<compile_context>
chip_gen: v6e
topology: v6e:2x2x1
jax: 0.10.0
libtpu: 0.0.40
codegen_flags: <defaults>
</compile_context>

<pallas_src>
import math

import jax
import jax.numpy as jnp
from jax.experimental import pallas as pl
from jax.experimental.pallas import tpu as pltpu  # noqa: F401  (kept for TPU-specific tuning hooks)

# ----------------------- small synthetic hyper-parameters -----------------------
B = 2                       # batch
IMG_C, IMG_H, IMG_W = 1, 16, 16
PATCH = 4
PATCH_DIM = IMG_C * PATCH * PATCH               # 16
N_PATCH = (IMG_H // PATCH) * (IMG_W // PATCH)   # 16 patches
N_IMG = N_PATCH + 1                             # + CLS -> 17 real image tokens
N_IMG_PAD = 24                                  # padded to a multiple of 8 (key-masked)
L_TXT = 8                   # text sequence length
VOCAB = 64
D = 32                      # hidden size (stands in for 768)
HEADS = 4
DH = D // HEADS
FF = 4 * D
PROJ = 16                   # vision_proj output dim (stands in for 512)
OUT_PAD = 128               # lane-dense padded output width for proj / itm head
QKV_PAD = 128               # lane-dense packed q|k|v slab width (3*D=96 padded to 128)

# attention sublayer indices inside the packed weight stacks
#   0: visual self   1: text self   2: fusion-t self   3: fusion-t cross
#   4: fusion-v self 5: fusion-v cross
N_ATTN = 6
# ffn sublayer indices: 0 visual, 1 text, 2 fusion-t, 3 fusion-v
N_FFN = 4


# ============================ the single fused kernel ============================
def fused_forward_kernel(patches_ref, tok_ref, tmask_ref, imask_ref,
                         patch_w_ref, vis_bias_ref, txt_ln_ref,
                         w_qkv_ref, b_qkv_ref, w_o_ref, b_o_ref,
                         w1_ref, w2_ref, b_ffn_ref,
                         vproj_w_ref, vproj_b_ref, itm_w_ref, itm_b_ref,
                         vl_out_ref, feat_out_ref):
    f32 = jnp.float32
    bf16 = jnp.bfloat16

    # Head-selection lane masks, hoisted once and reused by every attention sublayer.
    col = jax.lax.broadcasted_iota(jnp.int32, (1, D), 1)
    head_masks = [((col >= h * DH) & (col < (h + 1) * DH)).astype(f32)
                  for h in range(HEADS)]

    # Additive key masks, hoisted once.  (B, Lk) each.
    neg_t = (tmask_ref[...] - 1.0) * 1e9
    neg_i = (imask_ref[...] - 1.0) * 1e9

    def layer_norm(x, g, b):
        # TODO(synk): eps=1e-12 is the HF-BERT default; the actual config_bert eps is unknown.
        mu = jnp.mean(x, axis=-1, keepdims=True)
        var = jnp.mean((x - mu) * (x - mu), axis=-1, keepdims=True)
        return (x - mu) * jax.lax.rsqrt(var + 1e-12) * g + b

    def attn_block(x, kv, neg_mask, lq, lk, idx, self_attn):
        # BERT-style post-LN attention block; kv == x gives self-attention.
        # x: (B*lq, D) f32, kv: (B*lk, D) f32, neg_mask: (B, lk) f32.
        wqkv = w_qkv_ref[idx]                    # (D, QKV_PAD) bf16, q-cols pre-scaled
        bqkv = b_qkv_ref[idx]                    # (1, QKV_PAD) f32
        wo = w_o_ref[idx]                        # (D, D)       bf16
        bo_ln = b_o_ref[idx]                     # (4, D)       f32: bo, ln_g, ln_b, pad

        # Fused QKV projection (one lane-dense matmul; a second one for cross-attn kv).
        qkv_q = jnp.dot(x.astype(bf16), wqkv, preferred_element_type=f32) + bqkv
        q = qkv_q[:, 0:D]
        if self_attn:
            k = qkv_q[:, D:2 * D]
            v = qkv_q[:, 2 * D:3 * D]
        else:
            qkv_kv = jnp.dot(kv.astype(bf16), wqkv, preferred_element_type=f32) + bqkv
            k = qkv_kv[:, D:2 * D]
            v = qkv_kv[:, 2 * D:3 * D]

        ctx_rows = []
        for b in range(B):                       # per-batch: keys/masks differ per element
            qb = q[b * lq:(b + 1) * lq, :]
            kb = k[b * lk:(b + 1) * lk, :]
            vb = v[b * lk:(b + 1) * lk, :]
            # Stack masked per-head queries on the sublane axis -> one score matmul,
            # one softmax pass and one ctx matmul for all heads.
            q_stk = jnp.concatenate([qb * hm for hm in head_masks], axis=0)  # (H*lq, D)
            s = jax.lax.dot_general(q_stk.astype(bf16), kb.astype(bf16),
                                    (((1,), (1,)), ((), ())),
                                    preferred_element_type=f32)              # (H*lq, lk)
            s = s + neg_mask[b:b + 1, :]
            s = s - jnp.max(s, axis=-1, keepdims=True)
            pr = jnp.exp(s)
            pr = pr * pl.reciprocal(jnp.sum(pr, axis=-1, keepdims=True), approx=True)
            c_all = jnp.dot(pr.astype(bf16), vb.astype(bf16),
                            preferred_element_type=f32)                      # (H*lq, D)
            cb = c_all[0:lq, :] * head_masks[0]   # disjoint lane ranges -> sum == concat
            for h in range(1, HEADS):
                cb = cb + c_all[h * lq:(h + 1) * lq, :] * head_masks[h]
            ctx_rows.append(cb)
        ctx = jnp.concatenate(ctx_rows, axis=0)                              # (B*lq, D)

        out = jnp.dot(ctx.astype(bf16), wo, preferred_element_type=f32) + bo_ln[0:1]
        return layer_norm(x + out, bo_ln[1:2], bo_ln[2:3])   # fused residual + LN epilogue

    def ffn_block(x, idx):
        w1 = w1_ref[idx]                         # (D, FF) bf16
        w2 = w2_ref[idx]                         # (FF, D) bf16
        bff = b_ffn_ref[idx]                     # (4, FF) f32: b1, b2, ln_g, ln_b
        h = jnp.dot(x.astype(bf16), w1, preferred_element_type=f32) + bff[0:1]
        # TODO(synk): PyTorch nn.GELU defaults to exact erf-GELU; tanh approximation used here.
        h = jax.nn.gelu(h)
        o = jnp.dot(h.astype(bf16), w2, preferred_element_type=f32) + bff[1:2, :D]
        return layer_norm(x + o, bff[2:3, :D], bff[3:4, :D])

    # ---------------- visual encoder (ViT-ish, 1 layer), both batch elements stacked ----------------
    # patch rows of padded/CLS positions are zeros; vis_bias carries cls+pos / pos+patch_b (pre-tiled).
    x_img = jnp.dot(patches_ref[...].astype(bf16), patch_w_ref[...],
                    preferred_element_type=f32) + vis_bias_ref[...]          # (B*N_IMG_PAD, D)
    x_img = attn_block(x_img, x_img, neg_i, N_IMG_PAD, N_IMG_PAD, 0, True)
    x_img = ffn_block(x_img, 0)
    image_embeds = x_img

    # image_feat = F.normalize(vision_proj(cls))  (returned, unused downstream, as in source)
    img_cls = jnp.concatenate(
        [image_embeds[b * N_IMG_PAD:b * N_IMG_PAD + 1, :] for b in range(B)], axis=0)  # (B, D)
    feat = jnp.dot(img_cls.astype(bf16), vproj_w_ref[...],
                   preferred_element_type=f32) + vproj_b_ref[...]
    feat = feat * jax.lax.rsqrt(jnp.sum(feat * feat, axis=-1, keepdims=True) + 1e-12)
    feat_out_ref[...] = feat                                                  # (B, OUT_PAD)

    # ---------------- text encoder (1 layer) ----------------
    t = layer_norm(tok_ref[...], txt_ln_ref[0:1, :], txt_ln_ref[1:2, :])     # (B*L_TXT, D)
    t = attn_block(t, t, neg_t, L_TXT, L_TXT, 1, True)
    t = ffn_block(t, 1)
    text_embeds = t

    # ---------------- multimodel_tencoder: text attends to image ----------------
    ot = attn_block(text_embeds, text_embeds, neg_t, L_TXT, L_TXT, 2, True)
    ot = attn_block(ot, image_embeds, neg_i, L_TXT, N_IMG_PAD, 3, False)
    ot = ffn_block(ot, 2)

    # ---------------- multimodel_vencoder: image attends to text ----------------
    ov = attn_block(image_embeds, image_embeds, neg_i, N_IMG_PAD, N_IMG_PAD, 4, True)
    ov = attn_block(ov, text_embeds, neg_t, N_IMG_PAD, L_TXT, 5, False)
    ov = ffn_block(ov, 3)

    # ---------------- CLS product + itm head ----------------
    t_cls = jnp.concatenate([ot[b * L_TXT:b * L_TXT + 1, :] for b in range(B)], axis=0)
    v_cls = jnp.concatenate([ov[b * N_IMG_PAD:b * N_IMG_PAD + 1, :] for b in range(B)], axis=0)
    vl = t_cls * v_cls                                                        # (B, D)
    vl_out_ref[...] = jnp.dot(vl.astype(bf16), itm_w_ref[...],
                              preferred_element_type=f32) + itm_b_ref[...]    # (B, OUT_PAD)


# ============================ pallas_call wrapper ================================
def _fused_call(patches, tok, tmask, imask, vis_bias_b, p):
    f32 = jnp.float32
    # Single kernel invocation (no grid): everything fits VMEM comfortably on all
    # generations, both batch elements share every weight matmul along sublanes.
    # (v7x-only alternative: grid=(B,) with CORE_PARALLEL / pl.core_map to put one
    #  batch element on each TensorCore.)
    return pl.pallas_call(
        fused_forward_kernel,
        out_shape=(
            jax.ShapeDtypeStruct((B, OUT_PAD), f32),   # padded itm logits
            jax.ShapeDtypeStruct((B, OUT_PAD), f32),   # padded image_feat
        ),
    )(patches, tok, tmask, imask,
      p["patch_w"], vis_bias_b, p["txt_ln"],
      p["w_qkv"], p["b_qkv"], p["w_o"], p["b_o"],
      p["w1"], p["w2"], p["b_ffn"],
      p["vproj_w"], p["vproj_b"], p["itm_w"], p["itm_b"])


# ============================ parameter initialization ==========================
_key_state = [jax.random.PRNGKey(0)]


def _next_key():
    _key_state[0], sub = jax.random.split(_key_state[0])
    return sub


def _rand(shape, scale=0.02):
    return jax.random.normal(_next_key(), shape, jnp.float32) * scale


def init_params():
    f32 = jnp.float32
    bf16 = jnp.bfloat16
    scale = 1.0 / math.sqrt(DH)
    p = {}

    # visual encoder (ViT-ish): patch embedding + cls + pos, packed as a token bias slab
    p["patch_w"] = _rand((PATCH_DIM, D)).astype(bf16)
    vis_cls = _rand((1, D))
    vis_pos = _rand((N_IMG, D))
    patch_b = jnp.zeros((1, D), f32)
    p["vis_bias"] = jnp.concatenate(
        [vis_cls + vis_pos[0:1],                      # CLS row (patch input row is zero)
         vis_pos[1:] + patch_b,                       # patch rows
         jnp.zeros((N_IMG_PAD - N_IMG, D), f32)],     # padded (masked) rows
        axis=0)                                       # (N_IMG_PAD, D)

    # text embedding
    p["tok_emb"] = _rand((VOCAB, D))
    p["txt_pos"] = _rand((L_TXT, D))
    p["txt_ln"] = jnp.concatenate([jnp.ones((1, D), f32), jnp.zeros((1, D), f32)], axis=0)

    # packed attention sublayers: fused q|k|v slab (1/sqrt(dh) folded into wq/bq), bf16 weights
    w_qkv, b_qkv = [], []
    for _ in range(N_ATTN):
        wq, wk, wv = _rand((D, D)), _rand((D, D)), _rand((D, D))
        bq = jnp.zeros((D,), f32)
        bk = jnp.zeros((D,), f32)
        bv = jnp.zeros((D,), f32)
        slab = (jnp.zeros((D, QKV_PAD), f32)
                .at[:, 0:D].set(wq * scale)
                .at[:, D:2 * D].set(wk)
                .at[:, 2 * D:3 * D].set(wv))
        bias = (jnp.zeros((1, QKV_PAD), f32)
                .at[0, 0:D].set(bq * scale)
                .at[0, D:2 * D].set(bk)
                .at[0, 2 * D:3 * D].set(bv))
        w_qkv.append(slab)
        b_qkv.append(bias)
    p["w_qkv"] = jnp.stack(w_qkv).astype(bf16)         # (N_ATTN, D, QKV_PAD)
    p["b_qkv"] = jnp.stack(b_qkv)                      # (N_ATTN, 1, QKV_PAD) f32
    p["w_o"] = jnp.stack([_rand((D, D)) for _ in range(N_ATTN)]).astype(bf16)   # (N_ATTN, D, D)
    bo_ln = jnp.concatenate([jnp.zeros((1, D), f32),   # bo
                             jnp.ones((1, D), f32),    # ln_g
                             jnp.zeros((2, D), f32)],  # ln_b + pad
                            axis=0)
    p["b_o"] = jnp.stack([bo_ln] * N_ATTN)             # (N_ATTN, 4, D) f32

    # packed FFN sublayers (bf16 weights)
    p["w1"] = jnp.stack([_rand((D, FF)) for _ in range(N_FFN)]).astype(bf16)    # (N_FFN, D, FF)
    p["w2"] = jnp.stack([_rand((FF, D)) for _ in range(N_FFN)]).astype(bf16)    # (N_FFN, FF, D)
    bffn = jnp.zeros((4, FF), f32).at[2, :D].set(1.0)  # rows: b1, b2, ln_g, ln_b
    p["b_ffn"] = jnp.stack([bffn] * N_FFN)             # (N_FFN, 4, FF) f32

    # vision_proj (768->512 analog), lane-padded to 128
    p["vproj_w"] = jnp.zeros((D, OUT_PAD), f32).at[:, :PROJ].set(_rand((D, PROJ))).astype(bf16)
    p["vproj_b"] = jnp.zeros((1, OUT_PAD), f32)
    # itm head (D -> 2), lane-padded to 128
    p["itm_w"] = jnp.zeros((D, OUT_PAD), f32).at[:, :2].set(_rand((D, 2))).astype(bf16)
    p["itm_b"] = jnp.zeros((1, OUT_PAD), f32)
    return p


# ================================ forward pass ==================================
def vl_transformer_itm_forward(params, image, input_ids, attention_mask):
    f32 = jnp.float32
    # ---- layout plumbing outside the kernel: patchify NCHW, pad to N_IMG_PAD tokens ----
    x = image.reshape(B, IMG_C, IMG_H // PATCH, PATCH, IMG_W // PATCH, PATCH)
    x = x.transpose(0, 2, 4, 1, 3, 5).reshape(B, N_PATCH, PATCH_DIM)
    patches = jnp.zeros((B, N_IMG_PAD, PATCH_DIM), f32).at[:, 1:1 + N_PATCH, :].set(x)
    patches = patches.reshape(B * N_IMG_PAD, PATCH_DIM)

    # ---- token embedding gather + position add (gather has no clean in-kernel form) ----
    tok = jnp.take(params["tok_emb"], input_ids, axis=0) + params["txt_pos"][None]
    tok = tok.reshape(B * L_TXT, D)

    tmask = attention_mask.astype(f32)                                   # (B, L_TXT)
    imask = jnp.concatenate(
        [jnp.ones((B, N_IMG), f32),
         jnp.zeros((B, N_IMG_PAD - N_IMG), f32)], axis=-1)               # (B, N_IMG_PAD)

    vis_bias_b = jnp.tile(params["vis_bias"], (B, 1))                    # (B*N_IMG_PAD, D)

    vl_pad, feat_pad = _fused_call(patches, tok, tmask, imask, vis_bias_b, params)
    vl_output = vl_pad[:, :2]             # itm logits (B, 2)
    image_feat = feat_pad[:, :PROJ]       # normalized projected image CLS (B, PROJ)
    return vl_output, image_feat


# ==================================== main ======================================
if __name__ == "__main__":
    key = jax.random.PRNGKey(0)
    k_img, k_ids = jax.random.split(key)
    image = jax.random.normal(k_img, (B, IMG_C, IMG_H, IMG_W), jnp.float32)
    input_ids = jax.random.randint(k_ids, (B, L_TXT), 0, VOCAB)
    attention_mask = jnp.ones((B, L_TXT), jnp.int32)

    params = init_params()
    fwd = jax.jit(vl_transformer_itm_forward)
    vl_output, image_feat = fwd(params, image, input_ids, attention_mask)
    jax.block_until_ready((vl_output, image_feat))

    assert vl_output.shape == (B, 2)
    assert image_feat.shape == (B, PROJ)
    assert bool(jnp.all(jnp.isfinite(vl_output))) and bool(jnp.all(jnp.isfinite(image_feat)))
    print("KERNEL_OK")
</pallas_src>

<mosaic_0001>
module attributes {stable_mosaic.version = 11 : i64} {
  func.func @fused_forward_kernel(%arg0: memref<48x16xf32, #tpu.memory_space<vmem>>, %arg1: memref<16x32xf32, #tpu.memory_space<vmem>>, %arg2: memref<2x8xf32, #tpu.memory_space<vmem>>, %arg3: memref<2x24xf32, #tpu.memory_space<vmem>>, %arg4: memref<16x32xbf16, #tpu.memory_space<vmem>>, %arg5: memref<48x32xf32, #tpu.memory_space<vmem>>, %arg6: memref<2x32xf32, #tpu.memory_space<vmem>>, %arg7: memref<6x32x128xbf16, #tpu.memory_space<vmem>>, %arg8: memref<6x1x128xf32, #tpu.memory_space<vmem>>, %arg9: memref<6x32x32xbf16, #tpu.memory_space<vmem>>, %arg10: memref<6x4x32xf32, #tpu.memory_space<vmem>>, %arg11: memref<4x32x128xbf16, #tpu.memory_space<vmem>>, %arg12: memref<4x128x32xbf16, #tpu.memory_space<vmem>>, %arg13: memref<4x4x128xf32, #tpu.memory_space<vmem>>, %arg14: memref<32x128xbf16, #tpu.memory_space<vmem>>, %arg15: memref<1x128xf32, #tpu.memory_space<vmem>>, %arg16: memref<32x128xbf16, #tpu.memory_space<vmem>>, %arg17: memref<1x128xf32, #tpu.memory_space<vmem>>, %arg18: memref<2x128xf32, #tpu.memory_space<vmem>>, %arg19: memref<2x128xf32, #tpu.memory_space<vmem>>) attributes {dimension_semantics = [], scalar_prefetch = 0 : i64, scratch_operands = 0 : i64, tpu.core_type = #tpu.core_type<tc>} {
    %0 = tpu.iota {dimensions = array<i32: 1>} : vector<1x32xi32>
    %c0_i32 = arith.constant 0 : i32
    %1 = vector.broadcast %c0_i32 : i32 to vector<1x32xi32>
    %2 = arith.cmpi sge, %0, %1 : vector<1x32xi32>
    %c8_i32 = arith.constant 8 : i32
    %3 = vector.broadcast %c8_i32 : i32 to vector<1x32xi32>
    %4 = arith.cmpi slt, %0, %3 : vector<1x32xi32>
    %5 = arith.andi %2, %4 : vector<1x32xi1>
    %6 = arith.extui %5 : vector<1x32xi1> to vector<1x32xi32>
    %7 = arith.sitofp %6 : vector<1x32xi32> to vector<1x32xf32>
    %c8_i32_0 = arith.constant 8 : i32
    %8 = vector.broadcast %c8_i32_0 : i32 to vector<1x32xi32>
    %9 = arith.cmpi sge, %0, %8 : vector<1x32xi32>
    %c16_i32 = arith.constant 16 : i32
    %10 = vector.broadcast %c16_i32 : i32 to vector<1x32xi32>
    %11 = arith.cmpi slt, %0, %10 : vector<1x32xi32>
    %12 = arith.andi %9, %11 : vector<1x32xi1>
    %13 = arith.extui %12 : vector<1x32xi1> to vector<1x32xi32>
    %14 = arith.sitofp %13 : vector<1x32xi32> to vector<1x32xf32>
    %c16_i32_1 = arith.constant 16 : i32
    %15 = vector.broadcast %c16_i32_1 : i32 to vector<1x32xi32>
    %16 = arith.cmpi sge, %0, %15 : vector<1x32xi32>
    %c24_i32 = arith.constant 24 : i32
    %17 = vector.broadcast %c24_i32 : i32 to vector<1x32xi32>
    %18 = arith.cmpi slt, %0, %17 : vector<1x32xi32>
    %19 = arith.andi %16, %18 : vector<1x32xi1>
    %20 = arith.extui %19 : vector<1x32xi1> to vector<1x32xi32>
    %21 = arith.sitofp %20 : vector<1x32xi32> to vector<1x32xf32>
    %c24_i32_2 = arith.constant 24 : i32
    %22 = vector.broadcast %c24_i32_2 : i32 to vector<1x32xi32>
    %23 = arith.cmpi sge, %0, %22 : vector<1x32xi32>
    %c32_i32 = arith.constant 32 : i32
    %24 = vector.broadcast %c32_i32 : i32 to vector<1x32xi32>
    %25 = arith.cmpi slt, %0, %24 : vector<1x32xi32>
    %26 = arith.andi %23, %25 : vector<1x32xi1>
    %27 = arith.extui %26 : vector<1x32xi1> to vector<1x32xi32>
    %28 = arith.sitofp %27 : vector<1x32xi32> to vector<1x32xf32>
    %c0 = arith.constant 0 : index
    %c0_3 = arith.constant 0 : index
    %29 = vector.load %arg2[%c0, %c0_3] : memref<2x8xf32, #tpu.memory_space<vmem>>, vector<2x8xf32>
    %cst = arith.constant 1.000000e+00 : f32
    %30 = vector.broadcast %cst : f32 to vector<2x8xf32>
    %31 = arith.subf %29, %30 : vector<2x8xf32>
    %cst_4 = arith.constant 1.000000e+09 : f32
    %32 = vector.broadcast %cst_4 : f32 to vector<2x8xf32>
    %33 = arith.mulf %31, %32 : vector<2x8xf32>
    %c0_5 = arith.constant 0 : index
    %c0_6 = arith.constant 0 : index
    %34 = vector.load %arg3[%c0_5, %c0_6] : memref<2x24xf32, #tpu.memory_space<vmem>>, vector<2x24xf32>
    %cst_7 = arith.constant 1.000000e+00 : f32
    %35 = vector.broadcast %cst_7 : f32 to vector<2x24xf32>
    %36 = arith.subf %34, %35 : vector<2x24xf32>
    %cst_8 = arith.constant 1.000000e+09 : f32
    %37 = vector.broadcast %cst_8 : f32 to vector<2x24xf32>
    %38 = arith.mulf %36, %37 : vector<2x24xf32>
    %c0_9 = arith.constant 0 : index
    %c0_10 = arith.constant 0 : index
    %39 = vector.load %arg0[%c0_9, %c0_10] : memref<48x16xf32, #tpu.memory_space<vmem>>, vector<48x16xf32>
    %40 = arith.truncf %39 : vector<48x16xf32> to vector<48x16xbf16>
    %c0_11 = arith.constant 0 : index
    %c0_12 = arith.constant 0 : index
    %41 = vector.load %arg4[%c0_11, %c0_12] : memref<16x32xbf16, #tpu.memory_space<vmem>>, vector<16x32xbf16>
    %cst_13 = arith.constant dense<0.000000e+00> : vector<48x32xf32>
    %42 = tpu.matmul %40, %41, %cst_13 {dimension_numbers = #tpu.dot_dimension_numbers<[1], [0], [0], [1], [0, 0, 1, 1], [], []>} : vector<48x16xbf16>, vector<16x32xbf16>, vector<48x32xf32> -> vector<48x32xf32>
    %c0_14 = arith.constant 0 : index
    %c0_15 = arith.constant 0 : index
    %43 = vector.load %arg5[%c0_14, %c0_15] : memref<48x32xf32, #tpu.memory_space<vmem>>, vector<48x32xf32>
    %44 = arith.addf %42, %43 : vector<48x32xf32>
    %c0_16 = arith.constant 0 : index
    %c0_17 = arith.constant 0 : index
    %c0_18 = arith.constant 0 : index
    %45 = vector.load %arg7[%c0_16, %c0_17, %c0_18] : memref<6x32x128xbf16, #tpu.memory_space<vmem>>, vector<1x32x128xbf16>
    %46 = vector.shape_cast %45 : vector<1x32x128xbf16> to vector<32x128xbf16>
    %c0_19 = arith.constant 0 : index
    %c0_20 = arith.constant 0 : index
    %c0_21 = arith.constant 0 : index
    %47 = vector.load %arg8[%c0_19, %c0_20, %c0_21] : memref<6x1x128xf32, #tpu.memory_space<vmem>>, vector<1x1x128xf32>
    %48 = vector.shape_cast %47 : vector<1x1x128xf32> to vector<1x128xf32>
    %c0_22 = arith.constant 0 : index
    %c0_23 = arith.constant 0 : index
    %c0_24 = arith.constant 0 : index
    %49 = vector.load %arg9[%c0_22, %c0_23, %c0_24] : memref<6x32x32xbf16, #tpu.memory_space<vmem>>, vector<1x32x32xbf16>
    %50 = vector.shape_cast %49 : vector<1x32x32xbf16> to vector<32x32xbf16>
    %c0_25 = arith.constant 0 : index
    %c0_26 = arith.constant 0 : index
    %c0_27 = arith.constant 0 : index
    %51 = vector.load %arg10[%c0_25, %c0_26, %c0_27] : memref<6x4x32xf32, #tpu.memory_space<vmem>>, vector<1x4x32xf32>
    %52 = vector.shape_cast %51 : vector<1x4x32xf32> to vector<4x32xf32>
    %53 = arith.truncf %44 : vector<48x32xf32> to vector<48x32xbf16>
    %cst_28 = arith.constant dense<0.000000e+00> : vector<48x128xf32>
    %54 = tpu.matmul %53, %46, %cst_28 {dimension_numbers = #tpu.dot_dimension_numbers<[1], [0], [0], [1], [0, 0, 1, 1], [], []>} : vector<48x32xbf16>, vector<32x128xbf16>, vector<48x128xf32> -> vector<48x128xf32>
    %55 = vector.broadcast %48 : vector<1x128xf32> to vector<48x128xf32>
    %56 = arith.addf %54, %55 : vector<48x128xf32>
    %57 = vector.extract_strided_slice %56 {offsets = [0, 0], sizes = [48, 32], strides = [1, 1]} : vector<48x128xf32> to vector<48x32xf32>
    %58 = vector.extract_strided_slice %56 {offsets = [0, 32], sizes = [48, 32], strides = [1, 1]} : vector<48x128xf32> to vector<48x32xf32>
    %59 = vector.extract_strided_slice %56 {offsets = [0, 64], sizes = [48, 32], strides = [1, 1]} : vector<48x128xf32> to vector<48x32xf32>
    %60 = vector.extract_strided_slice %57 {offsets = [0, 0], sizes = [24, 32], strides = [1, 1]} : vector<48x32xf32> to vector<24x32xf32>
    %61 = vector.extract_strided_slice %58 {offsets = [0, 0], sizes = [24, 32], strides = [1, 1]} : vector<48x32xf32> to vector<24x32xf32>
    %62 = vector.extract_strided_slice %59 {offsets = [0, 0], sizes = [24, 32], strides = [1, 1]} : vector<48x32xf32> to vector<24x32xf32>
    %63 = vector.broadcast %7 : vector<1x32xf32> to vector<24x32xf32>
    %64 = arith.mulf %60, %63 : vector<24x32xf32>
    %65 = vector.broadcast %14 : vector<1x32xf32> to vector<24x32xf32>
    %66 = arith.mulf %60, %65 : vector<24x32xf32>
    %67 = vector.broadcast %21 : vector<1x32xf32> to vector<24x32xf32>
    %68 = arith.mulf %60, %67 : vector<24x32xf32>
    %69 = vector.broadcast %28 : vector<1x32xf32> to vector<24x32xf32>
    %70 = arith.mulf %60, %69 : vector<24x32xf32>
    %71 = tpu.concatenate %64, %66, %68, %70 in 0 : vector<24x32xf32>, vector<24x32xf32>, vector<24x32xf32>, vector<24x32xf32> -> vector<96x32xf32>
    %72 = arith.truncf %71 : vector<96x32xf32> to vector<96x32xbf16>
    %73 = arith.truncf %61 : vector<24x32xf32> to vector<24x32xbf16>
    %cst_29 = arith.constant dense<0.000000e+00> : vector<96x24xf32>
    %74 = tpu.matmul %72, %73, %cst_29 {dimension_numbers = #tpu.dot_dimension_numbers<[1], [1], [0], [0], [0, 0, 1, 0], [], []>} : vector<96x32xbf16>, vector<24x32xbf16>, vector<96x24xf32> -> vector<96x24xf32>
    %75 = vector.extract_strided_slice %38 {offsets = [0, 0], sizes = [1, 24], strides = [1, 1]} : vector<2x24xf32> to vector<1x24xf32>
    %76 = vector.broadcast %75 : vector<1x24xf32> to vector<96x24xf32>
    %77 = arith.addf %74, %76 : vector<96x24xf32>
    %cst_30 = arith.constant dense<0xFF800000> : vector<96xf32>
    %78 = vector.multi_reduction <maximumf>, %77, %cst_30 [1] : vector<96x24xf32> to vector<96xf32>
    %79 = vector.shape_cast %78 : vector<96xf32> to vector<96x1xf32>
    %80 = vector.broadcast %79 : vector<96x1xf32> to vector<96x24xf32>
    %81 = arith.subf %77, %80 : vector<96x24xf32>
    %82 = math.exp %81 : vector<96x24xf32>
    %cst_31 = arith.constant dense<0.000000e+00> : vector<96xf32>
    %83 = vector.multi_reduction <add>, %82, %cst_31 [1] : vector<96x24xf32> to vector<96xf32>
    %84 = vector.shape_cast %83 : vector<96xf32> to vector<96x1xf32>
    %85 = tpu.reciprocal %84 {approx = true} : vector<96x1xf32> -> vector<96x1xf32>
    %86 = vector.broadcast %85 : vector<96x1xf32> to vector<96x24xf32>
    %87 = arith.mulf %82, %86 : vector<96x24xf32>
    %88 = arith.truncf %87 : vector<96x24xf32> to vector<96x24xbf16>
    %89 = arith.truncf %62 : vector<24x32xf32> to vector<24x32xbf16>
    %cst_32 = arith.constant dense<0.000000e+00> : vector<96x32xf32>
    %90 = tpu.matmul %88, %89, %cst_32 {dimension_numbers = #tpu.dot_dimension_numbers<[1], [0], [0], [1], [0, 0, 1, 1], [], []>} : vector<96x24xbf16>, vector<24x32xbf16>, vector<96x32xf32> -> vector<96x32xf32>
    %91 = vector.extract_strided_slice %90 {offsets = [0, 0], sizes = [24, 32], strides = [1, 1]} : vector<96x32xf32> to vector<24x32xf32>
    %92 = vector.broadcast %7 : vector<1x32xf32> to vector<24x32xf32>
    %93 = arith.mulf %91, %92 : vector<24x32xf32>
    %94 = vector.extract_strided_slice %90 {offsets = [24, 0], sizes = [24, 32], strides = [1, 1]} : vector<96x32xf32> to vector<24x32xf32>
    %95 = vector.broadcast %14 : vector<1x32xf32> to vector<24x32xf32>
    %96 = arith.mulf %94, %95 : vector<24x32xf32>
    %97 = arith.addf %93, %96 : vector<24x32xf32>
    %98 = vector.extract_strided_slice %90 {offsets = [48, 0], sizes = [24, 32], strides = [1, 1]} : vector<96x32xf32> to vector<24x32xf32>
    %99 = vector.broadcast %21 : vector<1x32xf32> to vector<24x32xf32>
    %100 = arith.mulf %98, %99 : vector<24x32xf32>
    %101 = arith.addf %97, %100 : vector<24x32xf32>
    %102 = vector.extract_strided_slice %90 {offsets = [72, 0], sizes = [24, 32], strides = [1, 1]} : vector<96x32xf32> to vector<24x32xf32>
    %103 = vector.broadcast %28 : vector<1x32xf32> to vector<24x32xf32>
    %104 = arith.mulf %102, %103 : vector<24x32xf32>
    %105 = arith.addf %101, %104 : vector<24x32xf32>
    %106 = vector.extract_strided_slice %57 {offsets = [24, 0], sizes = [24, 32], strides = [1, 1]} : vector<48x32xf32> to vector<24x32xf32>
    %107 = vector.extract_strided_slice %58 {offsets = [24, 0], sizes = [24, 32], strides = [1, 1]} : vector<48x32xf32> to vector<24x32xf32>
    %108 = vector.extract_strided_slice %59 {offsets = [24, 0], sizes = [24, 32], strides = [1, 1]} : vector<48x32xf32> to vector<24x32xf32>
    %109 = vector.broadcast %7 : vector<1x32xf32> to vector<24x32xf32>
    %110 = arith.mulf %106, %109 : vector<24x32xf32>
    %111 = vector.broadcast %14 : vector<1x32xf32> to vector<24x32xf32>
    %112 = arith.mulf %106, %111 : vector<24x32xf32>
    %113 = vector.broadcast %21 : vector<1x32xf32> to vector<24x32xf32>
    %114 = arith.mulf %106, %113 : vector<24x32xf32>
    %115 = vector.broadcast %28 : vector<1x32xf32> to vector<24x32xf32>
    %116 = arith.mulf %106, %115 : vector<24x32xf32>
    %117 = tpu.concatenate %110, %112, %114, %116 in 0 : vector<24x32xf32>, vector<24x32xf32>, vector<24x32xf32>, vector<24x32xf32> -> vector<96x32xf32>
    %118 = arith.truncf %117 : vector<96x32xf32> to vector<96x32xbf16>
    %119 = arith.truncf %107 : vector<24x32xf32> to vector<24x32xbf16>
    %cst_33 = arith.constant dense<0.000000e+00> : vector<96x24xf32>
    %120 = tpu.matmul %118, %119, %cst_33 {dimension_numbers = #tpu.dot_dimension_numbers<[1], [1], [0], [0], [0, 0, 1, 0], [], []>} : vector<96x32xbf16>, vector<24x32xbf16>, vector<96x24xf32> -> vector<96x24xf32>
    %121 = vector.extract_strided_slice %38 {offsets = [1, 0], sizes = [1, 24], strides = [1, 1]} : vector<2x24xf32> to vector<1x24xf32>
    %122 = vector.broadcast %121 : vector<1x24xf32> to vector<96x24xf32>
    %123 = arith.addf %120, %122 : vector<96x24xf32>
    %cst_34 = arith.constant dense<0xFF800000> : vector<96xf32>
    %124 = vector.multi_reduction <maximumf>, %123, %cst_34 [1] : vector<96x24xf32> to vector<96xf32>
    %125 = vector.shape_cast %124 : vector<96xf32> to vector<96x1xf32>
    %126 = vector.broadcast %125 : vector<96x1xf32> to vector<96x24xf32>
    %127 = arith.subf %123, %126 : vector<96x24xf32>
    %128 = math.exp %127 : vector<96x24xf32>
    %cst_35 = arith.constant dense<0.000000e+00> : vector<96xf32>
    %129 = vector.multi_reduction <add>, %128, %cst_35 [1] : vector<96x24xf32> to vector<96xf32>
    %130 = vector.shape_cast %129 : vector<96xf32> to vector<96x1xf32>
    %131 = tpu.reciprocal %130 {approx = true} : vector<96x1xf32> -> vector<96x1xf32>
    %132 = vector.broadcast %131 : vector<96x1xf32> to vector<96x24xf32>
    %133 = arith.mulf %128, %132 : vector<96x24xf32>
    %134 = arith.truncf %133 : vector<96x24xf32> to vector<96x24xbf16>
    %135 = arith.truncf %108 : vector<24x32xf32> to vector<24x32xbf16>
    %cst_36 = arith.constant dense<0.000000e+00> : vector<96x32xf32>
    %136 = tpu.matmul %134, %135, %cst_36 {dimension_numbers = #tpu.dot_dimension_numbers<[1], [0], [0], [1], [0, 0, 1, 1], [], []>} : vector<96x24xbf16>, vector<24x32xbf16>, vector<96x32xf32> -> vector<96x32xf32>
    %137 = vector.extract_strided_slice %136 {offsets = [0, 0], sizes = [24, 32], strides = [1, 1]} : vector<96x32xf32> to vector<24x32xf32>
    %138 = vector.broadcast %7 : vector<1x32xf32> to vector<24x32xf32>
    %139 = arith.mulf %137, %138 : vector<24x32xf32>
    %140 = vector.extract_strided_slice %136 {offsets = [24, 0], sizes = [24, 32], strides = [1, 1]} : vector<96x32xf32> to vector<24x32xf32>
    %141 = vector.broadcast %14 : vector<1x32xf32> to vector<24x32xf32>
    %142 = arith.mulf %140, %141 : vector<24x32xf32>
    %143 = arith.addf %139, %142 : vector<24x32xf32>
    %144 = vector.extract_strided_slice %136 {offsets = [48, 0], sizes = [24, 32], strides = [1, 1]} : vector<96x32xf32> to vector<24x32xf32>
    %145 = vector.broadcast %21 : vector<1x32xf32> to vector<24x32xf32>
    %146 = arith.mulf %144, %145 : vector<24x32xf32>
    %147 = arith.addf %143, %146 : vector<24x32xf32>
    %148 = vector.extract_strided_slice %136 {offsets = [72, 0], sizes = [24, 32], strides = [1, 1]} : vector<96x32xf32> to vector<24x32xf32>
    %149 = vector.broadcast %28 : vector<1x32xf32> to vector<24x32xf32>
    %150 = arith.mulf %148, %149 : vector<24x32xf32>
    %151 = arith.addf %147, %150 : vector<24x32xf32>
    %152 = tpu.concatenate %105, %151 in 0 : vector<24x32xf32>, vector<24x32xf32> -> vector<48x32xf32>
    %153 = arith.truncf %152 : vector<48x32xf32> to vector<48x32xbf16>
    %cst_37 = arith.constant dense<0.000000e+00> : vector<48x32xf32>
    %154 = tpu.matmul %153, %50, %cst_37 {dimension_numbers = #tpu.dot_dimension_numbers<[1], [0], [0], [1], [0, 0, 1, 1], [], []>} : vector<48x32xbf16>, vector<32x32xbf16>, vector<48x32xf32> -> vector<48x32xf32>
    %155 = vector.extract_strided_slice %52 {offsets = [0, 0], sizes = [1, 32], strides = [1, 1]} : vector<4x32xf32> to vector<1x32xf32>
    %156 = vector.broadcast %155 : vector<1x32xf32> to vector<48x32xf32>
    %157 = arith.addf %154, %156 : vector<48x32xf32>
    %158 = arith.addf %44, %157 : vector<48x32xf32>
    %159 = vector.extract_strided_slice %52 {offsets = [1, 0], sizes = [1, 32], strides = [1, 1]} : vector<4x32xf32> to vector<1x32xf32>
    %160 = vector.extract_strided_slice %52 {offsets = [2, 0], sizes = [1, 32], strides = [1, 1]} : vector<4x32xf32> to vector<1x32xf32>
    %cst_38 = arith.constant dense<0.000000e+00> : vector<48xf32>
    %161 = vector.multi_reduction <add>, %158, %cst_38 [1] : vector<48x32xf32> to vector<48xf32>
    %162 = vector.shape_cast %161 : vector<48xf32> to vector<48x1xf32>
    %cst_39 = arith.constant 3.200000e+01 : f32
    %163 = vector.broadcast %cst_39 : f32 to vector<48x1xf32>
    %164 = arith.divf %162, %163 : vector<48x1xf32>
    %165 = vector.broadcast %164 : vector<48x1xf32> to vector<48x32xf32>
    %166 = arith.subf %158, %165 : vector<48x32xf32>
    %167 = vector.broadcast %164 : vector<48x1xf32> to vector<48x32xf32>
    %168 = arith.subf %158, %167 : vector<48x32xf32>
    %169 = arith.mulf %166, %168 : vector<48x32xf32>
    %cst_40 = arith.constant dense<0.000000e+00> : vector<48xf32>
    %170 = vector.multi_reduction <add>, %169, %cst_40 [1] : vector<48x32xf32> to vector<48xf32>
    %171 = vector.shape_cast %170 : vector<48xf32> to vector<48x1xf32>
    %cst_41 = arith.constant 3.200000e+01 : f32
    %172 = vector.broadcast %cst_41 : f32 to vector<48x1xf32>
    %173 = arith.divf %171, %172 : vector<48x1xf32>
    %174 = vector.broadcast %164 : vector<48x1xf32> to vector<48x32xf32>
    %175 = arith.subf %158, %174 : vector<48x32xf32>
    %cst_42 = arith.constant 9.99999996E-13 : f32
    %176 = vector.broadcast %cst_42 : f32 to vector<48x1xf32>
    %177 = arith.addf %173, %176 : vector<48x1xf32>
    %178 = math.rsqrt %177 : vector<48x1xf32>
    %179 = vector.broadcast %178 : vector<48x1xf32> to vector<48x32xf32>
    %180 = arith.mulf %175, %179 : vector<48x32xf32>
    %181 = vector.broadcast %159 : vector<1x32xf32> to vector<48x32xf32>
    %182 = arith.mulf %180, %181 : vector<48x32xf32>
    %183 = vector.broadcast %160 : vector<1x32xf32> to vector<48x32xf32>
    %184 = arith.addf %182, %183 : vector<48x32xf32>
    %c0_43 = arith.constant 0 : index
    %c0_44 = arith.constant 0 : index
    %c0_45 = arith.constant 0 : index
    %185 = vector.load %arg11[%c0_43, %c0_44, %c0_45] : memref<4x32x128xbf16, #tpu.memory_space<vmem>>, vector<1x32x128xbf16>
    %186 = vector.shape_cast %185 : vector<1x32x128xbf16> to vector<32x128xbf16>
    %c0_46 = arith.constant 0 : index
    %c0_47 = arith.constant 0 : index
    %c0_48 = arith.constant 0 : index
    %187 = vector.load %arg12[%c0_46, %c0_47, %c0_48] : memref<4x128x32xbf16, #tpu.memory_space<vmem>>, vector<1x128x32xbf16>
    %188 = vector.shape_cast %187 : vector<1x128x32xbf16> to vector<128x32xbf16>
    %c0_49 = arith.constant 0 : index
    %c0_50 = arith.constant 0 : index
    %c0_51 = arith.constant 0 : index
    %189 = vector.load %arg13[%c0_49, %c0_50, %c0_51] : memref<4x4x128xf32, #tpu.memory_space<vmem>>, vector<1x4x128xf32>
    %190 = vector.shape_cast %189 : vector<1x4x128xf32> to vector<4x128xf32>
    %191 = arith.truncf %184 : vector<48x32xf32> to vector<48x32xbf16>
    %cst_52 = arith.constant dense<0.000000e+00> : vector<48x128xf32>
    %192 = tpu.matmul %191, %186, %cst_52 {dimension_numbers = #tpu.dot_dimension_numbers<[1], [0], [0], [1], [0, 0, 1, 1], [], []>} : vector<48x32xbf16>, vector<32x128xbf16>, vector<48x128xf32> -> vector<48x128xf32>
    %193 = vector.extract_strided_slice %190 {offsets = [0, 0], sizes = [1, 128], strides = [1, 1]} : vector<4x128xf32> to vector<1x128xf32>
    %194 = vector.broadcast %193 : vector<1x128xf32> to vector<48x128xf32>
    %195 = arith.addf %192, %194 : vector<48x128xf32>
    %196 = arith.mulf %195, %195 : vector<48x128xf32>
    %197 = arith.mulf %195, %196 : vector<48x128xf32>
    %cst_53 = arith.constant 4.471500e-02 : f32
    %198 = vector.broadcast %cst_53 : f32 to vector<48x128xf32>
    %199 = arith.mulf %198, %197 : vector<48x128xf32>
    %200 = arith.addf %195, %199 : vector<48x128xf32>
    %cst_54 = arith.constant 0.797884583 : f32
    %201 = vector.broadcast %cst_54 : f32 to vector<48x128xf32>
    %202 = arith.mulf %201, %200 : vector<48x128xf32>
    %203 = math.tanh %202 : vector<48x128xf32>
    %cst_55 = arith.constant 1.000000e+00 : f32
    %204 = vector.broadcast %cst_55 : f32 to vector<48x128xf32>
    %205 = arith.addf %204, %203 : vector<48x128xf32>
    %cst_56 = arith.constant 5.000000e-01 : f32
    %206 = vector.broadcast %cst_56 : f32 to vector<48x128xf32>
    %207 = arith.mulf %206, %205 : vector<48x128xf32>
    %208 = arith.mulf %195, %207 : vector<48x128xf32>
    %209 = arith.truncf %208 : vector<48x128xf32> to vector<48x128xbf16>
    %cst_57 = arith.constant dense<0.000000e+00> : vector<48x32xf32>
    %210 = tpu.matmul %209, %188, %cst_57 {dimension_numbers = #tpu.dot_dimension_numbers<[1], [0], [0], [1], [0, 0, 1, 1], [], []>} : vector<48x128xbf16>, vector<128x32xbf16>, vector<48x32xf32> -> vector<48x32xf32>
    %211 = vector.extract_strided_slice %190 {offsets = [1, 0], sizes = [1, 32], strides = [1, 1]} : vector<4x128xf32> to vector<1x32xf32>
    %212 = vector.broadcast %211 : vector<1x32xf32> to vector<48x32xf32>
    %213 = arith.addf %210, %212 : vector<48x32xf32>
    %214 = arith.addf %184, %213 : vector<48x32xf32>
    %215 = vector.extract_strided_slice %190 {offsets = [2, 0], sizes = [1, 32], strides = [1, 1]} : vector<4x128xf32> to vector<1x32xf32>
    %216 = vector.extract_strided_slice %190 {offsets = [3, 0], sizes = [1, 32], strides = [1, 1]} : vector<4x128xf32> to vector<1x32xf32>
    %cst_58 = arith.constant dense<0.000000e+00> : vector<48xf32>
    %217 = vector.multi_reduction <add>, %214, %cst_58 [1] : vector<48x32xf32> to vector<48xf32>
    %218 = vector.shape_cast %217 : vector<48xf32> to vector<48x1xf32>
    %cst_59 = arith.constant 3.200000e+01 : f32
    %219 = vector.broadcast %cst_59 : f32 to vector<48x1xf32>
    %220 = arith.divf %218, %219 : vector<48x1xf32>
    %221 = vector.broadcast %220 : vector<48x1xf32> to vector<48x32xf32>
    %222 = arith.subf %214, %221 : vector<48x32xf32>
    %223 = vector.broadcast %220 : vector<48x1xf32> to vector<48x32xf32>
    %224 = arith.subf %214, %223 : vector<48x32xf32>
    %225 = arith.mulf %222, %224 : vector<48x32xf32>
    %cst_60 = arith.constant dense<0.000000e+00> : vector<48xf32>
    %226 = vector.multi_reduction <add>, %225, %cst_60 [1] : vector<48x32xf32> to vector<48xf32>
    %227 = vector.shape_cast %226 : vector<48xf32> to vector<48x1xf32>
    %cst_61 = arith.constant 3.200000e+01 : f32
    %228 = vector.broadcast %cst_61 : f32 to vector<48x1xf32>
    %229 = arith.divf %227, %228 : vector<48x1xf32>
    %230 = vector.broadcast %220 : vector<48x1xf32> to vector<48x32xf32>
    %231 = arith.subf %214, %230 : vector<48x32xf32>
    %cst_62 = arith.constant 9.99999996E-13 : f32
    %232 = vector.broadcast %cst_62 : f32 to vector<48x1xf32>
    %233 = arith.addf %229, %232 : vector<48x1xf32>
    %234 = math.rsqrt %233 : vector<48x1xf32>
    %235 = vector.broadcast %234 : vector<48x1xf32> to vector<48x32xf32>
    %236 = arith.mulf %231, %235 : vector<48x32xf32>
    %237 = vector.broadcast %215 : vector<1x32xf32> to vector<48x32xf32>
    %238 = arith.mulf %236, %237 : vector<48x32xf32>
    %239 = vector.broadcast %216 : vector<1x32xf32> to vector<48x32xf32>
    %240 = arith.addf %238, %239 : vector<48x32xf32>
    %241 = vector.extract_strided_slice %240 {offsets = [0, 0], sizes = [1, 32], strides = [1, 1]} : vector<48x32xf32> to vector<1x32xf32>
    %242 = vector.extract_strided_slice %240 {offsets = [24, 0], sizes = [1, 32], strides = [1, 1]} : vector<48x32xf32> to vector<1x32xf32>
    %243 = tpu.concatenate %241, %242 in 0 : vector<1x32xf32>, vector<1x32xf32> -> vector<2x32xf32>
    %244 = arith.truncf %243 : vector<2x32xf32> to vector<2x32xbf16>
    %c0_63 = arith.constant 0 : index
    %c0_64 = arith.constant 0 : index
    %245 = vector.load %arg14[%c0_63, %c0_64] : memref<32x128xbf16, #tpu.memory_space<vmem>>, vector<32x128xbf16>
    %cst_65 = arith.constant dense<0.000000e+00> : vector<2x128xf32>
    %246 = tpu.matmul %244, %245, %cst_65 {dimension_numbers = #tpu.dot_dimension_numbers<[1], [0], [0], [1], [0, 0, 1, 1], [], []>} : vector<2x32xbf16>, vector<32x128xbf16>, vector<2x128xf32> -> vector<2x128xf32>
    %c0_66 = arith.constant 0 : index
    %c0_67 = arith.constant 0 : index
    %247 = vector.load %arg15[%c0_66, %c0_67] : memref<1x128xf32, #tpu.memory_space<vmem>>, vector<1x128xf32>
    %248 = vector.broadcast %247 : vector<1x128xf32> to vector<2x128xf32>
    %249 = arith.addf %246, %248 : vector<2x128xf32>
    %250 = arith.mulf %249, %249 : vector<2x128xf32>
    %cst_68 = arith.constant dense<0.000000e+00> : vector<2xf32>
    %251 = vector.multi_reduction <add>, %250, %cst_68 [1] : vector<2x128xf32> to vector<2xf32>
    %252 = vector.shape_cast %251 : vector<2xf32> to vector<2x1xf32>
    %cst_69 = arith.constant 9.99999996E-13 : f32
    %253 = vector.broadcast %cst_69 : f32 to vector<2x1xf32>
    %254 = arith.addf %252, %253 : vector<2x1xf32>
    %255 = math.rsqrt %254 : vector<2x1xf32>
    %256 = vector.broadcast %255 : vector<2x1xf32> to vector<2x128xf32>
    %257 = arith.mulf %249, %256 : vector<2x128xf32>
    %c0_70 = arith.constant 0 : index
    %c0_71 = arith.constant 0 : index
    %258 = vector.load %arg19[%c0_70, %c0_71] : memref<2x128xf32, #tpu.memory_space<vmem>>, vector<2x128xf32>
    tpu.vector_store %arg19[%c0_70, %c0_71], %257 {strides = array<i32>} : memref<2x128xf32, #tpu.memory_space<vmem>>, vector<2x128xf32>,
    %c0_72 = arith.constant 0 : index
    %c0_73 = arith.constant 0 : index
    %259 = vector.load %arg1[%c0_72, %c0_73] : memref<16x32xf32, #tpu.memory_space<vmem>>, vector<16x32xf32>
    %c0_74 = arith.constant 0 : index
    %c0_75 = arith.constant 0 : index
    %260 = vector.load %arg6[%c0_74, %c0_75] : memref<2x32xf32, #tpu.memory_space<vmem>>, vector<1x32xf32>
    %c1 = arith.constant 1 : index
    %c0_76 = arith.constant 0 : index
    %261 = vector.load %arg6[%c1, %c0_76] : memref<2x32xf32, #tpu.memory_space<vmem>>, vector<1x32xf32>
    %cst_77 = arith.constant dense<0.000000e+00> : vector<16xf32>
    %262 = vector.multi_reduction <add>, %259, %cst_77 [1] : vector<16x32xf32> to vector<16xf32>
    %263 = vector.shape_cast %262 : vector<16xf32> to vector<16x1xf32>
    %cst_78 = arith.constant 3.200000e+01 : f32
    %264 = vector.broadcast %cst_78 : f32 to vector<16x1xf32>
    %265 = arith.divf %263, %264 : vector<16x1xf32>
    %266 = vector.broadcast %265 : vector<16x1xf32> to vector<16x32xf32>
    %267 = arith.subf %259, %266 : vector<16x32xf32>
    %268 = vector.broadcast %265 : vector<16x1xf32> to vector<16x32xf32>
    %269 = arith.subf %259, %268 : vector<16x32xf32>
    %270 = arith.mulf %267, %269 : vector<16x32xf32>
    %cst_79 = arith.constant dense<0.000000e+00> : vector<16xf32>
    %271 = vector.multi_reduction <add>, %270, %cst_79 [1] : vector<16x32xf32> to vector<16xf32>
    %272 = vector.shape_cast %271 : vector<16xf32> to vector<16x1xf32>
    %cst_80 = arith.constant 3.200000e+01 : f32
    %273 = vector.broadcast %cst_80 : f32 to vector<16x1xf32>
    %274 = arith.divf %272, %273 : vector<16x1xf32>
    %275 = vector.broadcast %265 : vector<16x1xf32> to vector<16x32xf32>
    %276 = arith.subf %259, %275 : vector<16x32xf32>
    %cst_81 = arith.constant 9.99999996E-13 : f32
    %277 = vector.broadcast %cst_81 : f32 to vector<16x1xf32>
    %278 = arith.addf %274, %277 : vector<16x1xf32>
    %279 = math.rsqrt %278 : vector<16x1xf32>
    %280 = vector.broadcast %279 : vector<16x1xf32> to vector<16x32xf32>
    %281 = arith.mulf %276, %280 : vector<16x32xf32>
    %282 = vector.broadcast %260 : vector<1x32xf32> to vector<16x32xf32>
    %283 = arith.mulf %281, %282 : vector<16x32xf32>
    %284 = vector.broadcast %261 : vector<1x32xf32> to vector<16x32xf32>
    %285 = arith.addf %283, %284 : vector<16x32xf32>
    %c1_82 = arith.constant 1 : index
    %c0_83 = arith.constant 0 : index
    %c0_84 = arith.constant 0 : index
    %286 = vector.load %arg7[%c1_82, %c0_83, %c0_84] : memref<6x32x128xbf16, #tpu.memory_space<vmem>>, vector<1x32x128xbf16>
    %287 = vector.shape_cast %286 : vector<1x32x128xbf16> to vector<32x128xbf16>
    %c1_85 = arith.constant 1 : index
    %c0_86 = arith.constant 0 : index
    %c0_87 = arith.constant 0 : index
    %288 = vector.load %arg8[%c1_85, %c0_86, %c0_87] : memref<6x1x128xf32, #tpu.memory_space<vmem>>, vector<1x1x128xf32>
    %289 = vector.shape_cast %288 : vector<1x1x128xf32> to vector<1x128xf32>
    %c1_88 = arith.constant 1 : index
    %c0_89 = arith.constant 0 : index
    %c0_90 = arith.constant 0 : index
    %290 = vector.load %arg9[%c1_88, %c0_89, %c0_90] : memref<6x32x32xbf16, #tpu.memory_space<vmem>>, vector<1x32x32xbf16>
    %291 = vector.shape_cast %290 : vector<1x32x32xbf16> to vector<32x32xbf16>
    %c1_91 = arith.constant 1 : index
    %c0_92 = arith.constant 0 : index
    %c0_93 = arith.constant 0 : index
    %292 = vector.load %arg10[%c1_91, %c0_92, %c0_93] : memref<6x4x32xf32, #tpu.memory_space<vmem>>, vector<1x4x32xf32>
    %293 = vector.shape_cast %292 : vector<1x4x32xf32> to vector<4x32xf32>
    %294 = arith.truncf %285 : vector<16x32xf32> to vector<16x32xbf16>
    %cst_94 = arith.constant dense<0.000000e+00> : vector<16x128xf32>
    %295 = tpu.matmul %294, %287, %cst_94 {dimension_numbers = #tpu.dot_dimension_numbers<[1], [0], [0], [1], [0, 0, 1, 1], [], []>} : vector<16x32xbf16>, vector<32x128xbf16>, vector<16x128xf32> -> vector<16x128xf32>
    %296 = vector.broadcast %289 : vector<1x128xf32> to vector<16x128xf32>
    %297 = arith.addf %295, %296 : vector<16x128xf32>
    %298 = vector.extract_strided_slice %297 {offsets = [0, 0], sizes = [16, 32], strides = [1, 1]} : vector<16x128xf32> to vector<16x32xf32>
    %299 = vector.extract_strided_slice %297 {offsets = [0, 32], sizes = [16, 32], strides = [1, 1]} : vector<16x128xf32> to vector<16x32xf32>
    %300 = vector.extract_strided_slice %297 {offsets = [0, 64], sizes = [16, 32], strides = [1, 1]} : vector<16x128xf32> to vector<16x32xf32>
    %301 = vector.extract_strided_slice %298 {offsets = [0, 0], sizes = [8, 32], strides = [1, 1]} : vector<16x32xf32> to vector<8x32xf32>
    %302 = vector.extract_strided_slice %299 {offsets = [0, 0], sizes = [8, 32], strides = [1, 1]} : vector<16x32xf32> to vector<8x32xf32>
    %303 = vector.extract_strided_slice %300 {offsets = [0, 0], sizes = [8, 32], strides = [1, 1]} : vector<16x32xf32> to vector<8x32xf32>
    %304 = vector.broadcast %7 : vector<1x32xf32> to vector<8x32xf32>
    %305 = arith.mulf %301, %304 : vector<8x32xf32>
    %306 = vector.broadcast %14 : vector<1x32xf32> to vector<8x32xf32>
    %307 = arith.mulf %301, %306 : vector<8x32xf32>
    %308 = vector.broadcast %21 : vector<1x32xf32> to vector<8x32xf32>
    %309 = arith.mulf %301, %308 : vector<8x32xf32>
    %310 = vector.broadcast %28 : vector<1x32xf32> to vector<8x32xf32>
    %311 = arith.mulf %301, %310 : vector<8x32xf32>
    %312 = tpu.concatenate %305, %307, %309, %311 in 0 : vector<8x32xf32>, vector<8x32xf32>, vector<8x32xf32>, vector<8x32xf32> -> vector<32x32xf32>
    %313 = arith.truncf %312 : vector<32x32xf32> to vector<32x32xbf16>
    %314 = arith.truncf %302 : vector<8x32xf32> to vector<8x32xbf16>
    %cst_95 = arith.constant dense<0.000000e+00> : vector<32x8xf32>
    %315 = tpu.matmul %313, %314, %cst_95 {dimension_numbers = #tpu.dot_dimension_numbers<[1], [1], [0], [0], [0, 0, 1, 0], [], []>} : vector<32x32xbf16>, vector<8x32xbf16>, vector<32x8xf32> -> vector<32x8xf32>
    %316 = vector.extract_strided_slice %33 {offsets = [0, 0], sizes = [1, 8], strides = [1, 1]} : vector<2x8xf32> to vector<1x8xf32>
    %317 = vector.broadcast %316 : vector<1x8xf32> to vector<32x8xf32>
    %318 = arith.addf %315, %317 : vector<32x8xf32>
    %cst_96 = arith.constant dense<0xFF800000> : vector<32xf32>
    %319 = vector.multi_reduction <maximumf>, %318, %cst_96 [1] : vector<32x8xf32> to vector<32xf32>
    %320 = vector.shape_cast %319 : vector<32xf32> to vector<32x1xf32>
    %321 = vector.broadcast %320 : vector<32x1xf32> to vector<32x8xf32>
    %322 = arith.subf %318, %321 : vector<32x8xf32>
    %323 = math.exp %322 : vector<32x8xf32>
    %cst_97 = arith.constant dense<0.000000e+00> : vector<32xf32>
    %324 = vector.multi_reduction <add>, %323, %cst_97 [1] : vector<32x8xf32> to vector<32xf32>
    %325 = vector.shape_cast %324 : vector<32xf32> to vector<32x1xf32>
    %326 = tpu.reciprocal %325 {approx = true} : vector<32x1xf32> -> vector<32x1xf32>
    %327 = vector.broadcast %326 : vector<32x1xf32> to vector<32x8xf32>
    %328 = arith.mulf %323, %327 : vector<32x8xf32>
    %329 = arith.truncf %328 : vector<32x8xf32> to vector<32x8xbf16>
    %330 = arith.truncf %303 : vector<8x32xf32> to vector<8x32xbf16>
    %cst_98 = arith.constant dense<0.000000e+00> : vector<32x32xf32>
    %331 = tpu.matmul %329, %330, %cst_98 {dimension_numbers = #tpu.dot_dimension_numbers<[1], [0], [0], [1], [0, 0, 1, 1], [], []>} : vector<32x8xbf16>, vector<8x32xbf16>, vector<32x32xf32> -> vector<32x32xf32>
    %332 = vector.extract_strided_slice %331 {offsets = [0, 0], sizes = [8, 32], strides = [1, 1]} : vector<32x32xf32> to vector<8x32xf32>
    %333 = vector.broadcast %7 : vector<1x32xf32> to vector<8x32xf32>
    %334 = arith.mulf %332, %333 : vector<8x32xf32>
    %335 = vector.extract_strided_slice %331 {offsets = [8, 0], sizes = [8, 32], strides = [1, 1]} : vector<32x32xf32> to vector<8x32xf32>
    %336 = vector.broadcast %14 : vector<1x32xf32> to vector<8x32xf32>
    %337 = arith.mulf %335, %336 : vector<8x32xf32>
    %338 = arith.addf %334, %337 : vector<8x32xf32>
    %339 = vector.extract_strided_slice %331 {offsets = [16, 0], sizes = [8, 32], strides = [1, 1]} : vector<32x32xf32> to vector<8x32xf32>
    %340 = vector.broadcast %21 : vector<1x32xf32> to vector<8x32xf32>
    %341 = arith.mulf %339, %340 : vector<8x32xf32>
    %342 = arith.addf %338, %341 : vector<8x32xf32>
    %343 = vector.extract_strided_slice %331 {offsets = [24, 0], sizes = [8, 32], strides = [1, 1]} : vector<32x32xf32> to vector<8x32xf32>
    %344 = vector.broadcast %28 : vector<1x32xf32> to vector<8x32xf32>
    %345 = arith.mulf %343, %344 : vector<8x32xf32>
    %346 = arith.addf %342, %345 : vector<8x32xf32>
    %347 = vector.extract_strided_slice %298 {offsets = [8, 0], sizes = [8, 32], strides = [1, 1]} : vector<16x32xf32> to vector<8x32xf32>
    %348 = vector.extract_strided_slice %299 {offsets = [8, 0], sizes = [8, 32], strides = [1, 1]} : vector<16x32xf32> to vector<8x32xf32>
    %349 = vector.extract_strided_slice %300 {offsets = [8, 0], sizes = [8, 32], strides = [1, 1]} : vector<16x32xf32> to vector<8x32xf32>
    %350 = vector.broadcast %7 : vector<1x32xf32> to vector<8x32xf32>
    %351 = arith.mulf %347, %350 : vector<8x32xf32>
    %352 = vector.broadcast %14 : vector<1x32xf32> to vector<8x32xf32>
    %353 = arith.mulf %347, %352 : vector<8x32xf32>
    %354 = vector.broadcast %21 : vector<1x32xf32> to vector<8x32xf32>
    %355 = arith.mulf %347, %354 : vector<8x32xf32>
    %356 = vector.broadcast %28 : vector<1x32xf32> to vector<8x32xf32>
    %357 = arith.mulf %347, %356 : vector<8x32xf32>
    %358 = tpu.concatenate %351, %353, %355, %357 in 0 : vector<8x32xf32>, vector<8x32xf32>, vector<8x32xf32>, vector<8x32xf32> -> vector<32x32xf32>
    %359 = arith.truncf %358 : vector<32x32xf32> to vector<32x32xbf16>
    %360 = arith.truncf %348 : vector<8x32xf32> to vector<8x32xbf16>
    %cst_99 = arith.constant dense<0.000000e+00> : vector<32x8xf32>
    %361 = tpu.matmul %359, %360, %cst_99 {dimension_numbers = #tpu.dot_dimension_numbers<[1], [1], [0], [0], [0, 0, 1, 0], [], []>} : vector<32x32xbf16>, vector<8x32xbf16>, vector<32x8xf32> -> vector<32x8xf32>
    %362 = vector.extract_strided_slice %33 {offsets = [1, 0], sizes = [1, 8], strides = [1, 1]} : vector<2x8xf32> to vector<1x8xf32>
    %363 = vector.broadcast %362 : vector<1x8xf32> to vector<32x8xf32>
    %364 = arith.addf %361, %363 : vector<32x8xf32>
    %cst_100 = arith.constant dense<0xFF800000> : vector<32xf32>
    %365 = vector.multi_reduction <maximumf>, %364, %cst_100 [1] : vector<32x8xf32> to vector<32xf32>
    %366 = vector.shape_cast %365 : vector<32xf32> to vector<32x1xf32>
    %367 = vector.broadcast %366 : vector<32x1xf32> to vector<32x8xf32>
    %368 = arith.subf %364, %367 : vector<32x8xf32>
    %369 = math.exp %368 : vector<32x8xf32>
    %cst_101 = arith.constant dense<0.000000e+00> : vector<32xf32>
    %370 = vector.multi_reduction <add>, %369, %cst_101 [1] : vector<32x8xf32> to vector<32xf32>
    %371 = vector.shape_cast %370 : vector<32xf32> to vector<32x1xf32>
    %372 = tpu.reciprocal %371 {approx = true} : vector<32x1xf32> -> vector<32x1xf32>
    %373 = vector.broadcast %372 : vector<32x1xf32> to vector<32x8xf32>
    %374 = arith.mulf %369, %373 : vector<32x8xf32>
    %375 = arith.truncf %374 : vector<32x8xf32> to vector<32x8xbf16>
    %376 = arith.truncf %349 : vector<8x32xf32> to vector<8x32xbf16>
    %cst_102 = arith.constant dense<0.000000e+00> : vector<32x32xf32>
    %377 = tpu.matmul %375, %376, %cst_102 {dimension_numbers = #tpu.dot_dimension_numbers<[1], [0], [0], [1], [0, 0, 1, 1], [], []>} : vector<32x8xbf16>, vector<8x32xbf16>, vector<32x32xf32> -> vector<32x32xf32>
    %378 = vector.extract_strided_slice %377 {offsets = [0, 0], sizes = [8, 32], strides = [1, 1]} : vector<32x32xf32> to vector<8x32xf32>
    %379 = vector.broadcast %7 : vector<1x32xf32> to vector<8x32xf32>
    %380 = arith.mulf %378, %379 : vector<8x32xf32>
    %381 = vector.extract_strided_slice %377 {offsets = [8, 0], sizes = [8, 32], strides = [1, 1]} : vector<32x32xf32> to vector<8x32xf32>
    %382 = vector.broadcast %14 : vector<1x32xf32> to vector<8x32xf32>
    %383 = arith.mulf %381, %382 : vector<8x32xf32>
    %384 = arith.addf %380, %383 : vector<8x32xf32>
    %385 = vector.extract_strided_slice %377 {offsets = [16, 0], sizes = [8, 32], strides = [1, 1]} : vector<32x32xf32> to vector<8x32xf32>
    %386 = vector.broadcast %21 : vector<1x32xf32> to vector<8x32xf32>
    %387 = arith.mulf %385, %386 : vector<8x32xf32>
    %388 = arith.addf %384, %387 : vector<8x32xf32>
    %389 = vector.extract_strided_slice %377 {offsets = [24, 0], sizes = [8, 32], strides = [1, 1]} : vector<32x32xf32> to vector<8x32xf32>
    %390 = vector.broadcast %28 : vector<1x32xf32> to vector<8x32xf32>
    %391 = arith.mulf %389, %390 : vector<8x32xf32>
    %392 = arith.addf %388, %391 : vector<8x32xf32>
    %393 = tpu.concatenate %346, %392 in 0 : vector<8x32xf32>, vector<8x32xf32> -> vector<16x32xf32>
    %394 = arith.truncf %393 : vector<16x32xf32> to vector<16x32xbf16>
    %cst_103 = arith.constant dense<0.000000e+00> : vector<16x32xf32>
    %395 = tpu.matmul %394, %291, %cst_103 {dimension_numbers = #tpu.dot_dimension_numbers<[1], [0], [0], [1], [0, 0, 1, 1], [], []>} : vector<16x32xbf16>, vector<32x32xbf16>, vector<16x32xf32> -> vector<16x32xf32>
    %396 = vector.extract_strided_slice %293 {offsets = [0, 0], sizes = [1, 32], strides = [1, 1]} : vector<4x32xf32> to vector<1x32xf32>
    %397 = vector.broadcast %396 : vector<1x32xf32> to vector<16x32xf32>
    %398 = arith.addf %395, %397 : vector<16x32xf32>
    %399 = arith.addf %285, %398 : vector<16x32xf32>
    %400 = vector.extract_strided_slice %293 {offsets = [1, 0], sizes = [1, 32], strides = [1, 1]} : vector<4x32xf32> to vector<1x32xf32>
    %401 = vector.extract_strided_slice %293 {offsets = [2, 0], sizes = [1, 32], strides = [1, 1]} : vector<4x32xf32> to vector<1x32xf32>
    %cst_104 = arith.constant dense<0.000000e+00> : vector<16xf32>
    %402 = vector.multi_reduction <add>, %399, %cst_104 [1] : vector<16x32xf32> to vector<16xf32>
    %403 = vector.shape_cast %402 : vector<16xf32> to vector<16x1xf32>
    %cst_105 = arith.constant 3.200000e+01 : f32
    %404 = vector.broadcast %cst_105 : f32 to vector<16x1xf32>
    %405 = arith.divf %403, %404 : vector<16x1xf32>
    %406 = vector.broadcast %405 : vector<16x1xf32> to vector<16x32xf32>
    %407 = arith.subf %399, %406 : vector<16x32xf32>
    %408 = vector.broadcast %405 : vector<16x1xf32> to vector<16x32xf32>
    %409 = arith.subf %399, %408 : vector<16x32xf32>
    %410 = arith.mulf %407, %409 : vector<16x32xf32>
    %cst_106 = arith.constant dense<0.000000e+00> : vector<16xf32>
    %411 = vector.multi_reduction <add>, %410, %cst_106 [1] : vector<16x32xf32> to vector<16xf32>
    %412 = vector.shape_cast %411 : vector<16xf32> to vector<16x1xf32>
    %cst_107 = arith.constant 3.200000e+01 : f32
    %413 = vector.broadcast %cst_107 : f32 to vector<16x1xf32>
    %414 = arith.divf %412, %413 : vector<16x1xf32>
    %415 = vector.broadcast %405 : vector<16x1xf32> to vector<16x32xf32>
    %416 = arith.subf %399, %415 : vector<16x32xf32>
    %cst_108 = arith.constant 9.99999996E-13 : f32
    %417 = vector.broadcast %cst_108 : f32 to vector<16x1xf32>
    %418 = arith.addf %414, %417 : vector<16x1xf32>
    %419 = math.rsqrt %418 : vector<16x1xf32>
    %420 = vector.broadcast %419 : vector<16x1xf32> to vector<16x32xf32>
    %421 = arith.mulf %416, %420 : vector<16x32xf32>
    %422 = vector.broadcast %400 : vector<1x32xf32> to vector<16x32xf32>
    %423 = arith.mulf %421, %422 : vector<16x32xf32>
    %424 = vector.broadcast %401 : vector<1x32xf32> to vector<16x32xf32>
    %425 = arith.addf %423, %424 : vector<16x32xf32>
    %c1_109 = arith.constant 1 : index
    %c0_110 = arith.constant 0 : index
    %c0_111 = arith.constant 0 : index
    %426 = vector.load %arg11[%c1_109, %c0_110, %c0_111] : memref<4x32x128xbf16, #tpu.memory_space<vmem>>, vector<1x32x128xbf16>
    %427 = vector.shape_cast %426 : vector<1x32x128xbf16> to vector<32x128xbf16>
    %c1_112 = arith.constant 1 : index
    %c0_113 = arith.constant 0 : index
    %c0_114 = arith.constant 0 : index
    %428 = vector.load %arg12[%c1_112, %c0_113, %c0_114] : memref<4x128x32xbf16, #tpu.memory_space<vmem>>, vector<1x128x32xbf16>
    %429 = vector.shape_cast %428 : vector<1x128x32xbf16> to vector<128x32xbf16>
    %c1_115 = arith.constant 1 : index
    %c0_116 = arith.constant 0 : index
    %c0_117 = arith.constant 0 : index
    %430 = vector.load %arg13[%c1_115, %c0_116, %c0_117] : memref<4x4x128xf32, #tpu.memory_space<vmem>>, vector<1x4x128xf32>
    %431 = vector.shape_cast %430 : vector<1x4x128xf32> to vector<4x128xf32>
    %432 = arith.truncf %425 : vector<16x32xf32> to vector<16x32xbf16>
    %cst_118 = arith.constant dense<0.000000e+00> : vector<16x128xf32>
    %433 = tpu.matmul %432, %427, %cst_118 {dimension_numbers = #tpu.dot_dimension_numbers<[1], [0], [0], [1], [0, 0, 1, 1], [], []>} : vector<16x32xbf16>, vector<32x128xbf16>, vector<16x128xf32> -> vector<16x128xf32>
    %434 = vector.extract_strided_slice %431 {offsets = [0, 0], sizes = [1, 128], strides = [1, 1]} : vector<4x128xf32> to vector<1x128xf32>
    %435 = vector.broadcast %434 : vector<1x128xf32> to vector<16x128xf32>
    %436 = arith.addf %433, %435 : vector<16x128xf32>
    %437 = arith.mulf %436, %436 : vector<16x128xf32>
    %438 = arith.mulf %436, %437 : vector<16x128xf32>
    %cst_119 = arith.constant 4.471500e-02 : f32
    %439 = vector.broadcast %cst_119 : f32 to vector<16x128xf32>
    %440 = arith.mulf %439, %438 : vector<16x128xf32>
    %441 = arith.addf %436, %440 : vector<16x128xf32>
    %cst_120 = arith.constant 0.797884583 : f32
    %442 = vector.broadcast %cst_120 : f32 to vector<16x128xf32>
    %443 = arith.mulf %442, %441 : vector<16x128xf32>
    %444 = math.tanh %443 : vector<16x128xf32>
    %cst_121 = arith.constant 1.000000e+00 : f32
    %445 = vector.broadcast %cst_121 : f32 to vector<16x128xf32>
    %446 = arith.addf %445, %444 : vector<16x128xf32>
    %cst_122 = arith.constant 5.000000e-01 : f32
    %447 = vector.broadcast %cst_122 : f32 to vector<16x128xf32>
    %448 = arith.mulf %447, %446 : vector<16x128xf32>
    %449 = arith.mulf %436, %448 : vector<16x128xf32>
    %450 = arith.truncf %449 : vector<16x128xf32> to vector<16x128xbf16>
    %cst_123 = arith.constant dense<0.000000e+00> : vector<16x32xf32>
    %451 = tpu.matmul %450, %429, %cst_123 {dimension_numbers = #tpu.dot_dimension_numbers<[1], [0], [0], [1], [0, 0, 1, 1], [], []>} : vector<16x128xbf16>, vector<128x32xbf16>, vector<16x32xf32> -> vector<16x32xf32>
    %452 = vector.extract_strided_slice %431 {offsets = [1, 0], sizes = [1, 32], strides = [1, 1]} : vector<4x128xf32> to vector<1x32xf32>
    %453 = vector.broadcast %452 : vector<1x32xf32> to vector<16x32xf32>
    %454 = arith.addf %451, %453 : vector<16x32xf32>
    %455 = arith.addf %425, %454 : vector<16x32xf32>
    %456 = vector.extract_strided_slice %431 {offsets = [2, 0], sizes = [1, 32], strides = [1, 1]} : vector<4x128xf32> to vector<1x32xf32>
    %457 = vector.extract_strided_slice %431 {offsets = [3, 0], sizes = [1, 32], strides = [1, 1]} : vector<4x128xf32> to vector<1x32xf32>
    %cst_124 = arith.constant dense<0.000000e+00> : vector<16xf32>
    %458 = vector.multi_reduction <add>, %455, %cst_124 [1] : vector<16x32xf32> to vector<16xf32>
    %459 = vector.shape_cast %458 : vector<16xf32> to vector<16x1xf32>
    %cst_125 = arith.constant 3.200000e+01 : f32
    %460 = vector.broadcast %cst_125 : f32 to vector<16x1xf32>
    %461 = arith.divf %459, %460 : vector<16x1xf32>
    %462 = vector.broadcast %461 : vector<16x1xf32> to vector<16x32xf32>
    %463 = arith.subf %455, %462 : vector<16x32xf32>
    %464 = vector.broadcast %461 : vector<16x1xf32> to vector<16x32xf32>
    %465 = arith.subf %455, %464 : vector<16x32xf32>
    %466 = arith.mulf %463, %465 : vector<16x32xf32>
    %cst_126 = arith.constant dense<0.000000e+00> : vector<16xf32>
    %467 = vector.multi_reduction <add>, %466, %cst_126 [1] : vector<16x32xf32> to vector<16xf32>
    %468 = vector.shape_cast %467 : vector<16xf32> to vector<16x1xf32>
    %cst_127 = arith.constant 3.200000e+01 : f32
    %469 = vector.broadcast %cst_127 : f32 to vector<16x1xf32>
    %470 = arith.divf %468, %469 : vector<16x1xf32>
    %471 = vector.broadcast %461 : vector<16x1xf32> to vector<16x32xf32>
    %472 = arith.subf %455, %471 : vector<16x32xf32>
    %cst_128 = arith.constant 9.99999996E-13 : f32
    %473 = vector.broadcast %cst_128 : f32 to vector<16x1xf32>
    %474 = arith.addf %470, %473 : vector<16x1xf32>
    %475 = math.rsqrt %474 : vector<16x1xf32>
    %476 = vector.broadcast %475 : vector<16x1xf32> to vector<16x32xf32>
    %477 = arith.mulf %472, %476 : vector<16x32xf32>
    %478 = vector.broadcast %456 : vector<1x32xf32> to vector<16x32xf32>
    %479 = arith.mulf %477, %478 : vector<16x32xf32>
    %480 = vector.broadcast %457 : vector<1x32xf32> to vector<16x32xf32>
    %481 = arith.addf %479, %480 : vector<16x32xf32>
    %c2 = arith.constant 2 : index
    %c0_129 = arith.constant 0 : index
    %c0_130 = arith.constant 0 : index
    %482 = vector.load %arg7[%c2, %c0_129, %c0_130] : memref<6x32x128xbf16, #tpu.memory_space<vmem>>, vector<1x32x128xbf16>
    %483 = vector.shape_cast %482 : vector<1x32x128xbf16> to vector<32x128xbf16>
    %c2_131 = arith.constant 2 : index
    %c0_132 = arith.constant 0 : index
    %c0_133 = arith.constant 0 : index
    %484 = vector.load %arg8[%c2_131, %c0_132, %c0_133] : memref<6x1x128xf32, #tpu.memory_space<vmem>>, vector<1x1x128xf32>
    %485 = vector.shape_cast %484 : vector<1x1x128xf32> to vector<1x128xf32>
    %c2_134 = arith.constant 2 : index
    %c0_135 = arith.constant 0 : index
    %c0_136 = arith.constant 0 : index
    %486 = vector.load %arg9[%c2_134, %c0_135, %c0_136] : memref<6x32x32xbf16, #tpu.memory_space<vmem>>, vector<1x32x32xbf16>
    %487 = vector.shape_cast %486 : vector<1x32x32xbf16> to vector<32x32xbf16>
    %c2_137 = arith.constant 2 : index
    %c0_138 = arith.constant 0 : index
    %c0_139 = arith.constant 0 : index
    %488 = vector.load %arg10[%c2_137, %c0_138, %c0_139] : memref<6x4x32xf32, #tpu.memory_space<vmem>>, vector<1x4x32xf32>
    %489 = vector.shape_cast %488 : vector<1x4x32xf32> to vector<4x32xf32>
    %490 = arith.truncf %481 : vector<16x32xf32> to vector<16x32xbf16>
    %cst_140 = arith.constant dense<0.000000e+00> : vector<16x128xf32>
    %491 = tpu.matmul %490, %483, %cst_140 {dimension_numbers = #tpu.dot_dimension_numbers<[1], [0], [0], [1], [0, 0, 1, 1], [], []>} : vector<16x32xbf16>, vector<32x128xbf16>, vector<16x128xf32> -> vector<16x128xf32>
    %492 = vector.broadcast %485 : vector<1x128xf32> to vector<16x128xf32>
    %493 = arith.addf %491, %492 : vector<16x128xf32>
    %494 = vector.extract_strided_slice %493 {offsets = [0, 0], sizes = [16, 32], strides = [1, 1]} : vector<16x128xf32> to vector<16x32xf32>
    %495 = vector.extract_strided_slice %493 {offsets = [0, 32], sizes = [16, 32], strides = [1, 1]} : vector<16x128xf32> to vector<16x32xf32>
    %496 = vector.extract_strided_slice %493 {offsets = [0, 64], sizes = [16, 32], strides = [1, 1]} : vector<16x128xf32> to vector<16x32xf32>
    %497 = vector.extract_strided_slice %494 {offsets = [0, 0], sizes = [8, 32], strides = [1, 1]} : vector<16x32xf32> to vector<8x32xf32>
    %498 = vector.extract_strided_slice %495 {offsets = [0, 0], sizes = [8, 32], strides = [1, 1]} : vector<16x32xf32> to vector<8x32xf32>
    %499 = vector.extract_strided_slice %496 {offsets = [0, 0], sizes = [8, 32], strides = [1, 1]} : vector<16x32xf32> to vector<8x32xf32>
    %500 = vector.broadcast %7 : vector<1x32xf32> to vector<8x32xf32>
    %501 = arith.mulf %497, %500 : vector<8x32xf32>
    %502 = vector.broadcast %14 : vector<1x32xf32> to vector<8x32xf32>
    %503 = arith.mulf %497, %502 : vector<8x32xf32>
    %504 = vector.broadcast %21 : vector<1x32xf32> to vector<8x32xf32>
    %505 = arith.mulf %497, %504 : vector<8x32xf32>
    %506 = vector.broadcast %28 : vector<1x32xf32> to vector<8x32xf32>
    %507 = arith.mulf %497, %506 : vector<8x32xf32>
    %508 = tpu.concatenate %501, %503, %505, %507 in 0 : vector<8x32xf32>, vector<8x32xf32>, vector<8x32xf32>, vector<8x32xf32> -> vector<32x32xf32>
    %509 = arith.truncf %508 : vector<32x32xf32> to vector<32x32xbf16>
    %510 = arith.truncf %498 : vector<8x32xf32> to vector<8x32xbf16>
    %cst_141 = arith.constant dense<0.000000e+00> : vector<32x8xf32>
    %511 = tpu.matmul %509, %510, %cst_141 {dimension_numbers = #tpu.dot_dimension_numbers<[1], [1], [0], [0], [0, 0, 1, 0], [], []>} : vector<32x32xbf16>, vector<8x32xbf16>, vector<32x8xf32> -> vector<32x8xf32>
    %512 = vector.extract_strided_slice %33 {offsets = [0, 0], sizes = [1, 8], strides = [1, 1]} : vector<2x8xf32> to vector<1x8xf32>
    %513 = vector.broadcast %512 : vector<1x8xf32> to vector<32x8xf32>
    %514 = arith.addf %511, %513 : vector<32x8xf32>
    %cst_142 = arith.constant dense<0xFF800000> : vector<32xf32>
    %515 = vector.multi_reduction <maximumf>, %514, %cst_142 [1] : vector<32x8xf32> to vector<32xf32>
    %516 = vector.shape_cast %515 : vector<32xf32> to vector<32x1xf32>
    %517 = vector.broadcast %516 : vector<32x1xf32> to vector<32x8xf32>
    %518 = arith.subf %514, %517 : vector<32x8xf32>
    %519 = math.exp %518 : vector<32x8xf32>
    %cst_143 = arith.constant dense<0.000000e+00> : vector<32xf32>
    %520 = vector.multi_reduction <add>, %519, %cst_143 [1] : vector<32x8xf32> to vector<32xf32>
    %521 = vector.shape_cast %520 : vector<32xf32> to vector<32x1xf32>
    %522 = tpu.reciprocal %521 {approx = true} : vector<32x1xf32> -> vector<32x1xf32>
    %523 = vector.broadcast %522 : vector<32x1xf32> to vector<32x8xf32>
    %524 = arith.mulf %519, %523 : vector<32x8xf32>
    %525 = arith.truncf %524 : vector<32x8xf32> to vector<32x8xbf16>
    %526 = arith.truncf %499 : vector<8x32xf32> to vector<8x32xbf16>
    %cst_144 = arith.constant dense<0.000000e+00> : vector<32x32xf32>
    %527 = tpu.matmul %525, %526, %cst_144 {dimension_numbers = #tpu.dot_dimension_numbers<[1], [0], [0], [1], [0, 0, 1, 1], [], []>} : vector<32x8xbf16>, vector<8x32xbf16>, vector<32x32xf32> -> vector<32x32xf32>
    %528 = vector.extract_strided_slice %527 {offsets = [0, 0], sizes = [8, 32], strides = [1, 1]} : vector<32x32xf32> to vector<8x32xf32>
    %529 = vector.broadcast %7 : vector<1x32xf32> to vector<8x32xf32>
    %530 = arith.mulf %528, %529 : vector<8x32xf32>
    %531 = vector.extract_strided_slice %527 {offsets = [8, 0], sizes = [8, 32], strides = [1, 1]} : vector<32x32xf32> to vector<8x32xf32>
    %532 = vector.broadcast %14 : vector<1x32xf32> to vector<8x32xf32>
    %533 = arith.mulf %531, %532 : vector<8x32xf32>
    %534 = arith.addf %530, %533 : vector<8x32xf32>
    %535 = vector.extract_strided_slice %527 {offsets = [16, 0], sizes = [8, 32], strides = [1, 1]} : vector<32x32xf32> to vector<8x32xf32>
    %536 = vector.broadcast %21 : vector<1x32xf32> to vector<8x32xf32>
    %537 = arith.mulf %535, %536 : vector<8x32xf32>
    %538 = arith.addf %534, %537 : vector<8x32xf32>
    %539 = vector.extract_strided_slice %527 {offsets = [24, 0], sizes = [8, 32], strides = [1, 1]} : vector<32x32xf32> to vector<8x32xf32>
    %540 = vector.broadcast %28 : vector<1x32xf32> to vector<8x32xf32>
    %541 = arith.mulf %539, %540 : vector<8x32xf32>
    %542 = arith.addf %538, %541 : vector<8x32xf32>
    %543 = vector.extract_strided_slice %494 {offsets = [8, 0], sizes = [8, 32], strides = [1, 1]} : vector<16x32xf32> to vector<8x32xf32>
    %544 = vector.extract_strided_slice %495 {offsets = [8, 0], sizes = [8, 32], strides = [1, 1]} : vector<16x32xf32> to vector<8x32xf32>
    %545 = vector.extract_strided_slice %496 {offsets = [8, 0], sizes = [8, 32], strides = [1, 1]} : vector<16x32xf32> to vector<8x32xf32>
    %546 = vector.broadcast %7 : vector<1x32xf32> to vector<8x32xf32>
    %547 = arith.mulf %543, %546 : vector<8x32xf32>
    %548 = vector.broadcast %14 : vector<1x32xf32> to vector<8x32xf32>
    %549 = arith.mulf %543, %548 : vector<8x32xf32>
    %550 = vector.broadcast %21 : vector<1x32xf32> to vector<8x32xf32>
    %551 = arith.mulf %543, %550 : vector<8x32xf32>
    %552 = vector.broadcast %28 : vector<1x32xf32> to vector<8x32xf32>
    %553 = arith.mulf %543, %552 : vector<8x32xf32>
    %554 = tpu.concatenate %547, %549, %551, %553 in 0 : vector<8x32xf32>, vector<8x32xf32>, vector<8x32xf32>, vector<8x32xf32> -> vector<32x32xf32>
    %555 = arith.truncf %554 : vector<32x32xf32> to vector<32x32xbf16>
    %556 = arith.truncf %544 : vector<8x32xf32> to vector<8x32xbf16>
    %cst_145 = arith.constant dense<0.000000e+00> : vector<32x8xf32>
    %557 = tpu.matmul %555, %556, %cst_145 {dimension_numbers = #tpu.dot_dimension_numbers<[1], [1], [0], [0], [0, 0, 1, 0], [], []>} : vector<32x32xbf16>, vector<8x32xbf16>, vector<32x8xf32> -> vector<32x8xf32>
    %558 = vector.extract_strided_slice %33 {offsets = [1, 0], sizes = [1, 8], strides = [1, 1]} : vector<2x8xf32> to vector<1x8xf32>
    %559 = vector.broadcast %558 : vector<1x8xf32> to vector<32x8xf32>
    %560 = arith.addf %557, %559 : vector<32x8xf32>
    %cst_146 = arith.constant dense<0xFF800000> : vector<32xf32>
    %561 = vector.multi_reduction <maximumf>, %560, %cst_146 [1] : vector<32x8xf32> to vector<32xf32>
    %562 = vector.shape_cast %561 : vector<32xf32> to vector<32x1xf32>
    %563 = vector.broadcast %562 : vector<32x1xf32> to vector<32x8xf32>
    %564 = arith.subf %560, %563 : vector<32x8xf32>
    %565 = math.exp %564 : vector<32x8xf32>
    %cst_147 = arith.constant dense<0.000000e+00> : vector<32xf32>
    %566 = vector.multi_reduction <add>, %565, %cst_147 [1] : vector<32x8xf32> to vector<32xf32>
    %567 = vector.shape_cast %566 : vector<32xf32> to vector<32x1xf32>
    %568 = tpu.reciprocal %567 {approx = true} : vector<32x1xf32> -> vector<32x1xf32>
    %569 = vector.broadcast %568 : vector<32x1xf32> to vector<32x8xf32>
    %570 = arith.mulf %565, %569 : vector<32x8xf32>
    %571 = arith.truncf %570 : vector<32x8xf32> to vector<32x8xbf16>
    %572 = arith.truncf %545 : vector<8x32xf32> to vector<8x32xbf16>
    %cst_148 = arith.constant dense<0.000000e+00> : vector<32x32xf32>
    %573 = tpu.matmul %571, %572, %cst_148 {dimension_numbers = #tpu.dot_dimension_numbers<[1], [0], [0], [1], [0, 0, 1, 1], [], []>} : vector<32x8xbf16>, vector<8x32xbf16>, vector<32x32xf32> -> vector<32x32xf32>
    %574 = vector.extract_strided_slice %573 {offsets = [0, 0], sizes = [8, 32], strides = [1, 1]} : vector<32x32xf32> to vector<8x32xf32>
    %575 = vector.broadcast %7 : vector<1x32xf32> to vector<8x32xf32>
    %576 = arith.mulf %574, %575 : vector<8x32xf32>
    %577 = vector.extract_strided_slice %573 {offsets = [8, 0], sizes = [8, 32], strides = [1, 1]} : vector<32x32xf32> to vector<8x32xf32>
    %578 = vector.broadcast %14 : vector<1x32xf32> to vector<8x32xf32>
    %579 = arith.mulf %577, %578 : vector<8x32xf32>
    %580 = arith.addf %576, %579 : vector<8x32xf32>
    %581 = vector.extract_strided_slice %573 {offsets = [16, 0], sizes = [8, 32], strides = [1, 1]} : vector<32x32xf32> to vector<8x32xf32>
    %582 = vector.broadcast %21 : vector<1x32xf32> to vector<8x32xf32>
    %583 = arith.mulf %581, %582 : vector<8x32xf32>
    %584 = arith.addf %580, %583 : vector<8x32xf32>
    %585 = vector.extract_strided_slice %573 {offsets = [24, 0], sizes = [8, 32], strides = [1, 1]} : vector<32x32xf32> to vector<8x32xf32>
    %586 = vector.broadcast %28 : vector<1x32xf32> to vector<8x32xf32>
    %587 = arith.mulf %585, %586 : vector<8x32xf32>
    %588 = arith.addf %584, %587 : vector<8x32xf32>
    %589 = tpu.concatenate %542, %588 in 0 : vector<8x32xf32>, vector<8x32xf32> -> vector<16x32xf32>
    %590 = arith.truncf %589 : vector<16x32xf32> to vector<16x32xbf16>
    %cst_149 = arith.constant dense<0.000000e+00> : vector<16x32xf32>
    %591 = tpu.matmul %590, %487, %cst_149 {dimension_numbers = #tpu.dot_dimension_numbers<[1], [0], [0], [1], [0, 0, 1, 1], [], []>} : vector<16x32xbf16>, vector<32x32xbf16>, vector<16x32xf32> -> vector<16x32xf32>
    %592 = vector.extract_strided_slice %489 {offsets = [0, 0], sizes = [1, 32], strides = [1, 1]} : vector<4x32xf32> to vector<1x32xf32>
    %593 = vector.broadcast %592 : vector<1x32xf32> to vector<16x32xf32>
    %594 = arith.addf %591, %593 : vector<16x32xf32>
    %595 = arith.addf %481, %594 : vector<16x32xf32>
    %596 = vector.extract_strided_slice %489 {offsets = [1, 0], sizes = [1, 32], strides = [1, 1]} : vector<4x32xf32> to vector<1x32xf32>
    %597 = vector.extract_strided_slice %489 {offsets = [2, 0], sizes = [1, 32], strides = [1, 1]} : vector<4x32xf32> to vector<1x32xf32>
    %cst_150 = arith.constant dense<0.000000e+00> : vector<16xf32>
    %598 = vector.multi_reduction <add>, %595, %cst_150 [1] : vector<16x32xf32> to vector<16xf32>
    %599 = vector.shape_cast %598 : vector<16xf32> to vector<16x1xf32>
    %cst_151 = arith.constant 3.200000e+01 : f32
    %600 = vector.broadcast %cst_151 : f32 to vector<16x1xf32>
    %601 = arith.divf %599, %600 : vector<16x1xf32>
    %602 = vector.broadcast %601 : vector<16x1xf32> to vector<16x32xf32>
    %603 = arith.subf %595, %602 : vector<16x32xf32>
    %604 = vector.broadcast %601 : vector<16x1xf32> to vector<16x32xf32>
    %605 = arith.subf %595, %604 : vector<16x32xf32>
    %606 = arith.mulf %603, %605 : vector<16x32xf32>
    %cst_152 = arith.constant dense<0.000000e+00> : vector<16xf32>
    %607 = vector.multi_reduction <add>, %606, %cst_152 [1] : vector<16x32xf32> to vector<16xf32>
    %608 = vector.shape_cast %607 : vector<16xf32> to vector<16x1xf32>
    %cst_153 = arith.constant 3.200000e+01 : f32
    %609 = vector.broadcast %cst_153 : f32 to vector<16x1xf32>
    %610 = arith.divf %608, %609 : vector<16x1xf32>
    %611 = vector.broadcast %601 : vector<16x1xf32> to vector<16x32xf32>
    %612 = arith.subf %595, %611 : vector<16x32xf32>
    %cst_154 = arith.constant 9.99999996E-13 : f32
    %613 = vector.broadcast %cst_154 : f32 to vector<16x1xf32>
    %614 = arith.addf %610, %613 : vector<16x1xf32>
    %615 = math.rsqrt %614 : vector<16x1xf32>
    %616 = vector.broadcast %615 : vector<16x1xf32> to vector<16x32xf32>
    %617 = arith.mulf %612, %616 : vector<16x32xf32>
    %618 = vector.broadcast %596 : vector<1x32xf32> to vector<16x32xf32>
    %619 = arith.mulf %617, %618 : vector<16x32xf32>
    %620 = vector.broadcast %597 : vector<1x32xf32> to vector<16x32xf32>
    %621 = arith.addf %619, %620 : vector<16x32xf32>
    %c3 = arith.constant 3 : index
    %c0_155 = arith.constant 0 : index
    %c0_156 = arith.constant 0 : index
    %622 = vector.load %arg7[%c3, %c0_155, %c0_156] : memref<6x32x128xbf16, #tpu.memory_space<vmem>>, vector<1x32x128xbf16>
    %623 = vector.shape_cast %622 : vector<1x32x128xbf16> to vector<32x128xbf16>
    %c3_157 = arith.constant 3 : index
    %c0_158 = arith.constant 0 : index
    %c0_159 = arith.constant 0 : index
    %624 = vector.load %arg8[%c3_157, %c0_158, %c0_159] : memref<6x1x128xf32, #tpu.memory_space<vmem>>, vector<1x1x128xf32>
    %625 = vector.shape_cast %624 : vector<1x1x128xf32> to vector<1x128xf32>
    %c3_160 = arith.constant 3 : index
    %c0_161 = arith.constant 0 : index
    %c0_162 = arith.constant 0 : index
    %626 = vector.load %arg9[%c3_160, %c0_161, %c0_162] : memref<6x32x32xbf16, #tpu.memory_space<vmem>>, vector<1x32x32xbf16>
    %627 = vector.shape_cast %626 : vector<1x32x32xbf16> to vector<32x32xbf16>
    %c3_163 = arith.constant 3 : index
    %c0_164 = arith.constant 0 : index
    %c0_165 = arith.constant 0 : index
    %628 = vector.load %arg10[%c3_163, %c0_164, %c0_165] : memref<6x4x32xf32, #tpu.memory_space<vmem>>, vector<1x4x32xf32>
    %629 = vector.shape_cast %628 : vector<1x4x32xf32> to vector<4x32xf32>
    %630 = arith.truncf %621 : vector<16x32xf32> to vector<16x32xbf16>
    %cst_166 = arith.constant dense<0.000000e+00> : vector<16x128xf32>
    %631 = tpu.matmul %630, %623, %cst_166 {dimension_numbers = #tpu.dot_dimension_numbers<[1], [0], [0], [1], [0, 0, 1, 1], [], []>} : vector<16x32xbf16>, vector<32x128xbf16>, vector<16x128xf32> -> vector<16x128xf32>
    %632 = vector.broadcast %625 : vector<1x128xf32> to vector<16x128xf32>
    %633 = arith.addf %631, %632 : vector<16x128xf32>
    %634 = vector.extract_strided_slice %633 {offsets = [0, 0], sizes = [16, 32], strides = [1, 1]} : vector<16x128xf32> to vector<16x32xf32>
    %635 = arith.truncf %240 : vector<48x32xf32> to vector<48x32xbf16>
    %cst_167 = arith.constant dense<0.000000e+00> : vector<48x128xf32>
    %636 = tpu.matmul %635, %623, %cst_167 {dimension_numbers = #tpu.dot_dimension_numbers<[1], [0], [0], [1], [0, 0, 1, 1], [], []>} : vector<48x32xbf16>, vector<32x128xbf16>, vector<48x128xf32> -> vector<48x128xf32>
    %637 = vector.broadcast %625 : vector<1x128xf32> to vector<48x128xf32>
    %638 = arith.addf %636, %637 : vector<48x128xf32>
    %639 = vector.extract_strided_slice %638 {offsets = [0, 32], sizes = [48, 32], strides = [1, 1]} : vector<48x128xf32> to vector<48x32xf32>
    %640 = vector.extract_strided_slice %638 {offsets = [0, 64], sizes = [48, 32], strides = [1, 1]} : vector<48x128xf32> to vector<48x32xf32>
    %641 = vector.extract_strided_slice %634 {offsets = [0, 0], sizes = [8, 32], strides = [1, 1]} : vector<16x32xf32> to vector<8x32xf32>
    %642 = vector.extract_strided_slice %639 {offsets = [0, 0], sizes = [24, 32], strides = [1, 1]} : vector<48x32xf32> to vector<24x32xf32>
    %643 = vector.extract_strided_slice %640 {offsets = [0, 0], sizes = [24, 32], strides = [1, 1]} : vector<48x32xf32> to vector<24x32xf32>
    %644 = vector.broadcast %7 : vector<1x32xf32> to vector<8x32xf32>
    %645 = arith.mulf %641, %644 : vector<8x32xf32>
    %646 = vector.broadcast %14 : vector<1x32xf32> to vector<8x32xf32>
    %647 = arith.mulf %641, %646 : vector<8x32xf32>
    %648 = vector.broadcast %21 : vector<1x32xf32> to vector<8x32xf32>
    %649 = arith.mulf %641, %648 : vector<8x32xf32>
    %650 = vector.broadcast %28 : vector<1x32xf32> to vector<8x32xf32>
    %651 = arith.mulf %641, %650 : vector<8x32xf32>
    %652 = tpu.concatenate %645, %647, %649, %651 in 0 : vector<8x32xf32>, vector<8x32xf32>, vector<8x32xf32>, vector<8x32xf32> -> vector<32x32xf32>
    %653 = arith.truncf %652 : vector<32x32xf32> to vector<32x32xbf16>
    %654 = arith.truncf %642 : vector<24x32xf32> to vector<24x32xbf16>
    %cst_168 = arith.constant dense<0.000000e+00> : vector<32x24xf32>
    %655 = tpu.matmul %653, %654, %cst_168 {dimension_numbers = #tpu.dot_dimension_numbers<[1], [1], [0], [0], [0, 0, 1, 0], [], []>} : vector<32x32xbf16>, vector<24x32xbf16>, vector<32x24xf32> -> vector<32x24xf32>
    %656 = vector.extract_strided_slice %38 {offsets = [0, 0], sizes = [1, 24], strides = [1, 1]} : vector<2x24xf32> to vector<1x24xf32>
    %657 = vector.broadcast %656 : vector<1x24xf32> to vector<32x24xf32>
    %658 = arith.addf %655, %657 : vector<32x24xf32>
    %cst_169 = arith.constant dense<0xFF800000> : vector<32xf32>
    %659 = vector.multi_reduction <maximumf>, %658, %cst_169 [1] : vector<32x24xf32> to vector<32xf32>
    %660 = vector.shape_cast %659 : vector<32xf32> to vector<32x1xf32>
    %661 = vector.broadcast %660 : vector<32x1xf32> to vector<32x24xf32>
    %662 = arith.subf %658, %661 : vector<32x24xf32>
    %663 = math.exp %662 : vector<32x24xf32>
    %cst_170 = arith.constant dense<0.000000e+00> : vector<32xf32>
    %664 = vector.multi_reduction <add>, %663, %cst_170 [1] : vector<32x24xf32> to vector<32xf32>
    %665 = vector.shape_cast %664 : vector<32xf32> to vector<32x1xf32>
    %666 = tpu.reciprocal %665 {approx = true} : vector<32x1xf32> -> vector<32x1xf32>
    %667 = vector.broadcast %666 : vector<32x1xf32> to vector<32x24xf32>
    %668 = arith.mulf %663, %667 : vector<32x24xf32>
    %669 = arith.truncf %668 : vector<32x24xf32> to vector<32x24xbf16>
    %670 = arith.truncf %643 : vector<24x32xf32> to vector<24x32xbf16>
    %cst_171 = arith.constant dense<0.000000e+00> : vector<32x32xf32>
    %671 = tpu.matmul %669, %670, %cst_171 {dimension_numbers = #tpu.dot_dimension_numbers<[1], [0], [0], [1], [0, 0, 1, 1], [], []>} : vector<32x24xbf16>, vector<24x32xbf16>, vector<32x32xf32> -> vector<32x32xf32>
    %672 = vector.extract_strided_slice %671 {offsets = [0, 0], sizes = [8, 32], strides = [1, 1]} : vector<32x32xf32> to vector<8x32xf32>
    %673 = vector.broadcast %7 : vector<1x32xf32> to vector<8x32xf32>
    %674 = arith.mulf %672, %673 : vector<8x32xf32>
    %675 = vector.extract_strided_slice %671 {offsets = [8, 0], sizes = [8, 32], strides = [1, 1]} : vector<32x32xf32> to vector<8x32xf32>
    %676 = vector.broadcast %14 : vector<1x32xf32> to vector<8x32xf32>
    %677 = arith.mulf %675, %676 : vector<8x32xf32>
    %678 = arith.addf %674, %677 : vector<8x32xf32>
    %679 = vector.extract_strided_slice %671 {offsets = [16, 0], sizes = [8, 32], strides = [1, 1]} : vector<32x32xf32> to vector<8x32xf32>
    %680 = vector.broadcast %21 : vector<1x32xf32> to vector<8x32xf32>
    %681 = arith.mulf %679, %680 : vector<8x32xf32>
    %682 = arith.addf %678, %681 : vector<8x32xf32>
    %683 = vector.extract_strided_slice %671 {offsets = [24, 0], sizes = [8, 32], strides = [1, 1]} : vector<32x32xf32> to vector<8x32xf32>
    %684 = vector.broadcast %28 : vector<1x32xf32> to vector<8x32xf32>
    %685 = arith.mulf %683, %684 : vector<8x32xf32>
    %686 = arith.addf %682, %685 : vector<8x32xf32>
    %687 = vector.extract_strided_slice %634 {offsets = [8, 0], sizes = [8, 32], strides = [1, 1]} : vector<16x32xf32> to vector<8x32xf32>
    %688 = vector.extract_strided_slice %639 {offsets = [24, 0], sizes = [24, 32], strides = [1, 1]} : vector<48x32xf32> to vector<24x32xf32>
    %689 = vector.extract_strided_slice %640 {offsets = [24, 0], sizes = [24, 32], strides = [1, 1]} : vector<48x32xf32> to vector<24x32xf32>
    %690 = vector.broadcast %7 : vector<1x32xf32> to vector<8x32xf32>
    %691 = arith.mulf %687, %690 : vector<8x32xf32>
    %692 = vector.broadcast %14 : vector<1x32xf32> to vector<8x32xf32>
    %693 = arith.mulf %687, %692 : vector<8x32xf32>
    %694 = vector.broadcast %21 : vector<1x32xf32> to vector<8x32xf32>
    %695 = arith.mulf %687, %694 : vector<8x32xf32>
    %696 = vector.broadcast %28 : vector<1x32xf32> to vector<8x32xf32>
    %697 = arith.mulf %687, %696 : vector<8x32xf32>
    %698 = tpu.concatenate %691, %693, %695, %697 in 0 : vector<8x32xf32>, vector<8x32xf32>, vector<8x32xf32>, vector<8x32xf32> -> vector<32x32xf32>
    %699 = arith.truncf %698 : vector<32x32xf32> to vector<32x32xbf16>
    %700 = arith.truncf %688 : vector<24x32xf32> to vector<24x32xbf16>
    %cst_172 = arith.constant dense<0.000000e+00> : vector<32x24xf32>
    %701 = tpu.matmul %699, %700, %cst_172 {dimension_numbers = #tpu.dot_dimension_numbers<[1], [1], [0], [0], [0, 0, 1, 0], [], []>} : vector<32x32xbf16>, vector<24x32xbf16>, vector<32x24xf32> -> vector<32x24xf32>
    %702 = vector.extract_strided_slice %38 {offsets = [1, 0], sizes = [1, 24], strides = [1, 1]} : vector<2x24xf32> to vector<1x24xf32>
    %703 = vector.broadcast %702 : vector<1x24xf32> to vector<32x24xf32>
    %704 = arith.addf %701, %703 : vector<32x24xf32>
    %cst_173 = arith.constant dense<0xFF800000> : vector<32xf32>
    %705 = vector.multi_reduction <maximumf>, %704, %cst_173 [1] : vector<32x24xf32> to vector<32xf32>
    %706 = vector.shape_cast %705 : vector<32xf32> to vector<32x1xf32>
    %707 = vector.broadcast %706 : vector<32x1xf32> to vector<32x24xf32>
    %708 = arith.subf %704, %707 : vector<32x24xf32>
    %709 = math.exp %708 : vector<32x24xf32>
    %cst_174 = arith.constant dense<0.000000e+00> : vector<32xf32>
    %710 = vector.multi_reduction <add>, %709, %cst_174 [1] : vector<32x24xf32> to vector<32xf32>
    %711 = vector.shape_cast %710 : vector<32xf32> to vector<32x1xf32>
    %712 = tpu.reciprocal %711 {approx = true} : vector<32x1xf32> -> vector<32x1xf32>
    %713 = vector.broadcast %712 : vector<32x1xf32> to vector<32x24xf32>
    %714 = arith.mulf %709, %713 : vector<32x24xf32>
    %715 = arith.truncf %714 : vector<32x24xf32> to vector<32x24xbf16>
    %716 = arith.truncf %689 : vector<24x32xf32> to vector<24x32xbf16>
    %cst_175 = arith.constant dense<0.000000e+00> : vector<32x32xf32>
    %717 = tpu.matmul %715, %716, %cst_175 {dimension_numbers = #tpu.dot_dimension_numbers<[1], [0], [0], [1], [0, 0, 1, 1], [], []>} : vector<32x24xbf16>, vector<24x32xbf16>, vector<32x32xf32> -> vector<32x32xf32>
    %718 = vector.extract_strided_slice %717 {offsets = [0, 0], sizes = [8, 32], strides = [1, 1]} : vector<32x32xf32> to vector<8x32xf32>
    %719 = vector.broadcast %7 : vector<1x32xf32> to vector<8x32xf32>
    %720 = arith.mulf %718, %719 : vector<8x32xf32>
    %721 = vector.extract_strided_slice %717 {offsets = [8, 0], sizes = [8, 32], strides = [1, 1]} : vector<32x32xf32> to vector<8x32xf32>
    %722 = vector.broadcast %14 : vector<1x32xf32> to vector<8x32xf32>
    %723 = arith.mulf %721, %722 : vector<8x32xf32>
    %724 = arith.addf %720, %723 : vector<8x32xf32>
    %725 = vector.extract_strided_slice %717 {offsets = [16, 0], sizes = [8, 32], strides = [1, 1]} : vector<32x32xf32> to vector<8x32xf32>
    %726 = vector.broadcast %21 : vector<1x32xf32> to vector<8x32xf32>
    %727 = arith.mulf %725, %726 : vector<8x32xf32>
    %728 = arith.addf %724, %727 : vector<8x32xf32>
    %729 = vector.extract_strided_slice %717 {offsets = [24, 0], sizes = [8, 32], strides = [1, 1]} : vector<32x32xf32> to vector<8x32xf32>
    %730 = vector.broadcast %28 : vector<1x32xf32> to vector<8x32xf32>
    %731 = arith.mulf %729, %730 : vector<8x32xf32>
    %732 = arith.addf %728, %731 : vector<8x32xf32>
    %733 = tpu.concatenate %686, %732 in 0 : vector<8x32xf32>, vector<8x32xf32> -> vector<16x32xf32>
    %734 = arith.truncf %733 : vector<16x32xf32> to vector<16x32xbf16>
    %cst_176 = arith.constant dense<0.000000e+00> : vector<16x32xf32>
    %735 = tpu.matmul %734, %627, %cst_176 {dimension_numbers = #tpu.dot_dimension_numbers<[1], [0], [0], [1], [0, 0, 1, 1], [], []>} : vector<16x32xbf16>, vector<32x32xbf16>, vector<16x32xf32> -> vector<16x32xf32>
    %736 = vector.extract_strided_slice %629 {offsets = [0, 0], sizes = [1, 32], strides = [1, 1]} : vector<4x32xf32> to vector<1x32xf32>
    %737 = vector.broadcast %736 : vector<1x32xf32> to vector<16x32xf32>
    %738 = arith.addf %735, %737 : vector<16x32xf32>
    %739 = arith.addf %621, %738 : vector<16x32xf32>
    %740 = vector.extract_strided_slice %629 {offsets = [1, 0], sizes = [1, 32], strides = [1, 1]} : vector<4x32xf32> to vector<1x32xf32>
    %741 = vector.extract_strided_slice %629 {offsets = [2, 0], sizes = [1, 32], strides = [1, 1]} : vector<4x32xf32> to vector<1x32xf32>
    %cst_177 = arith.constant dense<0.000000e+00> : vector<16xf32>
    %742 = vector.multi_reduction <add>, %739, %cst_177 [1] : vector<16x32xf32> to vector<16xf32>
    %743 = vector.shape_cast %742 : vector<16xf32> to vector<16x1xf32>
    %cst_178 = arith.constant 3.200000e+01 : f32
    %744 = vector.broadcast %cst_178 : f32 to vector<16x1xf32>
    %745 = arith.divf %743, %744 : vector<16x1xf32>
    %746 = vector.broadcast %745 : vector<16x1xf32> to vector<16x32xf32>
    %747 = arith.subf %739, %746 : vector<16x32xf32>
    %748 = vector.broadcast %745 : vector<16x1xf32> to vector<16x32xf32>
    %749 = arith.subf %739, %748 : vector<16x32xf32>
    %750 = arith.mulf %747, %749 : vector<16x32xf32>
    %cst_179 = arith.constant dense<0.000000e+00> : vector<16xf32>
    %751 = vector.multi_reduction <add>, %750, %cst_179 [1] : vector<16x32xf32> to vector<16xf32>
    %752 = vector.shape_cast %751 : vector<16xf32> to vector<16x1xf32>
    %cst_180 = arith.constant 3.200000e+01 : f32
    %753 = vector.broadcast %cst_180 : f32 to vector<16x1xf32>
    %754 = arith.divf %752, %753 : vector<16x1xf32>
    %755 = vector.broadcast %745 : vector<16x1xf32> to vector<16x32xf32>
    %756 = arith.subf %739, %755 : vector<16x32xf32>
    %cst_181 = arith.constant 9.99999996E-13 : f32
    %757 = vector.broadcast %cst_181 : f32 to vector<16x1xf32>
    %758 = arith.addf %754, %757 : vector<16x1xf32>
    %759 = math.rsqrt %758 : vector<16x1xf32>
    %760 = vector.broadcast %759 : vector<16x1xf32> to vector<16x32xf32>
    %761 = arith.mulf %756, %760 : vector<16x32xf32>
    %762 = vector.broadcast %740 : vector<1x32xf32> to vector<16x32xf32>
    %763 = arith.mulf %761, %762 : vector<16x32xf32>
    %764 = vector.broadcast %741 : vector<1x32xf32> to vector<16x32xf32>
    %765 = arith.addf %763, %764 : vector<16x32xf32>
    %c2_182 = arith.constant 2 : index
    %c0_183 = arith.constant 0 : index
    %c0_184 = arith.constant 0 : index
    %766 = vector.load %arg11[%c2_182, %c0_183, %c0_184] : memref<4x32x128xbf16, #tpu.memory_space<vmem>>, vector<1x32x128xbf16>
    %767 = vector.shape_cast %766 : vector<1x32x128xbf16> to vector<32x128xbf16>
    %c2_185 = arith.constant 2 : index
    %c0_186 = arith.constant 0 : index
    %c0_187 = arith.constant 0 : index
    %768 = vector.load %arg12[%c2_185, %c0_186, %c0_187] : memref<4x128x32xbf16, #tpu.memory_space<vmem>>, vector<1x128x32xbf16>
    %769 = vector.shape_cast %768 : vector<1x128x32xbf16> to vector<128x32xbf16>
    %c2_188 = arith.constant 2 : index
    %c0_189 = arith.constant 0 : index
    %c0_190 = arith.constant 0 : index
    %770 = vector.load %arg13[%c2_188, %c0_189, %c0_190] : memref<4x4x128xf32, #tpu.memory_space<vmem>>, vector<1x4x128xf32>
    %771 = vector.shape_cast %770 : vector<1x4x128xf32> to vector<4x128xf32>
    %772 = arith.truncf %765 : vector<16x32xf32> to vector<16x32xbf16>
    %cst_191 = arith.constant dense<0.000000e+00> : vector<16x128xf32>
    %773 = tpu.matmul %772, %767, %cst_191 {dimension_numbers = #tpu.dot_dimension_numbers<[1], [0], [0], [1], [0, 0, 1, 1], [], []>} : vector<16x32xbf16>, vector<32x128xbf16>, vector<16x128xf32> -> vector<16x128xf32>
    %774 = vector.extract_strided_slice %771 {offsets = [0, 0], sizes = [1, 128], strides = [1, 1]} : vector<4x128xf32> to vector<1x128xf32>
    %775 = vector.broadcast %774 : vector<1x128xf32> to vector<16x128xf32>
    %776 = arith.addf %773, %775 : vector<16x128xf32>
    %777 = arith.mulf %776, %776 : vector<16x128xf32>
    %778 = arith.mulf %776, %777 : vector<16x128xf32>
    %cst_192 = arith.constant 4.471500e-02 : f32
    %779 = vector.broadcast %cst_192 : f32 to vector<16x128xf32>
    %780 = arith.mulf %779, %778 : vector<16x128xf32>
    %781 = arith.addf %776, %780 : vector<16x128xf32>
    %cst_193 = arith.constant 0.797884583 : f32
    %782 = vector.broadcast %cst_193 : f32 to vector<16x128xf32>
    %783 = arith.mulf %782, %781 : vector<16x128xf32>
    %784 = math.tanh %783 : vector<16x128xf32>
    %cst_194 = arith.constant 1.000000e+00 : f32
    %785 = vector.broadcast %cst_194 : f32 to vector<16x128xf32>
    %786 = arith.addf %785, %784 : vector<16x128xf32>
    %cst_195 = arith.constant 5.000000e-01 : f32
    %787 = vector.broadcast %cst_195 : f32 to vector<16x128xf32>
    %788 = arith.mulf %787, %786 : vector<16x128xf32>
    %789 = arith.mulf %776, %788 : vector<16x128xf32>
    %790 = arith.truncf %789 : vector<16x128xf32> to vector<16x128xbf16>
    %cst_196 = arith.constant dense<0.000000e+00> : vector<16x32xf32>
    %791 = tpu.matmul %790, %769, %cst_196 {dimension_numbers = #tpu.dot_dimension_numbers<[1], [0], [0], [1], [0, 0, 1, 1], [], []>} : vector<16x128xbf16>, vector<128x32xbf16>, vector<16x32xf32> -> vector<16x32xf32>
    %792 = vector.extract_strided_slice %771 {offsets = [1, 0], sizes = [1, 32], strides = [1, 1]} : vector<4x128xf32> to vector<1x32xf32>
    %793 = vector.broadcast %792 : vector<1x32xf32> to vector<16x32xf32>
    %794 = arith.addf %791, %793 : vector<16x32xf32>
    %795 = arith.addf %765, %794 : vector<16x32xf32>
    %796 = vector.extract_strided_slice %771 {offsets = [2, 0], sizes = [1, 32], strides = [1, 1]} : vector<4x128xf32> to vector<1x32xf32>
    %797 = vector.extract_strided_slice %771 {offsets = [3, 0], sizes = [1, 32], strides = [1, 1]} : vector<4x128xf32> to vector<1x32xf32>
    %cst_197 = arith.constant dense<0.000000e+00> : vector<16xf32>
    %798 = vector.multi_reduction <add>, %795, %cst_197 [1] : vector<16x32xf32> to vector<16xf32>
    %799 = vector.shape_cast %798 : vector<16xf32> to vector<16x1xf32>
    %cst_198 = arith.constant 3.200000e+01 : f32
    %800 = vector.broadcast %cst_198 : f32 to vector<16x1xf32>
    %801 = arith.divf %799, %800 : vector<16x1xf32>
    %802 = vector.broadcast %801 : vector<16x1xf32> to vector<16x32xf32>
    %803 = arith.subf %795, %802 : vector<16x32xf32>
    %804 = vector.broadcast %801 : vector<16x1xf32> to vector<16x32xf32>
    %805 = arith.subf %795, %804 : vector<16x32xf32>
    %806 = arith.mulf %803, %805 : vector<16x32xf32>
    %cst_199 = arith.constant dense<0.000000e+00> : vector<16xf32>
    %807 = vector.multi_reduction <add>, %806, %cst_199 [1] : vector<16x32xf32> to vector<16xf32>
    %808 = vector.shape_cast %807 : vector<16xf32> to vector<16x1xf32>
    %cst_200 = arith.constant 3.200000e+01 : f32
    %809 = vector.broadcast %cst_200 : f32 to vector<16x1xf32>
    %810 = arith.divf %808, %809 : vector<16x1xf32>
    %811 = vector.broadcast %801 : vector<16x1xf32> to vector<16x32xf32>
    %812 = arith.subf %795, %811 : vector<16x32xf32>
    %cst_201 = arith.constant 9.99999996E-13 : f32
    %813 = vector.broadcast %cst_201 : f32 to vector<16x1xf32>
    %814 = arith.addf %810, %813 : vector<16x1xf32>
    %815 = math.rsqrt %814 : vector<16x1xf32>
    %816 = vector.broadcast %815 : vector<16x1xf32> to vector<16x32xf32>
    %817 = arith.mulf %812, %816 : vector<16x32xf32>
    %818 = vector.broadcast %796 : vector<1x32xf32> to vector<16x32xf32>
    %819 = arith.mulf %817, %818 : vector<16x32xf32>
    %820 = vector.broadcast %797 : vector<1x32xf32> to vector<16x32xf32>
    %821 = arith.addf %819, %820 : vector<16x32xf32>
    %c4 = arith.constant 4 : index
    %c0_202 = arith.constant 0 : index
    %c0_203 = arith.constant 0 : index
    %822 = vector.load %arg7[%c4, %c0_202, %c0_203] : memref<6x32x128xbf16, #tpu.memory_space<vmem>>, vector<1x32x128xbf16>
    %823 = vector.shape_cast %822 : vector<1x32x128xbf16> to vector<32x128xbf16>
    %c4_204 = arith.constant 4 : index
    %c0_205 = arith.constant 0 : index
    %c0_206 = arith.constant 0 : index
    %824 = vector.load %arg8[%c4_204, %c0_205, %c0_206] : memref<6x1x128xf32, #tpu.memory_space<vmem>>, vector<1x1x128xf32>
    %825 = vector.shape_cast %824 : vector<1x1x128xf32> to vector<1x128xf32>
    %c4_207 = arith.constant 4 : index
    %c0_208 = arith.constant 0 : index
    %c0_209 = arith.constant 0 : index
    %826 = vector.load %arg9[%c4_207, %c0_208, %c0_209] : memref<6x32x32xbf16, #tpu.memory_space<vmem>>, vector<1x32x32xbf16>
    %827 = vector.shape_cast %826 : vector<1x32x32xbf16> to vector<32x32xbf16>
    %c4_210 = arith.constant 4 : index
    %c0_211 = arith.constant 0 : index
    %c0_212 = arith.constant 0 : index
    %828 = vector.load %arg10[%c4_210, %c0_211, %c0_212] : memref<6x4x32xf32, #tpu.memory_space<vmem>>, vector<1x4x32xf32>
    %829 = vector.shape_cast %828 : vector<1x4x32xf32> to vector<4x32xf32>
    %830 = arith.truncf %240 : vector<48x32xf32> to vector<48x32xbf16>
    %cst_213 = arith.constant dense<0.000000e+00> : vector<48x128xf32>
    %831 = tpu.matmul %830, %823, %cst_213 {dimension_numbers = #tpu.dot_dimension_numbers<[1], [0], [0], [1], [0, 0, 1, 1], [], []>} : vector<48x32xbf16>, vector<32x128xbf16>, vector<48x128xf32> -> vector<48x128xf32>
    %832 = vector.broadcast %825 : vector<1x128xf32> to vector<48x128xf32>
    %833 = arith.addf %831, %832 : vector<48x128xf32>
    %834 = vector.extract_strided_slice %833 {offsets = [0, 0], sizes = [48, 32], strides = [1, 1]} : vector<48x128xf32> to vector<48x32xf32>
    %835 = vector.extract_strided_slice %833 {offsets = [0, 32], sizes = [48, 32], strides = [1, 1]} : vector<48x128xf32> to vector<48x32xf32>
    %836 = vector.extract_strided_slice %833 {offsets = [0, 64], sizes = [48, 32], strides = [1, 1]} : vector<48x128xf32> to vector<48x32xf32>
    %837 = vector.extract_strided_slice %834 {offsets = [0, 0], sizes = [24, 32], strides = [1, 1]} : vector<48x32xf32> to vector<24x32xf32>
    %838 = vector.extract_strided_slice %835 {offsets = [0, 0], sizes = [24, 32], strides = [1, 1]} : vector<48x32xf32> to vector<24x32xf32>
    %839 = vector.extract_strided_slice %836 {offsets = [0, 0], sizes = [24, 32], strides = [1, 1]} : vector<48x32xf32> to vector<24x32xf32>
    %840 = vector.broadcast %7 : vector<1x32xf32> to vector<24x32xf32>
    %841 = arith.mulf %837, %840 : vector<24x32xf32>
    %842 = vector.broadcast %14 : vector<1x32xf32> to vector<24x32xf32>
    %843 = arith.mulf %837, %842 : vector<24x32xf32>
    %844 = vector.broadcast %21 : vector<1x32xf32> to vector<24x32xf32>
    %845 = arith.mulf %837, %844 : vector<24x32xf32>
    %846 = vector.broadcast %28 : vector<1x32xf32> to vector<24x32xf32>
    %847 = arith.mulf %837, %846 : vector<24x32xf32>
    %848 = tpu.concatenate %841, %843, %845, %847 in 0 : vector<24x32xf32>, vector<24x32xf32>, vector<24x32xf32>, vector<24x32xf32> -> vector<96x32xf32>
    %849 = arith.truncf %848 : vector<96x32xf32> to vector<96x32xbf16>
    %850 = arith.truncf %838 : vector<24x32xf32> to vector<24x32xbf16>
    %cst_214 = arith.constant dense<0.000000e+00> : vector<96x24xf32>
    %851 = tpu.matmul %849, %850, %cst_214 {dimension_numbers = #tpu.dot_dimension_numbers<[1], [1], [0], [0], [0, 0, 1, 0], [], []>} : vector<96x32xbf16>, vector<24x32xbf16>, vector<96x24xf32> -> vector<96x24xf32>
    %852 = vector.extract_strided_slice %38 {offsets = [0, 0], sizes = [1, 24], strides = [1, 1]} : vector<2x24xf32> to vector<1x24xf32>
    %853 = vector.broadcast %852 : vector<1x24xf32> to vector<96x24xf32>
    %854 = arith.addf %851, %853 : vector<96x24xf32>
    %cst_215 = arith.constant dense<0xFF800000> : vector<96xf32>
    %855 = vector.multi_reduction <maximumf>, %854, %cst_215 [1] : vector<96x24xf32> to vector<96xf32>
    %856 = vector.shape_cast %855 : vector<96xf32> to vector<96x1xf32>
    %857 = vector.broadcast %856 : vector<96x1xf32> to vector<96x24xf32>
    %858 = arith.subf %854, %857 : vector<96x24xf32>
    %859 = math.exp %858 : vector<96x24xf32>
    %cst_216 = arith.constant dense<0.000000e+00> : vector<96xf32>
    %860 = vector.multi_reduction <add>, %859, %cst_216 [1] : vector<96x24xf32> to vector<96xf32>
    %861 = vector.shape_cast %860 : vector<96xf32> to vector<96x1xf32>
    %862 = tpu.reciprocal %861 {approx = true} : vector<96x1xf32> -> vector<96x1xf32>
    %863 = vector.broadcast %862 : vector<96x1xf32> to vector<96x24xf32>
    %864 = arith.mulf %859, %863 : vector<96x24xf32>
    %865 = arith.truncf %864 : vector<96x24xf32> to vector<96x24xbf16>
    %866 = arith.truncf %839 : vector<24x32xf32> to vector<24x32xbf16>
    %cst_217 = arith.constant dense<0.000000e+00> : vector<96x32xf32>
    %867 = tpu.matmul %865, %866, %cst_217 {dimension_numbers = #tpu.dot_dimension_numbers<[1], [0], [0], [1], [0, 0, 1, 1], [], []>} : vector<96x24xbf16>, vector<24x32xbf16>, vector<96x32xf32> -> vector<96x32xf32>
    %868 = vector.extract_strided_slice %867 {offsets = [0, 0], sizes = [24, 32], strides = [1, 1]} : vector<96x32xf32> to vector<24x32xf32>
    %869 = vector.broadcast %7 : vector<1x32xf32> to vector<24x32xf32>
    %870 = arith.mulf %868, %869 : vector<24x32xf32>
    %871 = vector.extract_strided_slice %867 {offsets = [24, 0], sizes = [24, 32], strides = [1, 1]} : vector<96x32xf32> to vector<24x32xf32>
    %872 = vector.broadcast %14 : vector<1x32xf32> to vector<24x32xf32>
    %873 = arith.mulf %871, %872 : vector<24x32xf32>
    %874 = arith.addf %870, %873 : vector<24x32xf32>
    %875 = vector.extract_strided_slice %867 {offsets = [48, 0], sizes = [24, 32], strides = [1, 1]} : vector<96x32xf32> to vector<24x32xf32>
    %876 = vector.broadcast %21 : vector<1x32xf32> to vector<24x32xf32>
    %877 = arith.mulf %875, %876 : vector<24x32xf32>
    %878 = arith.addf %874, %877 : vector<24x32xf32>
    %879 = vector.extract_strided_slice %867 {offsets = [72, 0], sizes = [24, 32], strides = [1, 1]} : vector<96x32xf32> to vector<24x32xf32>
    %880 = vector.broadcast %28 : vector<1x32xf32> to vector<24x32xf32>
    %881 = arith.mulf %879, %880 : vector<24x32xf32>
    %882 = arith.addf %878, %881 : vector<24x32xf32>
    %883 = vector.extract_strided_slice %834 {offsets = [24, 0], sizes = [24, 32], strides = [1, 1]} : vector<48x32xf32> to vector<24x32xf32>
    %884 = vector.extract_strided_slice %835 {offsets = [24, 0], sizes = [24, 32], strides = [1, 1]} : vector<48x32xf32> to vector<24x32xf32>
    %885 = vector.extract_strided_slice %836 {offsets = [24, 0], sizes = [24, 32], strides = [1, 1]} : vector<48x32xf32> to vector<24x32xf32>
    %886 = vector.broadcast %7 : vector<1x32xf32> to vector<24x32xf32>
    %887 = arith.mulf %883, %886 : vector<24x32xf32>
    %888 = vector.broadcast %14 : vector<1x32xf32> to vector<24x32xf32>
    %889 = arith.mulf %883, %888 : vector<24x32xf32>
    %890 = vector.broadcast %21 : vector<1x32xf32> to vector<24x32xf32>
    %891 = arith.mulf %883, %890 : vector<24x32xf32>
    %892 = vector.broadcast %28 : vector<1x32xf32> to vector<24x32xf32>
    %893 = arith.mulf %883, %892 : vector<24x32xf32>
    %894 = tpu.concatenate %887, %889, %891, %893 in 0 : vector<24x32xf32>, vector<24x32xf32>, vector<24x32xf32>, vector<24x32xf32> -> vector<96x32xf32>
    %895 = arith.truncf %894 : vector<96x32xf32> to vector<96x32xbf16>
    %896 = arith.truncf %884 : vector<24x32xf32> to vector<24x32xbf16>
    %cst_218 = arith.constant dense<0.000000e+00> : vector<96x24xf32>
    %897 = tpu.matmul %895, %896, %cst_218 {dimension_numbers = #tpu.dot_dimension_numbers<[1], [1], [0], [0], [0, 0, 1, 0], [], []>} : vector<96x32xbf16>, vector<24x32xbf16>, vector<96x24xf32> -> vector<96x24xf32>
    %898 = vector.extract_strided_slice %38 {offsets = [1, 0], sizes = [1, 24], strides = [1, 1]} : vector<2x24xf32> to vector<1x24xf32>
    %899 = vector.broadcast %898 : vector<1x24xf32> to vector<96x24xf32>
    %900 = arith.addf %897, %899 : vector<96x24xf32>
    %cst_219 = arith.constant dense<0xFF800000> : vector<96xf32>
    %901 = vector.multi_reduction <maximumf>, %900, %cst_219 [1] : vector<96x24xf32> to vector<96xf32>
    %902 = vector.shape_cast %901 : vector<96xf32> to vector<96x1xf32>
    %903 = vector.broadcast %902 : vector<96x1xf32> to vector<96x24xf32>
    %904 = arith.subf %900, %903 : vector<96x24xf32>
    %905 = math.exp %904 : vector<96x24xf32>
    %cst_220 = arith.constant dense<0.000000e+00> : vector<96xf32>
    %906 = vector.multi_reduction <add>, %905, %cst_220 [1] : vector<96x24xf32> to vector<96xf32>
    %907 = vector.shape_cast %906 : vector<96xf32> to vector<96x1xf32>
    %908 = tpu.reciprocal %907 {approx = true} : vector<96x1xf32> -> vector<96x1xf32>
    %909 = vector.broadcast %908 : vector<96x1xf32> to vector<96x24xf32>
    %910 = arith.mulf %905, %909 : vector<96x24xf32>
    %911 = arith.truncf %910 : vector<96x24xf32> to vector<96x24xbf16>
    %912 = arith.truncf %885 : vector<24x32xf32> to vector<24x32xbf16>
    %cst_221 = arith.constant dense<0.000000e+00> : vector<96x32xf32>
    %913 = tpu.matmul %911, %912, %cst_221 {dimension_numbers = #tpu.dot_dimension_numbers<[1], [0], [0], [1], [0, 0, 1, 1], [], []>} : vector<96x24xbf16>, vector<24x32xbf16>, vector<96x32xf32> -> vector<96x32xf32>
    %914 = vector.extract_strided_slice %913 {offsets = [0, 0], sizes = [24, 32], strides = [1, 1]} : vector<96x32xf32> to vector<24x32xf32>
    %915 = vector.broadcast %7 : vector<1x32xf32> to vector<24x32xf32>
    %916 = arith.mulf %914, %915 : vector<24x32xf32>
    %917 = vector.extract_strided_slice %913 {offsets = [24, 0], sizes = [24, 32], strides = [1, 1]} : vector<96x32xf32> to vector<24x32xf32>
    %918 = vector.broadcast %14 : vector<1x32xf32> to vector<24x32xf32>
    %919 = arith.mulf %917, %918 : vector<24x32xf32>
    %920 = arith.addf %916, %919 : vector<24x32xf32>
    %921 = vector.extract_strided_slice %913 {offsets = [48, 0], sizes = [24, 32], strides = [1, 1]} : vector<96x32xf32> to vector<24x32xf32>
    %922 = vector.broadcast %21 : vector<1x32xf32> to vector<24x32xf32>
    %923 = arith.mulf %921, %922 : vector<24x32xf32>
    %924 = arith.addf %920, %923 : vector<24x32xf32>
    %925 = vector.extract_strided_slice %913 {offsets = [72, 0], sizes = [24, 32], strides = [1, 1]} : vector<96x32xf32> to vector<24x32xf32>
    %926 = vector.broadcast %28 : vector<1x32xf32> to vector<24x32xf32>
    %927 = arith.mulf %925, %926 : vector<24x32xf32>
    %928 = arith.addf %924, %927 : vector<24x32xf32>
    %929 = tpu.concatenate %882, %928 in 0 : vector<24x32xf32>, vector<24x32xf32> -> vector<48x32xf32>
    %930 = arith.truncf %929 : vector<48x32xf32> to vector<48x32xbf16>
    %cst_222 = arith.constant dense<0.000000e+00> : vector<48x32xf32>
    %931 = tpu.matmul %930, %827, %cst_222 {dimension_numbers = #tpu.dot_dimension_numbers<[1], [0], [0], [1], [0, 0, 1, 1], [], []>} : vector<48x32xbf16>, vector<32x32xbf16>, vector<48x32xf32> -> vector<48x32xf32>
    %932 = vector.extract_strided_slice %829 {offsets = [0, 0], sizes = [1, 32], strides = [1, 1]} : vector<4x32xf32> to vector<1x32xf32>
    %933 = vector.broadcast %932 : vector<1x32xf32> to vector<48x32xf32>
    %934 = arith.addf %931, %933 : vector<48x32xf32>
    %935 = arith.addf %240, %934 : vector<48x32xf32>
    %936 = vector.extract_strided_slice %829 {offsets = [1, 0], sizes = [1, 32], strides = [1, 1]} : vector<4x32xf32> to vector<1x32xf32>
    %937 = vector.extract_strided_slice %829 {offsets = [2, 0], sizes = [1, 32], strides = [1, 1]} : vector<4x32xf32> to vector<1x32xf32>
    %cst_223 = arith.constant dense<0.000000e+00> : vector<48xf32>
    %938 = vector.multi_reduction <add>, %935, %cst_223 [1] : vector<48x32xf32> to vector<48xf32>
    %939 = vector.shape_cast %938 : vector<48xf32> to vector<48x1xf32>
    %cst_224 = arith.constant 3.200000e+01 : f32
    %940 = vector.broadcast %cst_224 : f32 to vector<48x1xf32>
    %941 = arith.divf %939, %940 : vector<48x1xf32>
    %942 = vector.broadcast %941 : vector<48x1xf32> to vector<48x32xf32>
    %943 = arith.subf %935, %942 : vector<48x32xf32>
    %944 = vector.broadcast %941 : vector<48x1xf32> to vector<48x32xf32>
    %945 = arith.subf %935, %944 : vector<48x32xf32>
    %946 = arith.mulf %943, %945 : vector<48x32xf32>
    %cst_225 = arith.constant dense<0.000000e+00> : vector<48xf32>
    %947 = vector.multi_reduction <add>, %946, %cst_225 [1] : vector<48x32xf32> to vector<48xf32>
    %948 = vector.shape_cast %947 : vector<48xf32> to vector<48x1xf32>
    %cst_226 = arith.constant 3.200000e+01 : f32
    %949 = vector.broadcast %cst_226 : f32 to vector<48x1xf32>
    %950 = arith.divf %948, %949 : vector<48x1xf32>
    %951 = vector.broadcast %941 : vector<48x1xf32> to vector<48x32xf32>
    %952 = arith.subf %935, %951 : vector<48x32xf32>
    %cst_227 = arith.constant 9.99999996E-13 : f32
    %953 = vector.broadcast %cst_227 : f32 to vector<48x1xf32>
    %954 = arith.addf %950, %953 : vector<48x1xf32>
    %955 = math.rsqrt %954 : vector<48x1xf32>
    %956 = vector.broadcast %955 : vector<48x1xf32> to vector<48x32xf32>
    %957 = arith.mulf %952, %956 : vector<48x32xf32>
    %958 = vector.broadcast %936 : vector<1x32xf32> to vector<48x32xf32>
    %959 = arith.mulf %957, %958 : vector<48x32xf32>
    %960 = vector.broadcast %937 : vector<1x32xf32> to vector<48x32xf32>
    %961 = arith.addf %959, %960 : vector<48x32xf32>
    %c5 = arith.constant 5 : index
    %c0_228 = arith.constant 0 : index
    %c0_229 = arith.constant 0 : index
    %962 = vector.load %arg7[%c5, %c0_228, %c0_229] : memref<6x32x128xbf16, #tpu.memory_space<vmem>>, vector<1x32x128xbf16>
    %963 = vector.shape_cast %962 : vector<1x32x128xbf16> to vector<32x128xbf16>
    %c5_230 = arith.constant 5 : index
    %c0_231 = arith.constant 0 : index
    %c0_232 = arith.constant 0 : index
    %964 = vector.load %arg8[%c5_230, %c0_231, %c0_232] : memref<6x1x128xf32, #tpu.memory_space<vmem>>, vector<1x1x128xf32>
    %965 = vector.shape_cast %964 : vector<1x1x128xf32> to vector<1x128xf32>
    %c5_233 = arith.constant 5 : index
    %c0_234 = arith.constant 0 : index
    %c0_235 = arith.constant 0 : index
    %966 = vector.load %arg9[%c5_233, %c0_234, %c0_235] : memref<6x32x32xbf16, #tpu.memory_space<vmem>>, vector<1x32x32xbf16>
    %967 = vector.shape_cast %966 : vector<1x32x32xbf16> to vector<32x32xbf16>
    %c5_236 = arith.constant 5 : index
    %c0_237 = arith.constant 0 : index
    %c0_238 = arith.constant 0 : index
    %968 = vector.load %arg10[%c5_236, %c0_237, %c0_238] : memref<6x4x32xf32, #tpu.memory_space<vmem>>, vector<1x4x32xf32>
    %969 = vector.shape_cast %968 : vector<1x4x32xf32> to vector<4x32xf32>
    %970 = arith.truncf %961 : vector<48x32xf32> to vector<48x32xbf16>
    %cst_239 = arith.constant dense<0.000000e+00> : vector<48x128xf32>
    %971 = tpu.matmul %970, %963, %cst_239 {dimension_numbers = #tpu.dot_dimension_numbers<[1], [0], [0], [1], [0, 0, 1, 1], [], []>} : vector<48x32xbf16>, vector<32x128xbf16>, vector<48x128xf32> -> vector<48x128xf32>
    %972 = vector.broadcast %965 : vector<1x128xf32> to vector<48x128xf32>
    %973 = arith.addf %971, %972 : vector<48x128xf32>
    %974 = vector.extract_strided_slice %973 {offsets = [0, 0], sizes = [48, 32], strides = [1, 1]} : vector<48x128xf32> to vector<48x32xf32>
    %975 = arith.truncf %481 : vector<16x32xf32> to vector<16x32xbf16>
    %cst_240 = arith.constant dense<0.000000e+00> : vector<16x128xf32>
    %976 = tpu.matmul %975, %963, %cst_240 {dimension_numbers = #tpu.dot_dimension_numbers<[1], [0], [0], [1], [0, 0, 1, 1], [], []>} : vector<16x32xbf16>, vector<32x128xbf16>, vector<16x128xf32> -> vector<16x128xf32>
    %977 = vector.broadcast %965 : vector<1x128xf32> to vector<16x128xf32>
    %978 = arith.addf %976, %977 : vector<16x128xf32>
    %979 = vector.extract_strided_slice %978 {offsets = [0, 32], sizes = [16, 32], strides = [1, 1]} : vector<16x128xf32> to vector<16x32xf32>
    %980 = vector.extract_strided_slice %978 {offsets = [0, 64], sizes = [16, 32], strides = [1, 1]} : vector<16x128xf32> to vector<16x32xf32>
    %981 = vector.extract_strided_slice %974 {offsets = [0, 0], sizes = [24, 32], strides = [1, 1]} : vector<48x32xf32> to vector<24x32xf32>
    %982 = vector.extract_strided_slice %979 {offsets = [0, 0], sizes = [8, 32], strides = [1, 1]} : vector<16x32xf32> to vector<8x32xf32>
    %983 = vector.extract_strided_slice %980 {offsets = [0, 0], sizes = [8, 32], strides = [1, 1]} : vector<16x32xf32> to vector<8x32xf32>
    %984 = vector.broadcast %7 : vector<1x32xf32> to vector<24x32xf32>
    %985 = arith.mulf %981, %984 : vector<24x32xf32>
    %986 = vector.broadcast %14 : vector<1x32xf32> to vector<24x32xf32>
    %987 = arith.mulf %981, %986 : vector<24x32xf32>
    %988 = vector.broadcast %21 : vector<1x32xf32> to vector<24x32xf32>
    %989 = arith.mulf %981, %988 : vector<24x32xf32>
    %990 = vector.broadcast %28 : vector<1x32xf32> to vector<24x32xf32>
    %991 = arith.mulf %981, %990 : vector<24x32xf32>
    %992 = tpu.concatenate %985, %987, %989, %991 in 0 : vector<24x32xf32>, vector<24x32xf32>, vector<24x32xf32>, vector<24x32xf32> -> vector<96x32xf32>
    %993 = arith.truncf %992 : vector<96x32xf32> to vector<96x32xbf16>
    %994 = arith.truncf %982 : vector<8x32xf32> to vector<8x32xbf16>
    %cst_241 = arith.constant dense<0.000000e+00> : vector<96x8xf32>
    %995 = tpu.matmul %993, %994, %cst_241 {dimension_numbers = #tpu.dot_dimension_numbers<[1], [1], [0], [0], [0, 0, 1, 0], [], []>} : vector<96x32xbf16>, vector<8x32xbf16>, vector<96x8xf32> -> vector<96x8xf32>
    %996 = vector.extract_strided_slice %33 {offsets = [0, 0], sizes = [1, 8], strides = [1, 1]} : vector<2x8xf32> to vector<1x8xf32>
    %997 = vector.broadcast %996 : vector<1x8xf32> to vector<96x8xf32>
    %998 = arith.addf %995, %997 : vector<96x8xf32>
    %cst_242 = arith.constant dense<0xFF800000> : vector<96xf32>
    %999 = vector.multi_reduction <maximumf>, %998, %cst_242 [1] : vector<96x8xf32> to vector<96xf32>
    %1000 = vector.shape_cast %999 : vector<96xf32> to vector<96x1xf32>
    %1001 = vector.broadcast %1000 : vector<96x1xf32> to vector<96x8xf32>
    %1002 = arith.subf %998, %1001 : vector<96x8xf32>
    %1003 = math.exp %1002 : vector<96x8xf32>
    %cst_243 = arith.constant dense<0.000000e+00> : vector<96xf32>
    %1004 = vector.multi_reduction <add>, %1003, %cst_243 [1] : vector<96x8xf32> to vector<96xf32>
    %1005 = vector.shape_cast %1004 : vector<96xf32> to vector<96x1xf32>
    %1006 = tpu.reciprocal %1005 {approx = true} : vector<96x1xf32> -> vector<96x1xf32>
    %1007 = vector.broadcast %1006 : vector<96x1xf32> to vector<96x8xf32>
    %1008 = arith.mulf %1003, %1007 : vector<96x8xf32>
    %1009 = arith.truncf %1008 : vector<96x8xf32> to vector<96x8xbf16>
    %1010 = arith.truncf %983 : vector<8x32xf32> to vector<8x32xbf16>
    %cst_244 = arith.constant dense<0.000000e+00> : vector<96x32xf32>
    %1011 = tpu.matmul %1009, %1010, %cst_244 {dimension_numbers = #tpu.dot_dimension_numbers<[1], [0], [0], [1], [0, 0, 1, 1], [], []>} : vector<96x8xbf16>, vector<8x32xbf16>, vector<96x32xf32> -> vector<96x32xf32>
    %1012 = vector.extract_strided_slice %1011 {offsets = [0, 0], sizes = [24, 32], strides = [1, 1]} : vector<96x32xf32> to vector<24x32xf32>
    %1013 = vector.broadcast %7 : vector<1x32xf32> to vector<24x32xf32>
    %1014 = arith.mulf %1012, %1013 : vector<24x32xf32>
    %1015 = vector.extract_strided_slice %1011 {offsets = [24, 0], sizes = [24, 32], strides = [1, 1]} : vector<96x32xf32> to vector<24x32xf32>
    %1016 = vector.broadcast %14 : vector<1x32xf32> to vector<24x32xf32>
    %1017 = arith.mulf %1015, %1016 : vector<24x32xf32>
    %1018 = arith.addf %1014, %1017 : vector<24x32xf32>
    %1019 = vector.extract_strided_slice %1011 {offsets = [48, 0], sizes = [24, 32], strides = [1, 1]} : vector<96x32xf32> to vector<24x32xf32>
    %1020 = vector.broadcast %21 : vector<1x32xf32> to vector<24x32xf32>
    %1021 = arith.mulf %1019, %1020 : vector<24x32xf32>
    %1022 = arith.addf %1018, %1021 : vector<24x32xf32>
    %1023 = vector.extract_strided_slice %1011 {offsets = [72, 0], sizes = [24, 32], strides = [1, 1]} : vector<96x32xf32> to vector<24x32xf32>
    %1024 = vector.broadcast %28 : vector<1x32xf32> to vector<24x32xf32>
    %1025 = arith.mulf %1023, %1024 : vector<24x32xf32>
    %1026 = arith.addf %1022, %1025 : vector<24x32xf32>
    %1027 = vector.extract_strided_slice %974 {offsets = [24, 0], sizes = [24, 32], strides = [1, 1]} : vector<48x32xf32> to vector<24x32xf32>
    %1028 = vector.extract_strided_slice %979 {offsets = [8, 0], sizes = [8, 32], strides = [1, 1]} : vector<16x32xf32> to vector<8x32xf32>
    %1029 = vector.extract_strided_slice %980 {offsets = [8, 0], sizes = [8, 32], strides = [1, 1]} : vector<16x32xf32> to vector<8x32xf32>
    %1030 = vector.broadcast %7 : vector<1x32xf32> to vector<24x32xf32>
    %1031 = arith.mulf %1027, %1030 : vector<24x32xf32>
    %1032 = vector.broadcast %14 : vector<1x32xf32> to vector<24x32xf32>
    %1033 = arith.mulf %1027, %1032 : vector<24x32xf32>
    %1034 = vector.broadcast %21 : vector<1x32xf32> to vector<24x32xf32>
    %1035 = arith.mulf %1027, %1034 : vector<24x32xf32>
    %1036 = vector.broadcast %28 : vector<1x32xf32> to vector<24x32xf32>
    %1037 = arith.mulf %1027, %1036 : vector<24x32xf32>
    %1038 = tpu.concatenate %1031, %1033, %1035, %1037 in 0 : vector<24x32xf32>, vector<24x32xf32>, vector<24x32xf32>, vector<24x32xf32> -> vector<96x32xf32>
    %1039 = arith.truncf %1038 : vector<96x32xf32> to vector<96x32xbf16>
    %1040 = arith.truncf %1028 : vector<8x32xf32> to vector<8x32xbf16>
    %cst_245 = arith.constant dense<0.000000e+00> : vector<96x8xf32>
    %1041 = tpu.matmul %1039, %1040, %cst_245 {dimension_numbers = #tpu.dot_dimension_numbers<[1], [1], [0], [0], [0, 0, 1, 0], [], []>} : vector<96x32xbf16>, vector<8x32xbf16>, vector<96x8xf32> -> vector<96x8xf32>
    %1042 = vector.extract_strided_slice %33 {offsets = [1, 0], sizes = [1, 8], strides = [1, 1]} : vector<2x8xf32> to vector<1x8xf32>
    %1043 = vector.broadcast %1042 : vector<1x8xf32> to vector<96x8xf32>
    %1044 = arith.addf %1041, %1043 : vector<96x8xf32>
    %cst_246 = arith.constant dense<0xFF800000> : vector<96xf32>
    %1045 = vector.multi_reduction <maximumf>, %1044, %cst_246 [1] : vector<96x8xf32> to vector<96xf32>
    %1046 = vector.shape_cast %1045 : vector<96xf32> to vector<96x1xf32>
    %1047 = vector.broadcast %1046 : vector<96x1xf32> to vector<96x8xf32>
    %1048 = arith.subf %1044, %1047 : vector<96x8xf32>
    %1049 = math.exp %1048 : vector<96x8xf32>
    %cst_247 = arith.constant dense<0.000000e+00> : vector<96xf32>
    %1050 = vector.multi_reduction <add>, %1049, %cst_247 [1] : vector<96x8xf32> to vector<96xf32>
    %1051 = vector.shape_cast %1050 : vector<96xf32> to vector<96x1xf32>
    %1052 = tpu.reciprocal %1051 {approx = true} : vector<96x1xf32> -> vector<96x1xf32>
    %1053 = vector.broadcast %1052 : vector<96x1xf32> to vector<96x8xf32>
    %1054 = arith.mulf %1049, %1053 : vector<96x8xf32>
    %1055 = arith.truncf %1054 : vector<96x8xf32> to vector<96x8xbf16>
    %1056 = arith.truncf %1029 : vector<8x32xf32> to vector<8x32xbf16>
    %cst_248 = arith.constant dense<0.000000e+00> : vector<96x32xf32>
    %1057 = tpu.matmul %1055, %1056, %cst_248 {dimension_numbers = #tpu.dot_dimension_numbers<[1], [0], [0], [1], [0, 0, 1, 1], [], []>} : vector<96x8xbf16>, vector<8x32xbf16>, vector<96x32xf32> -> vector<96x32xf32>
    %1058 = vector.extract_strided_slice %1057 {offsets = [0, 0], sizes = [24, 32], strides = [1, 1]} : vector<96x32xf32> to vector<24x32xf32>
    %1059 = vector.broadcast %7 : vector<1x32xf32> to vector<24x32xf32>
    %1060 = arith.mulf %1058, %1059 : vector<24x32xf32>
    %1061 = vector.extract_strided_slice %1057 {offsets = [24, 0], sizes = [24, 32], strides = [1, 1]} : vector<96x32xf32> to vector<24x32xf32>
    %1062 = vector.broadcast %14 : vector<1x32xf32> to vector<24x32xf32>
    %1063 = arith.mulf %1061, %1062 : vector<24x32xf32>
    %1064 = arith.addf %1060, %1063 : vector<24x32xf32>
    %1065 = vector.extract_strided_slice %1057 {offsets = [48, 0], sizes = [24, 32], strides = [1, 1]} : vector<96x32xf32> to vector<24x32xf32>
    %1066 = vector.broadcast %21 : vector<1x32xf32> to vector<24x32xf32>
    %1067 = arith.mulf %1065, %1066 : vector<24x32xf32>
    %1068 = arith.addf %1064, %1067 : vector<24x32xf32>
    %1069 = vector.extract_strided_slice %1057 {offsets = [72, 0], sizes = [24, 32], strides = [1, 1]} : vector<96x32xf32> to vector<24x32xf32>
    %1070 = vector.broadcast %28 : vector<1x32xf32> to vector<24x32xf32>
    %1071 = arith.mulf %1069, %1070 : vector<24x32xf32>
    %1072 = arith.addf %1068, %1071 : vector<24x32xf32>
    %1073 = tpu.concatenate %1026, %1072 in 0 : vector<24x32xf32>, vector<24x32xf32> -> vector<48x32xf32>
    %1074 = arith.truncf %1073 : vector<48x32xf32> to vector<48x32xbf16>
    %cst_249 = arith.constant dense<0.000000e+00> : vector<48x32xf32>
    %1075 = tpu.matmul %1074, %967, %cst_249 {dimension_numbers = #tpu.dot_dimension_numbers<[1], [0], [0], [1], [0, 0, 1, 1], [], []>} : vector<48x32xbf16>, vector<32x32xbf16>, vector<48x32xf32> -> vector<48x32xf32>
    %1076 = vector.extract_strided_slice %969 {offsets = [0, 0], sizes = [1, 32], strides = [1, 1]} : vector<4x32xf32> to vector<1x32xf32>
    %1077 = vector.broadcast %1076 : vector<1x32xf32> to vector<48x32xf32>
    %1078 = arith.addf %1075, %1077 : vector<48x32xf32>
    %1079 = arith.addf %961, %1078 : vector<48x32xf32>
    %1080 = vector.extract_strided_slice %969 {offsets = [1, 0], sizes = [1, 32], strides = [1, 1]} : vector<4x32xf32> to vector<1x32xf32>
    %1081 = vector.extract_strided_slice %969 {offsets = [2, 0], sizes = [1, 32], strides = [1, 1]} : vector<4x32xf32> to vector<1x32xf32>
    %cst_250 = arith.constant dense<0.000000e+00> : vector<48xf32>
    %1082 = vector.multi_reduction <add>, %1079, %cst_250 [1] : vector<48x32xf32> to vector<48xf32>
    %1083 = vector.shape_cast %1082 : vector<48xf32> to vector<48x1xf32>
    %cst_251 = arith.constant 3.200000e+01 : f32
    %1084 = vector.broadcast %cst_251 : f32 to vector<48x1xf32>
    %1085 = arith.divf %1083, %1084 : vector<48x1xf32>
    %1086 = vector.broadcast %1085 : vector<48x1xf32> to vector<48x32xf32>
    %1087 = arith.subf %1079, %1086 : vector<48x32xf32>
    %1088 = vector.broadcast %1085 : vector<48x1xf32> to vector<48x32xf32>
    %1089 = arith.subf %1079, %1088 : vector<48x32xf32>
    %1090 = arith.mulf %1087, %1089 : vector<48x32xf32>
    %cst_252 = arith.constant dense<0.000000e+00> : vector<48xf32>
    %1091 = vector.multi_reduction <add>, %1090, %cst_252 [1] : vector<48x32xf32> to vector<48xf32>
    %1092 = vector.shape_cast %1091 : vector<48xf32> to vector<48x1xf32>
    %cst_253 = arith.constant 3.200000e+01 : f32
    %1093 = vector.broadcast %cst_253 : f32 to vector<48x1xf32>
    %1094 = arith.divf %1092, %1093 : vector<48x1xf32>
    %1095 = vector.broadcast %1085 : vector<48x1xf32> to vector<48x32xf32>
    %1096 = arith.subf %1079, %1095 : vector<48x32xf32>
    %cst_254 = arith.constant 9.99999996E-13 : f32
    %1097 = vector.broadcast %cst_254 : f32 to vector<48x1xf32>
    %1098 = arith.addf %1094, %1097 : vector<48x1xf32>
    %1099 = math.rsqrt %1098 : vector<48x1xf32>
    %1100 = vector.broadcast %1099 : vector<48x1xf32> to vector<48x32xf32>
    %1101 = arith.mulf %1096, %1100 : vector<48x32xf32>
    %1102 = vector.broadcast %1080 : vector<1x32xf32> to vector<48x32xf32>
    %1103 = arith.mulf %1101, %1102 : vector<48x32xf32>
    %1104 = vector.broadcast %1081 : vector<1x32xf32> to vector<48x32xf32>
    %1105 = arith.addf %1103, %1104 : vector<48x32xf32>
    %c3_255 = arith.constant 3 : index
    %c0_256 = arith.constant 0 : index
    %c0_257 = arith.constant 0 : index
    %1106 = vector.load %arg11[%c3_255, %c0_256, %c0_257] : memref<4x32x128xbf16, #tpu.memory_space<vmem>>, vector<1x32x128xbf16>
    %1107 = vector.shape_cast %1106 : vector<1x32x128xbf16> to vector<32x128xbf16>
    %c3_258 = arith.constant 3 : index
    %c0_259 = arith.constant 0 : index
    %c0_260 = arith.constant 0 : index
    %1108 = vector.load %arg12[%c3_258, %c0_259, %c0_260] : memref<4x128x32xbf16, #tpu.memory_space<vmem>>, vector<1x128x32xbf16>
    %1109 = vector.shape_cast %1108 : vector<1x128x32xbf16> to vector<128x32xbf16>
    %c3_261 = arith.constant 3 : index
    %c0_262 = arith.constant 0 : index
    %c0_263 = arith.constant 0 : index
    %1110 = vector.load %arg13[%c3_261, %c0_262, %c0_263] : memref<4x4x128xf32, #tpu.memory_space<vmem>>, vector<1x4x128xf32>
    %1111 = vector.shape_cast %1110 : vector<1x4x128xf32> to vector<4x128xf32>
    %1112 = arith.truncf %1105 : vector<48x32xf32> to vector<48x32xbf16>
    %cst_264 = arith.constant dense<0.000000e+00> : vector<48x128xf32>
    %1113 = tpu.matmul %1112, %1107, %cst_264 {dimension_numbers = #tpu.dot_dimension_numbers<[1], [0], [0], [1], [0, 0, 1, 1], [], []>} : vector<48x32xbf16>, vector<32x128xbf16>, vector<48x128xf32> -> vector<48x128xf32>
    %1114 = vector.extract_strided_slice %1111 {offsets = [0, 0], sizes = [1, 128], strides = [1, 1]} : vector<4x128xf32> to vector<1x128xf32>
    %1115 = vector.broadcast %1114 : vector<1x128xf32> to vector<48x128xf32>
    %1116 = arith.addf %1113, %1115 : vector<48x128xf32>
    %1117 = arith.mulf %1116, %1116 : vector<48x128xf32>
    %1118 = arith.mulf %1116, %1117 : vector<48x128xf32>
    %cst_265 = arith.constant 4.471500e-02 : f32
    %1119 = vector.broadcast %cst_265 : f32 to vector<48x128xf32>
    %1120 = arith.mulf %1119, %1118 : vector<48x128xf32>
    %1121 = arith.addf %1116, %1120 : vector<48x128xf32>
    %cst_266 = arith.constant 0.797884583 : f32
    %1122 = vector.broadcast %cst_266 : f32 to vector<48x128xf32>
    %1123 = arith.mulf %1122, %1121 : vector<48x128xf32>
    %1124 = math.tanh %1123 : vector<48x128xf32>
    %cst_267 = arith.constant 1.000000e+00 : f32
    %1125 = vector.broadcast %cst_267 : f32 to vector<48x128xf32>
    %1126 = arith.addf %1125, %1124 : vector<48x128xf32>
    %cst_268 = arith.constant 5.000000e-01 : f32
    %1127 = vector.broadcast %cst_268 : f32 to vector<48x128xf32>
    %1128 = arith.mulf %1127, %1126 : vector<48x128xf32>
    %1129 = arith.mulf %1116, %1128 : vector<48x128xf32>
    %1130 = arith.truncf %1129 : vector<48x128xf32> to vector<48x128xbf16>
    %cst_269 = arith.constant dense<0.000000e+00> : vector<48x32xf32>
    %1131 = tpu.matmul %1130, %1109, %cst_269 {dimension_numbers = #tpu.dot_dimension_numbers<[1], [0], [0], [1], [0, 0, 1, 1], [], []>} : vector<48x128xbf16>, vector<128x32xbf16>, vector<48x32xf32> -> vector<48x32xf32>
    %1132 = vector.extract_strided_slice %1111 {offsets = [1, 0], sizes = [1, 32], strides = [1, 1]} : vector<4x128xf32> to vector<1x32xf32>
    %1133 = vector.broadcast %1132 : vector<1x32xf32> to vector<48x32xf32>
    %1134 = arith.addf %1131, %1133 : vector<48x32xf32>
    %1135 = arith.addf %1105, %1134 : vector<48x32xf32>
    %1136 = vector.extract_strided_slice %1111 {offsets = [2, 0], sizes = [1, 32], strides = [1, 1]} : vector<4x128xf32> to vector<1x32xf32>
    %1137 = vector.extract_strided_slice %1111 {offsets = [3, 0], sizes = [1, 32], strides = [1, 1]} : vector<4x128xf32> to vector<1x32xf32>
    %cst_270 = arith.constant dense<0.000000e+00> : vector<48xf32>
    %1138 = vector.multi_reduction <add>, %1135, %cst_270 [1] : vector<48x32xf32> to vector<48xf32>
    %1139 = vector.shape_cast %1138 : vector<48xf32> to vector<48x1xf32>
    %cst_271 = arith.constant 3.200000e+01 : f32
    %1140 = vector.broadcast %cst_271 : f32 to vector<48x1xf32>
    %1141 = arith.divf %1139, %1140 : vector<48x1xf32>
    %1142 = vector.broadcast %1141 : vector<48x1xf32> to vector<48x32xf32>
    %1143 = arith.subf %1135, %1142 : vector<48x32xf32>
    %1144 = vector.broadcast %1141 : vector<48x1xf32> to vector<48x32xf32>
    %1145 = arith.subf %1135, %1144 : vector<48x32xf32>
    %1146 = arith.mulf %1143, %1145 : vector<48x32xf32>
    %cst_272 = arith.constant dense<0.000000e+00> : vector<48xf32>
    %1147 = vector.multi_reduction <add>, %1146, %cst_272 [1] : vector<48x32xf32> to vector<48xf32>
    %1148 = vector.shape_cast %1147 : vector<48xf32> to vector<48x1xf32>
    %cst_273 = arith.constant 3.200000e+01 : f32
    %1149 = vector.broadcast %cst_273 : f32 to vector<48x1xf32>
    %1150 = arith.divf %1148, %1149 : vector<48x1xf32>
    %1151 = vector.broadcast %1141 : vector<48x1xf32> to vector<48x32xf32>
    %1152 = arith.subf %1135, %1151 : vector<48x32xf32>
    %cst_274 = arith.constant 9.99999996E-13 : f32
    %1153 = vector.broadcast %cst_274 : f32 to vector<48x1xf32>
    %1154 = arith.addf %1150, %1153 : vector<48x1xf32>
    %1155 = math.rsqrt %1154 : vector<48x1xf32>
    %1156 = vector.broadcast %1155 : vector<48x1xf32> to vector<48x32xf32>
    %1157 = arith.mulf %1152, %1156 : vector<48x32xf32>
    %1158 = vector.broadcast %1136 : vector<1x32xf32> to vector<48x32xf32>
    %1159 = arith.mulf %1157, %1158 : vector<48x32xf32>
    %1160 = vector.broadcast %1137 : vector<1x32xf32> to vector<48x32xf32>
    %1161 = arith.addf %1159, %1160 : vector<48x32xf32>
    %1162 = vector.extract_strided_slice %821 {offsets = [0, 0], sizes = [1, 32], strides = [1, 1]} : vector<16x32xf32> to vector<1x32xf32>
    %1163 = vector.extract_strided_slice %821 {offsets = [8, 0], sizes = [1, 32], strides = [1, 1]} : vector<16x32xf32> to vector<1x32xf32>
    %1164 = tpu.concatenate %1162, %1163 in 0 : vector<1x32xf32>, vector<1x32xf32> -> vector<2x32xf32>
    %1165 = vector.extract_strided_slice %1161 {offsets = [0, 0], sizes = [1, 32], strides = [1, 1]} : vector<48x32xf32> to vector<1x32xf32>
    %1166 = vector.extract_strided_slice %1161 {offsets = [24, 0], sizes = [1, 32], strides = [1, 1]} : vector<48x32xf32> to vector<1x32xf32>
    %1167 = tpu.concatenate %1165, %1166 in 0 : vector<1x32xf32>, vector<1x32xf32> -> vector<2x32xf32>
    %1168 = arith.mulf %1164, %1167 : vector<2x32xf32>
    %1169 = arith.truncf %1168 : vector<2x32xf32> to vector<2x32xbf16>
    %c0_275 = arith.constant 0 : index
    %c0_276 = arith.constant 0 : index
    %1170 = vector.load %arg16[%c0_275, %c0_276] : memref<32x128xbf16, #tpu.memory_space<vmem>>, vector<32x128xbf16>
    %cst_277 = arith.constant dense<0.000000e+00> : vector<2x128xf32>
    %1171 = tpu.matmul %1169, %1170, %cst_277 {dimension_numbers = #tpu.dot_dimension_numbers<[1], [0], [0], [1], [0, 0, 1, 1], [], []>} : vector<2x32xbf16>, vector<32x128xbf16>, vector<2x128xf32> -> vector<2x128xf32>
    %c0_278 = arith.constant 0 : index
    %c0_279 = arith.constant 0 : index
    %1172 = vector.load %arg17[%c0_278, %c0_279] : memref<1x128xf32, #tpu.memory_space<vmem>>, vector<1x128xf32>
    %1173 = vector.broadcast %1172 : vector<1x128xf32> to vector<2x128xf32>
    %1174 = arith.addf %1171, %1173 : vector<2x128xf32>
    %c0_280 = arith.constant 0 : index
    %c0_281 = arith.constant 0 : index
    %1175 = vector.load %arg18[%c0_280, %c0_281] : memref<2x128xf32, #tpu.memory_space<vmem>>, vector<2x128xf32>
    tpu.vector_store %arg18[%c0_280, %c0_281], %1174 {strides = array<i32>} : memref<2x128xf32, #tpu.memory_space<vmem>>, vector<2x128xf32>,
    return
  }
}

</mosaic_0001>

<bundles_post_ra>
// kernel: vl_transformer_itm_forward.1
= control target key start
LH: loop header
LB: loop body
LE: loop exit
PB: predicated region body
PF: predicated region fallthrough
CT: control target
= control target key end

     0   :  { %s10981_s0 = inlined_call_operand.vmem [shape: f32[48,16], index: 0, kind: input, shape index: {}]   ;;  %s10982_s1 = inlined_call_operand.vmem [shape: f32[16,32], index: 1, kind: input, shape index: {}]   ;;  %s10983_s2 = inlined_call_operand.vmem [shape: f32[2,8], index: 2, kind: input, shape index: {}]   ;;  %s10984_s3 = inlined_call_operand.vmem [shape: f32[2,24], index: 3, kind: input, shape index: {}]   ;;  %s10985_s4 = inlined_call_operand.vmem [shape: bf16[16,32], index: 4, kind: input, shape index: {}]   ;;  %s10986_s5 = inlined_call_operand.vmem [shape: f32[48,32], index: 5, kind: input, shape index: {}]   ;;  %s10987_s6 = inlined_call_operand.vmem [shape: f32[2,32], index: 6, kind: input, shape index: {}]   ;;  %s10988_s7 = inlined_call_operand.vmem [shape: bf16[6,32,128], index: 7, kind: input, shape index: {}]   ;;  %s10989_s8 = inlined_call_operand.vmem [shape: f32[6,1,128], index: 8, kind: input, shape index: {}]   ;;  %s10990_s9 = inlined_call_operand.vmem [shape: bf16[6,32,32], index: 9, kind: input, shape index: {}]   ;;  %s10991_s10 = inlined_call_operand.vmem [shape: f32[6,4,32], index: 10, kind: input, shape index: {}]   ;;  %s10992_s11 = inlined_call_operand.vmem [shape: bf16[4,32,128], index: 11, kind: input, shape index: {}]   ;;  %s10993_s12 = inlined_call_operand.vmem [shape: bf16[4,128,32], index: 12, kind: input, shape index: {}]   ;;  %s10994_s13 = inlined_call_operand.vmem [shape: f32[4,4,128], index: 13, kind: input, shape index: {}]   ;;  %s10995_s14 = inlined_call_operand.vmem [shape: bf16[32,128], index: 14, kind: input, shape index: {}]   ;;  %s10996_s15 = inlined_call_operand.vmem [shape: f32[1,128], index: 15, kind: input, shape index: {}]   ;;  %s10997_s16 = inlined_call_operand.vmem [shape: bf16[32,128], index: 16, kind: input, shape index: {}]   ;;  %s10998_s17 = inlined_call_operand.vmem [shape: f32[1,128], index: 17, kind: input, shape index: {}]   ;;  %s10999_s18 = inlined_call_operand.hbm [shape: f32[2,128], index: 18, kind: output, shape index: {0}]   ;;  %s11000_s19 = inlined_call_operand.hbm [shape: f32[2,128], index: 19, kind: output, shape index: {1}]  }
   0x1   :  { %11003 = sst [smem:[#allocation8_spill]] %s10981_s0 }
   0x2   :  { %11004 = sst [smem:[#allocation9_spill]] %s10982_s1 }
   0x3   :  { %11005 = sst [smem:[#allocation10_spill]] %s10983_s2 }
   0x4   :  { %11006 = sst [smem:[#allocation11_spill]] %s10984_s3 }
   0x5   :  { %25 = vsyncpa [#allocation3], 0  ;;  %v7794_v0 = vld [vmem:[%s10985_s4] sm:$0xff]   ;;  %v8402_v1 = vmov 0.0   ;;  %s11007_s1 = sld [smem:[#allocation8_spill]]  ;;  %vm8403_vm0 = vmmov 0  }
   0x6   :  { %7147 = vmatprep.subr.bf16.mxu0 %v8402_v1  ;;  %7161 = vmatprep.subr.bf16.mxu1 %v8402_v1  ;;  %vm115_vm1 = vcmask 130048  }
   0x7   :  { %7148 = vmatpush3.bf16.msra.mxu0 %v7794_v0  ;;  %7149 = vmatprep.mubr.msk.bf16.mxu0 %vm8403_vm0, %v8402_v1 }
   0x8   :  { %7165 = vmatprep.mubr.msk.bf16.mxu1 %vm8403_vm0, %v8402_v1 }
   0xb   :  { %v92_v2 = vld [vmem:[%s11007_s1] sm:$0xff]  ;;  %v93_v3 = vld [vmem:[%s11007_s1 + $0x8] sm:$0xff]  ;;  %v94_v5 = vld [vmem:[%s11007_s1 + $0x10] sm:$0xff] }
   0xc   :  { %v98_v4 = vpack.c.bf16 %v93_v3, %v92_v2  ;;  %v95_v6 = vld [vmem:[%s11007_s1 + $0x18] sm:$0xff]  ;;  %v96_v8 = vld [vmem:[%s11007_s1 + $0x20] sm:$0xff]  ;;  %v97_v9 = vld [vmem:[%s11007_s1 + $0x28] sm:$0xff] }
   0xd   :  { %v99_v7 = vpack.c.bf16 %v95_v6, %v94_v5  ;;  %v100_v10 = vpack.c.bf16 %v97_v9, %v96_v8 }
   0xe   :  { %7150 = vmatmul.mubr.msk.bf16.vlgmr.msra.gmra.mxu0 %vm115_vm1, %v98_v4 }
   0xf   :  { %7153 = vmatprep.mubr.msk.bf16.mxu0 %vm8403_vm0, %v8402_v1 }
  0x16   :  { %7154 = vmatmul.mubr.msk.bf16.gmra.mxu0 %vm115_vm1, %v99_v7 }
  0x17   :  { %7157 = vmatprep.mubr.msk.bf16.mxu0 %vm8403_vm0, %v8402_v1 }
  0x1e   :  { %7158 = vmatmul.mubr.msk.bf16.gmra.mxu0 %vm115_vm1, %v100_v10 }
  0x1f   :  { %26 = vsyncpa [#allocation5], 0  ;;  %v7795_v11 = vld [vmem:[%s10988_s7 + $0x8] sm:$0xff]   ;;  %v7796_v12 = vld [vmem:[%s10988_s7] sm:$0xff]   ;;  %vm213_vm2 = vcmask 261120   ;;  %v64_v40 = vlaneseq  ;;  %s8404_s0 = smov 96  }
  0x20   :  { %7162 = vmatpush3.bf16.msra.mxu1 %v7795_v11  ;;  %v103_v14 = vld [vmem:[%s10986_s5] sm:$0xff]  ;;  %v104_v16 = vld [vmem:[%s10986_s5 + $0x8] sm:$0xff]  ;;  %v105_v23 = vld [vmem:[%s10986_s5 + $0x10] sm:$0xff]  ;;  %s11008_s21 = sld [smem:[#allocation11_spill]]  ;;  %vm415_vm13 = vcmask 195584   ;;  %s8405_s1 = smov 64  }
  0x21   :  { %7163 = vmatprep.subr.bf16.mxu1 %v8402_v1  ;;  %v106_v25 = vld [vmem:[%s10986_s5 + $0x18] sm:$0xff]  ;;  %v107_v31 = vld [vmem:[%s10986_s5 + $0x20] sm:$0xff]  ;;  %v108_v34 = vld [vmem:[%s10986_s5 + $0x28] sm:$0xff]  ;;  %v65_v41 = vand.u32 127, %v64_v40  ;;  %vm577_vm14 = vcmask 1043456   ;;  %s11009_s22 = sld [smem:[#allocation9_spill]] }
  0x22   :  { %v6568_v42 = vld [vmem:[%s10989_s8] ss:$0 sm:$0xff]  ;;  %vm1653_vm15 = vcmask 1040384   ;;  %s11010_s4 = sld [smem:[#allocation10_spill]]  ;;  %vm1922_vm1 = vcmask 64512  }
  0x23   :  { %vm76_vm3 = vcmp.ge.s32.totalorder %v65_v41, 16  ;;  %vm77_vm4 = vcmp.lt.s32.totalorder %v65_v41, 24  ;;  %vm71_vm5 = vcmp.ge.s32.totalorder %v65_v41, 8  ;;  %vm72_vm6 = vcmp.lt.s32.totalorder %v65_v41, 16 }
  0x24   :  { %7164 = vmatpush3.bf16.msra.mxu1 %v7796_v12  ;;  %vm81_vm7 = vcmp.ge.s32.totalorder %v65_v41, 24  ;;  %vm82_vm8 = vcmp.lt.s32.totalorder %v65_v41, 32  ;;  %vm67_vm9 = vcmp.lt.s32.totalorder %v65_v41, 8  ;;  %vm78_vm10 = vmand %vm76_vm3, %vm77_vm4  ;;  %vm1723_vm3 = vcmask 1041408  }
  0x25   :  { %vm73_vm11 = vmand %vm71_vm5, %vm72_vm6  ;;  %v8594_v47 = vsel %vm67_vm9, 1.0, %v8402_v1  ;;  %v8597_v48 = vsel %vm78_vm10, 1.0, %v8402_v1 }
  0x26   :  { %vm83_vm12 = vmand %vm81_vm7, %vm82_vm8  ;;  %v8600_v50 = vsel %vm73_vm11, 1.0, %v8402_v1 }
  0x27   :  { %v8603_v52 = vsel %vm83_vm12, 1.0, %v8402_v1 }
  0xce   :  { %v159_v13 = vpop.f32.mrf.mxu0 }
  0xcf   :  { %v8552_v18 = vadd.f32 %v159_v13, %v103_v14 }
  0xd0   :  { %v7151_v15 = vpop.f32.mrf.mxu0 }
  0xd2   :  { %v162_v17 = vpop.f32.mrf.mxu0 }
  0xd3   :  { %v8554_v19 = vadd.f32 %v162_v17, %v104_v16 }
  0xd4   :  { %v7152_v20 = vpop.f32.mrf.mxu0 }
  0xd5   :  { %v192_v21 = vpack.c.bf16 %v8554_v19, %v8552_v18 }
  0xd6   :  { %v167_v22 = vpop.f32.mrf.mxu0 }
  0xd7   :  { %7166 = vmatmul.mubr.msk.bf16.vlgmr.msra.gmra.mxu1 %vm213_vm2, %v192_v21  ;;  %v8567_v27 = vadd.f32 %v167_v22, %v105_v23 }
  0xd8   :  { %v7155_v24 = vpop.f32.mrf.mxu0  ;;  %7169 = vmatprep.mubr.msk.bf16.mxu1 %vm8403_vm0, %v8402_v1 }
  0xda   :  { %v170_v26 = vpop.f32.mrf.mxu0 }
  0xdb   :  { %v8569_v28 = vadd.f32 %v170_v26, %v106_v25 }
  0xdc   :  { %v7156_v29 = vpop.f32.mrf.mxu0 }
  0xdd   :  { %v193_v30 = vpack.c.bf16 %v8569_v28, %v8567_v27 }
  0xde   :  { %v175_v32 = vpop.f32.mrf.mxu0 }
  0xdf   :  { %7170 = vmatmul.mubr.msk.bf16.gmra.mxu1 %vm213_vm2, %v193_v30  ;;  %v8582_v35 = vadd.f32 %v175_v32, %v107_v31 }
  0xe0   :  { %v7159_v33 = vpop.f32.mrf.mxu0  ;;  %7173 = vmatprep.mubr.msk.bf16.mxu1 %vm8403_vm0, %v8402_v1 }
  0xe2   :  { %v178_v36 = vpop.f32.mrf.mxu0 }
  0xe3   :  { %v8584_v37 = vadd.f32 %v178_v36, %v108_v34 }
  0xe4   :  { %v7160_v38 = vpop.f32.mrf.mxu0 }
  0xe5   :  { %v194_v39 = vpack.c.bf16 %v8584_v37, %v8582_v35 }
  0xe7   :  { %7174 = vmatmul.mubr.msk.bf16.gmra.mxu1 %vm213_vm2, %v194_v39 }
 0x197   :  { %v257_v43 = vpop.f32.mrf.mxu1 }
 0x198   :  { %v258_v45 = vadd.f32 %v6568_v42, %v257_v43 }
 0x199   :  { %v7167_v44 = vpop.f32.mrf.mxu1 }
 0x19a   :  { %v280_v53 = vmul.f32 %v8594_v47, %v258_v45  ;;  %v8608_v55 = vmul.f32 %v8597_v48, %v258_v45  ;;  %v283_v61 = vmul.f32 %v8600_v50, %v258_v45  ;;  %v8618_v0 = vmul.f32 %v8603_v52, %v258_v45 }
 0x19b   :  { %v260_v46 = vpop.f32.mrf.mxu1 }
 0x19c   :  { %v261_v49 = vadd.f32 %v6568_v42, %v260_v46 }
 0x19d   :  { %v7168_v51 = vpop.f32.mrf.mxu1 }
 0x19e   :  { %v281_v54 = vmul.f32 %v8594_v47, %v261_v49  ;;  %v8611_v56 = vmul.f32 %v8597_v48, %v261_v49  ;;  %v284_v63 = vmul.f32 %v8600_v50, %v261_v49  ;;  %v290_v7 = vmul.f32 %v8603_v52, %v261_v49 }
 0x19f   :  { %v265_v57 = vpop.f32.mrf.mxu1  ;;  %v8631_v15 = vpack.c.bf16 %v261_v49, %v258_v45 }
 0x1a0   :  { %v266_v58 = vadd.f32 %v6568_v42, %v265_v57  ;;  %v292_v59 = vpack.c.bf16 %v281_v54, %v280_v53  ;;  %v295_v60 = vpack.c.bf16 %v8611_v56, %v8608_v55  ;;  %v89_v55 = vld [vmem:[%s11008_s21] sm:$0x3] }
 0x1a1   :  { %v7171_v62 = vpop.f32.mrf.mxu1  ;;  %v6563_v56 = vadd.f32 -1.0, %v89_v55 }
 0x1a2   :  { %v282_v2 = vmul.f32 %v8594_v47, %v266_v58  ;;  %7181 = vmatprep.mubr.msk.bf16.mxu0 %vm213_vm2, %v292_v59  ;;  %v8622_v3 = vpack.c.bf16 %v266_v58, %v266_v58  ;;  %v285_v4 = vmul.f32 %v8600_v50, %v266_v58  ;;  %v288_v5 = vmul.f32 %v8597_v48, %v266_v58 }
 0x1a3   :  { %v268_v6 = vpop.f32.mrf.mxu1  ;;  %v291_v8 = vmul.f32 %v8603_v52, %v266_v58 }
 0x1a4   :  { %v293_v9 = vpack.c.bf16 %v283_v61, %v282_v2  ;;  %308 = vrot.lane.b32.xlu0 %v8622_v3, %s8404_s0  ;;  %v294_v10 = vpack.c.bf16 %v285_v4, %v284_v63  ;;  %v296_v11 = vpack.c.bf16 %v8618_v0, %v288_v5  ;;  %v269_v14 = vadd.f32 %v6568_v42, %v268_v6 }
 0x1a5   :  { %v7172_v12 = vpop.f32.mrf.mxu1  ;;  %v297_v13 = vpack.c.bf16 %v291_v8, %v290_v7  ;;  %v91_v0 = vmul.f32 1e+09, %v6563_v56 }
 0x1a6   :  { %v683_v21 = vmul.f32 %v8594_v47, %v269_v14  ;;  %v689_v23 = vmul.f32 %v8597_v48, %v269_v14  ;;  %v686_v32 = vmul.f32 %v8600_v50, %v269_v14  ;;  %v692_v34 = vmul.f32 %v8603_v52, %v269_v14 }
 0x1a7   :  { %v273_v16 = vpop.f32.mrf.mxu1 }
 0x1a8   :  { %v274_v17 = vadd.f32 %v6568_v42, %v273_v16  ;;  %306 = vrot.lane.b32.xlu0 %v8631_v15, %s8404_s0 }
 0x1a9   :  { %v7175_v20 = vpop.f32.mrf.mxu1 }
 0x1aa   :  { %v684_v22 = vmul.f32 %v8594_v47, %v274_v17  ;;  %v690_v24 = vmul.f32 %v8597_v48, %v274_v17  ;;  %v687_v30 = vmul.f32 %v8600_v50, %v274_v17  ;;  %v693_v36 = vmul.f32 %v8603_v52, %v274_v17 }
 0x1ab   :  { %v276_v25 = vpop.f32.mrf.mxu1  ;;  %v8651_v51 = vpack.c.bf16 %v274_v17, %v269_v14 }
 0x1ac   :  { %v277_v26 = vadd.f32 %v6568_v42, %v276_v25  ;;  %v695_v29 = vpack.c.bf16 %v684_v22, %v683_v21  ;;  %v698_v31 = vpack.c.bf16 %v690_v24, %v689_v23 }
 0x1ad   :  { %v7176_v33 = vpop.f32.mrf.mxu1 }
 0x1ae   :  { %v685_v38 = vmul.f32 %v8594_v47, %v277_v26  ;;  %v8644_v39 = vpack.c.bf16 %v277_v26, %v277_v26  ;;  %v688_v41 = vmul.f32 %v8600_v50, %v277_v26  ;;  %v691_v43 = vmul.f32 %v8597_v48, %v277_v26 }
 0x1af   :  { %v694_v42 = vmul.f32 %v8603_v52, %v277_v26 }
 0x1b0   :  { %v696_v44 = vpack.c.bf16 %v686_v32, %v685_v38  ;;  %711 = vrot.lane.b32.xlu1 %v8644_v39, %s8404_s0  ;;  %v697_v45 = vpack.c.bf16 %v688_v41, %v687_v30  ;;  %v699_v46 = vpack.c.bf16 %v692_v34, %v691_v43 }
 0x1b1   :  { %v700_v49 = vpack.c.bf16 %v694_v42, %v693_v36 }
 0x1b4   :  { %709 = vrot.lane.b32.xlu1 %v8651_v51, %s8404_s0 }
 0x216   :  { %v309_v53 = vpop.permute.xlu0 %308 }
 0x217   :  { %7757 = vmatprep.subr.msk.bf16.mxu0 %vm213_vm2, %v309_v53  ;;  %v332_v54 = vsel %vm213_vm2, %v309_v53, 0 }
 0x218   :  { %7178 = vmatpush3.bf16.xpose.msra.mxu0 %v332_v54 }
 0x21a   :  { %v307_v57 = vpop.permute.xlu0 %306 }
 0x21b   :  { %7758 = vmatprep.subr.msk.bf16.mxu0 %vm213_vm2, %v307_v57  ;;  %v329_v58 = vsel %vm213_vm2, %v307_v57, 0 }
 0x220   :  { %7180 = vmatpush3.bf16.xpose.msra.mxu0 %v329_v58 }
 0x222   :  { %v712_v59 = vpop.permute.xlu1 %711 }
 0x223   :  { %7760 = vmatprep.subr.msk.bf16.mxu0 %vm213_vm2, %v712_v59  ;;  %v735_v61 = vsel %vm213_vm2, %v712_v59, 0 }
 0x226   :  { %v710_v62 = vpop.permute.xlu1 %709 }
 0x227   :  { %7182 = vmatmul.mubr.msk.bf16.vlgmr.msra.gmra.mxu0 %vm213_vm2, %v293_v9  ;;  %v732_v63 = vsel %vm213_vm2, %v710_v62, 0 }
 0x228   :  { %7185 = vmatprep.mubr.msk.bf16.mxu0 %vm213_vm2, %v294_v10  ;;  %7210 = vmatpush3.bf16.xpose.msra.mxu0 %v735_v61 }
 0x229   :  { %7761 = vmatprep.subr.msk.bf16.mxu0 %vm213_vm2, %v710_v62 }
 0x22f   :  { %7186 = vmatmul.mubr.msk.bf16.gmra.mxu0 %vm213_vm2, %v295_v60  ;;  %v8681_v60 = vshrl.u32 %v64_v40, 7 }
 0x230   :  { %7189 = vmatprep.mubr.msk.bf16.mxu0 %vm213_vm2, %v296_v11  ;;  %7212 = vmatpush3.bf16.xpose.msra.mxu0 %v732_v63 }
 0x231   :  { %v8684_v2 = vsub.s32 0, %v8681_v60  ;;  %v8731_v34 = vsub.s32 1, %v8681_v60 }
 0x233   :  { %v8687_v4 = vrot.slane %v91_v0, %v8684_v2 }
 0x237   :  { %7190 = vmatmul.mubr.msk.bf16.gmra.mxu0 %vm213_vm2, %v297_v13 }
 0x238   :  { %7213 = vmatprep.mubr.msk.bf16.mxu0 %vm213_vm2, %v695_v29 }
 0x23f   :  { %7214 = vmatmul.mubr.msk.bf16.vlgmr.msra.gmra.mxu0 %vm213_vm2, %v696_v44 }
 0x240   :  { %7217 = vmatprep.mubr.msk.bf16.mxu0 %vm213_vm2, %v697_v45  ;;  %v8744_v45 = vrot.slane %v91_v0, %v8731_v34 }
 0x247   :  { %7218 = vmatmul.mubr.msk.bf16.gmra.mxu0 %vm213_vm2, %v698_v31 }
 0x248   :  { %7221 = vmatprep.mubr.msk.bf16.mxu0 %vm213_vm2, %v699_v46 }
 0x24f   :  { %7222 = vmatmul.mubr.msk.bf16.gmra.mxu0 %vm213_vm2, %v700_v49 }
 0x2e7   :  { %v7183_v5 = vpop.f32.mrf.mxu0 }
 0x2e8   :  { %v8690_v6 = vadd.f32 %v7183_v5, %v8687_v4 }
 0x2e9   :  { %v368_v7 = vpop.f32.mrf.mxu0 }
 0x2ea   :  { %v8693_v8 = vadd.f32 %v368_v7, %v8687_v4  ;;  %v422_v40 = vsel %vm415_vm13, %v8690_v6, -inf }
 0x2eb   :  { %423 = vmax.xlane.f32.xlu0 %v422_v40  ;;  %v7184_v9 = vpop.f32.mrf.mxu0 }
 0x2ec   :  { %v8698_v11 = vadd.f32 %v7184_v9, %v8687_v4  ;;  %v416_v13 = vsel %vm415_vm13, %v8693_v8, -inf }
 0x2ed   :  { %v371_v10 = vpop.f32.mrf.mxu0 }
 0x2ee   :  { %v8701_v12 = vadd.f32 %v371_v10, %v8687_v4  ;;  %v425_v21 = vsel %vm415_vm13, %v8698_v11, -inf }
 0x2ef   :  { %v7187_v14 = vpop.f32.mrf.mxu0  ;;  %417 = vmax.xlane.f32.xlu0 %v416_v13 }
 0x2f0   :  { %v8706_v16 = vadd.f32 %v7187_v14, %v8687_v4  ;;  %v419_v17 = vsel %vm415_vm13, %v8701_v12, -inf }
 0x2f1   :  { %v384_v20 = vpop.f32.mrf.mxu0  ;;  %420 = vmax.xlane.f32.xlu1 %v419_v17 }
 0x2f2   :  { %v8713_v23 = vadd.f32 %v384_v20, %v8687_v4  ;;  %v434_v25 = vsel %vm415_vm13, %v8706_v16, -inf }
 0x2f3   :  { %v7188_v22 = vpop.f32.mrf.mxu0  ;;  %426 = vmax.xlane.f32.xlu0 %v425_v21 }
 0x2f4   :  { %v8716_v24 = vadd.f32 %v7188_v22, %v8687_v4  ;;  %v428_v33 = vsel %vm415_vm13, %v8713_v23, -inf }
 0x2f5   :  { %v387_v26 = vpop.f32.mrf.mxu0  ;;  %435 = vmax.xlane.f32.xlu1 %v434_v25 }
 0x2f6   :  { %v8721_v29 = vadd.f32 %v387_v26, %v8687_v4  ;;  %v437_v30 = vsel %vm415_vm13, %v8716_v24, -inf }
 0x2f7   :  { %v7191_v31 = vpop.f32.mrf.mxu0  ;;  %438 = vmax.xlane.f32.xlu0 %v437_v30 }
 0x2f8   :  { %v8726_v32 = vadd.f32 %v7191_v31, %v8687_v4  ;;  %v431_v38 = vsel %vm415_vm13, %v8721_v29, -inf }
 0x2f9   :  { %v400_v36 = vpop.f32.mrf.mxu0  ;;  %429 = vmax.xlane.f32.xlu1 %v428_v33 }
 0x2fa   :  { %v8736_v43 = vadd.f32 %v400_v36, %v8687_v4  ;;  %v446_v44 = vsel %vm415_vm13, %v8726_v32, -inf }
 0x2fb   :  { %v7192_v41 = vpop.f32.mrf.mxu0  ;;  %432 = vmax.xlane.f32.xlu0 %v431_v38 }
 0x2fc   :  { %v8739_v42 = vadd.f32 %v7192_v41, %v8687_v4  ;;  %v440_v58 = vsel %vm415_vm13, %v8736_v43, -inf }
 0x2fd   :  { %v403_v46 = vpop.f32.mrf.mxu0  ;;  %447 = vmax.xlane.f32.xlu1 %v446_v44 }
 0x2fe   :  { %v8747_v49 = vadd.f32 %v403_v46, %v8687_v4  ;;  %v449_v53 = vsel %vm415_vm13, %v8739_v42, -inf }
 0x2ff   :  { %v7215_v54 = vpop.f32.mrf.mxu0  ;;  %450 = vmax.xlane.f32.xlu0 %v449_v53 }
 0x300   :  { %v8752_v57 = vadd.f32 %v7215_v54, %v8744_v45  ;;  %v443_v61 = vsel %vm415_vm13, %v8747_v49, -inf }
 0x301   :  { %v771_v59 = vpop.f32.mrf.mxu0  ;;  %441 = vmax.xlane.f32.xlu1 %v440_v58 }
 0x302   :  { %v8759_v63 = vadd.f32 %v771_v59, %v8744_v45  ;;  %v824_v55 = vsel %vm415_vm13, %v8752_v57, -inf }
 0x303   :  { %v7216_v62 = vpop.f32.mrf.mxu0  ;;  %444 = vmax.xlane.f32.xlu0 %v443_v61 }
 0x304   :  { %v818_v40 = vsel %vm415_vm13, %v8759_v63, -inf  ;;  %v8792_v36 = vadd.f32 %v7216_v62, %v8744_v45 }
 0x305   :  { %v774_v56 = vpop.f32.mrf.mxu0  ;;  %825 = vmax.xlane.f32.xlu1 %v824_v55 }
 0x306   :  { %v8764_v0 = vadd.f32 %v774_v56, %v8744_v45  ;;  %v827_v58 = vsel %vm415_vm13, %v8792_v36, -inf }
 0x307   :  { %v7219_v5 = vpop.f32.mrf.mxu0 }
 0x308   :  { %v8767_v7 = vadd.f32 %v7219_v5, %v8744_v45  ;;  %v821_v9 = vsel %vm415_vm13, %v8764_v0, -inf }
 0x309   :  { %v787_v10 = vpop.f32.mrf.mxu0  ;;  %819 = vmax.xlane.f32.xlu1 %v818_v40  ;;  %822 = vmax.xlane.f32.xlu0 %v821_v9 }
 0x30a   :  { %v8774_v14 = vadd.f32 %v787_v10, %v8744_v45  ;;  %v836_v20 = vsel %vm415_vm13, %v8767_v7, -inf }
 0x30b   :  { %v7220_v13 = vpop.f32.mrf.mxu0 }
 0x30c   :  { %v8777_v17 = vadd.f32 %v7220_v13, %v8744_v45  ;;  %v830_v31 = vsel %vm415_vm13, %v8774_v14, -inf }
 0x30d   :  { %v790_v21 = vpop.f32.mrf.mxu0  ;;  %837 = vmax.xlane.f32.xlu1 %v836_v20 }
 0x30e   :  { %v8782_v22 = vadd.f32 %v790_v21, %v8744_v45  ;;  %v839_v25 = vsel %vm415_vm13, %v8777_v17, -inf }
 0x30f   :  { %v7223_v26 = vpop.f32.mrf.mxu0  ;;  %840 = vmax.xlane.f32.xlu0 %v839_v25 }
 0x310   :  { %v8787_v30 = vadd.f32 %v7223_v26, %v8744_v45  ;;  %v833_v38 = vsel %vm415_vm13, %v8782_v22, -inf }
 0x311   :  { %v803_v33 = vpop.f32.mrf.mxu0  ;;  %831 = vmax.xlane.f32.xlu1 %v830_v31 }
 0x312   :  { %v8797_v44 = vadd.f32 %v803_v33, %v8744_v45  ;;  %v848_v46 = vsel %vm415_vm13, %v8787_v30, -inf }
 0x313   :  { %v7224_v41 = vpop.f32.mrf.mxu0  ;;  %834 = vmax.xlane.f32.xlu0 %v833_v38 }
 0x314   :  { %v842_v59 = vsel %vm415_vm13, %v8797_v44, -inf  ;;  %v8809_v61 = vadd.f32 %v7224_v41, %v8744_v45 }
 0x315   :  { %v806_v53 = vpop.f32.mrf.mxu0  ;;  %849 = vmax.xlane.f32.xlu1 %v848_v46 }
 0x316   :  { %v8802_v54 = vadd.f32 %v806_v53, %v8744_v45  ;;  %v851_v55 = vsel %vm415_vm13, %v8809_v61, -inf }
 0x317   :  { %828 = vmax.xlane.f32.xlu0 %v827_v58 }
 0x318   :  { %v845_v62 = vsel %vm415_vm13, %v8802_v54, -inf }
 0x319   :  { %843 = vmax.xlane.f32.xlu1 %v842_v59 }
 0x31b   :  { %846 = vmax.xlane.f32.xlu0 %v845_v62 }
 0x31f   :  { %852 = vmax.xlane.f32.xlu0 %v851_v55 }
 0x32a   :  { %556 = vrot.lane.b32.xlu1 %v8622_v3, %s8405_s1 }
 0x32e   :  { %554 = vrot.lane.b32.xlu1 %v8631_v15, %s8405_s1 }
 0x374   :  { %v424_v56 = vpop.xlane.xlu0 %423 }
 0x375   :  { %v454_v5 = vsub.f32 %v8690_v6, %v424_v56 }
 0x377   :  { %v468_v40 = vmul.f32 1.442695, %v454_v5 }
 0x378   :  { %v418_v9 = vpop.xlane.xlu0 %417 }
 0x379   :  { %7863 = vpow2.f32 %v468_v40  ;;  %v452_v10 = vsub.f32 %v8693_v8, %v418_v9 }
 0x37a   :  { %v421_v13 = vpop.xlane.xlu1 %420 }
 0x37b   :  { %v464_v20 = vmul.f32 1.442695, %v452_v10  ;;  %v453_v21 = vsub.f32 %v8701_v12, %v421_v13 }
 0x37c   :  { %v427_v25 = vpop.xlane.xlu0 %426 }
 0x37d   :  { %7865 = vpow2.f32 %v464_v20  ;;  %v455_v26 = vsub.f32 %v8698_v11, %v427_v25  ;;  %v466_v3 = vmul.f32 1.442695, %v453_v21 }
 0x37e   :  { %v436_v31 = vpop.xlane.xlu1 %435 }
 0x37f   :  { %v470_v33 = vmul.f32 1.442695, %v455_v26  ;;  %v458_v15 = vsub.f32 %v8706_v16, %v436_v31 }
 0x380   :  { %v439_v38 = vpop.xlane.xlu0 %438 }
 0x381   :  { %7867 = vpow2.f32 %v470_v33  ;;  %v476_v6 = vmul.f32 1.442695, %v458_v15  ;;  %v459_v41 = vsub.f32 %v8716_v24, %v439_v38 }
 0x382   :  { %7869 = vpow2.f32 %v466_v3  ;;  %v430_v8 = vpop.xlane.xlu1 %429 }
 0x383   :  { %7871 = vpow2.f32 %v476_v6  ;;  %v478_v46 = vmul.f32 1.442695, %v459_v41  ;;  %v456_v12 = vsub.f32 %v8713_v23, %v430_v8 }
 0x384   :  { %v433_v53 = vpop.xlane.xlu0 %432 }
 0x385   :  { %v472_v58 = vmul.f32 1.442695, %v456_v12  ;;  %v457_v11 = vsub.f32 %v8721_v29, %v433_v53  ;;  %7873 = vpow2.f32 %v478_v46 }
 0x386   :  { %v8827_v59 = vpop.eup %7863  ;;  %v448_v62 = vpop.xlane.xlu1 %447 }
 0x387   :  { %7875 = vpow2.f32 %v472_v58  ;;  %v474_v16 = vmul.f32 1.442695, %v457_v11  ;;  %v462_v55 = vsub.f32 %v8726_v32, %v448_v62  ;;  %v494_v24 = vsel %vm415_vm13, %v8827_v59, 0.0 }
 0x388   :  { %495 = vadd.xlane.f32.xlu1 %v494_v24  ;;  %v451_v56 = vpop.xlane.xlu0 %450 }
 0x389   :  { %v484_v5 = vmul.f32 1.442695, %v462_v55  ;;  %v463_v23 = vsub.f32 %v8739_v42, %v451_v56  ;;  %7877 = vpow2.f32 %v474_v16 }
 0x38a   :  { %v8833_v40 = vpop.eup %7865  ;;  %v442_v29 = vpop.xlane.xlu1 %441 }
 0x38b   :  { %7879 = vpow2.f32 %v484_v5  ;;  %v486_v9 = vmul.f32 1.442695, %v463_v23  ;;  %v460_v10 = vsub.f32 %v8736_v43, %v442_v29  ;;  %v488_v13 = vsel %vm415_vm13, %v8833_v40, 0.0 }
 0x38c   :  { %489 = vadd.xlane.f32.xlu1 %v488_v13  ;;  %v445_v32 = vpop.xlane.xlu0 %444 }
 0x38d   :  { %v480_v20 = vmul.f32 1.442695, %v460_v10  ;;  %v461_v21 = vsub.f32 %v8747_v49, %v445_v32  ;;  %7881 = vpow2.f32 %v486_v9 }
 0x38e   :  { %v8839_v25 = vpop.eup %7867  ;;  %v826_v42 = vpop.xlane.xlu1 %825 }
 0x38f   :  { %v8841_v26 = vpop.eup %7869  ;;  %7883 = vpow2.f32 %v480_v20  ;;  %v482_v3 = vmul.f32 1.442695, %v461_v21  ;;  %v856_v31 = vsub.f32 %v8752_v57, %v826_v42  ;;  %v497_v43 = vsel %vm415_vm13, %v8839_v25, 0.0 }
 0x390   :  { %v8846_v33 = vpop.eup %7871  ;;  %498 = vadd.xlane.f32.xlu0 %v497_v43  ;;  %v491_v6 = vsel %vm415_vm13, %v8841_v26, 0.0 }
 0x391   :  { %v506_v15 = vsel %vm415_vm13, %v8846_v33, 0.0  ;;  %7885 = vpow2.f32 %v482_v3  ;;  %v870_v8 = vmul.f32 1.442695, %v856_v31 }
 0x392   :  { %v820_v49 = vpop.xlane.xlu1 %819  ;;  %507 = vadd.xlane.f32.xlu1 %v506_v15  ;;  %v823_v38 = vpop.xlane.xlu0 %822 }
 0x393   :  { %v8852_v41 = vpop.eup %7873  ;;  %v854_v57 = vsub.f32 %v8759_v63, %v820_v49  ;;  %v855_v46 = vsub.f32 %v8764_v0, %v823_v38  ;;  %7887 = vpow2.f32 %v870_v8 }
 0x394   :  { %v8856_v12 = vpop.eup %7875  ;;  %492 = vadd.xlane.f32.xlu0 %v491_v6  ;;  %v509_v55 = vsel %vm415_vm13, %v8852_v41, 0.0 }
 0x395   :  { %v868_v53 = vmul.f32 1.442695, %v855_v46  ;;  %v500_v58 = vsel %vm415_vm13, %v8856_v12, 0.0  ;;  %v866_v16 = vmul.f32 1.442695, %v854_v57 }
 0x396   :  { %v838_v11 = vpop.xlane.xlu1 %837  ;;  %501 = vadd.xlane.f32.xlu1 %v500_v58  ;;  %v8860_v62 = vpop.eup %7877 }
 0x397   :  { %7889 = vpow2.f32 %v868_v53  ;;  %v503_v23 = vsel %vm415_vm13, %v8860_v62, 0.0  ;;  %v860_v32 = vsub.f32 %v8767_v7, %v838_v11 }
 0x398   :  { %v8864_v24 = vpop.eup %7879  ;;  %510 = vadd.xlane.f32.xlu0 %v509_v55  ;;  %v841_v63 = vpop.xlane.xlu0 %840  ;;  %7891 = vpow2.f32 %v866_v16 }
 0x399   :  { %v518_v0 = vsel %vm415_vm13, %v8864_v24, 0.0  ;;  %v878_v43 = vmul.f32 1.442695, %v860_v32  ;;  %v861_v8 = vsub.f32 %v8777_v17, %v841_v63 }
 0x39a   :  { %v832_v56 = vpop.xlane.xlu1 %831  ;;  %519 = vadd.xlane.f32.xlu1 %v518_v0  ;;  %v8868_v5 = vpop.eup %7881 }
 0x39b   :  { %v521_v20 = vsel %vm415_vm13, %v8868_v5, 0.0  ;;  %v858_v15 = vsub.f32 %v8774_v14, %v832_v56  ;;  %v880_v17 = vmul.f32 1.442695, %v861_v8 }
 0x39c   :  { %v8872_v29 = vpop.eup %7883  ;;  %504 = vadd.xlane.f32.xlu0 %v503_v23  ;;  %v835_v9 = vpop.xlane.xlu0 %834 }
 0x39d   :  { %v512_v10 = vsel %vm415_vm13, %v8872_v29, 0.0  ;;  %v874_v46 = vmul.f32 1.442695, %v858_v15  ;;  %v859_v16 = vsub.f32 %v8782_v22, %v835_v9 }
 0x39e   :  { %v850_v13 = vpop.xlane.xlu1 %849  ;;  %513 = vadd.xlane.f32.xlu1 %v512_v10  ;;  %v8879_v21 = vpop.eup %7885 }
 0x39f   :  { %v515_v38 = vsel %vm415_vm13, %v8879_v21, 0.0  ;;  %v876_v0 = vmul.f32 1.442695, %v859_v16  ;;  %v864_v56 = vsub.f32 %v8787_v30, %v850_v13 }
 0x3a0   :  { %522 = vadd.xlane.f32.xlu0 %v521_v20  ;;  %v829_v42 = vpop.xlane.xlu0 %828  ;;  %v8885_v6 = vpop.eup %7887 }
 0x3a1   :  { %v857_v3 = vsub.f32 %v8792_v36, %v829_v42  ;;  %v896_v53 = vsel %vm415_vm13, %v8885_v6, 0.0  ;;  %v886_v10 = vmul.f32 1.442695, %v864_v56 }
 0x3a2   :  { %v844_v31 = vpop.xlane.xlu1 %843 }
 0x3a3   :  { %v872_v49 = vmul.f32 1.442695, %v857_v3  ;;  %v862_v32 = vsub.f32 %v8797_v44, %v844_v31 }
 0x3a4   :  { %516 = vadd.xlane.f32.xlu0 %v515_v38  ;;  %v8887_v7 = vpop.eup %7889  ;;  %v847_v63 = vpop.xlane.xlu0 %846 }
 0x3a5   :  { %7893 = vpow2.f32 %v872_v49  ;;  %v893_v36 = vsel %vm415_vm13, %v8887_v7, 0.0  ;;  %v8896_v58 = vpop.eup %7891  ;;  %v882_v42 = vmul.f32 1.442695, %v862_v32  ;;  %v863_v44 = vsub.f32 %v8802_v54, %v847_v63 }
 0x3a6   :  { %v557_v57 = vpop.permute.xlu1 %556  ;;  %7895 = vpow2.f32 %v878_v43  ;;  %894 = vadd.xlane.f32.xlu1 %v893_v36  ;;  %v890_v55 = vsel %vm415_vm13, %v8896_v58, 0.0 }
 0x3a7   :  { %7759 = vmatprep.subr.msk.bf16.mxu1 %vm577_vm14, %v557_v57  ;;  %v579_v14 = vsel %vm577_vm14, %v557_v57, 0  ;;  %7897 = vpow2.f32 %v874_v46 }
 0x3a8   :  { %7194 = vmatpush3.bf16.msra.mxu1 %v579_v14  ;;  %897 = vadd.xlane.f32.xlu0 %v896_v53  ;;  %7899 = vpow2.f32 %v880_v17  ;;  %v853_v20 = vpop.xlane.xlu0 %852 }
 0x3a9   :  { %7901 = vpow2.f32 %v876_v0  ;;  %v865_v3 = vsub.f32 %v8809_v61, %v853_v20  ;;  %v884_v61 = vmul.f32 1.442695, %v863_v44 }
 0x3aa   :  { %v555_v11 = vpop.permute.xlu1 %554  ;;  %7903 = vpow2.f32 %v886_v10 }
 0x3ab   :  { %7195 = vmatprep.subr.bf16.mxu1 %v555_v11  ;;  %7905 = vpow2.f32 %v882_v42  ;;  %v888_v31 = vmul.f32 1.442695, %v865_v3 }
 0x3ac   :  { %7196 = vmatpush3.bf16.msra.mxu1 %v555_v11  ;;  %891 = vadd.xlane.f32.xlu0 %v890_v55 }
 0x3ad   :  { %7907 = vpow2.f32 %v888_v31 }
 0x3ae   :  { %7909 = vpow2.f32 %v884_v61 }
 0x3b2   :  { %v8902_v23 = vpop.eup %7893 }
 0x3b3   :  { %v899_v22 = vsel %vm415_vm13, %v8902_v23, 0.0  ;;  %v8907_v9 = vpop.eup %7895 }
 0x3b4   :  { %900 = vadd.xlane.f32.xlu0 %v899_v22  ;;  %v908_v30 = vsel %vm415_vm13, %v8907_v9, 0.0  ;;  %v8912_v13 = vpop.eup %7897 }
 0x3b5   :  { %v902_v43 = vsel %vm415_vm13, %v8912_v13, 0.0  ;;  %v8919_v15 = vpop.eup %7899 }
 0x3b6   :  { %v911_v49 = vsel %vm415_vm13, %v8919_v15, 0.0  ;;  %v8923_v38 = vpop.eup %7901 }
 0x3b7   :  { %956 = vrot.lane.b32.xlu1 %v8651_v51, %s8405_s1  ;;  %v905_v51 = vsel %vm415_vm13, %v8923_v38, 0.0  ;;  %v8927_v54 = vpop.eup %7903 }
 0x3b8   :  { %909 = vadd.xlane.f32.xlu0 %v908_v30  ;;  %v920_v8 = vsel %vm415_vm13, %v8927_v54, 0.0  ;;  %v8931_v57 = vpop.eup %7905 }
 0x3b9   :  { %v914_v36 = vsel %vm415_vm13, %v8931_v57, 0.0 }
 0x3ba   :  { %v8935_v46 = vpop.eup %7907 }
 0x3bb   :  { %v923_v14 = vsel %vm415_vm13, %v8935_v46, 0.0  ;;  %v8939_v53 = vpop.eup %7909 }
 0x3bc   :  { %903 = vadd.xlane.f32.xlu0 %v902_v43  ;;  %v917_v11 = vsel %vm415_vm13, %v8939_v53, 0.0 }
 0x3c0   :  { %912 = vadd.xlane.f32.xlu0 %v911_v49 }
 0x3c4   :  { %906 = vadd.xlane.f32.xlu0 %v905_v51 }
 0x3c8   :  { %921 = vadd.xlane.f32.xlu0 %v920_v8 }
 0x3cc   :  { %915 = vadd.xlane.f32.xlu0 %v914_v36 }
 0x3d0   :  { %924 = vadd.xlane.f32.xlu0 %v923_v14 }
 0x3d4   :  { %918 = vadd.xlane.f32.xlu0 %v917_v11 }
 0x3ea   :  { %958 = vrot.lane.b32.xlu0 %v8644_v39, %s8405_s1 }
 0x411   :  { %v496_v17 = vpop.xlane.xlu1 %495 }
 0x415   :  { %v490_v16 = vpop.xlane.xlu1 %489 }
 0x419   :  { %v499_v55 = vpop.xlane.xlu0 %498 }
 0x41a   :  { %7911 = vrcp.f32 %v499_v55 }
 0x41b   :  { %v508_v63 = vpop.xlane.xlu1 %507  ;;  %7913 = vrcp.f32 %v490_v16 }
 0x41c   :  { %7915 = vrcp.f32 %v496_v17 }
 0x41d   :  { %v493_v0 = vpop.xlane.xlu0 %492 }
 0x41e   :  { %7917 = vrcp.f32 %v493_v0 }
 0x41f   :  { %v502_v56 = vpop.xlane.xlu1 %501 }
 0x421   :  { %v511_v10 = vpop.xlane.xlu0 %510 }
 0x422   :  { %7919 = vrcp.f32 %v511_v10 }
 0x423   :  { %v520_v32 = vpop.xlane.xlu1 %519  ;;  %7921 = vrcp.f32 %v502_v56 }
 0x424   :  { %7923 = vrcp.f32 %v508_v63 }
 0x425   :  { %v505_v22 = vpop.xlane.xlu0 %504 }
 0x426   :  { %7925 = vrcp.f32 %v505_v22 }
 0x427   :  { %v7912_v20 = vpop.eup %7911  ;;  %v514_v39 = vpop.xlane.xlu1 %513 }
 0x428   :  { %v7914_v42 = vpop.eup %7913  ;;  %v539_v31 = vmul.f32 %v7912_v20, %v8839_v25 }
 0x429   :  { %v523_v3 = vpop.xlane.xlu0 %522  ;;  %v7916_v30 = vpop.eup %7915  ;;  %v536_v43 = vmul.f32 %v7914_v42, %v8833_v40 }
 0x42a   :  { %7927 = vrcp.f32 %v523_v3  ;;  %v538_v49 = vmul.f32 %v7916_v30, %v8827_v59 }
 0x42b   :  { %v7918_v44 = vpop.eup %7917  ;;  %7929 = vrcp.f32 %v514_v39 }
 0x42c   :  { %v537_v61 = vmul.f32 %v7918_v44, %v8841_v26  ;;  %7931 = vrcp.f32 %v520_v32  ;;  %v549_v36 = vpack.c.bf16 %v539_v31, %v538_v49 }
 0x42d   :  { %v517_v51 = vpop.xlane.xlu0 %516 }
 0x42e   :  { %7933 = vrcp.f32 %v517_v51  ;;  %v548_v8 = vpack.c.bf16 %v537_v61, %v536_v43 }
 0x42f   :  { %v7920_v14 = vpop.eup %7919  ;;  %v895_v17 = vpop.xlane.xlu1 %894 }
 0x430   :  { %7197 = vmatprep.mubr.msk.bf16.mxu1 %vm415_vm13, %v548_v8  ;;  %v7922_v11 = vpop.eup %7921  ;;  %v543_v40 = vmul.f32 %v7920_v14, %v8852_v41  ;;  %7935 = vrcp.f32 %v895_v17 }
 0x431   :  { %7198 = vmatmul.mubr.msk.bf16.vlgmr.msra.gmra.mxu1 %vm415_vm13, %v549_v36  ;;  %v898_v25 = vpop.xlane.xlu0 %897  ;;  %v7924_v16 = vpop.eup %7923  ;;  %v540_v59 = vmul.f32 %v7922_v11, %v8856_v12 }
 0x432   :  { %v542_v0 = vmul.f32 %v7924_v16, %v8846_v33 }
 0x433   :  { %v7926_v55 = vpop.eup %7925 }
 0x434   :  { %v541_v26 = vmul.f32 %v7926_v55, %v8860_v62  ;;  %v551_v10 = vpack.c.bf16 %v543_v40, %v542_v0 }
 0x435   :  { %v892_v63 = vpop.xlane.xlu0 %891 }
 0x436   :  { %7937 = vrcp.f32 %v892_v63  ;;  %v550_v56 = vpack.c.bf16 %v541_v26, %v540_v59 }
 0x437   :  { %v7928_v32 = vpop.eup %7927 }
 0x438   :  { %7201 = vmatprep.mubr.msk.bf16.mxu1 %vm415_vm13, %v550_v56  ;;  %v7930_v22 = vpop.eup %7929  ;;  %v547_v41 = vmul.f32 %v7928_v32, %v8868_v5 }
 0x439   :  { %7202 = vmatmul.mubr.msk.bf16.gmra.mxu1 %vm415_vm13, %v551_v10  ;;  %v7932_v20 = vpop.eup %7931  ;;  %v544_v12 = vmul.f32 %v7930_v22, %v8872_v29 }
 0x43a   :  { %v546_v33 = vmul.f32 %v7932_v20, %v8864_v24 }
 0x43b   :  { %v7934_v42 = vpop.eup %7933 }
 0x43c   :  { %v545_v62 = vmul.f32 %v7934_v42, %v8879_v21  ;;  %v553_v30 = vpack.c.bf16 %v547_v41, %v546_v33  ;;  %v7797_v33 = vld [vmem:[%s10990_s9 + $0x8] sm:$0xff]  }
 0x43d   :  { %v901_v39 = vpop.xlane.xlu0 %900  ;;  %v7936_v44 = vpop.eup %7935 }
 0x43e   :  { %v552_v3 = vpack.c.bf16 %v545_v62, %v544_v12  ;;  %v939_v5 = vmul.f32 %v7936_v44, %v8887_v7 }
 0x440   :  { %7205 = vmatprep.mubr.msk.bf16.mxu1 %vm415_vm13, %v552_v3 }
 0x441   :  { %7206 = vmatmul.mubr.msk.bf16.gmra.mxu1 %vm415_vm13, %v553_v30  ;;  %v910_v31 = vpop.xlane.xlu0 %909 }
 0x443   :  { %v7938_v43 = vpop.eup %7937 }
 0x444   :  { %v938_v61 = vmul.f32 %v7938_v43, %v8896_v58 }
 0x445   :  { %v904_v49 = vpop.xlane.xlu0 %903 }
 0x446   :  { %v950_v29 = vpack.c.bf16 %v939_v5, %v938_v61  ;;  %7939 = vrcp.f32 %v904_v49 }
 0x448   :  { %7229 = vmatprep.mubr.msk.bf16.mxu0 %vm415_vm13, %v950_v29 }
 0x449   :  { %v913_v21 = vpop.xlane.xlu0 %912 }
 0x44d   :  { %v907_v24 = vpop.xlane.xlu0 %906 }
 0x44e   :  { %7941 = vrcp.f32 %v907_v24 }
 0x44f   :  { %7943 = vrcp.f32 %v901_v39 }
 0x450   :  { %7945 = vrcp.f32 %v913_v21 }
 0x451   :  { %v922_v51 = vpop.xlane.xlu0 %921  ;;  %7947 = vrcp.f32 %v898_v25 }
 0x452   :  { %7949 = vrcp.f32 %v910_v31 }
 0x453   :  { %v7940_v36 = vpop.eup %7939 }
 0x454   :  { %v942_v7 = vmul.f32 %v7940_v36, %v8912_v13  ;;  %v957_v13 = vpop.permute.xlu1 %956 }
 0x455   :  { %v916_v8 = vpop.xlane.xlu0 %915 }
 0x456   :  { %7951 = vrcp.f32 %v916_v8 }
 0x459   :  { %v925_v14 = vpop.xlane.xlu0 %924 }
 0x45a   :  { %7953 = vrcp.f32 %v925_v14 }
 0x45b   :  { %v7942_v11 = vpop.eup %7941  ;;  %7955 = vrcp.f32 %v922_v51 }
 0x45c   :  { %v943_v58 = vmul.f32 %v7942_v11, %v8923_v38  ;;  %v7944_v55 = vpop.eup %7943 }
 0x45d   :  { %v919_v17 = vpop.xlane.xlu0 %918  ;;  %v7946_v40 = vpop.eup %7945  ;;  %v941_v38 = vmul.f32 %v7944_v55, %v8902_v23 }
 0x45e   :  { %7957 = vrcp.f32 %v919_v17  ;;  %v952_v16 = vpack.c.bf16 %v943_v58, %v942_v7  ;;  %v7948_v59 = vpop.eup %7947  ;;  %v945_v0 = vmul.f32 %v7946_v40, %v8919_v15 }
 0x45f   :  { %v7950_v63 = vpop.eup %7949  ;;  %v940_v56 = vmul.f32 %v7948_v59, %v8885_v6 }
 0x460   :  { %7233 = vmatprep.mubr.msk.bf16.mxu1 %vm415_vm13, %v952_v16  ;;  %v944_v10 = vmul.f32 %v7950_v63, %v8907_v9 }
 0x461   :  { %v959_v25 = vpop.permute.xlu0 %958  ;;  %v951_v22 = vpack.c.bf16 %v941_v38, %v940_v56 }
 0x462   :  { %7762 = vmatprep.subr.msk.bf16.mxu0 %vm577_vm14, %v959_v25  ;;  %7763 = vmatprep.subr.msk.bf16.mxu1 %vm577_vm14, %v959_v25  ;;  %v980_v26 = vsel %vm577_vm14, %v959_v25, 0  ;;  %v953_v20 = vpack.c.bf16 %v945_v0, %v944_v10 }
 0x463   :  { %7226 = vmatpush3.bf16.msra.mxu0 %v980_v26  ;;  %7755 = vmatpush3.bf16.msra.mxu1 %v980_v26  ;;  %v7952_v32 = vpop.eup %7951 }
 0x464   :  { %7227 = vmatprep.subr.bf16.mxu0 %v957_v13  ;;  %7754 = vmatprep.subr.bf16.mxu1 %v957_v13  ;;  %v946_v6 = vmul.f32 %v7952_v32, %v8931_v57  ;;  %v7798_v57 = vld [vmem:[%s10990_s9] sm:$0xff]  }
 0x467   :  { %7228 = vmatpush3.bf16.msra.mxu0 %v957_v13  ;;  %7756 = vmatpush3.bf16.msra.mxu1 %v957_v13  ;;  %v7954_v42 = vpop.eup %7953 }
 0x468   :  { %7241 = vmatprep.subr.bf16.mxu0 %v8402_v1  ;;  %7257 = vmatprep.subr.bf16.mxu1 %v8402_v1  ;;  %v7956_v41 = vpop.eup %7955  ;;  %v949_v15 = vmul.f32 %v7954_v42, %v8935_v46 }
 0x469   :  { %v948_v62 = vmul.f32 %v7956_v41, %v8927_v54 }
 0x46a   :  { %7230 = vmatmul.mubr.msk.bf16.vlgmr.msra.gmra.mxu0 %vm415_vm13, %v951_v22  ;;  %7234 = vmatmul.mubr.msk.bf16.vlgmr.msra.gmra.mxu1 %vm415_vm13, %v953_v20 }
 0x46b   :  { %v7958_v23 = vpop.eup %7957  ;;  %7245 = vmatprep.mubr.msk.bf16.mxu0 %vm8403_vm0, %v8402_v1  ;;  %v955_v39 = vpack.c.bf16 %v949_v15, %v948_v62  ;;  %7242 = vmatpush3.bf16.msra.mxu0 %v7797_v33 }
 0x46c   :  { %v947_v9 = vmul.f32 %v7958_v23, %v8939_v53  ;;  %7243 = vmatprep.subr.bf16.mxu0 %v8402_v1 }
 0x46e   :  { %v954_v12 = vpack.c.bf16 %v947_v9, %v946_v6 }
 0x46f   :  { %7244 = vmatpush3.bf16.msra.mxu0 %v7798_v57 }
 0x470   :  { %7237 = vmatprep.mubr.msk.bf16.mxu1 %vm415_vm13, %v954_v12  ;;  %7273 = vmatprep.subr.bf16.mxu0 %v8402_v1 }
 0x472   :  { %7238 = vmatmul.mubr.msk.bf16.gmra.mxu1 %vm415_vm13, %v955_v39 }
 0x473   :  { %7261 = vmatprep.mubr.msk.bf16.mxu1 %vm8403_vm0, %v8402_v1 }
 0x4f1   :  { %v7199_v54 = vpop.f32.mrf.mxu1 }
 0x4f2   :  { %v664_v20 = vmul.f32 %v7199_v54, %v8594_v47 }
 0x4f3   :  { %v615_v46 = vpop.f32.mrf.mxu1 }
 0x4f4   :  { %v662_v24 = vmul.f32 %v8594_v47, %v615_v46 }
 0x4f5   :  { %v7200_v53 = vpop.f32.mrf.mxu1 }
 0x4f6   :  { %v665_v49 = vmul.f32 %v7200_v53, %v8600_v50 }
 0x4f7   :  { %v618_v3 = vpop.f32.mrf.mxu1 }
 0x4f8   :  { %v663_v29 = vmul.f32 %v8594_v47, %v618_v3  ;;  %v668_v11 = vadd.f32 %v665_v49, %v662_v24 }
 0x4f9   :  { %v7203_v30 = vpop.f32.mrf.mxu1 }
 0x4fa   :  { %v671_v51 = vmul.f32 %v7203_v30, %v8597_v48 }
 0x4fb   :  { %v631_v44 = vpop.f32.mrf.mxu1 }
 0x4fc   :  { %v666_v61 = vmul.f32 %v8600_v50, %v631_v44  ;;  %v674_v17 = vadd.f32 %v671_v51, %v668_v11 }
 0x4fd   :  { %v7204_v31 = vpop.f32.mrf.mxu1 }
 0x4fe   :  { %v669_v8 = vadd.f32 %v666_v61, %v663_v29  ;;  %v672_v36 = vmul.f32 %v7204_v31, %v8597_v48 }
 0x4ff   :  { %v634_v43 = vpop.f32.mrf.mxu1 }
 0x500   :  { %v675_v16 = vadd.f32 %v672_v36, %v669_v8  ;;  %v667_v10 = vmul.f32 %v8600_v50, %v634_v43 }
 0x501   :  { %v7207_v5 = vpop.f32.mrf.mxu1 }
 0x502   :  { %v678_v7 = vmul.f32 %v7207_v5, %v8603_v52  ;;  %v670_v6 = vadd.f32 %v667_v10, %v664_v20 }
 0x503   :  { %v647_v21 = vpop.f32.mrf.mxu1 }
 0x504   :  { %v681_v40 = vadd.f32 %v678_v7, %v675_v16  ;;  %v673_v42 = vmul.f32 %v8597_v48, %v647_v21 }
 0x505   :  { %v7208_v14 = vpop.f32.mrf.mxu1 }
 0x506   :  { %v676_v62 = vadd.f32 %v673_v42, %v670_v6  ;;  %v679_v33 = vmul.f32 %v7208_v14, %v8603_v52 }
 0x507   :  { %v650_v58 = vpop.f32.mrf.mxu1 }
 0x508   :  { %v677_v55 = vmul.f32 %v8603_v52, %v650_v58  ;;  %v682_v61 = vadd.f32 %v679_v33, %v676_v62 }
 0x50a   :  { %v680_v25 = vadd.f32 %v677_v55, %v674_v17  ;;  %v9034_v17 = vld [vmem:[%s10991_s10] sm:$0xf] }
 0x50b   :  { %v1090_v16 = vrot.slane %v9034_v17, %v8684_v2 }
 0x50c   :  { %v1084_v59 = vpack.c.bf16 %v681_v40, %v680_v25 }
 0x50e   :  { %7246 = vmatmul.mubr.msk.bf16.vlgmr.msra.gmra.mxu0 %vm213_vm2, %v1084_v59 }
 0x50f   :  { %7249 = vmatprep.mubr.msk.bf16.mxu0 %vm8403_vm0, %v8402_v1 }
 0x52a   :  { %v7231_v26 = vpop.f32.mrf.mxu0  ;;  %v7235_v63 = vpop.f32.mrf.mxu1 }
 0x52b   :  { %v1072_v57 = vmul.f32 %v7235_v63, %v8597_v48  ;;  %v1065_v54 = vmul.f32 %v7231_v26, %v8594_v47 }
 0x52c   :  { %v1016_v13 = vpop.f32.mrf.mxu0  ;;  %v1032_v38 = vpop.f32.mrf.mxu1 }
 0x52d   :  { %v1063_v23 = vmul.f32 %v8594_v47, %v1016_v13  ;;  %v1067_v30 = vmul.f32 %v8600_v50, %v1032_v38 }
 0x52e   :  { %v7232_v0 = vpop.f32.mrf.mxu0  ;;  %v7236_v56 = vpop.f32.mrf.mxu1 }
 0x52f   :  { %v1066_v22 = vmul.f32 %v7232_v0, %v8600_v50  ;;  %v1073_v21 = vmul.f32 %v7236_v56, %v8597_v48 }
 0x530   :  { %v1035_v32 = vpop.f32.mrf.mxu1  ;;  %v1019_v9 = vpop.f32.mrf.mxu0 }
 0x531   :  { %v1069_v12 = vadd.f32 %v1066_v22, %v1063_v23  ;;  %v1064_v46 = vmul.f32 %v8594_v47, %v1019_v9  ;;  %v1068_v53 = vmul.f32 %v8600_v50, %v1035_v32 }
 0x532   :  { %v7239_v41 = vpop.f32.mrf.mxu1 }
 0x533   :  { %v1075_v44 = vadd.f32 %v1072_v57, %v1069_v12  ;;  %v1070_v5 = vadd.f32 %v1067_v30, %v1064_v46  ;;  %v1071_v49 = vadd.f32 %v1068_v53, %v1065_v54  ;;  %v1079_v14 = vmul.f32 %v7239_v41, %v8603_v52 }
 0x534   :  { %v1048_v15 = vpop.f32.mrf.mxu1 }
 0x535   :  { %v1074_v31 = vmul.f32 %v8597_v48, %v1048_v15  ;;  %v1076_v36 = vadd.f32 %v1073_v21, %v1070_v5 }
 0x536   :  { %v7240_v39 = vpop.f32.mrf.mxu1 }
 0x537   :  { %v1077_v24 = vadd.f32 %v1074_v31, %v1071_v49  ;;  %v1080_v51 = vmul.f32 %v7240_v39, %v8603_v52  ;;  %v1082_v7 = vadd.f32 %v1079_v14, %v1076_v36 }
 0x538   :  { %v1051_v3 = vpop.f32.mrf.mxu1 }
 0x539   :  { %v1078_v43 = vmul.f32 %v8603_v52, %v1051_v3  ;;  %v1083_v11 = vadd.f32 %v1080_v51, %v1077_v24 }
 0x53b   :  { %v1081_v29 = vadd.f32 %v1078_v43, %v1075_v44  ;;  %v1086_v58 = vpack.c.bf16 %v1083_v11, %v1082_v7  ;;  %v7799_v43 = vld [vmem:[%s10992_s11 + $0x8] sm:$0xff]  }
 0x53c   :  { %7258 = vmatpush3.bf16.msra.mxu1 %v7799_v43  ;;  %v7806_v43 = vld [vmem:[%s10993_s12 + $0x10] sm:$0xff]  }
 0x53d   :  { %v1085_v8 = vpack.c.bf16 %v1081_v29, %v682_v61  ;;  %v7800_v61 = vld [vmem:[%s10992_s11] sm:$0xff]   ;;  %7259 = vmatprep.subr.bf16.mxu1 %v8402_v1 }
 0x53f   :  { %7250 = vmatmul.mubr.msk.bf16.gmra.mxu0 %vm213_vm2, %v1085_v8 }
 0x540   :  { %7253 = vmatprep.mubr.msk.bf16.mxu0 %vm8403_vm0, %v8402_v1  ;;  %7260 = vmatpush3.bf16.msra.mxu1 %v7800_v61  ;;  %v7807_v61 = vld [vmem:[%s10993_s12 + $0x8] sm:$0xff]  }
 0x541   :  { %7301 = vmatprep.subr.bf16.mxu1 %v8402_v1 }
 0x547   :  { %7254 = vmatmul.mubr.msk.bf16.gmra.mxu0 %vm213_vm2, %v1086_v58 }
 0x548   :  { %7289 = vmatprep.mubr.msk.bf16.mxu0 %vm8403_vm0, %v8402_v1 }
 0x5ce   :  { %v1146_v55 = vpop.f32.mrf.mxu0 }
 0x5cf   :  { %v1147_v40 = vadd.f32 %v1146_v55, %v1090_v16 }
 0x5d0   :  { %v7247_v25 = vpop.f32.mrf.mxu0 }
 0x5d1   :  { %v1169_v59 = vadd.f32 %v1147_v40, %v8552_v18 }
 0x5d2   :  { %v1149_v26 = vpop.f32.mrf.mxu0 }
 0x5d3   :  { %v1150_v63 = vadd.f32 %v1149_v26, %v1090_v16  ;;  %v1175_v13 = vsel %vm213_vm2, %v1169_v59, 0.0 }
 0x5d4   :  { %1176 = vadd.xlane.f32.xlu0 %v1175_v13  ;;  %v7248_v38 = vpop.f32.mrf.mxu0 }
 0x5d5   :  { %v1170_v0 = vadd.f32 %v1150_v63, %v8554_v19  ;;  %v9070_v38 = vrot.slane %v9034_v17, %v8731_v34 }
 0x5d7   :  { %v1178_v56 = vsel %vm213_vm2, %v1170_v0, 0.0 }
 0x5d8   :  { %1179 = vadd.xlane.f32.xlu1 %v1178_v56 }
 0x5ff   :  { %v1154_v10 = vpop.f32.mrf.mxu0 }
 0x600   :  { %v1155_v32 = vadd.f32 %v1154_v10, %v1090_v16 }
 0x601   :  { %v7251_v22 = vpop.f32.mrf.mxu0 }
 0x602   :  { %v1171_v20 = vadd.f32 %v1155_v32, %v8567_v27 }
 0x603   :  { %v1157_v42 = vpop.f32.mrf.mxu0 }
 0x604   :  { %v1158_v41 = vadd.f32 %v1157_v42, %v1090_v16  ;;  %v1181_v18 = vsel %vm213_vm2, %v1171_v20, 0.0 }
 0x605   :  { %1182 = vadd.xlane.f32.xlu0 %v1181_v18  ;;  %v7252_v23 = vpop.f32.mrf.mxu0 }
 0x606   :  { %v1172_v6 = vadd.f32 %v1158_v41, %v8569_v28 }
 0x607   :  { %v1162_v9 = vpop.f32.mrf.mxu0 }
 0x608   :  { %v1163_v15 = vadd.f32 %v1162_v9, %v1090_v16  ;;  %v1184_v19 = vsel %vm213_vm2, %v1172_v6, 0.0 }
 0x609   :  { %1185 = vadd.xlane.f32.xlu0 %v1184_v19  ;;  %v7255_v12 = vpop.f32.mrf.mxu0 }
 0x60a   :  { %v9058_v14 = vadd.f32 %v1163_v15, %v8582_v35 }
 0x60b   :  { %v1165_v62 = vpop.f32.mrf.mxu0 }
 0x60c   :  { %v1166_v39 = vadd.f32 %v1165_v62, %v1090_v16  ;;  %v1187_v58 = vsel %vm213_vm2, %v9058_v14, 0.0 }
 0x60d   :  { %v7256_v33 = vpop.f32.mrf.mxu0 }
 0x60e   :  { %v9064_v16 = vadd.f32 %v1166_v39, %v8584_v37  ;;  %v9073_v37 = vsub.s32 2, %v8681_v60 }
 0x610   :  { %v1190_v55 = vsel %vm213_vm2, %v9064_v16, 0.0  ;;  %v9077_v10 = vrot.slane %v9034_v17, %v9073_v37 }
 0x65d   :  { %v1177_v57 = vpop.xlane.xlu0 %1176 }
 0x65e   :  { %v1194_v46 = vmul.f32 0.03125, %v1177_v57 }
 0x660   :  { %v1200_v27 = vsub.f32 %v1169_v59, %v1194_v46 }
 0x661   :  { %v1180_v53 = vpop.xlane.xlu1 %1179 }
 0x662   :  { %v1195_v54 = vmul.f32 0.03125, %v1180_v53  ;;  %v1206_v3 = vmul.f32 %v1200_v27, %v1200_v27 }
 0x664   :  { %v1201_v30 = vsub.f32 %v1170_v0, %v1195_v54  ;;  %v1212_v44 = vsel %vm213_vm2, %v1206_v3, 0.0  ;;  %v7801_v3 = vld [vmem:[%s10993_s12 + $0x38] sm:$0xff]  }
 0x665   :  { %1213 = vadd.xlane.f32.xlu0 %v1212_v44  ;;  %7274 = vmatpush3.bf16.msra.mxu0 %v7801_v3  ;;  %v7803_v44 = vld [vmem:[%s10993_s12 + $0x28] sm:$0xff]  }
 0x666   :  { %v1207_v28 = vmul.f32 %v1201_v30, %v1201_v30  ;;  %7275 = vmatprep.subr.bf16.mxu0 %v8402_v1 }
 0x668   :  { %v1215_v31 = vsel %vm213_vm2, %v1207_v28, 0.0  ;;  %v7804_v28 = vld [vmem:[%s10993_s12 + $0x20] sm:$0xff]  }
 0x669   :  { %1216 = vadd.xlane.f32.xlu1 %v1215_v31  ;;  %v7805_v31 = vld [vmem:[%s10993_s12 + $0x18] sm:$0xff]  }
 0x68e   :  { %v1183_v5 = vpop.xlane.xlu0 %1182 }
 0x68f   :  { %v1196_v49 = vmul.f32 0.03125, %v1183_v5  ;;  %v7808_v5 = vld [vmem:[%s10993_s12] sm:$0xff]  }
 0x691   :  { %v1202_v29 = vsub.f32 %v1171_v20, %v1196_v49  ;;  %v9139_v49 = vld [vmem:[%s10994_s13] sm:$0xf] }
 0x692   :  { %v1186_v21 = vpop.xlane.xlu0 %1185 }
 0x693   :  { %v1197_v24 = vmul.f32 0.03125, %v1186_v21  ;;  %v1208_v51 = vmul.f32 %v1202_v29, %v1202_v29 }
 0x695   :  { %v1203_v8 = vsub.f32 %v1172_v6, %v1197_v24  ;;  %v1218_v36 = vsel %vm213_vm2, %v1208_v51, 0.0 }
 0x696   :  { %1219 = vadd.xlane.f32.xlu0 %v1218_v36 }
 0x697   :  { %v1209_v11 = vmul.f32 %v1203_v8, %v1203_v8 }
 0x699   :  { %v1221_v7 = vsel %vm213_vm2, %v1209_v11, 0.0 }
 0x69a   :  { %1222 = vadd.xlane.f32.xlu1 %v1221_v7  ;;  %1188 = vadd.xlane.f32.xlu0 %v1187_v58 }
 0x69e   :  { %1191 = vadd.xlane.f32.xlu1 %v1190_v55 }
 0x6ee   :  { %v1214_v40 = vpop.xlane.xlu0 %1213 }
 0x6ef   :  { %v1230_v25 = vmul.f32 0.03125, %v1214_v40 }
 0x6f1   :  { %v1236_v35 = vadd.f32 1e-12, %v1230_v25 }
 0x6f2   :  { %v1217_v59 = vpop.xlane.xlu1 %1216 }
 0x6f3   :  { %7959 = vrsqrt.f32 %v1236_v35  ;;  %v1231_v26 = vmul.f32 0.03125, %v1217_v59 }
 0x6f5   :  { %v1237_v63 = vadd.f32 1e-12, %v1231_v26 }
 0x6f7   :  { %7961 = vrsqrt.f32 %v1237_v63 }
 0x700   :  { %v7960_v13 = vpop.eup %7959 }
 0x701   :  { %v1248_v0 = vmul.f32 %v7960_v13, %v1200_v27 }
 0x703   :  { %v1258_v32 = vmul.f32 %v9070_v38, %v1248_v0 }
 0x704   :  { %v7962_v56 = vpop.eup %7961 }
 0x705   :  { %v1249_v22 = vmul.f32 %v7962_v56, %v1201_v30  ;;  %v9082_v42 = vadd.f32 %v9077_v10, %v1258_v32  ;;  %v7802_v30 = vld [vmem:[%s10993_s12 + $0x30] sm:$0xff]  }
 0x706   :  { %7276 = vmatpush3.bf16.msra.mxu0 %v7802_v30 }
 0x707   :  { %v1259_v20 = vmul.f32 %v9070_v38, %v1249_v22  ;;  %7277 = vmatprep.subr.bf16.mxu0 %v8402_v1 }
 0x709   :  { %v9085_v41 = vadd.f32 %v9077_v10, %v1259_v20 }
 0x70a   :  { %7278 = vmatpush3.bf16.msra.mxu0 %v7803_v44 }
 0x70b   :  { %v1295_v18 = vpack.c.bf16 %v9085_v41, %v9082_v42  ;;  %7279 = vmatprep.subr.bf16.mxu0 %v8402_v1 }
 0x70d   :  { %7262 = vmatmul.mubr.msk.bf16.vlgmr.msra.gmra.mxu1 %vm213_vm2, %v1295_v18 }
 0x70e   :  { %7265 = vmatprep.mubr.msk.bf16.mxu1 %vm8403_vm0, %v8402_v1  ;;  %7280 = vmatpush3.bf16.msra.mxu0 %v7804_v28 }
 0x70f   :  { %7281 = vmatprep.subr.bf16.mxu0 %v8402_v1 }
 0x712   :  { %7282 = vmatpush3.bf16.msra.mxu0 %v7805_v31 }
 0x713   :  { %7283 = vmatprep.subr.bf16.mxu0 %v8402_v1 }
 0x716   :  { %7284 = vmatpush3.bf16.msra.mxu0 %v7806_v43 }
 0x717   :  { %7285 = vmatprep.subr.bf16.mxu0 %v8402_v1 }
 0x71a   :  { %7286 = vmatpush3.bf16.msra.mxu0 %v7807_v61 }
 0x71b   :  { %7287 = vmatprep.subr.bf16.mxu0 %v8402_v1 }
 0x71e   :  { %7288 = vmatpush3.bf16.msra.mxu0 %v7808_v5 }
 0x71f   :  { %v1220_v17 = vpop.xlane.xlu0 %1219 }
 0x720   :  { %v1232_v23 = vmul.f32 0.03125, %v1220_v17 }
 0x722   :  { %v1238_v6 = vadd.f32 1e-12, %v1232_v23 }
 0x723   :  { %v1223_v9 = vpop.xlane.xlu1 %1222 }
 0x724   :  { %7963 = vrsqrt.f32 %v1238_v6  ;;  %v1233_v15 = vmul.f32 0.03125, %v1223_v9 }
 0x726   :  { %v1239_v19 = vadd.f32 1e-12, %v1233_v15 }
 0x728   :  { %7965 = vrsqrt.f32 %v1239_v19 }
 0x731   :  { %v7964_v12 = vpop.eup %7963 }
 0x732   :  { %v1250_v62 = vmul.f32 %v7964_v12, %v1202_v29  ;;  %v9143_v29 = vrot.slane %v9139_v49, %v8684_v2 }
 0x734   :  { %v1260_v57 = vmul.f32 %v9070_v38, %v1250_v62 }
 0x735   :  { %v7966_v39 = vpop.eup %7965 }
 0x736   :  { %v1251_v33 = vmul.f32 %v7966_v39, %v1203_v8  ;;  %v9095_v27 = vadd.f32 %v9077_v10, %v1260_v57 }
 0x738   :  { %v1261_v46 = vmul.f32 %v9070_v38, %v1251_v33 }
 0x73a   :  { %v9098_v53 = vadd.f32 %v9077_v10, %v1261_v46 }
 0x73c   :  { %v1296_v54 = vpack.c.bf16 %v9098_v53, %v9095_v27 }
 0x73e   :  { %7266 = vmatmul.mubr.msk.bf16.gmra.mxu1 %vm213_vm2, %v1296_v54 }
 0x73f   :  { %7269 = vmatprep.mubr.msk.bf16.mxu1 %vm8403_vm0, %v8402_v1 }
 0x7cd   :  { %v1357_v21 = vpop.f32.mrf.mxu1 }
 0x7ce   :  { %v1358_v24 = vadd.f32 %v1357_v21, %v9143_v29 }
 0x7cf   :  { %v7263_v51 = vpop.f32.mrf.mxu1 }
 0x7d0   :  { %v1380_v8 = vmul.f32 %v1358_v24, %v1358_v24 }
 0x7d1   :  { %v1360_v36 = vpop.f32.mrf.mxu1 }
 0x7d2   :  { %v1386_v11 = vmul.f32 %v1380_v8, %v1358_v24  ;;  %v1361_v7 = vadd.f32 %v1360_v36, %v9143_v29 }
 0x7d3   :  { %v7264_v58 = vpop.f32.mrf.mxu1 }
 0x7d4   :  { %v1392_v55 = vmul.f32 0.044715, %v1386_v11  ;;  %v1381_v40 = vmul.f32 %v1361_v7, %v1361_v7  ;;  %v9155_v58 = vrot.slane %v9139_v49, %v8731_v34 }
 0x7d6   :  { %v1398_v25 = vadd.f32 %v1392_v55, %v1358_v24  ;;  %v1387_v35 = vmul.f32 %v1381_v40, %v1361_v7  ;;  %v1192_v55 = vpop.xlane.xlu1 %1191 }
 0x7d8   :  { %v1404_v59 = vmul.f32 0.7978846, %v1398_v25  ;;  %v1393_v26 = vmul.f32 0.044715, %v1387_v35  ;;  %v1199_v25 = vmul.f32 0.03125, %v1192_v55 }
 0x7da   :  { %7967 = vtanh.f32 %v1404_v59  ;;  %v1399_v63 = vadd.f32 %v1393_v26, %v1361_v7 }
 0x7dc   :  { %v1405_v13 = vmul.f32 0.7978846, %v1399_v63 }
 0x7de   :  { %7969 = vtanh.f32 %v1405_v13  ;;  %v1732_v13 = vld [vmem:[%s11009_s22 + $0x8] sm:$0xff] }
 0x7e7   :  { %v7968_v0 = vpop.eup %7967 }
 0x7e8   :  { %v1416_v56 = vadd.f32 1.0, %v7968_v0  ;;  %v1205_v0 = vsub.f32 %v9064_v16, %v1199_v25 }
 0x7ea   :  { %v1422_v22 = vmul.f32 0.5, %v1416_v56 }
 0x7eb   :  { %v7970_v32 = vpop.eup %7969 }
 0x7ec   :  { %v1417_v20 = vadd.f32 1.0, %v7970_v32  ;;  %v1428_v17 = vmul.f32 %v1422_v22, %v1358_v24  ;;  %v1738_v22 = vsel %vm213_vm2, %v1732_v13, 0.0 }
 0x7ee   :  { %v1423_v18 = vmul.f32 0.5, %v1417_v20  ;;  %v1211_v20 = vmul.f32 %v1205_v0, %v1205_v0 }
 0x7f0   :  { %v1429_v23 = vmul.f32 %v1423_v18, %v1361_v7  ;;  %v1227_v18 = vsel %vm213_vm2, %v1211_v20, 0.0 }
 0x7f2   :  { %v1434_v6 = vpack.c.bf16 %v1429_v23, %v1428_v17  ;;  %v1189_v17 = vpop.xlane.xlu0 %1188 }
 0x7f4   :  { %7290 = vmatmul.mubr.bf16.vlgmr.msra.gmra.mxu0 %v1434_v6 }
 0x7f5   :  { %7293 = vmatprep.mubr.msk.bf16.mxu0 %vm8403_vm0, %v8402_v1 }
 0x7fe   :  { %v1365_v9 = vpop.f32.mrf.mxu1 }
 0x7ff   :  { %v1366_v15 = vadd.f32 %v1365_v9, %v9143_v29  ;;  %v1198_v9 = vmul.f32 0.03125, %v1189_v17 }
 0x800   :  { %v7267_v19 = vpop.f32.mrf.mxu1 }
 0x801   :  { %v1382_v12 = vmul.f32 %v1366_v15, %v1366_v15 }
 0x802   :  { %v1368_v62 = vpop.f32.mrf.mxu1 }
 0x803   :  { %v1388_v39 = vmul.f32 %v1382_v12, %v1366_v15  ;;  %v1369_v33 = vadd.f32 %v1368_v62, %v9143_v29  ;;  %v1731_v12 = vld [vmem:[%s11009_s22] sm:$0xff]  ;;  %v1204_v62 = vsub.f32 %v9058_v14, %v1198_v9 }
 0x804   :  { %v7268_v57 = vpop.f32.mrf.mxu1 }
 0x805   :  { %v1394_v46 = vmul.f32 0.044715, %v1388_v39  ;;  %v1383_v54 = vmul.f32 %v1369_v33, %v1369_v33  ;;  %v1210_v57 = vmul.f32 %v1204_v62, %v1204_v62 }
 0x807   :  { %v1400_v3 = vadd.f32 %v1394_v46, %v1366_v15  ;;  %v1389_v30 = vmul.f32 %v1383_v54, %v1369_v33  ;;  %v1224_v46 = vsel %vm213_vm2, %v1210_v57, 0.0 }
 0x809   :  { %v1406_v44 = vmul.f32 0.7978846, %v1400_v3  ;;  %v1395_v28 = vmul.f32 0.044715, %v1389_v30 }
 0x80b   :  { %7971 = vtanh.f32 %v1406_v44  ;;  %v1401_v31 = vadd.f32 %v1395_v28, %v1369_v33 }
 0x80d   :  { %v1407_v43 = vmul.f32 0.7978846, %v1401_v31 }
 0x80f   :  { %7973 = vtanh.f32 %v1407_v43 }
 0x818   :  { %v7972_v61 = vpop.eup %7971 }
 0x819   :  { %v1418_v5 = vadd.f32 1.0, %v7972_v61 }
 0x81b   :  { %v1424_v51 = vmul.f32 0.5, %v1418_v5 }
 0x81c   :  { %v7974_v21 = vpop.eup %7973 }
 0x81d   :  { %v1419_v24 = vadd.f32 1.0, %v7974_v21  ;;  %v1430_v36 = vmul.f32 %v1424_v51, %v1366_v15 }
 0x81f   :  { %v1425_v8 = vmul.f32 0.5, %v1419_v24 }
 0x821   :  { %v1431_v11 = vmul.f32 %v1425_v8, %v1369_v33  ;;  %v1735_v33 = vsel %vm213_vm2, %v1731_v12, 0.0 }
 0x823   :  { %v1435_v7 = vpack.c.bf16 %v1431_v11, %v1430_v36 }
 0x825   :  { %7294 = vmatmul.mubr.bf16.gmra.mxu0 %v1435_v7 }
 0x826   :  { %7297 = vmatprep.mubr.msk.bf16.mxu0 %vm8403_vm0, %v8402_v1 }
 0x8b4   :  { %v1523_v40 = vpop.f32.mrf.mxu0 }
 0x8b5   :  { %v1524_v35 = vadd.f32 %v1523_v40, %v9155_v58 }
 0x8b6   :  { %v7291_v59 = vpop.f32.mrf.mxu0 }
 0x8b7   :  { %v1546_v26 = vadd.f32 %v1524_v35, %v9082_v42 }
 0x8b8   :  { %v9159_v63 = vpop.f32.mrf.mxu0 }
 0x8b9   :  { %v1552_v56 = vsel %vm213_vm2, %v1546_v26, 0.0 }
 0x8ba   :  { %1553 = vadd.xlane.f32.xlu1 %v1552_v56  ;;  %v7292_v32 = vpop.f32.mrf.mxu0 }
 0x8be   :  { %1739 = vadd.xlane.f32.xlu1 %v1738_v22 }
 0x8c2   :  { %1228 = vadd.xlane.f32.xlu1 %v1227_v18 }
 0x8e5   :  { %v9168_v42 = vpop.f32.mrf.mxu0 }
 0x8e7   :  { %v7295_v23 = vpop.f32.mrf.mxu0 }
 0x8e9   :  { %v1534_v6 = vpop.f32.mrf.mxu0 }
 0x8ea   :  { %v1535_v15 = vadd.f32 %v1534_v6, %v9155_v58 }
 0x8eb   :  { %v7296_v16 = vpop.f32.mrf.mxu0 }
 0x8ec   :  { %v1549_v19 = vadd.f32 %v1535_v15, %v9098_v53 }
 0x8ee   :  { %v1561_v39 = vsel %vm213_vm2, %v1549_v19, 0.0 }
 0x8ef   :  { %1562 = vadd.xlane.f32.xlu0 %v1561_v39 }
 0x8f3   :  { %1736 = vadd.xlane.f32.xlu0 %v1735_v33 }
 0x8f7   :  { %1225 = vadd.xlane.f32.xlu0 %v1224_v46 }
 0x943   :  { %v1554_v54 = vpop.xlane.xlu1 %1553 }
 0x944   :  { %v1570_v3 = vmul.f32 0.03125, %v1554_v54 }
 0x946   :  { %v9179_v30 = vsub.f32 %v1546_v26, %v1570_v3 }
 0x947   :  { %v1740_v53 = vpop.xlane.xlu1 %1739 }
 0x948   :  { %v1742_v44 = vmul.f32 0.03125, %v1740_v53  ;;  %v1582_v28 = vmul.f32 %v9179_v30, %v9179_v30 }
 0x94a   :  { %v9183_v14 = vsub.f32 %v1732_v13, %v1742_v44  ;;  %v1588_v31 = vsel %vm213_vm2, %v1582_v28, 0.0  ;;  %v9214_v28 = vrot.slane %v9139_v49, %v9073_v37 }
 0x94b   :  { %1589 = vadd.xlane.f32.xlu1 %v1588_v31  ;;  %v1229_v5 = vpop.xlane.xlu1 %1228  ;;  %v9217_v31 = vsub.s32 3, %v8681_v60 }
 0x94c   :  { %v1746_v43 = vmul.f32 %v9183_v14, %v9183_v14  ;;  %v1235_v21 = vmul.f32 0.03125, %v1229_v5 }
 0x94e   :  { %v1750_v61 = vsel %vm213_vm2, %v1746_v43, 0.0  ;;  %v1241_v8 = vadd.f32 1e-12, %v1235_v21  ;;  %v9222_v21 = vrot.slane %v9139_v49, %v9217_v31 }
 0x94f   :  { %1751 = vadd.xlane.f32.xlu1 %v1750_v61 }
 0x950   :  { %7975 = vrsqrt.f32 %v1241_v8 }
 0x95d   :  { %v7976_v32 = vpop.eup %7975 }
 0x95e   :  { %v1253_v22 = vmul.f32 %v7976_v32, %v1205_v0  ;;  %v7809_v0 = vld [vmem:[%s10995_s14 + $0x8] sm:$0xff]  }
 0x95f   :  { %7302 = vmatpush3.bf16.msra.mxu1 %v7809_v0 }
 0x960   :  { %v1263_v17 = vmul.f32 %v9070_v38, %v1253_v22  ;;  %7303 = vmatprep.subr.bf16.mxu1 %v8402_v1 }
 0x962   :  { %v9197_v9 = vadd.f32 %v9077_v10, %v1263_v17 }
 0x978   :  { %v1563_v24 = vpop.xlane.xlu0 %1562 }
 0x979   :  { %v1573_v51 = vmul.f32 0.03125, %v1563_v24 }
 0x97b   :  { %v1579_v36 = vsub.f32 %v1549_v19, %v1573_v51 }
 0x97c   :  { %v1737_v11 = vpop.xlane.xlu0 %1736 }
 0x97d   :  { %v1741_v7 = vmul.f32 0.03125, %v1737_v11  ;;  %v1585_v55 = vmul.f32 %v1579_v36, %v1579_v36 }
 0x97f   :  { %v1743_v40 = vsub.f32 %v1731_v12, %v1741_v7  ;;  %v1597_v25 = vsel %vm213_vm2, %v1585_v55, 0.0 }
 0x980   :  { %1598 = vadd.xlane.f32.xlu0 %v1597_v25  ;;  %v1226_v35 = vpop.xlane.xlu0 %1225  ;;  %v7811_v25 = vld [vmem:[%s10988_s7 + $0x18] sm:$0xff]  }
 0x981   :  { %v1234_v59 = vmul.f32 0.03125, %v1226_v35  ;;  %v1745_v26 = vmul.f32 %v1743_v40, %v1743_v40  ;;  %v6620_v35 = vld [vmem:[%s10987_s6] ss:$0 sm:$0xff] }
 0x983   :  { %v1240_v13 = vadd.f32 1e-12, %v1234_v59  ;;  %v1747_v56 = vsel %vm213_vm2, %v1745_v26, 0.0 }
 0x984   :  { %1748 = vadd.xlane.f32.xlu0 %v1747_v56 }
 0x985   :  { %7977 = vrsqrt.f32 %v1240_v13  ;;  %v6621_v13 = vld [vmem:[%s10987_s6 + $0x1] ss:$0 sm:$0xff] }
 0x992   :  { %v7978_v20 = vpop.eup %7977 }
 0x993   :  { %v1252_v18 = vmul.f32 %v7978_v20, %v1204_v62 }
 0x995   :  { %v1262_v23 = vmul.f32 %v9070_v38, %v1252_v18  ;;  %v7810_v38 = vld [vmem:[%s10995_s14] sm:$0xff]  }
 0x996   :  { %7304 = vmatpush3.bf16.msra.mxu1 %v7810_v38 }
 0x997   :  { %v9194_v6 = vadd.f32 %v9077_v10, %v1262_v23  ;;  %7309 = vmatprep.subr.bf16.mxu1 %v8402_v1 }
 0x999   :  { %v1297_v15 = vpack.c.bf16 %v9197_v9, %v9194_v6 }
 0x99b   :  { %7270 = vmatmul.mubr.msk.bf16.gmra.mxu1 %vm213_vm2, %v1297_v15 }
 0x99c   :  { %7305 = vmatprep.mubr.msk.bf16.mxu1 %vm8403_vm0, %v8402_v1 }
 0x9d4   :  { %v1590_v10 = vpop.xlane.xlu1 %1589 }
 0x9d5   :  { %v1606_v16 = vmul.f32 0.03125, %v1590_v10 }
 0x9d7   :  { %v1612_v19 = vadd.f32 1e-12, %v1606_v16 }
 0x9d8   :  { %v1752_v12 = vpop.xlane.xlu1 %1751 }
 0x9d9   :  { %7979 = vrsqrt.f32 %v1612_v19  ;;  %v1754_v33 = vmul.f32 0.03125, %v1752_v12 }
 0x9db   :  { %v1756_v3 = vadd.f32 1e-12, %v1754_v33 }
 0x9e6   :  { %v7980_v44 = vpop.eup %7979 }
 0x9e7   :  { %v1624_v43 = vmul.f32 %v7980_v44, %v9179_v30 }
 0x9e9   :  { %v1634_v24 = vmul.f32 %v9214_v28, %v1624_v43 }
 0x9eb   :  { %v9230_v60 = vadd.f32 %v9222_v21, %v1634_v24 }
 0xa09   :  { %v1599_v62 = vpop.xlane.xlu0 %1598 }
 0xa0a   :  { %v1609_v39 = vmul.f32 0.03125, %v1599_v62 }
 0xa0c   :  { %v1615_v57 = vadd.f32 1e-12, %v1609_v39 }
 0xa0d   :  { %v1749_v46 = vpop.xlane.xlu0 %1748 }
 0xa0e   :  { %7981 = vrsqrt.f32 %v1615_v57  ;;  %v1753_v54 = vmul.f32 0.03125, %v1749_v46 }
 0xa10   :  { %v1755_v53 = vadd.f32 1e-12, %v1753_v54 }
 0xa12   :  { %7983 = vrsqrt.f32 %v1755_v53 }
 0xa13   :  { %7985 = vrsqrt.f32 %v1756_v3 }
 0xa1b   :  { %v7982_v61 = vpop.eup %7981 }
 0xa1c   :  { %v1627_v5 = vmul.f32 %v7982_v61, %v1579_v36 }
 0xa1e   :  { %v1637_v51 = vmul.f32 %v9214_v28, %v1627_v5 }
 0xa1f   :  { %v7984_v8 = vpop.eup %7983 }
 0xa20   :  { %v7986_v11 = vpop.eup %7985  ;;  %v9227_v7 = vadd.f32 %v9222_v21, %v1637_v51  ;;  %v1759_v55 = vmul.f32 %v7984_v8, %v1743_v40 }
 0xa21   :  { %v1760_v36 = vmul.f32 %v7986_v11, %v9183_v14  ;;  %v7812_v14 = vld [vmem:[%s10988_s7 + $0x10] sm:$0xff]  }
 0xa22   :  { %v1651_v30 = vrot.slane %v9227_v7, 7  ;;  %v1765_v59 = vmul.f32 %v6620_v35, %v1759_v55 }
 0xa23   :  { %v1766_v26 = vmul.f32 %v6620_v35, %v1760_v36 }
 0xa24   :  { %v1654_v49 = vsel %vm1653_vm15, %v9230_v60, %v1651_v30  ;;  %v9252_v56 = vadd.f32 %v6621_v13, %v1765_v59  ;;  %v6632_v30 = vld [vmem:[%s10989_s8 + $0x1] ss:$0 sm:$0xff] }
 0xa25   :  { %v1655_v40 = vpack.c.bf16 %v1654_v49, %v1654_v49  ;;  %v9254_v32 = vadd.f32 %v6621_v13, %v1766_v26 }
 0xa27   :  { %7306 = vmatmul.mubr.msk.bf16.vlgmr.msra.gmra.mxu1 %vm213_vm2, %v1655_v40  ;;  %v1787_v22 = vpack.c.bf16 %v9254_v32, %v9252_v56 }
 0xa28   :  { %7310 = vmatpush3.bf16.msra.mxu1 %v7811_v25  ;;  %7313 = vmatprep.mubr.msk.bf16.mxu1 %vm8403_vm0, %v8402_v1 }
 0xa29   :  { %7311 = vmatprep.subr.bf16.mxu1 %v8402_v1 }
 0xa2c   :  { %7312 = vmatpush3.bf16.msra.mxu1 %v7812_v14 }
 0xa2f   :  { %7314 = vmatmul.mubr.msk.bf16.vlgmr.msra.gmra.mxu1 %vm213_vm2, %v1787_v22 }
 0xa5b   :  { %v1373_v20 = vpop.f32.mrf.mxu1 }
 0xa5c   :  { %v1374_v18 = vadd.f32 %v1373_v20, %v9143_v29 }
 0xa5d   :  { %v7271_v17 = vpop.f32.mrf.mxu1 }
 0xa5e   :  { %v1384_v23 = vmul.f32 %v1374_v18, %v1374_v18 }
 0xa5f   :  { %v1376_v15 = vpop.f32.mrf.mxu1 }
 0xa60   :  { %v1390_v0 = vmul.f32 %v1384_v23, %v1374_v18  ;;  %v1377_v38 = vadd.f32 %v1376_v15, %v9143_v29 }
 0xa61   :  { %v7272_v10 = vpop.f32.mrf.mxu1 }
 0xa62   :  { %v1396_v16 = vmul.f32 0.044715, %v1390_v0  ;;  %v1385_v19 = vmul.f32 %v1377_v38, %v1377_v38 }
 0xa64   :  { %v1402_v12 = vadd.f32 %v1396_v16, %v1374_v18  ;;  %v1391_v62 = vmul.f32 %v1385_v19, %v1377_v38 }
 0xa66   :  { %v1408_v39 = vmul.f32 0.7978846, %v1402_v12  ;;  %v1397_v33 = vmul.f32 0.044715, %v1391_v62 }
 0xa68   :  { %7987 = vtanh.f32 %v1408_v39  ;;  %v1403_v57 = vadd.f32 %v1397_v33, %v1377_v38 }
 0xa6a   :  { %v1409_v46 = vmul.f32 0.7978846, %v1403_v57 }
 0xa6c   :  { %7989 = vtanh.f32 %v1409_v46 }
 0xa75   :  { %v7988_v54 = vpop.eup %7987 }
 0xa76   :  { %v1420_v3 = vadd.f32 1.0, %v7988_v54 }
 0xa78   :  { %v1426_v43 = vmul.f32 0.5, %v1420_v3 }
 0xa79   :  { %v7990_v53 = vpop.eup %7989 }
 0xa7a   :  { %v1421_v44 = vadd.f32 1.0, %v7990_v53  ;;  %v1432_v5 = vmul.f32 %v1426_v43, %v1374_v18  ;;  %v86_v53 = vld [vmem:[%s11010_s4] sm:$0x3] }
 0xa7c   :  { %v1427_v61 = vmul.f32 0.5, %v1421_v44  ;;  %v6562_v44 = vadd.f32 -1.0, %v86_v53 }
 0xa7e   :  { %v1433_v24 = vmul.f32 %v1427_v61, %v1377_v38  ;;  %v88_v43 = vmul.f32 1e+09, %v6562_v44 }
 0xa80   :  { %v1436_v29 = vpack.c.bf16 %v1433_v24, %v1432_v5  ;;  %v9301_v5 = vrot.slane %v88_v43, %v8684_v2 }
 0xa82   :  { %7298 = vmatmul.mubr.bf16.gmra.mxu0 %v1436_v29 }
 0xae7   :  { %v9261_v51 = vpop.f32.mrf.mxu1 }
 0xae9   :  { %v7307_v8 = vpop.f32.mrf.mxu1 }
 0xaeb   :  { %v1719_v11 = vpop.f32.mrf.mxu1 }
 0xaed   :  { %v7308_v55 = vpop.f32.mrf.mxu1 }
 0xaef   :  { %v1843_v36 = vpop.f32.mrf.mxu1 }
 0xaf0   :  { %v1844_v49 = vadd.f32 %v6632_v30, %v1843_v36 }
 0xaf1   :  { %v7315_v25 = vpop.f32.mrf.mxu1 }
 0xaf2   :  { %v9266_v35 = vpack.c.bf16 %v1844_v49, %v1844_v49  ;;  %v1850_v40 = vmul.f32 %v8594_v47, %v1844_v49  ;;  %v1851_v26 = vmul.f32 %v8600_v50, %v1844_v49  ;;  %v1852_v12 = vmul.f32 %v8597_v48, %v1844_v49 }
 0xaf3   :  { %v1846_v59 = vpop.f32.mrf.mxu1  ;;  %v1853_v62 = vmul.f32 %v8603_v52, %v1844_v49 }
 0xaf4   :  { %v1847_v14 = vadd.f32 %v6632_v30, %v1846_v59  ;;  %1862 = vrot.lane.b32.xlu0 %v9266_v35, %s8404_s0  ;;  %v1854_v22 = vpack.c.bf16 %v1851_v26, %v1850_v40  ;;  %v9309_v26 = vrot.slane %v88_v43, %v8731_v34 }
 0xaf5   :  { %v7316_v13 = vpop.f32.mrf.mxu1  ;;  %v1855_v54 = vpack.c.bf16 %v1853_v62, %v1852_v12 }
 0xaf6   :  { %v9272_v20 = vpack.c.bf16 %v1847_v14, %v1847_v14  ;;  %v2036_v18 = vmul.f32 %v8594_v47, %v1847_v14  ;;  %7319 = vmatprep.mubr.msk.bf16.mxu1 %vm213_vm2, %v1854_v22  ;;  %v2037_v17 = vmul.f32 %v8600_v50, %v1847_v14  ;;  %v2038_v57 = vmul.f32 %v8597_v48, %v1847_v14 }
 0xaf7   :  { %v2039_v46 = vmul.f32 %v8603_v52, %v1847_v14 }
 0xaf8   :  { %2048 = vrot.lane.b32.xlu1 %v9272_v20, %s8404_s0  ;;  %v2040_v23 = vpack.c.bf16 %v2037_v17, %v2036_v18 }
 0xaf9   :  { %v2041_v3 = vpack.c.bf16 %v2039_v46, %v2038_v57 }
 0xafa   :  { %7331 = vmatprep.mubr.msk.bf16.mxu0 %vm213_vm2, %v2040_v23 }
 0xb42   :  { %v9280_v15 = vpop.f32.mrf.mxu0 }
 0xb44   :  { %v7299_v0 = vpop.f32.mrf.mxu0 }
 0xb46   :  { %v9282_v38 = vpop.f32.mrf.mxu0 }
 0xb48   :  { %v7300_v10 = vpop.f32.mrf.mxu0 }
 0xb66   :  { %v1863_v16 = vpop.permute.xlu0 %1862 }
 0xb67   :  { %7764 = vmatprep.subr.msk.bf16.mxu1 %vm213_vm2, %v1863_v16  ;;  %v1871_v19 = vsel %vm213_vm2, %v1863_v16, 0 }
 0xb68   :  { %7318 = vmatpush3.bf16.xpose.msra.mxu1 %v1871_v19 }
 0xb6a   :  { %v2049_v39 = vpop.permute.xlu1 %2048 }
 0xb6b   :  { %7766 = vmatprep.subr.msk.bf16.mxu0 %vm213_vm2, %v2049_v39  ;;  %v2057_v33 = vsel %vm213_vm2, %v2049_v39, 0 }
 0xb6c   :  { %7330 = vmatpush3.bf16.xpose.msra.mxu0 %v2057_v33 }
 0xb6d   :  { %7341 = vmatprep.subr.bf16.mxu0 %v8402_v1 }
 0xb6f   :  { %7320 = vmatmul.mubr.msk.bf16.vlgmr.msra.gmra.mxu1 %vm213_vm2, %v1855_v54 }
 0xb73   :  { %7332 = vmatmul.mubr.msk.bf16.vlgmr.msra.gmra.mxu0 %vm213_vm2, %v2041_v3 }
 0xb74   :  { %7345 = vmatprep.mubr.msk.bf16.mxu0 %vm8403_vm0, %v8402_v1 }
 0xc2f   :  { %v7321_v61 = vpop.f32.mrf.mxu1 }
 0xc30   :  { %v1916_v59 = vadd.f32 %v7321_v61, %v9301_v5 }
 0xc31   :  { %v1907_v24 = vpop.f32.mrf.mxu1 }
 0xc32   :  { %v1908_v29 = vadd.f32 %v1907_v24, %v9301_v5  ;;  %v1929_v0 = vsel %vm1922_vm1, %v1916_v59, -inf }
 0xc33   :  { %v7322_v8 = vpop.f32.mrf.mxu1  ;;  %v7333_v11 = vpop.f32.mrf.mxu0 }
 0xc34   :  { %v1919_v55 = vadd.f32 %v7322_v8, %v9301_v5  ;;  %v1923_v30 = vsel %vm1922_vm1, %v1908_v29, -inf  ;;  %v2102_v16 = vadd.f32 %v7333_v11, %v9309_v26 }
 0xc35   :  { %v1910_v36 = vpop.f32.mrf.mxu1  ;;  %1924 = vmax.xlane.f32.xlu1 %v1923_v30  ;;  %v2093_v49 = vpop.f32.mrf.mxu0 }
 0xc36   :  { %v1911_v25 = vadd.f32 %v1910_v36, %v9301_v5  ;;  %v1932_v13 = vsel %vm1922_vm1, %v1919_v55, -inf  ;;  %v2094_v17 = vadd.f32 %v2093_v49, %v9309_v26  ;;  %v2114_v62 = vsel %vm1922_vm1, %v2102_v16, -inf }
 0xc37   :  { %v7334_v40 = vpop.f32.mrf.mxu0 }
 0xc38   :  { %v1926_v14 = vsel %vm1922_vm1, %v1911_v25, -inf  ;;  %v2105_v23 = vadd.f32 %v7334_v40, %v9309_v26  ;;  %v2108_v12 = vsel %vm1922_vm1, %v2094_v17, -inf }
 0xc39   :  { %1927 = vmax.xlane.f32.xlu0 %v1926_v14  ;;  %1933 = vmax.xlane.f32.xlu1 %v1932_v13  ;;  %v2096_v22 = vpop.f32.mrf.mxu0 }
 0xc3a   :  { %v2097_v18 = vadd.f32 %v2096_v22, %v9309_v26  ;;  %v2117_v19 = vsel %vm1922_vm1, %v2105_v23, -inf }
 0xc3c   :  { %v2111_v10 = vsel %vm1922_vm1, %v2097_v18, -inf }
 0xc3d   :  { %1930 = vmax.xlane.f32.xlu0 %v1929_v0  ;;  %2112 = vmax.xlane.f32.xlu1 %v2111_v10 }
 0xc41   :  { %2118 = vmax.xlane.f32.xlu1 %v2117_v19  ;;  %2109 = vmax.xlane.f32.xlu0 %v2108_v12 }
 0xc45   :  { %2115 = vmax.xlane.f32.xlu0 %v2114_v62 }
 0xcbe   :  { %v1925_v39 = vpop.xlane.xlu1 %1924 }
 0xcbf   :  { %v1935_v3 = vsub.f32 %v1908_v29, %v1925_v39 }
 0xcc1   :  { %v1939_v8 = vmul.f32 1.442695, %v1935_v3 }
 0xcc2   :  { %v1928_v33 = vpop.xlane.xlu0 %1927  ;;  %v1934_v57 = vpop.xlane.xlu1 %1933 }
 0xcc3   :  { %v1936_v46 = vsub.f32 %v1911_v25, %v1928_v33  ;;  %v1938_v54 = vsub.f32 %v1919_v55, %v1934_v57 }
 0xcc5   :  { %v1945_v53 = vmul.f32 1.442695, %v1938_v54  ;;  %v1941_v44 = vmul.f32 1.442695, %v1936_v46 }
 0xcc6   :  { %v1931_v43 = vpop.xlane.xlu0 %1930  ;;  %v2113_v61 = vpop.xlane.xlu1 %2112 }
 0xcc7   :  { %v1937_v24 = vsub.f32 %v1916_v59, %v1931_v43  ;;  %7991 = vpow2.f32 %v1945_v53  ;;  %v2121_v30 = vsub.f32 %v2097_v18, %v2113_v61 }
 0xcc8   :  { %7993 = vpow2.f32 %v1941_v44 }
 0xcc9   :  { %v1943_v11 = vmul.f32 1.442695, %v1937_v24  ;;  %v2126_v25 = vmul.f32 1.442695, %v2121_v30 }
 0xcca   :  { %v2119_v36 = vpop.xlane.xlu1 %2118  ;;  %v2110_v49 = vpop.xlane.xlu0 %2109 }
 0xccb   :  { %7995 = vpow2.f32 %v1943_v11  ;;  %v2123_v40 = vsub.f32 %v2105_v23, %v2119_v36  ;;  %v2120_v13 = vsub.f32 %v2094_v17, %v2110_v49 }
 0xccc   :  { %7997 = vpow2.f32 %v1939_v8 }
 0xccd   :  { %v2130_v14 = vmul.f32 1.442695, %v2123_v40  ;;  %v2124_v22 = vmul.f32 1.442695, %v2120_v13 }
 0xcce   :  { %v2116_v55 = vpop.xlane.xlu0 %2115 }
 0xccf   :  { %7999 = vpow2.f32 %v2130_v14  ;;  %v2122_v29 = vsub.f32 %v2102_v16, %v2116_v55 }
 0xcd0   :  { %8001 = vpow2.f32 %v2126_v25 }
 0xcd1   :  { %v2128_v0 = vmul.f32 1.442695, %v2122_v29 }
 0xcd3   :  { %8003 = vpow2.f32 %v2128_v0 }
 0xcd4   :  { %v7992_v59 = vpop.eup %7991  ;;  %8005 = vpow2.f32 %v2124_v22 }
 0xcd5   :  { %v1956_v10 = vsel %vm1922_vm1, %v7992_v59, 0.0  ;;  %v7994_v18 = vpop.eup %7993 }
 0xcd6   :  { %1957 = vadd.xlane.f32.xlu1 %v1956_v10  ;;  %v1950_v17 = vsel %vm1922_vm1, %v7994_v18, 0.0 }
 0xcd8   :  { %v7996_v19 = vpop.eup %7995 }
 0xcd9   :  { %v1953_v23 = vsel %vm1922_vm1, %v7996_v19, 0.0  ;;  %v7998_v12 = vpop.eup %7997 }
 0xcda   :  { %1954 = vadd.xlane.f32.xlu0 %v1953_v23  ;;  %1951 = vadd.xlane.f32.xlu1 %v1950_v17  ;;  %v1947_v39 = vsel %vm1922_vm1, %v7998_v12, 0.0 }
 0xcdc   :  { %v8000_v62 = vpop.eup %7999 }
 0xcdd   :  { %v2141_v16 = vsel %vm1922_vm1, %v8000_v62, 0.0  ;;  %v8002_v33 = vpop.eup %8001 }
 0xcde   :  { %1948 = vadd.xlane.f32.xlu0 %v1947_v39  ;;  %2142 = vadd.xlane.f32.xlu1 %v2141_v16  ;;  %v2135_v3 = vsel %vm1922_vm1, %v8002_v33, 0.0 }
 0xce0   :  { %v8004_v57 = vpop.eup %8003 }
 0xce1   :  { %v2138_v46 = vsel %vm1922_vm1, %v8004_v57, 0.0  ;;  %v8006_v54 = vpop.eup %8005 }
 0xce2   :  { %2139 = vadd.xlane.f32.xlu0 %v2138_v46  ;;  %2136 = vadd.xlane.f32.xlu1 %v2135_v3  ;;  %v2132_v53 = vsel %vm1922_vm1, %v8006_v54, 0.0 }
 0xce6   :  { %2133 = vadd.xlane.f32.xlu0 %v2132_v53 }
 0xcf3   :  { %2154 = vrot.lane.b32.xlu1 %v9272_v20, %s8405_s1 }
 0xcfc   :  { %1969 = vrot.lane.b32.xlu0 %v9266_v35, %s8405_s1 }
 0xd5f   :  { %v1958_v44 = vpop.xlane.xlu1 %1957 }
 0xd63   :  { %v1955_v43 = vpop.xlane.xlu0 %1954  ;;  %v1952_v61 = vpop.xlane.xlu1 %1951 }
 0xd64   :  { %8007 = vrcp.f32 %v1955_v43  ;;  %v7813_v43 = vld [vmem:[%s10990_s9 + $0x18] sm:$0xff]  }
 0xd65   :  { %8009 = vrcp.f32 %v1952_v61  ;;  %7342 = vmatpush3.bf16.msra.mxu0 %v7813_v43 }
 0xd66   :  { %8011 = vrcp.f32 %v1958_v44  ;;  %7343 = vmatprep.subr.bf16.mxu0 %v8402_v1 }
 0xd67   :  { %v1949_v24 = vpop.xlane.xlu0 %1948  ;;  %v2143_v8 = vpop.xlane.xlu1 %2142 }
 0xd68   :  { %8013 = vrcp.f32 %v1949_v24 }
 0xd6b   :  { %v2140_v11 = vpop.xlane.xlu0 %2139  ;;  %v2137_v30 = vpop.xlane.xlu1 %2136 }
 0xd6c   :  { %8015 = vrcp.f32 %v2140_v11 }
 0xd6d   :  { %8017 = vrcp.f32 %v2137_v30 }
 0xd6e   :  { %8019 = vrcp.f32 %v2143_v8 }
 0xd6f   :  { %v2134_v36 = vpop.xlane.xlu0 %2133  ;;  %v2155_v25 = vpop.permute.xlu1 %2154 }
 0xd70   :  { %8021 = vrcp.f32 %v2134_v36  ;;  %v2163_v39 = vsel %vm577_vm14, %v2155_v25, 0 }
 0xd71   :  { %v8008_v20 = vpop.eup %8007 }
 0xd72   :  { %v8010_v49 = vpop.eup %8009  ;;  %v1965_v55 = vmul.f32 %v8008_v20, %v7996_v19 }
 0xd73   :  { %v1970_v40 = vpop.permute.xlu0 %1969  ;;  %v8012_v35 = vpop.eup %8011  ;;  %v1964_v22 = vmul.f32 %v8010_v49, %v7994_v18 }
 0xd74   :  { %7765 = vmatprep.subr.msk.bf16.mxu1 %vm577_vm14, %v1970_v40  ;;  %v1978_v14 = vsel %vm577_vm14, %v1970_v40, 0  ;;  %v1966_v0 = vmul.f32 %v8012_v35, %v7992_v59 }
 0xd75   :  { %v8014_v13 = vpop.eup %8013  ;;  %7324 = vmatpush3.bf16.msra.mxu1 %v1978_v14 }
 0xd76   :  { %7767 = vmatprep.subr.msk.bf16.mxu1 %vm577_vm14, %v2155_v25  ;;  %v1963_v29 = vmul.f32 %v8014_v13, %v7998_v12  ;;  %v1968_v23 = vpack.c.bf16 %v1966_v0, %v1965_v55 }
 0xd78   :  { %v1967_v10 = vpack.c.bf16 %v1964_v22, %v1963_v29 }
 0xd79   :  { %v8016_v17 = vpop.eup %8015 }
 0xd7a   :  { %7325 = vmatprep.mubr.msk.bf16.mxu1 %vm1922_vm1, %v1967_v10  ;;  %v8018_v16 = vpop.eup %8017  ;;  %v2150_v53 = vmul.f32 %v8016_v17, %v8004_v57 }
 0xd7b   :  { %7326 = vmatmul.mubr.msk.bf16.vlgmr.msra.gmra.mxu1 %vm1922_vm1, %v1968_v23  ;;  %v8020_v46 = vpop.eup %8019  ;;  %v2149_v12 = vmul.f32 %v8018_v16, %v8002_v33  ;;  %v6631_v16 = vld [vmem:[%s10991_s10 + $0x4] sm:$0xf] }
 0xd7c   :  { %7336 = vmatpush3.bf16.msra.mxu1 %v2163_v39  ;;  %v2151_v18 = vmul.f32 %v8020_v46, %v8000_v62  ;;  %v7814_v62 = vld [vmem:[%s10990_s9 + $0x10] sm:$0xff]   ;;  %v2225_v39 = vrot.slane %v6631_v16, %v8684_v2 }
 0xd7d   :  { %v8022_v3 = vpop.eup %8021  ;;  %7349 = vmatprep.subr.bf16.mxu1 %v8402_v1  ;;  %7344 = vmatpush3.bf16.msra.mxu0 %v7814_v62 }
 0xd7e   :  { %v2148_v19 = vmul.f32 %v8022_v3, %v8006_v54  ;;  %v2153_v44 = vpack.c.bf16 %v2151_v18, %v2150_v53  ;;  %7357 = vmatprep.subr.bf16.mxu0 %v8402_v1 }
 0xd80   :  { %v2152_v59 = vpack.c.bf16 %v2149_v12, %v2148_v19 }
 0xd82   :  { %7337 = vmatprep.mubr.msk.bf16.mxu1 %vm1922_vm1, %v2152_v59 }
 0xd83   :  { %7338 = vmatmul.mubr.msk.bf16.vlgmr.msra.gmra.mxu1 %vm1922_vm1, %v2153_v44 }
 0xd84   :  { %7353 = vmatprep.mubr.msk.bf16.mxu1 %vm8403_vm0, %v8402_v1 }
 0xe3b   :  { %v7327_v33 = vpop.f32.mrf.mxu1 }
 0xe3c   :  { %v2032_v40 = vmul.f32 %v7327_v33, %v8597_v48 }
 0xe3d   :  { %v2014_v57 = vpop.f32.mrf.mxu1 }
 0xe3e   :  { %v2029_v30 = vmul.f32 %v8594_v47, %v2014_v57 }
 0xe3f   :  { %v7328_v54 = vpop.f32.mrf.mxu1 }
 0xe40   :  { %v2034_v29 = vmul.f32 %v7328_v54, %v8603_v52 }
 0xe41   :  { %v2017_v61 = vpop.f32.mrf.mxu1 }
 0xe42   :  { %v2030_v8 = vmul.f32 %v8600_v50, %v2017_v61 }
 0xe43   :  { %v7339_v24 = vpop.f32.mrf.mxu1 }
 0xe44   :  { %v2031_v20 = vadd.f32 %v2030_v8, %v2029_v30  ;;  %v2217_v25 = vmul.f32 %v7339_v24, %v8597_v48 }
 0xe45   :  { %v2199_v11 = vpop.f32.mrf.mxu1 }
 0xe46   :  { %v2214_v35 = vmul.f32 %v8594_v47, %v2199_v11  ;;  %v2033_v13 = vadd.f32 %v2032_v40, %v2031_v20  ;;  %v7816_v20 = vld [vmem:[%s10992_s11 + $0x10] sm:$0xff]  }
 0xe47   :  { %v7340_v36 = vpop.f32.mrf.mxu1 }
 0xe48   :  { %v2219_v22 = vmul.f32 %v7340_v36, %v8603_v52  ;;  %v2035_v10 = vadd.f32 %v2034_v29, %v2033_v13  ;;  %v2313_v29 = vrot.slane %v6631_v16, %v8731_v34 }
 0xe49   :  { %v2202_v49 = vpop.f32.mrf.mxu1 }
 0xe4a   :  { %v2215_v14 = vmul.f32 %v8600_v50, %v2202_v49 }
 0xe4c   :  { %v2216_v55 = vadd.f32 %v2215_v14, %v2214_v35 }
 0xe4e   :  { %v2218_v0 = vadd.f32 %v2217_v25, %v2216_v55 }
 0xe50   :  { %v2220_v23 = vadd.f32 %v2219_v22, %v2218_v0 }
 0xe52   :  { %v2221_v17 = vpack.c.bf16 %v2220_v23, %v2035_v10  ;;  %v2319_v10 = vrot.slane %v6631_v16, %v9073_v37  ;;  %v7818_v16 = vld [vmem:[%s10993_s12 + $0x70] sm:$0xff]  }
 0xe54   :  { %7346 = vmatmul.mubr.msk.bf16.vlgmr.msra.gmra.mxu0 %vm213_vm2, %v2221_v17 }
 0xe55   :  { %7373 = vmatprep.mubr.msk.bf16.mxu0 %vm8403_vm0, %v8402_v1 }
 0xf14   :  { %v2275_v46 = vpop.f32.mrf.mxu0 }
 0xf15   :  { %v2276_v3 = vadd.f32 %v2275_v46, %v2225_v39 }
 0xf16   :  { %v7347_v53 = vpop.f32.mrf.mxu0 }
 0xf17   :  { %v2282_v19 = vadd.f32 %v2276_v3, %v9252_v56 }
 0xf18   :  { %v2278_v12 = vpop.f32.mrf.mxu0 }
 0xf19   :  { %v2279_v18 = vadd.f32 %v2278_v12, %v2225_v39  ;;  %v2284_v59 = vsel %vm213_vm2, %v2282_v19, 0.0  ;;  %v7819_v12 = vld [vmem:[%s10993_s12 + $0x68] sm:$0xff]  }
 0xf1a   :  { %2285 = vadd.xlane.f32.xlu1 %v2284_v59  ;;  %v7348_v44 = vpop.f32.mrf.mxu0  ;;  %v7821_v59 = vld [vmem:[%s10993_s12 + $0x58] sm:$0xff]  }
 0xf1b   :  { %v2283_v43 = vadd.f32 %v2279_v18, %v9254_v32  ;;  %v7815_v32 = vld [vmem:[%s10992_s11 + $0x18] sm:$0xff]   ;;  %v7820_v18 = vld [vmem:[%s10993_s12 + $0x60] sm:$0xff]   ;;  %v7822_v44 = vld [vmem:[%s10993_s12 + $0x50] sm:$0xff]  }
 0xf1c   :  { %7350 = vmatpush3.bf16.msra.mxu1 %v7815_v32 }
 0xf1d   :  { %v2287_v62 = vsel %vm213_vm2, %v2283_v43, 0.0  ;;  %7351 = vmatprep.subr.bf16.mxu1 %v8402_v1 }
 0xf1e   :  { %2288 = vadd.xlane.f32.xlu0 %v2287_v62  ;;  %v7824_v62 = vld [vmem:[%s10993_s12 + $0x40] sm:$0xff]  }
 0xf20   :  { %7352 = vmatpush3.bf16.msra.mxu1 %v7816_v20 }
 0xf21   :  { %7377 = vmatprep.subr.bf16.mxu1 %v8402_v1 }
 0xfa3   :  { %v2286_v33 = vpop.xlane.xlu1 %2285 }
 0xfa4   :  { %v2290_v57 = vmul.f32 0.03125, %v2286_v33  ;;  %v9424_v33 = vld [vmem:[%s10994_s13 + $0x4] sm:$0xf] }
 0xfa6   :  { %v2292_v54 = vsub.f32 %v2282_v19, %v2290_v57  ;;  %v7817_v19 = vld [vmem:[%s10993_s12 + $0x78] sm:$0xff]   ;;  %v2350_v57 = vrot.slane %v9424_v33, %v8684_v2 }
 0xfa7   :  { %v2289_v61 = vpop.xlane.xlu0 %2288  ;;  %7358 = vmatpush3.bf16.msra.mxu0 %v7817_v19  ;;  %v2429_v19 = vrot.slane %v9424_v33, %v8731_v34 }
 0xfa8   :  { %v2291_v24 = vmul.f32 0.03125, %v2289_v61  ;;  %v2294_v8 = vmul.f32 %v2292_v54, %v2292_v54  ;;  %7359 = vmatprep.subr.bf16.mxu0 %v8402_v1 }
 0xfaa   :  { %v2293_v11 = vsub.f32 %v2283_v43, %v2291_v24  ;;  %v2296_v56 = vsel %vm213_vm2, %v2294_v8, 0.0  ;;  %v7823_v43 = vld [vmem:[%s10993_s12 + $0x48] sm:$0xff]  }
 0xfab   :  { %2297 = vadd.xlane.f32.xlu0 %v2296_v56  ;;  %7360 = vmatpush3.bf16.msra.mxu0 %v7818_v16 }
 0xfac   :  { %v2295_v30 = vmul.f32 %v2293_v11, %v2293_v11  ;;  %7361 = vmatprep.subr.bf16.mxu0 %v8402_v1 }
 0xfae   :  { %v2299_v36 = vsel %vm213_vm2, %v2295_v30, 0.0 }
 0xfaf   :  { %2300 = vadd.xlane.f32.xlu1 %v2299_v36  ;;  %7362 = vmatpush3.bf16.msra.mxu0 %v7819_v12 }
 0xfb0   :  { %7363 = vmatprep.subr.bf16.mxu0 %v8402_v1 }
 0xfb3   :  { %7364 = vmatpush3.bf16.msra.mxu0 %v7820_v18 }
 0xfb4   :  { %7365 = vmatprep.subr.bf16.mxu0 %v8402_v1 }
 0xfb7   :  { %7366 = vmatpush3.bf16.msra.mxu0 %v7821_v59 }
 0xfb8   :  { %7367 = vmatprep.subr.bf16.mxu0 %v8402_v1 }
 0xfbb   :  { %7368 = vmatpush3.bf16.msra.mxu0 %v7822_v44 }
 0xfbc   :  { %7369 = vmatprep.subr.bf16.mxu0 %v8402_v1 }
 0xfbf   :  { %7370 = vmatpush3.bf16.msra.mxu0 %v7823_v43 }
 0xfc0   :  { %7371 = vmatprep.subr.bf16.mxu0 %v8402_v1 }
 0xfc3   :  { %7372 = vmatpush3.bf16.msra.mxu0 %v7824_v62 }
0x1034   :  { %v2298_v49 = vpop.xlane.xlu0 %2297 }
0x1035   :  { %v2302_v40 = vmul.f32 0.03125, %v2298_v49 }
0x1037   :  { %v2304_v35 = vadd.f32 1e-12, %v2302_v40 }
0x1038   :  { %v2301_v14 = vpop.xlane.xlu1 %2300 }
0x1039   :  { %8023 = vrsqrt.f32 %v2304_v35  ;;  %v2303_v13 = vmul.f32 0.03125, %v2301_v14 }
0x103b   :  { %v2305_v25 = vadd.f32 1e-12, %v2303_v13 }
0x103d   :  { %8025 = vrsqrt.f32 %v2305_v25 }
0x1046   :  { %v8024_v55 = vpop.eup %8023 }
0x1047   :  { %v2308_v22 = vmul.f32 %v8024_v55, %v2292_v54 }
0x1049   :  { %v2314_v17 = vmul.f32 %v2313_v29, %v2308_v22 }
0x104a   :  { %v8026_v0 = vpop.eup %8025 }
0x104b   :  { %v2309_v23 = vmul.f32 %v8026_v0, %v2293_v11  ;;  %v2320_v46 = vadd.f32 %v2319_v10, %v2314_v17 }
0x104d   :  { %v2315_v39 = vmul.f32 %v2313_v29, %v2309_v23 }
0x104f   :  { %v9384_v3 = vadd.f32 %v2319_v10, %v2315_v39 }
0x1051   :  { %v2346_v53 = vpack.c.bf16 %v9384_v3, %v2320_v46 }
0x1053   :  { %7354 = vmatmul.mubr.msk.bf16.vlgmr.msra.gmra.mxu1 %vm213_vm2, %v2346_v53 }
0x1054   :  { %7381 = vmatprep.mubr.msk.bf16.mxu1 %vm8403_vm0, %v8402_v1 }
0x1113   :  { %v2400_v54 = vpop.f32.mrf.mxu1 }
0x1114   :  { %v2401_v61 = vadd.f32 %v2400_v54, %v2350_v57 }
0x1115   :  { %v7355_v24 = vpop.f32.mrf.mxu1 }
0x1116   :  { %v2407_v8 = vmul.f32 %v2401_v61, %v2401_v61 }
0x1117   :  { %v2403_v11 = vpop.f32.mrf.mxu1 }
0x1118   :  { %v2409_v56 = vmul.f32 %v2407_v8, %v2401_v61  ;;  %v2404_v30 = vadd.f32 %v2403_v11, %v2350_v57 }
0x1119   :  { %v7356_v36 = vpop.f32.mrf.mxu1 }
0x111a   :  { %v2411_v32 = vmul.f32 0.044715, %v2409_v56  ;;  %v2408_v20 = vmul.f32 %v2404_v30, %v2404_v30 }
0x111c   :  { %v2413_v49 = vadd.f32 %v2411_v32, %v2401_v61  ;;  %v2410_v40 = vmul.f32 %v2408_v20, %v2404_v30 }
0x111e   :  { %v2415_v35 = vmul.f32 0.7978846, %v2413_v49  ;;  %v2412_v14 = vmul.f32 0.044715, %v2410_v40  ;;  %v7826_v40 = vld [vmem:[%s10988_s7 + $0x20] sm:$0xff]  }
0x1120   :  { %8027 = vtanh.f32 %v2415_v35  ;;  %v2414_v13 = vadd.f32 %v2412_v14, %v2404_v30 }
0x1122   :  { %v2416_v25 = vmul.f32 0.7978846, %v2414_v13 }
0x1124   :  { %8029 = vtanh.f32 %v2416_v25 }
0x112d   :  { %v8028_v55 = vpop.eup %8027 }
0x112e   :  { %v2419_v29 = vadd.f32 1.0, %v8028_v55 }
0x1130   :  { %v2421_v0 = vmul.f32 0.5, %v2419_v29 }
0x1131   :  { %v8030_v22 = vpop.eup %8029 }
0x1132   :  { %v2420_v10 = vadd.f32 1.0, %v8030_v22  ;;  %v2423_v17 = vmul.f32 %v2421_v0, %v2401_v61  ;;  %v2550_v0 = vrot.slane %v9424_v33, %v9073_v37 }
0x1134   :  { %v2422_v23 = vmul.f32 0.5, %v2420_v10 }
0x1136   :  { %v2424_v39 = vmul.f32 %v2422_v23, %v2404_v30 }
0x1138   :  { %v2425_v53 = vpack.c.bf16 %v2424_v39, %v2423_v17  ;;  %v2556_v17 = vrot.slane %v9424_v33, %v9217_v31 }
0x113a   :  { %7374 = vmatmul.mubr.bf16.vlgmr.msra.gmra.mxu0 %v2425_v53 }
0x11fa   :  { %v2512_v16 = vpop.f32.mrf.mxu0 }
0x11fb   :  { %v2513_v12 = vadd.f32 %v2512_v16, %v2429_v19 }
0x11fc   :  { %v7375_v18 = vpop.f32.mrf.mxu0 }
0x11fd   :  { %v2519_v59 = vadd.f32 %v2513_v12, %v2320_v46 }
0x11fe   :  { %v2515_v44 = vpop.f32.mrf.mxu0 }
0x11ff   :  { %v2516_v43 = vadd.f32 %v2515_v44, %v2429_v19  ;;  %v2521_v62 = vsel %vm213_vm2, %v2519_v59, 0.0 }
0x1200   :  { %2522 = vadd.xlane.f32.xlu0 %v2521_v62  ;;  %v7376_v57 = vpop.f32.mrf.mxu0 }
0x1201   :  { %v2520_v54 = vadd.f32 %v2516_v43, %v9384_v3  ;;  %v7825_v3 = vld [vmem:[%s10988_s7 + $0x28] sm:$0xff]  }
0x1202   :  { %7378 = vmatpush3.bf16.msra.mxu1 %v7825_v3 }
0x1203   :  { %v2524_v61 = vsel %vm213_vm2, %v2520_v54, 0.0  ;;  %7379 = vmatprep.subr.bf16.mxu1 %v8402_v1 }
0x1204   :  { %2525 = vadd.xlane.f32.xlu1 %v2524_v61 }
0x1206   :  { %7380 = vmatpush3.bf16.msra.mxu1 %v7826_v40 }
0x1289   :  { %v2523_v24 = vpop.xlane.xlu0 %2522 }
0x128a   :  { %v2527_v8 = vmul.f32 0.03125, %v2523_v24 }
0x128c   :  { %v2529_v11 = vsub.f32 %v2519_v59, %v2527_v8  ;;  %v6689_v59 = vld [vmem:[%s10989_s8 + $0x2] ss:$0 sm:$0xff] }
0x128d   :  { %v2526_v56 = vpop.xlane.xlu1 %2525 }
0x128e   :  { %v2528_v30 = vmul.f32 0.03125, %v2526_v56  ;;  %v2531_v36 = vmul.f32 %v2529_v11, %v2529_v11 }
0x1290   :  { %v2530_v32 = vsub.f32 %v2520_v54, %v2528_v30  ;;  %v2533_v46 = vsel %vm213_vm2, %v2531_v36, 0.0 }
0x1291   :  { %2534 = vadd.xlane.f32.xlu0 %v2533_v46 }
0x1292   :  { %v2532_v20 = vmul.f32 %v2530_v32, %v2530_v32 }
0x1294   :  { %v2536_v49 = vsel %vm213_vm2, %v2532_v20, 0.0 }
0x1295   :  { %2537 = vadd.xlane.f32.xlu1 %v2536_v49 }
0x131a   :  { %v2535_v35 = vpop.xlane.xlu0 %2534 }
0x131b   :  { %v2539_v14 = vmul.f32 0.03125, %v2535_v35 }
0x131d   :  { %v2541_v13 = vadd.f32 1e-12, %v2539_v14 }
0x131e   :  { %v2538_v25 = vpop.xlane.xlu1 %2537 }
0x131f   :  { %8031 = vrsqrt.f32 %v2541_v13  ;;  %v2540_v55 = vmul.f32 0.03125, %v2538_v25 }
0x1321   :  { %v2542_v29 = vadd.f32 1e-12, %v2540_v55 }
0x1323   :  { %8033 = vrsqrt.f32 %v2542_v29 }
0x132c   :  { %v8032_v22 = vpop.eup %8031 }
0x132d   :  { %v2545_v10 = vmul.f32 %v8032_v22, %v2529_v11 }
0x132f   :  { %v2551_v53 = vmul.f32 %v2550_v0, %v2545_v10 }
0x1330   :  { %v8034_v23 = vpop.eup %8033 }
0x1331   :  { %v2546_v39 = vmul.f32 %v8034_v23, %v2530_v32  ;;  %v9446_v16 = vadd.f32 %v2556_v17, %v2551_v53 }
0x1333   :  { %v2552_v19 = vmul.f32 %v2550_v0, %v2546_v39 }
0x1335   :  { %v9448_v12 = vadd.f32 %v2556_v17, %v2552_v19 }
0x1337   :  { %v9452_v18 = vpack.c.bf16 %v9448_v12, %v9446_v16 }
0x1339   :  { %7382 = vmatmul.mubr.msk.bf16.vlgmr.msra.gmra.mxu1 %vm213_vm2, %v9452_v18 }
0x13f9   :  { %v2629_v44 = vpop.f32.mrf.mxu1 }
0x13fa   :  { %v2630_v33 = vadd.f32 %v6689_v59, %v2629_v44 }
0x13fb   :  { %v7383_v43 = vpop.f32.mrf.mxu1 }
0x13fc   :  { %v2642_v62 = vpack.c.bf16 %v2630_v33, %v2630_v33  ;;  %v2636_v57 = vmul.f32 %v8594_v47, %v2630_v33  ;;  %v2637_v61 = vmul.f32 %v8600_v50, %v2630_v33  ;;  %v2638_v36 = vmul.f32 %v8597_v48, %v2630_v33 }
0x13fd   :  { %v2632_v54 = vpop.f32.mrf.mxu1  ;;  %v2639_v32 = vmul.f32 %v8603_v52, %v2630_v33 }
0x13fe   :  { %v9461_v24 = vadd.f32 %v6689_v59, %v2632_v54  ;;  %2644 = vrot.lane.b32.xlu0 %v2642_v62, %s8404_s0  ;;  %v2640_v11 = vpack.c.bf16 %v2637_v61, %v2636_v57 }
0x13ff   :  { %v7384_v8 = vpop.f32.mrf.mxu1  ;;  %v2641_v46 = vpack.c.bf16 %v2639_v32, %v2638_v36 }
0x1400   :  { %7387 = vmatprep.mubr.msk.bf16.mxu1 %vm213_vm2, %v2640_v11 }
0x1470   :  { %v2645_v56 = vpop.permute.xlu0 %2644 }
0x1471   :  { %7768 = vmatprep.subr.msk.bf16.mxu1 %vm213_vm2, %v2645_v56  ;;  %v2653_v30 = vsel %vm213_vm2, %v2645_v56, 0 }
0x1472   :  { %7386 = vmatpush3.bf16.xpose.msra.mxu1 %v2653_v30 }
0x1479   :  { %7388 = vmatmul.mubr.msk.bf16.vlgmr.msra.gmra.mxu1 %vm213_vm2, %v2641_v46 }
0x1539   :  { %v7389_v20 = vpop.f32.mrf.mxu1 }
0x153a   :  { %v2698_v49 = vadd.f32 %v7389_v20, %v9301_v5  ;;  %v9485_v20 = vpack.c.bf16 %v9461_v24, %v9461_v24 }
0x153b   :  { %v2689_v3 = vpop.f32.mrf.mxu1 }
0x153c   :  { %v2690_v40 = vadd.f32 %v2689_v3, %v9301_v5  ;;  %v2710_v35 = vsel %vm1922_vm1, %v2698_v49, -inf }
0x153d   :  { %2711 = vmax.xlane.f32.xlu1 %v2710_v35  ;;  %v7390_v14 = vpop.f32.mrf.mxu1 }
0x153e   :  { %v2704_v55 = vsel %vm1922_vm1, %v2690_v40, -inf  ;;  %v2701_v29 = vadd.f32 %v7390_v14, %v9301_v5 }
0x153f   :  { %v2692_v13 = vpop.f32.mrf.mxu1 }
0x1540   :  { %v2693_v25 = vadd.f32 %v2692_v13, %v9301_v5  ;;  %v2713_v0 = vsel %vm1922_vm1, %v2701_v29, -inf }
0x1541   :  { %2705 = vmax.xlane.f32.xlu1 %v2704_v55 }
0x1542   :  { %v2707_v22 = vsel %vm1922_vm1, %v2693_v25, -inf }
0x1545   :  { %2708 = vmax.xlane.f32.xlu1 %v2707_v22 }
0x1549   :  { %2714 = vmax.xlane.f32.xlu1 %v2713_v0 }
0x15c6   :  { %v2712_v10 = vpop.xlane.xlu1 %2711 }
0x15c7   :  { %v2718_v23 = vsub.f32 %v2698_v49, %v2712_v10 }
0x15c9   :  { %v2724_v53 = vmul.f32 1.442695, %v2718_v23 }
0x15ca   :  { %v2706_v17 = vpop.xlane.xlu1 %2705 }
0x15cb   :  { %v2716_v39 = vsub.f32 %v2690_v40, %v2706_v17  ;;  %v2817_v17 = vmul.f32 %v8594_v47, %v9461_v24 }
0x15cd   :  { %v2720_v19 = vmul.f32 1.442695, %v2716_v39  ;;  %v2818_v39 = vmul.f32 %v8600_v50, %v9461_v24 }
0x15ce   :  { %v2709_v59 = vpop.xlane.xlu1 %2708 }
0x15cf   :  { %8035 = vpow2.f32 %v2720_v19  ;;  %v2717_v44 = vsub.f32 %v2693_v25, %v2709_v59 }
0x15d0   :  { %8037 = vpow2.f32 %v2724_v53 }
0x15d1   :  { %v2722_v33 = vmul.f32 1.442695, %v2717_v44  ;;  %v2821_v44 = vpack.c.bf16 %v2818_v39, %v2817_v17 }
0x15d2   :  { %v2715_v43 = vpop.xlane.xlu1 %2714 }
0x15d3   :  { %8039 = vpow2.f32 %v2722_v33  ;;  %v2719_v57 = vsub.f32 %v2701_v29, %v2715_v43  ;;  %v2819_v43 = vmul.f32 %v8597_v48, %v9461_v24 }
0x15d5   :  { %v2726_v54 = vmul.f32 1.442695, %v2719_v57  ;;  %v2820_v57 = vmul.f32 %v8603_v52, %v9461_v24 }
0x15d7   :  { %8041 = vpow2.f32 %v2726_v54  ;;  %v2822_v54 = vpack.c.bf16 %v2820_v57, %v2819_v43 }
0x15dc   :  { %v8036_v61 = vpop.eup %8035 }
0x15dd   :  { %v2728_v8 = vsel %vm1922_vm1, %v8036_v61, 0.0  ;;  %v8038_v11 = vpop.eup %8037 }
0x15de   :  { %2729 = vadd.xlane.f32.xlu1 %v2728_v8  ;;  %v2734_v30 = vsel %vm1922_vm1, %v8038_v11, 0.0 }
0x15e0   :  { %v8040_v56 = vpop.eup %8039 }
0x15e1   :  { %v2731_v36 = vsel %vm1922_vm1, %v8040_v56, 0.0 }
0x15e2   :  { %2735 = vadd.xlane.f32.xlu1 %v2734_v30  ;;  %2732 = vadd.xlane.f32.xlu0 %v2731_v36 }
0x15e4   :  { %v8042_v32 = vpop.eup %8041 }
0x15e5   :  { %v2737_v46 = vsel %vm1922_vm1, %v8042_v32, 0.0 }
0x15e6   :  { %2738 = vadd.xlane.f32.xlu1 %v2737_v46 }
0x15f7   :  { %2750 = vrot.lane.b32.xlu1 %v2642_v62, %s8405_s1 }
0x15fb   :  { %2825 = vrot.lane.b32.xlu1 %v9485_v20, %s8404_s0 }
0x1667   :  { %v2730_v49 = vpop.xlane.xlu1 %2729 }
0x1668   :  { %8043 = vrcp.f32 %v2730_v49 }
0x166b   :  { %v2733_v3 = vpop.xlane.xlu0 %2732  ;;  %v2736_v40 = vpop.xlane.xlu1 %2735 }
0x166c   :  { %8045 = vrcp.f32 %v2733_v3 }
0x166d   :  { %8047 = vrcp.f32 %v2736_v40 }
0x166f   :  { %v2739_v35 = vpop.xlane.xlu1 %2738 }
0x1670   :  { %8049 = vrcp.f32 %v2739_v35 }
0x1673   :  { %v2751_v14 = vpop.permute.xlu1 %2750 }
0x1674   :  { %7769 = vmatprep.subr.msk.bf16.mxu1 %vm577_vm14, %v2751_v14  ;;  %v2759_v62 = vsel %vm577_vm14, %v2751_v14, 0 }
0x1675   :  { %7392 = vmatpush3.bf16.msra.mxu1 %v2759_v62  ;;  %v8044_v13 = vpop.eup %8043 }
0x1676   :  { %v2744_v29 = vmul.f32 %v8044_v13, %v8036_v61 }
0x1677   :  { %v2826_v25 = vpop.permute.xlu1 %2825 }
0x1678   :  { %7770 = vmatprep.subr.msk.bf16.mxu1 %vm213_vm2, %v2826_v25  ;;  %v2834_v33 = vsel %vm213_vm2, %v2826_v25, 0 }
0x1679   :  { %v8046_v55 = vpop.eup %8045 }
0x167a   :  { %v2745_v22 = vmul.f32 %v8046_v55, %v8040_v56  ;;  %v8048_v0 = vpop.eup %8047 }
0x167b   :  { %v2746_v53 = vmul.f32 %v8048_v0, %v8038_v11 }
0x167c   :  { %v2748_v10 = vpack.c.bf16 %v2745_v22, %v2744_v29 }
0x167d   :  { %v8050_v23 = vpop.eup %8049 }
0x167e   :  { %7393 = vmatprep.mubr.msk.bf16.mxu1 %vm1922_vm1, %v2748_v10  ;;  %v2747_v19 = vmul.f32 %v8050_v23, %v8042_v32  ;;  %v1527_v32 = vadd.f32 %v9159_v63, %v9155_v58  ;;  %v1532_v63 = vadd.f32 %v9168_v42, %v9155_v58 }
0x1680   :  { %v2749_v59 = vpack.c.bf16 %v2747_v19, %v2746_v53  ;;  %v1547_v25 = vadd.f32 %v1527_v32, %v9085_v41  ;;  %v9526_v17 = vadd.f32 %v1532_v63, %v9095_v27  ;;  %v1540_v41 = vadd.f32 %v9280_v15, %v9155_v58 }
0x1681   :  { %v1543_v19 = vadd.f32 %v9282_v38, %v9155_v58 }
0x1682   :  { %7394 = vmatmul.mubr.msk.bf16.vlgmr.msra.gmra.mxu1 %vm1922_vm1, %v2749_v59  ;;  %v1555_v23 = vsel %vm213_vm2, %v1547_v25, 0.0  ;;  %v9533_v53 = vadd.f32 %v1540_v41, %v9194_v6  ;;  %v1558_v27 = vsel %vm213_vm2, %v9526_v17, 0.0 }
0x1683   :  { %7398 = vmatpush3.bf16.xpose.msra.mxu1 %v2834_v33  ;;  %7399 = vmatprep.mubr.msk.bf16.mxu1 %vm213_vm2, %v2821_v44  ;;  %v9541_v15 = vadd.f32 %v1543_v19, %v9197_v9 }
0x1684   :  { %7409 = vmatprep.subr.bf16.mxu1 %v8402_v1  ;;  %v1564_v44 = vsel %vm213_vm2, %v9533_v53, 0.0 }
0x1685   :  { %v1567_v6 = vsel %vm213_vm2, %v9541_v15, 0.0 }
0x168a   :  { %7400 = vmatmul.mubr.msk.bf16.vlgmr.msra.gmra.mxu1 %vm213_vm2, %v2822_v54 }
0x168b   :  { %7413 = vmatprep.mubr.msk.bf16.mxu1 %vm8403_vm0, %v8402_v1 }
0x1742   :  { %v7395_v61 = vpop.f32.mrf.mxu1 }
0x1743   :  { %v2813_v46 = vmul.f32 %v7395_v61, %v8597_v48 }
0x1744   :  { %v2795_v8 = vpop.f32.mrf.mxu1 }
0x1745   :  { %v2810_v30 = vmul.f32 %v8594_v47, %v2795_v8 }
0x1746   :  { %v7396_v11 = vpop.f32.mrf.mxu1 }
0x1747   :  { %v2815_v35 = vmul.f32 %v7396_v11, %v8603_v52 }
0x1748   :  { %v2798_v56 = vpop.f32.mrf.mxu1 }
0x1749   :  { %v2811_v36 = vmul.f32 %v8600_v50, %v2798_v56 }
0x174a   :  { %v7401_v24 = vpop.f32.mrf.mxu1 }
0x174b   :  { %v2812_v49 = vadd.f32 %v2811_v36, %v2810_v30  ;;  %v2879_v3 = vadd.f32 %v7401_v24, %v9309_v26 }
0x174c   :  { %v2870_v40 = vpop.f32.mrf.mxu1 }
0x174d   :  { %v2814_v14 = vadd.f32 %v2813_v46, %v2812_v49  ;;  %v2871_v62 = vadd.f32 %v2870_v40, %v9309_v26  ;;  %v2891_v13 = vsel %vm1922_vm1, %v2879_v3, -inf }
0x174e   :  { %2892 = vmax.xlane.f32.xlu0 %v2891_v13  ;;  %v7402_v55 = vpop.f32.mrf.mxu1 }
0x174f   :  { %v9520_v29 = vadd.f32 %v2815_v35, %v2814_v14  ;;  %v2885_v22 = vsel %vm1922_vm1, %v2871_v62, -inf  ;;  %v2882_v39 = vadd.f32 %v7402_v55, %v9309_v26 }
0x1750   :  { %v2873_v0 = vpop.f32.mrf.mxu1  ;;  %2886 = vmax.xlane.f32.xlu1 %v2885_v22 }
0x1751   :  { %v2874_v10 = vadd.f32 %v2873_v0, %v9309_v26  ;;  %v2894_v59 = vsel %vm1922_vm1, %v2882_v39, -inf }
0x1753   :  { %v2888_v42 = vsel %vm1922_vm1, %v2874_v10, -inf }
0x1754   :  { %2889 = vmax.xlane.f32.xlu0 %v2888_v42  ;;  %1556 = vadd.xlane.f32.xlu1 %v1555_v23 }
0x1758   :  { %2895 = vmax.xlane.f32.xlu0 %v2894_v59  ;;  %1559 = vadd.xlane.f32.xlu1 %v1558_v27 }
0x175c   :  { %1565 = vadd.xlane.f32.xlu1 %v1564_v44 }
0x1760   :  { %1568 = vadd.xlane.f32.xlu1 %v1567_v6 }
0x17d7   :  { %v2893_v33 = vpop.xlane.xlu0 %2892 }
0x17d8   :  { %v2899_v58 = vsub.f32 %v2879_v3, %v2893_v33 }
0x17d9   :  { %v2887_v38 = vpop.xlane.xlu1 %2886 }
0x17da   :  { %v2905_v43 = vmul.f32 1.442695, %v2899_v58  ;;  %v2897_v57 = vsub.f32 %v2871_v62, %v2887_v38  ;;  %v7827_v38 = vld [vmem:[%s10990_s9 + $0x28] sm:$0xff]  }
0x17db   :  { %7410 = vmatpush3.bf16.msra.mxu1 %v7827_v38 }
0x17dc   :  { %8051 = vpow2.f32 %v2905_v43  ;;  %v2901_v54 = vmul.f32 1.442695, %v2897_v57  ;;  %7411 = vmatprep.subr.bf16.mxu1 %v8402_v1  ;;  %v7828_v43 = vld [vmem:[%s10990_s9 + $0x20] sm:$0xff]   ;;  %v7829_v57 = vld [vmem:[%s10988_s7 + $0x38] sm:$0xff]  }
0x17dd   :  { %v2890_v61 = vpop.xlane.xlu0 %2889  ;;  %v1557_v14 = vpop.xlane.xlu1 %1556 }
0x17de   :  { %8053 = vpow2.f32 %v2901_v54  ;;  %v2898_v8 = vsub.f32 %v2874_v10, %v2890_v61  ;;  %v1571_v62 = vmul.f32 0.03125, %v1557_v14  ;;  %v7830_v54 = vld [vmem:[%s10988_s7 + $0x30] sm:$0xff]  }
0x17df   :  { %7412 = vmatpush3.bf16.msra.mxu1 %v7828_v43 }
0x17e0   :  { %v2903_v56 = vmul.f32 1.442695, %v2898_v8  ;;  %v1577_v13 = vsub.f32 %v1547_v25, %v1571_v62  ;;  %7425 = vmatprep.subr.bf16.mxu1 %v8402_v1 }
0x17e1   :  { %v2896_v9 = vpop.xlane.xlu0 %2895 }
0x17e2   :  { %v2900_v11 = vsub.f32 %v2882_v39, %v2896_v9  ;;  %v1583_v55 = vmul.f32 %v1577_v13, %v1577_v13 }
0x17e4   :  { %v2907_v30 = vmul.f32 1.442695, %v2900_v11  ;;  %v1591_v63 = vsel %vm213_vm2, %v1583_v55, 0.0 }
0x17e6   :  { %8055 = vpow2.f32 %v2907_v30 }
0x17e7   :  { %8057 = vpow2.f32 %v2903_v56 }
0x17e9   :  { %v8052_v36 = vpop.eup %8051 }
0x17ea   :  { %v2915_v32 = vsel %vm1922_vm1, %v8052_v36, 0.0 }
0x17eb   :  { %v8054_v24 = vpop.eup %8053  ;;  %2916 = vadd.xlane.f32.xlu0 %v2915_v32 }
0x17ec   :  { %v2909_v46 = vsel %vm1922_vm1, %v8054_v24, 0.0 }
0x17ef   :  { %2910 = vadd.xlane.f32.xlu0 %v2909_v46 }
0x17f3   :  { %v8056_v49 = vpop.eup %8055 }
0x17f4   :  { %v2918_v3 = vsel %vm1922_vm1, %v8056_v49, 0.0  ;;  %v8058_v40 = vpop.eup %8057 }
0x17f5   :  { %2919 = vadd.xlane.f32.xlu0 %v2918_v3  ;;  %v2912_v35 = vsel %vm1922_vm1, %v8058_v40, 0.0 }
0x17f9   :  { %2913 = vadd.xlane.f32.xlu0 %v2912_v35 }
0x180f   :  { %2931 = vrot.lane.b32.xlu0 %v9485_v20, %s8405_s1 }
0x182e   :  { %1592 = vadd.xlane.f32.xlu0 %v1591_v63 }
0x1874   :  { %v2917_v22 = vpop.xlane.xlu0 %2916 }
0x1878   :  { %v2911_v0 = vpop.xlane.xlu0 %2910 }
0x187e   :  { %v2920_v10 = vpop.xlane.xlu0 %2919 }
0x187f   :  { %8059 = vrcp.f32 %v2920_v10 }
0x1880   :  { %8061 = vrcp.f32 %v2911_v0  ;;  %v9600_v0 = vld [vmem:[%s10991_s10 + $0x8] sm:$0xf] }
0x1881   :  { %8063 = vrcp.f32 %v2917_v22  ;;  %v3002_v10 = vrot.slane %v9600_v0, %v8684_v2 }
0x1882   :  { %v2914_v23 = vpop.xlane.xlu0 %2913 }
0x1883   :  { %8065 = vrcp.f32 %v2914_v23 }
0x1886   :  { %v2932_v41 = vpop.permute.xlu0 %2931 }
0x1887   :  { %7771 = vmatprep.subr.msk.bf16.mxu0 %vm577_vm14, %v2932_v41  ;;  %v2940_v20 = vsel %vm577_vm14, %v2932_v41, 0 }
0x1888   :  { %7404 = vmatpush3.bf16.msra.mxu0 %v2940_v20 }
0x1889   :  { %7417 = vmatprep.subr.bf16.mxu0 %v8402_v1 }
0x188c   :  { %v8060_v25 = vpop.eup %8059 }
0x188d   :  { %v8062_v39 = vpop.eup %8061  ;;  %v2928_v59 = vmul.f32 %v8060_v25, %v8056_v49 }
0x188e   :  { %v8064_v42 = vpop.eup %8063  ;;  %v2925_v27 = vmul.f32 %v8062_v39, %v8054_v24 }
0x188f   :  { %v2927_v6 = vmul.f32 %v8064_v42, %v8052_v36 }
0x1890   :  { %v8066_v19 = vpop.eup %8065 }
0x1891   :  { %v2926_v44 = vmul.f32 %v8066_v19, %v8058_v40  ;;  %v2930_v58 = vpack.c.bf16 %v2928_v59, %v2927_v6 }
0x1893   :  { %v2929_v33 = vpack.c.bf16 %v2926_v44, %v2925_v27 }
0x1895   :  { %7405 = vmatprep.mubr.msk.bf16.mxu0 %vm1922_vm1, %v2929_v33 }
0x1896   :  { %7406 = vmatmul.mubr.msk.bf16.vlgmr.msra.gmra.mxu0 %vm1922_vm1, %v2930_v58 }
0x1897   :  { %7421 = vmatprep.mubr.msk.bf16.mxu0 %vm8403_vm0, %v8402_v1  ;;  %7418 = vmatpush3.bf16.msra.mxu0 %v7829_v57 }
0x1898   :  { %7419 = vmatprep.subr.bf16.mxu0 %v8402_v1 }
0x189b   :  { %7420 = vmatpush3.bf16.msra.mxu0 %v7830_v54 }
0x18b7   :  { %v1593_v61 = vpop.xlane.xlu0 %1592 }
0x18b8   :  { %v1607_v8 = vmul.f32 0.03125, %v1593_v61 }
0x18ba   :  { %v1613_v9 = vadd.f32 1e-12, %v1607_v8 }
0x18bc   :  { %8067 = vrsqrt.f32 %v1613_v9 }
0x18c9   :  { %v8068_v46 = vpop.eup %8067 }
0x18ca   :  { %v1625_v40 = vmul.f32 %v8068_v46, %v1577_v13 }
0x18cc   :  { %v1635_v63 = vmul.f32 %v9214_v28, %v1625_v40 }
0x18ce   :  { %v9587_v22 = vadd.f32 %v9222_v21, %v1635_v63 }
0x18d0   :  { %v9591_v13 = vpack.c.bf16 %v9587_v22, %v9230_v60 }
0x1956   :  { %v7407_v11 = vpop.f32.mrf.mxu0 }
0x1957   :  { %v2994_v49 = vmul.f32 %v7407_v11, %v8597_v48 }
0x1958   :  { %v2976_v56 = vpop.f32.mrf.mxu0 }
0x1959   :  { %v2991_v32 = vmul.f32 %v8594_v47, %v2976_v56 }
0x195a   :  { %v7408_v30 = vpop.f32.mrf.mxu0 }
0x195b   :  { %v2996_v35 = vmul.f32 %v7408_v30, %v8603_v52 }
0x195c   :  { %v2979_v36 = vpop.f32.mrf.mxu0 }
0x195d   :  { %v2992_v24 = vmul.f32 %v8600_v50, %v2979_v36 }
0x195f   :  { %v2993_v3 = vadd.f32 %v2992_v24, %v2991_v32 }
0x1961   :  { %v2995_v14 = vadd.f32 %v2994_v49, %v2993_v3 }
0x1963   :  { %v2997_v62 = vadd.f32 %v2996_v35, %v2995_v14 }
0x1965   :  { %v2998_v55 = vpack.c.bf16 %v2997_v62, %v9520_v29  ;;  %v1560_v29 = vpop.xlane.xlu1 %1559 }
0x1966   :  { %v1572_v23 = vmul.f32 0.03125, %v1560_v29 }
0x1967   :  { %7414 = vmatmul.mubr.msk.bf16.vlgmr.msra.gmra.mxu1 %vm213_vm2, %v2998_v55 }
0x1968   :  { %7426 = vmatpush3.bf16.msra.mxu1 %v7829_v57  ;;  %7429 = vmatprep.mubr.msk.bf16.mxu1 %vm8403_vm0, %v8402_v1  ;;  %v1578_v19 = vsub.f32 %v9526_v17, %v1572_v23 }
0x1969   :  { %7427 = vmatprep.subr.bf16.mxu1 %v8402_v1  ;;  %v1566_v41 = vpop.xlane.xlu1 %1565 }
0x196a   :  { %v1574_v27 = vmul.f32 0.03125, %v1566_v41  ;;  %v1584_v57 = vmul.f32 %v1578_v19, %v1578_v19 }
0x196c   :  { %7428 = vmatpush3.bf16.msra.mxu1 %v7830_v54  ;;  %v1580_v54 = vsub.f32 %v9533_v53, %v1574_v27  ;;  %v1594_v11 = vsel %vm213_vm2, %v1584_v57, 0.0 }
0x196d   :  { %v1569_v33 = vpop.xlane.xlu1 %1568 }
0x196e   :  { %v1575_v61 = vmul.f32 0.03125, %v1569_v33  ;;  %v1586_v53 = vmul.f32 %v1580_v54, %v1580_v54 }
0x196f   :  { %7430 = vmatmul.mubr.msk.bf16.vlgmr.msra.gmra.mxu1 %vm213_vm2, %v9591_v13 }
0x1970   :  { %7433 = vmatprep.mubr.msk.bf16.mxu1 %vm8403_vm0, %v8402_v1  ;;  %v1581_v56 = vsub.f32 %v9541_v15, %v1575_v61  ;;  %v1600_v24 = vsel %vm213_vm2, %v1586_v53, 0.0 }
0x1972   :  { %v1587_v46 = vmul.f32 %v1581_v56, %v1581_v56 }
0x1974   :  { %v1603_v49 = vsel %vm213_vm2, %v1587_v46, 0.0 }
0x1a27   :  { %v3052_v20 = vpop.f32.mrf.mxu1 }
0x1a28   :  { %v3053_v25 = vadd.f32 %v3052_v20, %v3002_v10 }
0x1a29   :  { %v7415_v39 = vpop.f32.mrf.mxu1 }
0x1a2a   :  { %v3059_v42 = vadd.f32 %v3053_v25, %v9446_v16  ;;  %v9613_v16 = vld [vmem:[%s10989_s8 + $0x3] ss:$0 sm:$0xff] }
0x1a2b   :  { %v3055_v59 = vpop.f32.mrf.mxu1 }
0x1a2c   :  { %v3056_v44 = vadd.f32 %v3055_v59, %v3002_v10  ;;  %v3061_v6 = vsel %vm213_vm2, %v3059_v42, 0.0 }
0x1a2d   :  { %3062 = vadd.xlane.f32.xlu1 %v3061_v6  ;;  %v7416_v58 = vpop.f32.mrf.mxu1 }
0x1a2e   :  { %v3060_v38 = vadd.f32 %v3056_v44, %v9448_v12 }
0x1a2f   :  { %v3222_v43 = vpop.f32.mrf.mxu1 }
0x1a30   :  { %v3064_v8 = vsel %vm213_vm2, %v3060_v38, 0.0  ;;  %v3223_v12 = vadd.f32 %v9613_v16, %v3222_v43 }
0x1a31   :  { %3065 = vadd.xlane.f32.xlu1 %v3064_v8  ;;  %v7431_v17 = vpop.f32.mrf.mxu1 }
0x1a33   :  { %v3225_v9 = vpop.f32.mrf.mxu1 }
0x1a34   :  { %v3226_v30 = vadd.f32 %v9613_v16, %v3225_v9 }
0x1a35   :  { %1595 = vadd.xlane.f32.xlu1 %v1594_v11  ;;  %v7432_v36 = vpop.f32.mrf.mxu1 }
0x1a36   :  { %v9619_v32 = vpack.c.bf16 %v3226_v30, %v3223_v12 }
0x1a38   :  { %3255 = vrot.lane.b32.xlu0 %v9619_v32, %s8404_s0 }
0x1a39   :  { %1601 = vadd.xlane.f32.xlu1 %v1600_v24 }
0x1a3d   :  { %1604 = vadd.xlane.f32.xlu1 %v1603_v49 }
0x1ab6   :  { %v3063_v15 = vpop.xlane.xlu1 %3062 }
0x1ab7   :  { %v3067_v3 = vmul.f32 0.03125, %v3063_v15 }
0x1ab9   :  { %v3069_v40 = vsub.f32 %v3059_v42, %v3067_v3  ;;  %v3096_v3 = vrot.slane %v9600_v0, %v9073_v37 }
0x1aba   :  { %v3066_v35 = vpop.xlane.xlu1 %3065 }
0x1abb   :  { %v3068_v14 = vmul.f32 0.03125, %v3066_v35  ;;  %v3071_v62 = vmul.f32 %v3069_v40, %v3069_v40 }
0x1abd   :  { %v3070_v55 = vsub.f32 %v3060_v38, %v3068_v14  ;;  %v3073_v63 = vsel %vm213_vm2, %v3071_v62, 0.0 }
0x1abe   :  { %3074 = vadd.xlane.f32.xlu1 %v3073_v63  ;;  %v1596_v29 = vpop.xlane.xlu1 %1595 }
0x1abf   :  { %v1608_v10 = vmul.f32 0.03125, %v1596_v29  ;;  %v3072_v23 = vmul.f32 %v3070_v55, %v3070_v55 }
0x1ac1   :  { %v1614_v41 = vadd.f32 1e-12, %v1608_v10  ;;  %v3076_v20 = vsel %vm213_vm2, %v3072_v23, 0.0 }
0x1ac2   :  { %3077 = vadd.xlane.f32.xlu1 %v3076_v20  ;;  %v1602_v25 = vpop.xlane.xlu1 %1601 }
0x1ac3   :  { %8069 = vrsqrt.f32 %v1614_v41  ;;  %v1610_v39 = vmul.f32 0.03125, %v1602_v25 }
0x1ac5   :  { %v1616_v59 = vadd.f32 1e-12, %v1610_v39 }
0x1ac6   :  { %v1605_v27 = vpop.xlane.xlu1 %1604 }
0x1ac7   :  { %8071 = vrsqrt.f32 %v1616_v59  ;;  %v1611_v42 = vmul.f32 0.03125, %v1605_v27 }
0x1ac9   :  { %v1617_v44 = vadd.f32 1e-12, %v1611_v42 }
0x1acb   :  { %8073 = vrsqrt.f32 %v1617_v44 }
0x1ad0   :  { %v8070_v6 = vpop.eup %8069 }
0x1ad1   :  { %v1626_v33 = vmul.f32 %v8070_v6, %v1578_v19 }
0x1ad3   :  { %v1636_v58 = vmul.f32 %v9214_v28, %v1626_v33 }
0x1ad4   :  { %v8072_v38 = vpop.eup %8071 }
0x1ad5   :  { %v9629_v43 = vadd.f32 %v9222_v21, %v1636_v58  ;;  %v1628_v57 = vmul.f32 %v8072_v38, %v1580_v54 }
0x1ad7   :  { %v9633_v61 = vpack.c.bf16 %v9227_v7, %v9629_v43  ;;  %v1638_v9 = vmul.f32 %v9214_v28, %v1628_v57 }
0x1ad8   :  { %v8074_v8 = vpop.eup %8073 }
0x1ad9   :  { %7434 = vmatmul.mubr.msk.bf16.gmra.mxu1 %vm213_vm2, %v9633_v61  ;;  %v1629_v17 = vmul.f32 %v8074_v8, %v1581_v56  ;;  %v9642_v11 = vadd.f32 %v9222_v21, %v1638_v9  ;;  %v3256_v8 = vpop.permute.xlu0 %3255 }
0x1ada   :  { %7437 = vmatprep.mubr.msk.bf16.mxu1 %vm8403_vm0, %v8402_v1 }
0x1adb   :  { %v1639_v19 = vmul.f32 %v9214_v28, %v1629_v17  ;;  %v3266_v17 = vsel %vm213_vm2, %v3256_v8, 0 }
0x1add   :  { %v9645_v54 = vadd.f32 %v9222_v21, %v1639_v19  ;;  %v3090_v21 = vrot.slane %v9600_v0, %v8731_v34 }
0x1adf   :  { %v9649_v12 = vpack.c.bf16 %v9645_v54, %v9642_v11 }
0x1ae1   :  { %7438 = vmatmul.mubr.msk.bf16.gmra.mxu1 %vm213_vm2, %v9649_v12 }
0x1b47   :  { %v3075_v56 = vpop.xlane.xlu1 %3074 }
0x1b48   :  { %v3079_v30 = vmul.f32 0.03125, %v3075_v56 }
0x1b4a   :  { %v3081_v53 = vadd.f32 1e-12, %v3079_v30 }
0x1b4b   :  { %v3078_v36 = vpop.xlane.xlu1 %3077 }
0x1b4c   :  { %8075 = vrsqrt.f32 %v3081_v53  ;;  %v3080_v24 = vmul.f32 0.03125, %v3078_v36 }
0x1b4e   :  { %v3082_v28 = vadd.f32 1e-12, %v3080_v24 }
0x1b50   :  { %8077 = vrsqrt.f32 %v3082_v28 }
0x1b59   :  { %v8076_v46 = vpop.eup %8075 }
0x1b5a   :  { %v3085_v49 = vmul.f32 %v8076_v46, %v3069_v40 }
0x1b5c   :  { %v3091_v14 = vmul.f32 %v3090_v21, %v3085_v49 }
0x1b5d   :  { %v8078_v15 = vpop.eup %8077 }
0x1b5e   :  { %v3086_v35 = vmul.f32 %v8078_v15, %v3070_v55  ;;  %v9657_v63 = vadd.f32 %v3096_v3, %v3091_v14 }
0x1b60   :  { %v3092_v62 = vmul.f32 %v3090_v21, %v3086_v35 }
0x1b62   :  { %v9659_v29 = vadd.f32 %v3096_v3, %v3092_v62 }
0x1b64   :  { %v3113_v10 = vpack.c.bf16 %v9659_v29, %v9657_v63 }
0x1b66   :  { %7422 = vmatmul.mubr.msk.bf16.vlgmr.msra.gmra.mxu0 %vm213_vm2, %v3113_v10 }
0x1b99   :  { %v3230_v23 = vpop.f32.mrf.mxu1 }
0x1b9a   :  { %v3231_v41 = vadd.f32 %v9613_v16, %v3230_v23 }
0x1b9b   :  { %v7435_v40 = vpop.f32.mrf.mxu1 }
0x1b9c   :  { %v9665_v20 = vpack.c.bf16 %v3231_v41, %v3231_v41 }
0x1b9d   :  { %v3233_v25 = vpop.f32.mrf.mxu1 }
0x1b9e   :  { %3257 = vrot.lane.b32.xlu1 %v9665_v20, %s8404_s0  ;;  %v3234_v33 = vadd.f32 %v9613_v16, %v3233_v25 }
0x1b9f   :  { %v7436_v0 = vpop.f32.mrf.mxu1 }
0x1ba1   :  { %v3238_v55 = vpop.f32.mrf.mxu1 }
0x1ba2   :  { %v3239_v44 = vadd.f32 %v9613_v16, %v3238_v55 }
0x1ba3   :  { %v7439_v39 = vpop.f32.mrf.mxu1 }
0x1ba4   :  { %v9676_v58 = vpack.c.bf16 %v3239_v44, %v3234_v33 }
0x1ba5   :  { %v3241_v59 = vpop.f32.mrf.mxu1 }
0x1ba6   :  { %v3242_v27 = vadd.f32 %v9613_v16, %v3241_v59 }
0x1ba7   :  { %v7440_v42 = vpop.f32.mrf.mxu1 }
0x1ba8   :  { %v9671_v6 = vpack.c.bf16 %v3242_v27, %v3242_v27 }
0x1baa   :  { %3448 = vrot.lane.b32.xlu1 %v9671_v6, %s8404_s0 }
0x1bae   :  { %3446 = vrot.lane.b32.xlu1 %v9676_v58, %s8404_s0 }
0x1c10   :  { %v3258_v38 = vpop.permute.xlu1 %3257 }
0x1c11   :  { %7772 = vmatprep.subr.msk.bf16.mxu0 %vm213_vm2, %v3258_v38  ;;  %v3269_v57 = vsel %vm213_vm2, %v3258_v38, 0 }
0x1c12   :  { %7442 = vmatpush3.bf16.xpose.msra.mxu0 %v3269_v57 }
0x1c13   :  { %7773 = vmatprep.subr.msk.bf16.mxu0 %vm213_vm2, %v3256_v8 }
0x1c1a   :  { %7444 = vmatpush3.bf16.xpose.msra.mxu0 %v3266_v17 }
0x1c1c   :  { %v3449_v9 = vpop.permute.xlu1 %3448 }
0x1c1d   :  { %7775 = vmatprep.subr.msk.bf16.mxu1 %vm213_vm2, %v3449_v9  ;;  %v3460_v19 = vsel %vm213_vm2, %v3449_v9, 0 }
0x1c1e   :  { %7458 = vmatpush3.bf16.xpose.msra.mxu1 %v3460_v19 }
0x1c20   :  { %v3447_v56 = vpop.permute.xlu1 %3446 }
0x1c21   :  { %7776 = vmatprep.subr.msk.bf16.mxu1 %vm213_vm2, %v3447_v56  ;;  %v3457_v30 = vsel %vm213_vm2, %v3447_v56, 0 }
0x1c26   :  { %v3169_v53 = vpop.f32.mrf.mxu0  ;;  %7460 = vmatpush3.bf16.xpose.msra.mxu1 %v3457_v30 }
0x1c27   :  { %v3170_v36 = vadd.f32 %v9613_v16, %v3169_v53  ;;  %7473 = vmatprep.subr.bf16.mxu1 %v8402_v1 }
0x1c28   :  { %v7423_v24 = vpop.f32.mrf.mxu0 }
0x1c29   :  { %v3245_v28 = vmul.f32 %v8594_v47, %v3170_v36  ;;  %v3246_v46 = vmul.f32 %v8600_v50, %v3170_v36  ;;  %v3247_v21 = vmul.f32 %v8597_v48, %v3170_v36  ;;  %v3248_v49 = vmul.f32 %v8603_v52, %v3170_v36 }
0x1c2a   :  { %v3172_v15 = vpop.f32.mrf.mxu0 }
0x1c2b   :  { %v3250_v3 = vpack.c.bf16 %v3248_v49, %v3247_v21  ;;  %v3173_v35 = vadd.f32 %v9613_v16, %v3172_v15  ;;  %v3249_v14 = vpack.c.bf16 %v3246_v46, %v3245_v28 }
0x1c2c   :  { %v7424_v62 = vpop.f32.mrf.mxu0 }
0x1c2d   :  { %v3436_v10 = vmul.f32 %v8594_v47, %v3173_v35  ;;  %v3437_v23 = vmul.f32 %v8600_v50, %v3173_v35  ;;  %v3438_v41 = vmul.f32 %v8597_v48, %v3173_v35  ;;  %v3439_v40 = vmul.f32 %v8603_v52, %v3173_v35  ;;  %7445 = vmatprep.mubr.msk.bf16.mxu0 %vm213_vm2, %v3249_v14 }
0x1c2e   :  { %7446 = vmatmul.mubr.msk.bf16.vlgmr.msra.gmra.mxu0 %vm213_vm2, %v3250_v3 }
0x1c2f   :  { %v3441_v25 = vpack.c.bf16 %v3439_v40, %v3438_v41  ;;  %v3440_v0 = vpack.c.bf16 %v3437_v23, %v3436_v10 }
0x1c31   :  { %7461 = vmatprep.mubr.msk.bf16.mxu1 %vm213_vm2, %v3440_v0 }
0x1c32   :  { %7462 = vmatmul.mubr.msk.bf16.vlgmr.msra.gmra.mxu1 %vm213_vm2, %v3441_v25 }
0x1c33   :  { %7477 = vmatprep.mubr.msk.bf16.mxu1 %vm8403_vm0, %v8402_v1 }
0x1cee   :  { %v7447_v16 = vpop.f32.mrf.mxu0 }
0x1cef   :  { %v3314_v42 = vadd.f32 %v7447_v16, %v8687_v4 }
0x1cf0   :  { %v3305_v55 = vpop.f32.mrf.mxu0 }
0x1cf1   :  { %v3306_v39 = vadd.f32 %v3305_v55, %v8687_v4  ;;  %v3326_v19 = vsel %vm415_vm13, %v3314_v42, -inf }
0x1cf2   :  { %v7448_v59 = vpop.f32.mrf.mxu0  ;;  %v7463_v27 = vpop.f32.mrf.mxu1 }
0x1cf3   :  { %v3320_v44 = vsel %vm415_vm13, %v3306_v39, -inf  ;;  %v3317_v17 = vadd.f32 %v7448_v59, %v8687_v4  ;;  %v3505_v53 = vadd.f32 %v7463_v27, %v8744_v45 }
0x1cf4   :  { %v3308_v33 = vpop.f32.mrf.mxu0  ;;  %3321 = vmax.xlane.f32.xlu0 %v3320_v44  ;;  %v3496_v38 = vpop.f32.mrf.mxu1 }
0x1cf5   :  { %v3309_v57 = vadd.f32 %v3308_v33, %v8687_v4  ;;  %v3497_v9 = vadd.f32 %v3496_v38, %v8744_v45  ;;  %v3329_v24 = vsel %vm415_vm13, %v3317_v17, -inf  ;;  %v3517_v49 = vsel %vm415_vm13, %v3505_v53, -inf }
0x1cf6   :  { %v7464_v8 = vpop.f32.mrf.mxu1 }
0x1cf7   :  { %v3323_v56 = vsel %vm415_vm13, %v3309_v57, -inf  ;;  %v3511_v28 = vsel %vm415_vm13, %v3497_v9, -inf  ;;  %v3508_v46 = vadd.f32 %v7464_v8, %v8744_v45 }
0x1cf8   :  { %3327 = vmax.xlane.f32.xlu0 %v3326_v19  ;;  %3324 = vmax.xlane.f32.xlu1 %v3323_v56  ;;  %v3499_v30 = vpop.f32.mrf.mxu1 }
0x1cf9   :  { %v3500_v36 = vadd.f32 %v3499_v30, %v8744_v45  ;;  %v3520_v15 = vsel %vm415_vm13, %v3508_v46, -inf }
0x1cfb   :  { %v3514_v21 = vsel %vm415_vm13, %v3500_v36, -inf }
0x1cfc   :  { %3330 = vmax.xlane.f32.xlu0 %v3329_v24  ;;  %3512 = vmax.xlane.f32.xlu1 %v3511_v28 }
0x1d00   :  { %3515 = vmax.xlane.f32.xlu0 %v3514_v21  ;;  %3518 = vmax.xlane.f32.xlu1 %v3517_v49 }
0x1d04   :  { %3521 = vmax.xlane.f32.xlu0 %v3520_v15 }
0x1d11   :  { %3368 = vrot.lane.b32.xlu1 %v9665_v20, %s8405_s1 }
0x1d7d   :  { %v3322_v3 = vpop.xlane.xlu0 %3321 }
0x1d7e   :  { %v3332_v35 = vsub.f32 %v3306_v39, %v3322_v3 }
0x1d80   :  { %v3336_v23 = vmul.f32 1.442695, %v3332_v35 }
0x1d81   :  { %v3328_v14 = vpop.xlane.xlu0 %3327  ;;  %v3325_v62 = vpop.xlane.xlu1 %3324 }
0x1d82   :  { %v3334_v10 = vsub.f32 %v3314_v42, %v3328_v14  ;;  %v3333_v40 = vsub.f32 %v3309_v57, %v3325_v62 }
0x1d84   :  { %v3340_v41 = vmul.f32 1.442695, %v3334_v10  ;;  %v3338_v55 = vmul.f32 1.442695, %v3333_v40 }
0x1d85   :  { %v3331_v25 = vpop.xlane.xlu0 %3330  ;;  %v3513_v0 = vpop.xlane.xlu1 %3512 }
0x1d86   :  { %8079 = vpow2.f32 %v3340_v41  ;;  %v3335_v16 = vsub.f32 %v3317_v17, %v3331_v25  ;;  %v3523_v27 = vsub.f32 %v3497_v9, %v3513_v0 }
0x1d87   :  { %8081 = vpow2.f32 %v3336_v23 }
0x1d88   :  { %v3342_v59 = vmul.f32 1.442695, %v3335_v16  ;;  %v3527_v8 = vmul.f32 1.442695, %v3523_v27 }
0x1d89   :  { %v3516_v44 = vpop.xlane.xlu0 %3515  ;;  %v3519_v33 = vpop.xlane.xlu1 %3518 }
0x1d8a   :  { %8083 = vpow2.f32 %v3342_v59  ;;  %v3525_v20 = vsub.f32 %v3505_v53, %v3519_v33  ;;  %v3524_v39 = vsub.f32 %v3500_v36, %v3516_v44 }
0x1d8b   :  { %8085 = vpow2.f32 %v3338_v55 }
0x1d8c   :  { %v3531_v38 = vmul.f32 1.442695, %v3525_v20  ;;  %v3529_v17 = vmul.f32 1.442695, %v3524_v39 }
0x1d8d   :  { %v3522_v42 = vpop.xlane.xlu0 %3521  ;;  %v3369_v19 = vpop.permute.xlu1 %3368 }
0x1d8e   :  { %v3526_v56 = vsub.f32 %v3508_v46, %v3522_v42  ;;  %7774 = vmatprep.subr.msk.bf16.mxu0 %vm577_vm14, %v3369_v19  ;;  %v3378_v57 = vsel %vm577_vm14, %v3369_v19, 0  ;;  %8087 = vpow2.f32 %v3531_v38 }
0x1d8f   :  { %7450 = vmatpush3.bf16.msra.mxu0 %v3378_v57  ;;  %8089 = vpow2.f32 %v3527_v8 }
0x1d90   :  { %v3533_v30 = vmul.f32 1.442695, %v3526_v56 }
0x1d92   :  { %8091 = vpow2.f32 %v3533_v30 }
0x1d93   :  { %v8080_v9 = vpop.eup %8079  ;;  %8093 = vpow2.f32 %v3529_v17 }
0x1d94   :  { %v3350_v53 = vsel %vm415_vm13, %v8080_v9, 0.0  ;;  %v8082_v36 = vpop.eup %8081 }
0x1d95   :  { %3351 = vadd.xlane.f32.xlu1 %v3350_v53  ;;  %v3344_v46 = vsel %vm415_vm13, %v8082_v36, 0.0 }
0x1d97   :  { %v8084_v24 = vpop.eup %8083 }
0x1d98   :  { %v3353_v28 = vsel %vm415_vm13, %v8084_v24, 0.0  ;;  %v8086_v21 = vpop.eup %8085 }
0x1d99   :  { %3354 = vadd.xlane.f32.xlu0 %v3353_v28  ;;  %3345 = vadd.xlane.f32.xlu1 %v3344_v46  ;;  %v3347_v15 = vsel %vm415_vm13, %v8086_v21, 0.0 }
0x1d9b   :  { %v8088_v49 = vpop.eup %8087 }
0x1d9c   :  { %v3541_v3 = vsel %vm415_vm13, %v8088_v49, 0.0  ;;  %v8090_v35 = vpop.eup %8089 }
0x1d9d   :  { %3348 = vadd.xlane.f32.xlu0 %v3347_v15  ;;  %3542 = vadd.xlane.f32.xlu1 %v3541_v3  ;;  %v3535_v23 = vsel %vm415_vm13, %v8090_v35, 0.0 }
0x1d9f   :  { %v8092_v14 = vpop.eup %8091 }
0x1da0   :  { %v3544_v62 = vsel %vm415_vm13, %v8092_v14, 0.0  ;;  %v8094_v10 = vpop.eup %8093 }
0x1da1   :  { %3545 = vadd.xlane.f32.xlu0 %v3544_v62  ;;  %3536 = vadd.xlane.f32.xlu1 %v3535_v23  ;;  %v3538_v41 = vsel %vm415_vm13, %v8094_v10, 0.0  ;;  %v7831_v23 = vld [vmem:[%s10990_s9 + $0x38] sm:$0xff]  }
0x1da2   :  { %7474 = vmatpush3.bf16.msra.mxu1 %v7831_v23 }
0x1da3   :  { %7475 = vmatprep.subr.bf16.mxu1 %v8402_v1 }
0x1da5   :  { %3539 = vadd.xlane.f32.xlu0 %v3538_v41 }
0x1db2   :  { %3559 = vrot.lane.b32.xlu1 %v9671_v6, %s8405_s1 }
0x1db6   :  { %3557 = vrot.lane.b32.xlu1 %v9676_v58, %s8405_s1 }
0x1dbb   :  { %3366 = vrot.lane.b32.xlu0 %v9619_v32, %s8405_s1 }
0x1e1e   :  { %v3352_v40 = vpop.xlane.xlu1 %3351 }
0x1e22   :  { %v3355_v25 = vpop.xlane.xlu0 %3354  ;;  %v3346_v0 = vpop.xlane.xlu1 %3345 }
0x1e23   :  { %8095 = vrcp.f32 %v3355_v25 }
0x1e24   :  { %8097 = vrcp.f32 %v3346_v0 }
0x1e25   :  { %8099 = vrcp.f32 %v3352_v40 }
0x1e26   :  { %v3349_v16 = vpop.xlane.xlu0 %3348  ;;  %v3543_v55 = vpop.xlane.xlu1 %3542 }
0x1e27   :  { %8101 = vrcp.f32 %v3349_v16 }
0x1e2a   :  { %v3546_v59 = vpop.xlane.xlu0 %3545  ;;  %v3537_v27 = vpop.xlane.xlu1 %3536 }
0x1e2b   :  { %8103 = vrcp.f32 %v3546_v59 }
0x1e2c   :  { %8105 = vrcp.f32 %v3537_v27 }
0x1e2d   :  { %8107 = vrcp.f32 %v3543_v55 }
0x1e2e   :  { %v3540_v6 = vpop.xlane.xlu0 %3539  ;;  %v3560_v39 = vpop.permute.xlu1 %3559 }
0x1e2f   :  { %8109 = vrcp.f32 %v3540_v6  ;;  %v3569_v53 = vsel %vm577_vm14, %v3560_v39, 0 }
0x1e30   :  { %v8096_v58 = vpop.eup %8095 }
0x1e31   :  { %v8098_v44 = vpop.eup %8097  ;;  %v3363_v38 = vmul.f32 %v8096_v58, %v8084_v24 }
0x1e32   :  { %v3367_v33 = vpop.permute.xlu0 %3366  ;;  %v8100_v32 = vpop.eup %8099  ;;  %v3360_v8 = vmul.f32 %v8098_v44, %v8082_v36 }
0x1e33   :  { %7451 = vmatprep.subr.bf16.mxu0 %v3367_v33  ;;  %v3362_v19 = vmul.f32 %v8100_v32, %v8080_v9  ;;  %v3558_v46 = vpop.permute.xlu1 %3557 }
0x1e34   :  { %v8102_v20 = vpop.eup %8101  ;;  %7452 = vmatpush3.bf16.msra.mxu0 %v3367_v33 }
0x1e35   :  { %7777 = vmatprep.subr.msk.bf16.mxu0 %vm577_vm14, %v3560_v39  ;;  %v3361_v42 = vmul.f32 %v8102_v20, %v8086_v21  ;;  %v3365_v57 = vpack.c.bf16 %v3363_v38, %v3362_v19 }
0x1e37   :  { %v3364_v56 = vpack.c.bf16 %v3361_v42, %v3360_v8 }
0x1e38   :  { %v8104_v17 = vpop.eup %8103 }
0x1e39   :  { %7453 = vmatprep.mubr.msk.bf16.mxu0 %vm415_vm13, %v3364_v56  ;;  %v8106_v30 = vpop.eup %8105  ;;  %v3554_v24 = vmul.f32 %v8104_v17, %v8092_v14 }
0x1e3a   :  { %7454 = vmatmul.mubr.msk.bf16.vlgmr.msra.gmra.mxu0 %vm415_vm13, %v3365_v57  ;;  %v8108_v28 = vpop.eup %8107  ;;  %v3551_v3 = vmul.f32 %v8106_v30, %v8090_v35  ;;  %v6713_v57 = vld [vmem:[%s10991_s10 + $0xc] sm:$0xf] }
0x1e3b   :  { %7466 = vmatpush3.bf16.msra.mxu0 %v3569_v53  ;;  %v3553_v21 = vmul.f32 %v8108_v28, %v8088_v49  ;;  %v7832_v49 = vld [vmem:[%s10990_s9 + $0x30] sm:$0xff]   ;;  %v3631_v17 = vrot.slane %v6713_v57, %v8684_v2 }
0x1e3c   :  { %v8110_v15 = vpop.eup %8109  ;;  %7467 = vmatprep.subr.bf16.mxu0 %v3558_v46  ;;  %7476 = vmatpush3.bf16.msra.mxu1 %v7832_v49 }
0x1e3d   :  { %v3552_v36 = vmul.f32 %v8110_v15, %v8094_v10  ;;  %v3556_v62 = vpack.c.bf16 %v3554_v24, %v3553_v21  ;;  %7489 = vmatprep.subr.bf16.mxu1 %v8402_v1 }
0x1e3f   :  { %7468 = vmatpush3.bf16.msra.mxu0 %v3558_v46  ;;  %v3555_v9 = vpack.c.bf16 %v3552_v36, %v3551_v3 }
0x1e40   :  { %7481 = vmatprep.subr.bf16.mxu0 %v8402_v1 }
0x1e41   :  { %7469 = vmatprep.mubr.msk.bf16.mxu0 %vm415_vm13, %v3555_v9 }
0x1e42   :  { %7470 = vmatmul.mubr.msk.bf16.vlgmr.msra.gmra.mxu0 %vm415_vm13, %v3556_v62 }
0x1e43   :  { %7485 = vmatprep.mubr.msk.bf16.mxu0 %vm8403_vm0, %v8402_v1 }
0x1efa   :  { %v7455_v35 = vpop.f32.mrf.mxu0 }
0x1efb   :  { %v3432_v6 = vmul.f32 %v7455_v35, %v8597_v48 }
0x1efc   :  { %v3414_v14 = vpop.f32.mrf.mxu0 }
0x1efd   :  { %v3429_v16 = vmul.f32 %v8594_v47, %v3414_v14 }
0x1efe   :  { %v7456_v10 = vpop.f32.mrf.mxu0 }
0x1eff   :  { %v3434_v39 = vmul.f32 %v7456_v10, %v8603_v52 }
0x1f00   :  { %v3417_v41 = vpop.f32.mrf.mxu0 }
0x1f01   :  { %v3430_v25 = vmul.f32 %v8600_v50, %v3417_v41 }
0x1f02   :  { %v7471_v40 = vpop.f32.mrf.mxu0 }
0x1f03   :  { %v3431_v59 = vadd.f32 %v3430_v25, %v3429_v16  ;;  %v3623_v32 = vmul.f32 %v7471_v40, %v8597_v48 }
0x1f04   :  { %v3605_v0 = vpop.f32.mrf.mxu0 }
0x1f05   :  { %v3620_v58 = vmul.f32 %v8594_v47, %v3605_v0  ;;  %v3433_v33 = vadd.f32 %v3432_v6, %v3431_v59  ;;  %v7834_v0 = vld [vmem:[%s10992_s11 + $0x20] sm:$0xff]  }
0x1f06   :  { %v7472_v55 = vpop.f32.mrf.mxu0 }
0x1f07   :  { %v3625_v38 = vmul.f32 %v7472_v55, %v8603_v52  ;;  %v3435_v42 = vadd.f32 %v3434_v39, %v3433_v33  ;;  %v3719_v33 = vrot.slane %v6713_v57, %v8731_v34  ;;  %v3725_v39 = vrot.slane %v6713_v57, %v9073_v37  ;;  %v7836_v57 = vld [vmem:[%s10988_s7 + $0x40] sm:$0xff]  }
0x1f08   :  { %v3608_v27 = vpop.f32.mrf.mxu0 }
0x1f09   :  { %v3621_v44 = vmul.f32 %v8600_v50, %v3608_v27 }
0x1f0b   :  { %v3622_v20 = vadd.f32 %v3621_v44, %v3620_v58 }
0x1f0d   :  { %v3624_v8 = vadd.f32 %v3623_v32, %v3622_v20 }
0x1f0f   :  { %v3626_v19 = vadd.f32 %v3625_v38, %v3624_v8 }
0x1f11   :  { %v3627_v56 = vpack.c.bf16 %v3626_v19, %v3435_v42 }
0x1f13   :  { %7478 = vmatmul.mubr.msk.bf16.vlgmr.msra.gmra.mxu1 %vm213_vm2, %v3627_v56 }
0x1f14   :  { %7505 = vmatprep.mubr.msk.bf16.mxu1 %vm8403_vm0, %v8402_v1 }
0x1fd3   :  { %v3681_v30 = vpop.f32.mrf.mxu1 }
0x1fd4   :  { %v3682_v53 = vadd.f32 %v3681_v30, %v3631_v17 }
0x1fd5   :  { %v7479_v28 = vpop.f32.mrf.mxu1 }
0x1fd6   :  { %v3688_v46 = vadd.f32 %v3682_v53, %v9657_v63  ;;  %v7837_v53 = vld [vmem:[%s10993_s12 + $0xb8] sm:$0xff]  }
0x1fd7   :  { %v3684_v15 = vpop.f32.mrf.mxu1  ;;  %7490 = vmatpush3.bf16.msra.mxu1 %v7837_v53  ;;  %v7841_v28 = vld [vmem:[%s10993_s12 + $0x98] sm:$0xff]  }
0x1fd8   :  { %v3685_v24 = vadd.f32 %v3684_v15, %v3631_v17  ;;  %v3690_v3 = vsel %vm213_vm2, %v3688_v46, 0.0  ;;  %v7835_v17 = vld [vmem:[%s10988_s7 + $0x48] sm:$0xff]   ;;  %7491 = vmatprep.subr.bf16.mxu1 %v8402_v1 }
0x1fd9   :  { %3691 = vadd.xlane.f32.xlu0 %v3690_v3  ;;  %v7480_v36 = vpop.f32.mrf.mxu1  ;;  %v7843_v15 = vld [vmem:[%s10993_s12 + $0x88] sm:$0xff]  }
0x1fda   :  { %v3689_v21 = vadd.f32 %v3685_v24, %v9659_v29  ;;  %v7833_v29 = vld [vmem:[%s10992_s11 + $0x28] sm:$0xff]   ;;  %v7844_v24 = vld [vmem:[%s10993_s12 + $0x80] sm:$0xff]  }
0x1fdb   :  { %7482 = vmatpush3.bf16.msra.mxu0 %v7833_v29  ;;  %v6752_v3 = vld [vmem:[%s10994_s13 + $0x8] sm:$0xf] }
0x1fdc   :  { %v3693_v9 = vsel %vm213_vm2, %v3689_v21, 0.0  ;;  %7483 = vmatprep.subr.bf16.mxu0 %v8402_v1  ;;  %v3756_v36 = vrot.slane %v6752_v3, %v8684_v2 }
0x1fdd   :  { %3694 = vadd.xlane.f32.xlu1 %v3693_v9 }
0x1fdf   :  { %7484 = vmatpush3.bf16.msra.mxu0 %v7834_v0 }
0x1fe0   :  { %7509 = vmatprep.subr.bf16.mxu0 %v8402_v1 }
0x2062   :  { %v3692_v62 = vpop.xlane.xlu0 %3691 }
0x2063   :  { %v3696_v23 = vmul.f32 0.03125, %v3692_v62 }
0x2065   :  { %v3698_v49 = vsub.f32 %v3688_v46, %v3696_v23  ;;  %v7842_v46 = vld [vmem:[%s10993_s12 + $0x90] sm:$0xff]  }
0x2066   :  { %v3695_v35 = vpop.xlane.xlu1 %3694 }
0x2067   :  { %v3697_v14 = vmul.f32 0.03125, %v3695_v35  ;;  %v3700_v10 = vmul.f32 %v3698_v49, %v3698_v49 }
0x2069   :  { %v3699_v41 = vsub.f32 %v3689_v21, %v3697_v14  ;;  %v3702_v63 = vsel %vm213_vm2, %v3700_v10, 0.0 }
0x206a   :  { %3703 = vadd.xlane.f32.xlu0 %v3702_v63 }
0x206b   :  { %v3701_v40 = vmul.f32 %v3699_v41, %v3699_v41 }
0x206d   :  { %v3705_v25 = vsel %vm213_vm2, %v3701_v40, 0.0  ;;  %v6774_v40 = vld [vmem:[%s10989_s8 + $0x4] ss:$0 sm:$0xff] }
0x206e   :  { %3706 = vadd.xlane.f32.xlu0 %v3705_v25 }
0x20f3   :  { %v3704_v16 = vpop.xlane.xlu0 %3703 }
0x20f4   :  { %v3708_v55 = vmul.f32 0.03125, %v3704_v16 }
0x20f6   :  { %v3710_v59 = vadd.f32 1e-12, %v3708_v55 }
0x20f7   :  { %v3707_v27 = vpop.xlane.xlu0 %3706 }
0x20f8   :  { %8111 = vrsqrt.f32 %v3710_v59  ;;  %v3709_v6 = vmul.f32 0.03125, %v3707_v27 }
0x20fa   :  { %v3711_v58 = vadd.f32 1e-12, %v3709_v6 }
0x20fc   :  { %8113 = vrsqrt.f32 %v3711_v58 }
0x2105   :  { %v8112_v44 = vpop.eup %8111 }
0x2106   :  { %v3714_v32 = vmul.f32 %v8112_v44, %v3698_v49 }
0x2108   :  { %v3720_v8 = vmul.f32 %v3719_v33, %v3714_v32 }
0x2109   :  { %v8114_v20 = vpop.eup %8113 }
0x210a   :  { %v3715_v38 = vmul.f32 %v8114_v20, %v3699_v41  ;;  %v9787_v19 = vadd.f32 %v3725_v39, %v3720_v8 }
0x210c   :  { %v3721_v42 = vmul.f32 %v3719_v33, %v3715_v38 }
0x210e   :  { %v9789_v56 = vadd.f32 %v3725_v39, %v3721_v42 }
0x2110   :  { %v3752_v30 = vpack.c.bf16 %v9789_v56, %v9787_v19 }
0x2112   :  { %7486 = vmatmul.mubr.msk.bf16.vlgmr.msra.gmra.mxu0 %vm213_vm2, %v3752_v30 }
0x2113   :  { %7510 = vmatpush3.bf16.msra.mxu0 %v7835_v17  ;;  %7513 = vmatprep.mubr.msk.bf16.mxu0 %vm8403_vm0, %v8402_v1 }
0x2114   :  { %7511 = vmatprep.subr.bf16.mxu0 %v8402_v1 }
0x2117   :  { %7512 = vmatpush3.bf16.msra.mxu0 %v7836_v57 }
0x211a   :  { %7514 = vmatmul.mubr.msk.bf16.vlgmr.msra.gmra.mxu0 %vm213_vm2, %v9591_v13  ;;  %v7838_v13 = vld [vmem:[%s10993_s12 + $0xb0] sm:$0xff]  }
0x211b   :  { %7517 = vmatprep.mubr.msk.bf16.mxu0 %vm8403_vm0, %v8402_v1  ;;  %7492 = vmatpush3.bf16.msra.mxu1 %v7838_v13 }
0x211c   :  { %7493 = vmatprep.subr.bf16.mxu1 %v8402_v1 }
0x2122   :  { %7518 = vmatmul.mubr.msk.bf16.gmra.mxu0 %vm213_vm2, %v9633_v61  ;;  %v7839_v61 = vld [vmem:[%s10993_s12 + $0xa8] sm:$0xff]  }
0x2123   :  { %7521 = vmatprep.mubr.msk.bf16.mxu0 %vm8403_vm0, %v8402_v1  ;;  %7494 = vmatpush3.bf16.msra.mxu1 %v7839_v61 }
0x2124   :  { %7495 = vmatprep.subr.bf16.mxu1 %v8402_v1 }
0x212a   :  { %7522 = vmatmul.mubr.msk.bf16.gmra.mxu0 %vm213_vm2, %v9649_v12  ;;  %v7840_v12 = vld [vmem:[%s10993_s12 + $0xa0] sm:$0xff]  }
0x212b   :  { %7496 = vmatpush3.bf16.msra.mxu1 %v7840_v12 }
0x212c   :  { %7497 = vmatprep.subr.bf16.mxu1 %v8402_v1 }
0x212f   :  { %7498 = vmatpush3.bf16.msra.mxu1 %v7841_v28 }
0x2130   :  { %7499 = vmatprep.subr.bf16.mxu1 %v8402_v1 }
0x2133   :  { %7500 = vmatpush3.bf16.msra.mxu1 %v7842_v46 }
0x2134   :  { %7501 = vmatprep.subr.bf16.mxu1 %v8402_v1 }
0x2137   :  { %7502 = vmatpush3.bf16.msra.mxu1 %v7843_v15 }
0x2138   :  { %7503 = vmatprep.subr.bf16.mxu1 %v8402_v1 }
0x213b   :  { %7504 = vmatpush3.bf16.msra.mxu1 %v7844_v24 }
0x21d2   :  { %v3806_v21 = vpop.f32.mrf.mxu0 }
0x21d3   :  { %v9848_v9 = vadd.f32 %v3806_v21, %v3756_v36 }
0x21d4   :  { %v7487_v62 = vpop.f32.mrf.mxu0 }
0x21d5   :  { %v3813_v23 = vmul.f32 %v9848_v9, %v9848_v9 }
0x21d6   :  { %v3809_v49 = vpop.f32.mrf.mxu0 }
0x21d7   :  { %v3815_v35 = vmul.f32 %v3813_v23, %v9848_v9  ;;  %v9853_v14 = vadd.f32 %v3809_v49, %v3756_v36 }
0x21d8   :  { %v7488_v10 = vpop.f32.mrf.mxu0 }
0x21d9   :  { %v3817_v41 = vmul.f32 0.044715, %v3815_v35  ;;  %v3814_v63 = vmul.f32 %v9853_v14, %v9853_v14 }
0x21da   :  { %v4031_v25 = vpop.f32.mrf.mxu0 }
0x21db   :  { %v3819_v29 = vadd.f32 %v3817_v41, %v9848_v9  ;;  %v3816_v0 = vmul.f32 %v3814_v63, %v9853_v14  ;;  %v4032_v27 = vadd.f32 %v6774_v40, %v4031_v25 }
0x21dc   :  { %v7515_v16 = vpop.f32.mrf.mxu0 }
0x21dd   :  { %v3821_v55 = vmul.f32 0.7978846, %v3819_v29  ;;  %v3818_v59 = vmul.f32 0.044715, %v3816_v0  ;;  %v9864_v20 = vmul.f32 %v8597_v48, %v4032_v27  ;;  %v4054_v42 = vmul.f32 %v8594_v47, %v4032_v27 }
0x21de   :  { %v4034_v6 = vpop.f32.mrf.mxu0  ;;  %v9878_v53 = vmul.f32 %v8600_v50, %v4032_v27  ;;  %v9900_v62 = vmul.f32 %v8603_v52, %v4032_v27 }
0x21df   :  { %8115 = vtanh.f32 %v3821_v55  ;;  %v3820_v58 = vadd.f32 %v3818_v59, %v9853_v14  ;;  %v4035_v44 = vadd.f32 %v6774_v40, %v4034_v6 }
0x21e0   :  { %v7516_v33 = vpop.f32.mrf.mxu0 }
0x21e1   :  { %v3822_v32 = vmul.f32 0.7978846, %v3820_v58  ;;  %v9867_v39 = vmul.f32 %v8597_v48, %v4035_v44  ;;  %v9869_v38 = vpack.c.bf16 %v4035_v44, %v4032_v27  ;;  %v4055_v17 = vmul.f32 %v8594_v47, %v4035_v44 }
0x21e2   :  { %v4039_v8 = vpop.f32.mrf.mxu0  ;;  %v9881_v13 = vmul.f32 %v8603_v52, %v4035_v44  ;;  %v9884_v28 = vmul.f32 %v8600_v50, %v4035_v44 }
0x21e3   :  { %8117 = vtanh.f32 %v3822_v32  ;;  %v4040_v30 = vadd.f32 %v6774_v40, %v4039_v8  ;;  %4076 = vrot.lane.b32.xlu0 %v9869_v38, %s8404_s0  ;;  %v4069_v57 = vpack.c.bf16 %v9867_v39, %v9864_v20  ;;  %v4066_v12 = vpack.c.bf16 %v4055_v17, %v4054_v42 }
0x21e4   :  { %v7519_v61 = vpop.f32.mrf.mxu0 }
0x21e5   :  { %v9887_v46 = vmul.f32 %v8594_v47, %v4040_v30  ;;  %v9890_v15 = vmul.f32 %v8603_v52, %v4040_v30  ;;  %v4073_v24 = vpack.c.bf16 %v4040_v30, %v4040_v30  ;;  %v9893_v3 = vmul.f32 %v8600_v50, %v4040_v30  ;;  %7529 = vmatprep.mubr.msk.bf16.mxu0 %vm213_vm2, %v4066_v12 }
0x21e6   :  { %v4042_v36 = vpop.f32.mrf.mxu0  ;;  %v9897_v21 = vmul.f32 %v8597_v48, %v4040_v30 }
0x21e7   :  { %v4067_v23 = vpack.c.bf16 %v9878_v53, %v9887_v46  ;;  %4078 = vrot.lane.b32.xlu1 %v4073_v24, %s8404_s0  ;;  %v4068_v49 = vpack.c.bf16 %v9893_v3, %v9884_v28  ;;  %v4071_v35 = vpack.c.bf16 %v9890_v15, %v9881_v13  ;;  %v4043_v63 = vadd.f32 %v6774_v40, %v4042_v36 }
0x21e8   :  { %v7520_v10 = vpop.f32.mrf.mxu0  ;;  %v4070_v41 = vpack.c.bf16 %v9900_v62, %v9897_v21 }
0x21e9   :  { %v9912_v59 = vmul.f32 %v8597_v48, %v4043_v63  ;;  %v4451_v58 = vmul.f32 %v8594_v47, %v4043_v63  ;;  %v4454_v42 = vmul.f32 %v8600_v50, %v4043_v63  ;;  %v4460_v61 = vmul.f32 %v8603_v52, %v4043_v63 }
0x21ea   :  { %v4047_v25 = vpop.f32.mrf.mxu0 }
0x21eb   :  { %v4048_v29 = vadd.f32 %v6774_v40, %v4047_v25 }
0x21ec   :  { %v8116_v0 = vpop.eup %8115  ;;  %v7523_v16 = vpop.f32.mrf.mxu0 }
0x21ed   :  { %v3825_v55 = vadd.f32 1.0, %v8116_v0  ;;  %v9915_v27 = vmul.f32 %v8597_v48, %v4048_v29  ;;  %v4452_v44 = vmul.f32 %v8594_v47, %v4048_v29  ;;  %v4461_v17 = vmul.f32 %v8603_v52, %v4048_v29 }
0x21ee   :  { %v4050_v6 = vpop.f32.mrf.mxu0 }
0x21ef   :  { %v4051_v33 = vadd.f32 %v6774_v40, %v4050_v6  ;;  %v4466_v32 = vpack.c.bf16 %v9915_v27, %v9912_v59  ;;  %v4463_v53 = vpack.c.bf16 %v4452_v44, %v4451_v58  ;;  %v3827_v12 = vmul.f32 0.5, %v3825_v55 }
0x21f0   :  { %v8118_v8 = vpop.eup %8117  ;;  %v7524_v30 = vpop.f32.mrf.mxu0  ;;  %v4455_v40 = vmul.f32 %v8600_v50, %v4048_v29  ;;  %v9935_v44 = vpack.c.bf16 %v4048_v29, %v4043_v63 }
0x21f1   :  { %v3826_v28 = vadd.f32 1.0, %v8118_v8  ;;  %v4453_v46 = vmul.f32 %v8594_v47, %v4051_v33  ;;  %v4462_v3 = vmul.f32 %v8603_v52, %v4051_v33  ;;  %v9926_v36 = vpack.c.bf16 %v4051_v33, %v4051_v33 }
0x21f2   :  { %v4456_v10 = vmul.f32 %v8600_v50, %v4051_v33  ;;  %v4459_v25 = vmul.f32 %v8597_v48, %v4051_v33  ;;  %v3829_v6 = vmul.f32 %v3827_v12, %v9848_v9 }
0x21f3   :  { %v3828_v0 = vmul.f32 0.5, %v3826_v28  ;;  %v4464_v16 = vpack.c.bf16 %v4454_v42, %v4453_v46  ;;  %v4468_v59 = vpack.c.bf16 %v4462_v3, %v4461_v17  ;;  %4475 = vrot.lane.b32.xlu1 %v9926_v36, %s8404_s0 }
0x21f4   :  { %v4465_v55 = vpack.c.bf16 %v4456_v10, %v4455_v40  ;;  %v4467_v27 = vpack.c.bf16 %v4460_v61, %v4459_v25 }
0x21f5   :  { %v3830_v58 = vmul.f32 %v3828_v0, %v9853_v14 }
0x21f7   :  { %v3831_v8 = vpack.c.bf16 %v3830_v58, %v3829_v6  ;;  %4473 = vrot.lane.b32.xlu1 %v9935_v44, %s8404_s0 }
0x21f9   :  { %7506 = vmatmul.mubr.bf16.vlgmr.msra.gmra.mxu1 %v3831_v8 }
0x21fb   :  { %4325 = vrot.lane.b32.xlu1 %v4073_v24, %s8405_s1 }
0x2255   :  { %v4077_v17 = vpop.permute.xlu0 %4076 }
0x2256   :  { %v4099_v9 = vsel %vm213_vm2, %v4077_v17, 0 }
0x2259   :  { %v4079_v33 = vpop.permute.xlu1 %4078 }
0x225a   :  { %7778 = vmatprep.subr.msk.bf16.mxu0 %vm213_vm2, %v4079_v33  ;;  %v4102_v42 = vsel %vm213_vm2, %v4079_v33, 0 }
0x225b   :  { %7526 = vmatpush3.bf16.xpose.msra.mxu0 %v4102_v42 }
0x225c   :  { %7779 = vmatprep.subr.msk.bf16.mxu0 %vm213_vm2, %v4077_v17 }
0x2263   :  { %7528 = vmatpush3.bf16.xpose.msra.mxu0 %v4099_v9 }
0x2265   :  { %v4476_v14 = vpop.permute.xlu1 %4475 }
0x2266   :  { %7781 = vmatprep.subr.msk.bf16.mxu0 %vm213_vm2, %v4476_v14  ;;  %v4499_v24 = vsel %vm213_vm2, %v4476_v14, 0 }
0x2269   :  { %v4474_v63 = vpop.permute.xlu1 %4473 }
0x226a   :  { %7530 = vmatmul.mubr.msk.bf16.vlgmr.msra.gmra.mxu0 %vm213_vm2, %v4067_v23  ;;  %v4496_v23 = vsel %vm213_vm2, %v4474_v63, 0 }
0x226b   :  { %7533 = vmatprep.mubr.msk.bf16.mxu0 %vm213_vm2, %v4068_v49  ;;  %7558 = vmatpush3.bf16.xpose.msra.mxu0 %v4499_v24 }
0x226c   :  { %7782 = vmatprep.subr.msk.bf16.mxu0 %vm213_vm2, %v4474_v63 }
0x226d   :  { %v4326_v29 = vpop.permute.xlu1 %4325 }
0x226e   :  { %7780 = vmatprep.subr.msk.bf16.mxu1 %vm577_vm14, %v4326_v29  ;;  %v4347_v30 = vsel %vm577_vm14, %v4326_v29, 0 }
0x226f   :  { %7542 = vmatpush3.bf16.msra.mxu1 %v4347_v30 }
0x2272   :  { %7534 = vmatmul.mubr.msk.bf16.gmra.mxu0 %vm213_vm2, %v4069_v57 }
0x2273   :  { %7537 = vmatprep.mubr.msk.bf16.mxu0 %vm213_vm2, %v4070_v41  ;;  %7560 = vmatpush3.bf16.xpose.msra.mxu0 %v4496_v23 }
0x2274   :  { %7589 = vmatprep.subr.bf16.mxu0 %v8402_v1 }
0x227a   :  { %7538 = vmatmul.mubr.msk.bf16.gmra.mxu0 %vm213_vm2, %v4071_v35 }
0x227b   :  { %7561 = vmatprep.mubr.msk.bf16.mxu0 %vm213_vm2, %v4463_v53 }
0x2282   :  { %7562 = vmatmul.mubr.msk.bf16.vlgmr.msra.gmra.mxu0 %vm213_vm2, %v4464_v16 }
0x2283   :  { %7565 = vmatprep.mubr.msk.bf16.mxu0 %vm213_vm2, %v4465_v55 }
0x228a   :  { %7566 = vmatmul.mubr.msk.bf16.gmra.mxu0 %vm213_vm2, %v4466_v32 }
0x228b   :  { %7569 = vmatprep.mubr.msk.bf16.mxu0 %vm213_vm2, %v4467_v27 }
0x2292   :  { %7570 = vmatmul.mubr.msk.bf16.gmra.mxu0 %vm213_vm2, %v4468_v59 }
0x2293   :  { %7593 = vmatprep.mubr.msk.bf16.mxu0 %vm8403_vm0, %v8402_v1 }
0x22b9   :  { %v9973_v20 = vpop.f32.mrf.mxu1 }
0x22bb   :  { %v7507_v39 = vpop.f32.mrf.mxu1 }
0x22bd   :  { %v9975_v57 = vpop.f32.mrf.mxu1 }
0x22bf   :  { %v7508_v13 = vpop.f32.mrf.mxu1 }
0x232a   :  { %v7531_v15 = vpop.f32.mrf.mxu0 }
0x232b   :  { %v9978_v21 = vadd.f32 %v7531_v15, %v8687_v4 }
0x232c   :  { %v4138_v62 = vpop.f32.mrf.mxu0 }
0x232d   :  { %v9981_v49 = vadd.f32 %v4138_v62, %v8687_v4  ;;  %v4191_v35 = vsel %vm415_vm13, %v9978_v21, -inf }
0x232e   :  { %4192 = vmax.xlane.f32.xlu0 %v4191_v35  ;;  %v7532_v41 = vpop.f32.mrf.mxu0 }
0x232f   :  { %v9986_v53 = vadd.f32 %v7532_v41, %v8687_v4  ;;  %v4185_v12 = vsel %vm415_vm13, %v9981_v49, -inf }
0x2330   :  { %v4141_v32 = vpop.f32.mrf.mxu0 }
0x2331   :  { %v9989_v61 = vadd.f32 %v4141_v32, %v8687_v4  ;;  %v4194_v10 = vsel %vm415_vm13, %v9986_v53, -inf }
0x2332   :  { %v7535_v28 = vpop.f32.mrf.mxu0  ;;  %4186 = vmax.xlane.f32.xlu0 %v4185_v12 }
0x2333   :  { %v9994_v46 = vadd.f32 %v7535_v28, %v8687_v4  ;;  %v4188_v3 = vsel %vm415_vm13, %v9989_v61, -inf }
0x2334   :  { %v4154_v40 = vpop.f32.mrf.mxu0  ;;  %4189 = vmax.xlane.f32.xlu1 %v4188_v3 }
0x2335   :  { %v10001_v0 = vadd.f32 %v4154_v40, %v8687_v4  ;;  %v4203_v59 = vsel %vm415_vm13, %v9994_v46, -inf }
0x2336   :  { %v7536_v25 = vpop.f32.mrf.mxu0  ;;  %4195 = vmax.xlane.f32.xlu0 %v4194_v10 }
0x2337   :  { %v10004_v16 = vadd.f32 %v7536_v25, %v8687_v4  ;;  %v4197_v33 = vsel %vm415_vm13, %v10001_v0, -inf }
0x2338   :  { %v4157_v55 = vpop.f32.mrf.mxu0  ;;  %4204 = vmax.xlane.f32.xlu1 %v4203_v59 }
0x2339   :  { %v10009_v27 = vadd.f32 %v4157_v55, %v8687_v4  ;;  %v4206_v6 = vsel %vm415_vm13, %v10004_v16, -inf }
0x233a   :  { %v7539_v58 = vpop.f32.mrf.mxu0  ;;  %4207 = vmax.xlane.f32.xlu0 %v4206_v6 }
0x233b   :  { %v10014_v8 = vadd.f32 %v7539_v58, %v8687_v4  ;;  %v4200_v17 = vsel %vm415_vm13, %v10009_v27, -inf }
0x233c   :  { %v4170_v42 = vpop.f32.mrf.mxu0  ;;  %4198 = vmax.xlane.f32.xlu1 %v4197_v33 }
0x233d   :  { %v10021_v14 = vadd.f32 %v4170_v42, %v8687_v4  ;;  %v4215_v24 = vsel %vm415_vm13, %v10014_v8, -inf }
0x233e   :  { %v7540_v9 = vpop.f32.mrf.mxu0  ;;  %4201 = vmax.xlane.f32.xlu0 %v4200_v17 }
0x233f   :  { %v10024_v63 = vadd.f32 %v7540_v9, %v8687_v4  ;;  %v4209_v15 = vsel %vm415_vm13, %v10021_v14, -inf }
0x2340   :  { %v4173_v29 = vpop.f32.mrf.mxu0  ;;  %4216 = vmax.xlane.f32.xlu1 %v4215_v24 }
0x2341   :  { %v10029_v30 = vadd.f32 %v4173_v29, %v8687_v4  ;;  %v4218_v23 = vsel %vm415_vm13, %v10024_v63, -inf }
0x2342   :  { %v7563_v39 = vpop.f32.mrf.mxu0  ;;  %4219 = vmax.xlane.f32.xlu0 %v4218_v23 }
0x2343   :  { %v10034_v13 = vadd.f32 %v7563_v39, %v8744_v45  ;;  %v4212_v35 = vsel %vm415_vm13, %v10029_v30, -inf }
0x2344   :  { %v4535_v62 = vpop.f32.mrf.mxu0  ;;  %4210 = vmax.xlane.f32.xlu1 %v4209_v15 }
0x2345   :  { %v10041_v4 = vadd.f32 %v4535_v62, %v8744_v45  ;;  %v4588_v12 = vsel %vm415_vm13, %v10034_v13, -inf }
0x2346   :  { %v7564_v41 = vpop.f32.mrf.mxu0  ;;  %4213 = vmax.xlane.f32.xlu0 %v4212_v35 }
0x2347   :  { %v10044_v32 = vadd.f32 %v7564_v41, %v8744_v45  ;;  %v4582_v59 = vsel %vm415_vm13, %v10041_v4, -inf }
0x2348   :  { %v4538_v28 = vpop.f32.mrf.mxu0  ;;  %4589 = vmax.xlane.f32.xlu1 %v4588_v12 }
0x2349   :  { %v10049_v3 = vadd.f32 %v4538_v28, %v8744_v45  ;;  %v4591_v40 = vsel %vm415_vm13, %v10044_v32, -inf }
0x234a   :  { %v7567_v10 = vpop.f32.mrf.mxu0  ;;  %4592 = vmax.xlane.f32.xlu0 %v4591_v40 }
0x234b   :  { %v10054_v25 = vadd.f32 %v7567_v10, %v8744_v45  ;;  %v4585_v6 = vsel %vm415_vm13, %v10049_v3, -inf }
0x234c   :  { %v4551_v55 = vpop.f32.mrf.mxu0  ;;  %4583 = vmax.xlane.f32.xlu1 %v4582_v59 }
0x234d   :  { %v10061_v33 = vadd.f32 %v4551_v55, %v8744_v45  ;;  %v4600_v17 = vsel %vm415_vm13, %v10054_v25, -inf }
0x234e   :  { %v7568_v58 = vpop.f32.mrf.mxu0  ;;  %4586 = vmax.xlane.f32.xlu0 %v4585_v6 }
0x234f   :  { %v10064_v42 = vadd.f32 %v7568_v58, %v8744_v45  ;;  %v4594_v15 = vsel %vm415_vm13, %v10061_v33, -inf }
0x2350   :  { %v4554_v9 = vpop.f32.mrf.mxu0  ;;  %4601 = vmax.xlane.f32.xlu1 %v4600_v17 }
0x2351   :  { %v10069_v24 = vadd.f32 %v4554_v9, %v8744_v45  ;;  %v4603_v29 = vsel %vm415_vm13, %v10064_v42, -inf }
0x2352   :  { %v7571_v23 = vpop.f32.mrf.mxu0  ;;  %4604 = vmax.xlane.f32.xlu0 %v4603_v29 }
0x2353   :  { %v10074_v39 = vadd.f32 %v7571_v23, %v8744_v45  ;;  %v4597_v35 = vsel %vm415_vm13, %v10069_v24, -inf }
0x2354   :  { %v4567_v62 = vpop.f32.mrf.mxu0  ;;  %4595 = vmax.xlane.f32.xlu1 %v4594_v15 }
0x2355   :  { %v10081_v12 = vadd.f32 %v4567_v62, %v8744_v45  ;;  %v4612_v40 = vsel %vm415_vm13, %v10074_v39, -inf }
0x2356   :  { %v7572_v41 = vpop.f32.mrf.mxu0  ;;  %4598 = vmax.xlane.f32.xlu0 %v4597_v35 }
0x2357   :  { %v10084_v28 = vadd.f32 %v7572_v41, %v8744_v45  ;;  %v4606_v6 = vsel %vm415_vm13, %v10081_v12, -inf }
0x2358   :  { %v4570_v10 = vpop.f32.mrf.mxu0  ;;  %4613 = vmax.xlane.f32.xlu1 %v4612_v40 }
0x2359   :  { %v10089_v59 = vadd.f32 %v4570_v10, %v8744_v45  ;;  %v4615_v55 = vsel %vm415_vm13, %v10084_v28, -inf }
0x235a   :  { %4616 = vmax.xlane.f32.xlu0 %v4615_v55 }
0x235b   :  { %v4609_v58 = vsel %vm415_vm13, %v10089_v59, -inf }
0x235c   :  { %4607 = vmax.xlane.f32.xlu1 %v4606_v6 }
0x235e   :  { %4610 = vmax.xlane.f32.xlu0 %v4609_v58 }
0x236d   :  { %4323 = vrot.lane.b32.xlu1 %v9869_v38, %s8405_s1 }
0x23b7   :  { %v4193_v17 = vpop.xlane.xlu0 %4192 }
0x23b8   :  { %v4223_v9 = vsub.f32 %v9978_v21, %v4193_v17 }
0x23ba   :  { %v4237_v45 = vmul.f32 1.442695, %v4223_v9 }
0x23bb   :  { %v4187_v29 = vpop.xlane.xlu0 %4186 }
0x23bc   :  { %8119 = vpow2.f32 %v4237_v45  ;;  %v4221_v23 = vsub.f32 %v9981_v49, %v4187_v29 }
0x23bd   :  { %v4190_v15 = vpop.xlane.xlu1 %4189 }
0x23be   :  { %v4233_v62 = vmul.f32 1.442695, %v4221_v23  ;;  %v4222_v35 = vsub.f32 %v9989_v61, %v4190_v15 }
0x23bf   :  { %v4196_v41 = vpop.xlane.xlu0 %4195 }
0x23c0   :  { %8121 = vpow2.f32 %v4233_v62  ;;  %v4224_v40 = vsub.f32 %v9986_v53, %v4196_v41  ;;  %v4235_v10 = vmul.f32 1.442695, %v4222_v35 }
0x23c1   :  { %v4205_v55 = vpop.xlane.xlu1 %4204 }
0x23c2   :  { %v4239_v6 = vmul.f32 1.442695, %v4224_v40  ;;  %v4227_v38 = vsub.f32 %v9994_v46, %v4205_v55 }
0x23c3   :  { %v4208_v58 = vpop.xlane.xlu0 %4207 }
0x23c4   :  { %8123 = vpow2.f32 %v4239_v6  ;;  %v4245_v21 = vmul.f32 1.442695, %v4227_v38  ;;  %v4228_v17 = vsub.f32 %v10004_v16, %v4208_v58 }
0x23c5   :  { %8125 = vpow2.f32 %v4235_v10  ;;  %v4199_v49 = vpop.xlane.xlu1 %4198 }
0x23c6   :  { %8127 = vpow2.f32 %v4245_v21  ;;  %v4247_v9 = vmul.f32 1.442695, %v4228_v17  ;;  %v4225_v61 = vsub.f32 %v10001_v0, %v4199_v49 }
0x23c7   :  { %v4202_v45 = vpop.xlane.xlu0 %4201 }
0x23c8   :  { %v4241_v29 = vmul.f32 1.442695, %v4225_v61  ;;  %v4226_v53 = vsub.f32 %v10009_v27, %v4202_v45  ;;  %8129 = vpow2.f32 %v4247_v9 }
0x23c9   :  { %v10107_v23 = vpop.eup %8119  ;;  %v4217_v15 = vpop.xlane.xlu1 %4216 }
0x23ca   :  { %8131 = vpow2.f32 %v4241_v29  ;;  %v4243_v46 = vmul.f32 1.442695, %v4226_v53  ;;  %v4231_v62 = vsub.f32 %v10014_v8, %v4217_v15  ;;  %v4263_v16 = vsel %vm415_vm13, %v10107_v23, 0.0 }
0x23cb   :  { %4264 = vadd.xlane.f32.xlu1 %v4263_v16  ;;  %v4220_v35 = vpop.xlane.xlu0 %4219 }
0x23cc   :  { %v4253_v41 = vmul.f32 1.442695, %v4231_v62  ;;  %v4232_v0 = vsub.f32 %v10024_v63, %v4220_v35  ;;  %8133 = vpow2.f32 %v4243_v46 }
0x23cd   :  { %v10113_v40 = vpop.eup %8121  ;;  %v4211_v27 = vpop.xlane.xlu1 %4210 }
0x23ce   :  { %8135 = vpow2.f32 %v4253_v41  ;;  %v4255_v10 = vmul.f32 1.442695, %v4232_v0  ;;  %v4229_v55 = vsub.f32 %v10021_v14, %v4211_v27  ;;  %v4257_v6 = vsel %vm415_vm13, %v10113_v40, 0.0 }
0x23cf   :  { %4258 = vadd.xlane.f32.xlu1 %v4257_v6  ;;  %v4214_v8 = vpop.xlane.xlu0 %4213 }
0x23d0   :  { %v4249_v38 = vmul.f32 1.442695, %v4229_v55  ;;  %v4230_v58 = vsub.f32 %v10029_v30, %v4214_v8  ;;  %8137 = vpow2.f32 %v4255_v10 }
0x23d1   :  { %v10119_v21 = vpop.eup %8123  ;;  %v4590_v63 = vpop.xlane.xlu1 %4589 }
0x23d2   :  { %v10121_v17 = vpop.eup %8125  ;;  %8139 = vpow2.f32 %v4249_v38  ;;  %v4251_v49 = vmul.f32 1.442695, %v4230_v58  ;;  %v4620_v9 = vsub.f32 %v10034_v13, %v4590_v63  ;;  %v4266_v14 = vsel %vm415_vm13, %v10119_v21, 0.0 }
0x23d3   :  { %v10126_v61 = vpop.eup %8127  ;;  %4267 = vadd.xlane.f32.xlu0 %v4266_v14  ;;  %v4593_v45 = vpop.xlane.xlu0 %4592  ;;  %v4260_v13 = vsel %vm415_vm13, %v10121_v17, 0.0 }
0x23d4   :  { %v4275_v30 = vsel %vm415_vm13, %v10126_v61, 0.0  ;;  %8141 = vpow2.f32 %v4251_v49  ;;  %v4634_v15 = vmul.f32 1.442695, %v4620_v9  ;;  %v4621_v41 = vsub.f32 %v10044_v32, %v4593_v45 }
0x23d5   :  { %v4584_v29 = vpop.xlane.xlu1 %4583  ;;  %4276 = vadd.xlane.f32.xlu1 %v4275_v30  ;;  %v10130_v53 = vpop.eup %8129 }
0x23d6   :  { %v4618_v46 = vsub.f32 %v10041_v4, %v4584_v29  ;;  %8143 = vpow2.f32 %v4634_v15  ;;  %v4278_v4 = vsel %vm415_vm13, %v10130_v53, 0.0  ;;  %v4636_v38 = vmul.f32 1.442695, %v4621_v41 }
0x23d7   :  { %v10135_v62 = vpop.eup %8131  ;;  %4261 = vadd.xlane.f32.xlu0 %v4260_v13  ;;  %v4587_v16 = vpop.xlane.xlu0 %4586 }
0x23d8   :  { %v4269_v35 = vsel %vm415_vm13, %v10135_v62, 0.0  ;;  %v4630_v10 = vmul.f32 1.442695, %v4618_v46  ;;  %v4619_v63 = vsub.f32 %v10049_v3, %v4587_v16 }
0x23d9   :  { %v4602_v0 = vpop.xlane.xlu1 %4601  ;;  %4270 = vadd.xlane.f32.xlu1 %v4269_v35  ;;  %v10140_v27 = vpop.eup %8133 }
0x23da   :  { %8145 = vpow2.f32 %v4630_v10  ;;  %v4272_v49 = vsel %vm415_vm13, %v10140_v27, 0.0  ;;  %v4632_v15 = vmul.f32 1.442695, %v4619_v63  ;;  %v4624_v46 = vsub.f32 %v10054_v25, %v4602_v0 }
0x23db   :  { %v10144_v55 = vpop.eup %8135  ;;  %4279 = vadd.xlane.f32.xlu0 %v4278_v4  ;;  %v4605_v6 = vpop.xlane.xlu0 %4604  ;;  %8147 = vpow2.f32 %v4636_v38 }
0x23dc   :  { %v4287_v8 = vsel %vm415_vm13, %v10144_v55, 0.0  ;;  %v4625_v25 = vsub.f32 %v10064_v42, %v4605_v6 }
0x23dd   :  { %v4596_v58 = vpop.xlane.xlu1 %4595  ;;  %4288 = vadd.xlane.f32.xlu1 %v4287_v8  ;;  %v10148_v32 = vpop.eup %8137 }
0x23de   :  { %v4290_v3 = vsel %vm415_vm13, %v10148_v32, 0.0  ;;  %v4622_v41 = vsub.f32 %v10061_v33, %v4596_v58  ;;  %v4644_v33 = vmul.f32 1.442695, %v4625_v25 }
0x23df   :  { %v10153_v9 = vpop.eup %8139  ;;  %4273 = vadd.xlane.f32.xlu0 %v4272_v49  ;;  %v4599_v14 = vpop.xlane.xlu0 %4598 }
0x23e0   :  { %v4623_v45 = vsub.f32 %v10069_v24, %v4599_v14  ;;  %v4281_v30 = vsel %vm415_vm13, %v10153_v9, 0.0  ;;  %v4642_v24 = vmul.f32 1.442695, %v4624_v46  ;;  %v4638_v8 = vmul.f32 1.442695, %v4622_v41 }
0x23e1   :  { %v4614_v29 = vpop.xlane.xlu1 %4613  ;;  %4282 = vadd.xlane.f32.xlu1 %v4281_v30  ;;  %v10161_v16 = vpop.eup %8141 }
0x23e2   :  { %v4640_v13 = vmul.f32 1.442695, %v4623_v45  ;;  %v4284_v10 = vsel %vm415_vm13, %v10161_v16, 0.0  ;;  %v4628_v49 = vsub.f32 %v10074_v39, %v4614_v29 }
0x23e3   :  { %4291 = vadd.xlane.f32.xlu0 %v4290_v3  ;;  %v10166_v4 = vpop.eup %8143  ;;  %v4617_v14 = vpop.xlane.xlu0 %4616 }
0x23e4   :  { %8149 = vpow2.f32 %v4640_v13  ;;  %v4660_v38 = vsel %vm415_vm13, %v10166_v4, 0.0  ;;  %v4650_v45 = vmul.f32 1.442695, %v4628_v49  ;;  %v4629_v39 = vsub.f32 %v10084_v28, %v4617_v14 }
0x23e5   :  { %v4608_v35 = vpop.xlane.xlu1 %4607  ;;  %8151 = vpow2.f32 %v4632_v15 }
0x23e6   :  { %8153 = vpow2.f32 %v4642_v24  ;;  %v4626_v30 = vsub.f32 %v10081_v12, %v4608_v35  ;;  %v4652_v35 = vmul.f32 1.442695, %v4629_v39 }
0x23e7   :  { %4285 = vadd.xlane.f32.xlu0 %v4284_v10  ;;  %v10171_v63 = vpop.eup %8145  ;;  %8155 = vpow2.f32 %v4638_v8  ;;  %v4611_v12 = vpop.xlane.xlu0 %4610 }
0x23e8   :  { %v10173_v58 = vpop.eup %8147  ;;  %v4654_v42 = vsel %vm415_vm13, %v10171_v63, 0.0  ;;  %8157 = vpow2.f32 %v4644_v33  ;;  %v4646_v29 = vmul.f32 1.442695, %v4626_v30  ;;  %v4627_v41 = vsub.f32 %v10089_v59, %v4611_v12 }
0x23e9   :  { %v4324_v0 = vpop.permute.xlu1 %4323  ;;  %v4663_v15 = vsel %vm415_vm13, %v10173_v58, 0.0  ;;  %8159 = vpow2.f32 %v4650_v45 }
0x23ea   :  { %7543 = vmatprep.subr.bf16.mxu1 %v4324_v0  ;;  %8161 = vpow2.f32 %v4646_v29  ;;  %v4648_v28 = vmul.f32 1.442695, %v4627_v41 }
0x23eb   :  { %7544 = vmatpush3.bf16.msra.mxu1 %v4324_v0  ;;  %4661 = vadd.xlane.f32.xlu0 %v4660_v38  ;;  %8163 = vpow2.f32 %v4652_v35 }
0x23ec   :  { %8165 = vpow2.f32 %v4648_v28 }
0x23ef   :  { %4655 = vadd.xlane.f32.xlu0 %v4654_v42 }
0x23f1   :  { %v10178_v6 = vpop.eup %8149 }
0x23f2   :  { %v4669_v46 = vsel %vm415_vm13, %v10178_v6, 0.0  ;;  %v10185_v13 = vpop.eup %8151 }
0x23f3   :  { %4664 = vadd.xlane.f32.xlu0 %v4663_v15  ;;  %4670 = vadd.xlane.f32.xlu1 %v4669_v46  ;;  %v4657_v3 = vsel %vm415_vm13, %v10185_v13, 0.0  ;;  %v10190_v24 = vpop.eup %8153 }
0x23f4   :  { %v4672_v10 = vsel %vm415_vm13, %v10190_v24, 0.0  ;;  %v10195_v25 = vpop.eup %8155 }
0x23f5   :  { %v10197_v0 = vpop.eup %8157  ;;  %v4666_v8 = vsel %vm415_vm13, %v10195_v25, 0.0 }
0x23f6   :  { %v4675_v38 = vsel %vm415_vm13, %v10197_v0, 0.0  ;;  %v10203_v33 = vpop.eup %8159 }
0x23f7   :  { %4658 = vadd.xlane.f32.xlu0 %v4657_v3  ;;  %v4684_v59 = vsel %vm415_vm13, %v10203_v33, 0.0  ;;  %v10209_v49 = vpop.eup %8161 }
0x23f8   :  { %v4678_v42 = vsel %vm415_vm13, %v10209_v49, 0.0  ;;  %v10213_v14 = vpop.eup %8163 }
0x23f9   :  { %v4687_v45 = vsel %vm415_vm13, %v10213_v14, 0.0  ;;  %v10217_v30 = vpop.eup %8165 }
0x23fb   :  { %4673 = vadd.xlane.f32.xlu0 %v4672_v10 }
0x23ff   :  { %4667 = vadd.xlane.f32.xlu0 %v4666_v8 }
0x2403   :  { %4676 = vadd.xlane.f32.xlu0 %v4675_v38 }
0x2404   :  { %4720 = vrot.lane.b32.xlu1 %v9935_v44, %s8405_s1  ;;  %v4681_v44 = vsel %vm415_vm13, %v10217_v30, 0.0 }
0x2407   :  { %4685 = vadd.xlane.f32.xlu0 %v4684_v59 }
0x240b   :  { %4679 = vadd.xlane.f32.xlu0 %v4678_v42 }
0x240f   :  { %4688 = vadd.xlane.f32.xlu0 %v4687_v45 }
0x2413   :  { %4682 = vadd.xlane.f32.xlu0 %v4681_v44 }
0x2429   :  { %4722 = vrot.lane.b32.xlu0 %v9926_v36, %s8405_s1 }
0x2454   :  { %v4265_v15 = vpop.xlane.xlu1 %4264 }
0x2458   :  { %v4259_v46 = vpop.xlane.xlu1 %4258 }
0x245c   :  { %v4268_v39 = vpop.xlane.xlu0 %4267 }
0x245d   :  { %8167 = vrcp.f32 %v4268_v39 }
0x245e   :  { %v4277_v29 = vpop.xlane.xlu1 %4276  ;;  %8169 = vrcp.f32 %v4259_v46 }
0x245f   :  { %8171 = vrcp.f32 %v4265_v15 }
0x2460   :  { %v4262_v3 = vpop.xlane.xlu0 %4261 }
0x2461   :  { %8173 = vrcp.f32 %v4262_v3 }
0x2462   :  { %v4271_v12 = vpop.xlane.xlu1 %4270 }
0x2464   :  { %v4280_v35 = vpop.xlane.xlu0 %4279 }
0x2465   :  { %8175 = vrcp.f32 %v4280_v35 }
0x2466   :  { %v4289_v41 = vpop.xlane.xlu1 %4288  ;;  %8177 = vrcp.f32 %v4271_v12 }
0x2467   :  { %8179 = vrcp.f32 %v4277_v29 }
0x2468   :  { %v4274_v10 = vpop.xlane.xlu0 %4273 }
0x2469   :  { %8181 = vrcp.f32 %v4274_v10 }
0x246a   :  { %v8168_v28 = vpop.eup %8167  ;;  %v4283_v36 = vpop.xlane.xlu1 %4282 }
0x246b   :  { %v8170_v8 = vpop.eup %8169  ;;  %v4308_v45 = vmul.f32 %v8168_v28, %v10119_v21 }
0x246c   :  { %v4292_v38 = vpop.xlane.xlu0 %4291  ;;  %v8172_v59 = vpop.eup %8171  ;;  %v4305_v44 = vmul.f32 %v8170_v8, %v10113_v40 }
0x246d   :  { %8183 = vrcp.f32 %v4292_v38  ;;  %v4307_v46 = vmul.f32 %v8172_v59, %v10107_v23 }
0x246e   :  { %v8174_v42 = vpop.eup %8173  ;;  %8185 = vrcp.f32 %v4283_v36 }
0x246f   :  { %v4306_v15 = vmul.f32 %v8174_v42, %v10121_v17  ;;  %8187 = vrcp.f32 %v4289_v41  ;;  %v4318_v3 = vpack.c.bf16 %v4308_v45, %v4307_v46 }
0x2470   :  { %v4286_v39 = vpop.xlane.xlu0 %4285 }
0x2471   :  { %8189 = vrcp.f32 %v4286_v39  ;;  %v4317_v29 = vpack.c.bf16 %v4306_v15, %v4305_v44 }
0x2472   :  { %v8176_v12 = vpop.eup %8175 }
0x2473   :  { %7545 = vmatprep.mubr.msk.bf16.mxu1 %vm415_vm13, %v4317_v29  ;;  %v8178_v35 = vpop.eup %8177  ;;  %v4312_v40 = vmul.f32 %v8176_v12, %v10130_v53 }
0x2474   :  { %7546 = vmatmul.mubr.msk.bf16.vlgmr.msra.gmra.mxu1 %vm415_vm13, %v4318_v3  ;;  %v4662_v21 = vpop.xlane.xlu0 %4661  ;;  %v8180_v10 = vpop.eup %8179  ;;  %v4309_v17 = vmul.f32 %v8178_v35, %v10135_v62 }
0x2475   :  { %v4311_v8 = vmul.f32 %v8180_v10, %v10126_v61 }
0x2476   :  { %v8182_v28 = vpop.eup %8181 }
0x2477   :  { %v4310_v23 = vmul.f32 %v8182_v28, %v10140_v27  ;;  %v4320_v38 = vpack.c.bf16 %v4312_v40, %v4311_v8 }
0x2478   :  { %v4656_v41 = vpop.xlane.xlu0 %4655 }
0x2479   :  { %v4319_v36 = vpack.c.bf16 %v4310_v23, %v4309_v17  ;;  %8191 = vrcp.f32 %v4656_v41 }
0x247a   :  { %v8184_v59 = vpop.eup %8183 }
0x247b   :  { %7549 = vmatprep.mubr.msk.bf16.mxu1 %vm415_vm13, %v4319_v36  ;;  %v8186_v42 = vpop.eup %8185  ;;  %v4316_v53 = vmul.f32 %v8184_v59, %v10148_v32 }
0x247c   :  { %7550 = vmatmul.mubr.msk.bf16.gmra.mxu1 %vm415_vm13, %v4320_v38  ;;  %v4665_v45 = vpop.xlane.xlu0 %4664  ;;  %v8188_v44 = vpop.eup %8187  ;;  %v4313_v62 = vmul.f32 %v8186_v42, %v10153_v9 }
0x247d   :  { %v4315_v61 = vmul.f32 %v8188_v44, %v10144_v55  ;;  %v4671_v17 = vpop.xlane.xlu1 %4670 }
0x247e   :  { %v8190_v15 = vpop.eup %8189 }
0x247f   :  { %v4314_v27 = vmul.f32 %v8190_v15, %v10161_v16  ;;  %v4322_v29 = vpack.c.bf16 %v4316_v53, %v4315_v61 }
0x2480   :  { %v4659_v46 = vpop.xlane.xlu0 %4658 }
0x2481   :  { %8193 = vrcp.f32 %v4659_v46  ;;  %v4321_v39 = vpack.c.bf16 %v4314_v27, %v4313_v62  ;;  %v4721_v59 = vpop.permute.xlu1 %4720 }
0x2482   :  { %8195 = vrcp.f32 %v4665_v45 }
0x2483   :  { %7553 = vmatprep.mubr.msk.bf16.mxu1 %vm415_vm13, %v4321_v39 }
0x2484   :  { %7554 = vmatmul.mubr.msk.bf16.gmra.mxu1 %vm415_vm13, %v4322_v29  ;;  %v4674_v3 = vpop.xlane.xlu0 %4673 }
0x2486   :  { %v8192_v35 = vpop.eup %8191 }
0x2487   :  { %v4702_v28 = vmul.f32 %v8192_v35, %v10171_v63 }
0x2488   :  { %v4668_v12 = vpop.xlane.xlu0 %4667 }
0x2489   :  { %8197 = vrcp.f32 %v4668_v12 }
0x248a   :  { %8199 = vrcp.f32 %v4662_v21 }
0x248b   :  { %8201 = vrcp.f32 %v4671_v17 }
0x248c   :  { %v4677_v10 = vpop.xlane.xlu0 %4676 }
0x248d   :  { %8203 = vrcp.f32 %v4677_v10 }
0x248e   :  { %v8194_v32 = vpop.eup %8193  ;;  %8205 = vrcp.f32 %v4674_v3 }
0x248f   :  { %v4703_v9 = vmul.f32 %v8194_v32, %v10185_v13  ;;  %v8196_v8 = vpop.eup %8195 }
0x2490   :  { %v4686_v16 = vpop.xlane.xlu0 %4685  ;;  %v4705_v21 = vmul.f32 %v8196_v8, %v10173_v58 }
0x2491   :  { %v4714_v40 = vpack.c.bf16 %v4703_v9, %v4702_v28 }
0x2493   :  { %7577 = vmatprep.mubr.msk.bf16.mxu1 %vm415_vm13, %v4714_v40 }
0x2494   :  { %v4680_v55 = vpop.xlane.xlu0 %4679 }
0x2496   :  { %v8198_v36 = vpop.eup %8197 }
0x2497   :  { %v8200_v38 = vpop.eup %8199  ;;  %v4706_v45 = vmul.f32 %v8198_v36, %v10195_v25 }
0x2498   :  { %v4689_v23 = vpop.xlane.xlu0 %4688  ;;  %v8202_v42 = vpop.eup %8201  ;;  %v4704_v44 = vmul.f32 %v8200_v38, %v10166_v4 }
0x2499   :  { %v4707_v15 = vmul.f32 %v8202_v42, %v10178_v6 }
0x249a   :  { %v4715_v53 = vpack.c.bf16 %v4705_v21, %v4704_v44  ;;  %v8204_v62 = vpop.eup %8203 }
0x249b   :  { %v4716_v27 = vpack.c.bf16 %v4707_v15, %v4706_v45  ;;  %v8206_v46 = vpop.eup %8205  ;;  %v4709_v25 = vmul.f32 %v8204_v62, %v10197_v0  ;;  %v7846_v0 = vld [vmem:[%s10990_s9 + $0x40] sm:$0xff]  }
0x249c   :  { %v4683_v41 = vpop.xlane.xlu0 %4682  ;;  %v4708_v39 = vmul.f32 %v8206_v46, %v10190_v24  ;;  %v7845_v24 = vld [vmem:[%s10990_s9 + $0x48] sm:$0xff]  }
0x249d   :  { %8207 = vrcp.f32 %v4683_v41  ;;  %7590 = vmatpush3.bf16.msra.mxu0 %v7845_v24 }
0x249e   :  { %8209 = vrcp.f32 %v4680_v55  ;;  %v4717_v29 = vpack.c.bf16 %v4709_v25, %v4708_v39  ;;  %7591 = vmatprep.subr.bf16.mxu0 %v8402_v1 }
0x249f   :  { %8211 = vrcp.f32 %v4689_v23 }
0x24a0   :  { %v4723_v63 = vpop.permute.xlu0 %4722  ;;  %8213 = vrcp.f32 %v4686_v16 }
0x24a1   :  { %v4744_v13 = vsel %vm577_vm14, %v4723_v63, 0  ;;  %7783 = vmatprep.subr.msk.bf16.mxu1 %vm577_vm14, %v4723_v63  ;;  %7592 = vmatpush3.bf16.msra.mxu0 %v7846_v0 }
0x24a2   :  { %7574 = vmatpush3.bf16.msra.mxu1 %v4744_v13  ;;  %7621 = vmatprep.subr.bf16.mxu0 %v8402_v1 }
0x24a3   :  { %7575 = vmatprep.subr.bf16.mxu1 %v4721_v59 }
0x24a6   :  { %7576 = vmatpush3.bf16.msra.mxu1 %v4721_v59 }
0x24a7   :  { %7605 = vmatprep.subr.bf16.mxu1 %v8402_v1 }
0x24a9   :  { %7578 = vmatmul.mubr.msk.bf16.vlgmr.msra.gmra.mxu1 %vm415_vm13, %v4715_v53 }
0x24aa   :  { %v8208_v61 = vpop.eup %8207  ;;  %7581 = vmatprep.mubr.msk.bf16.mxu1 %vm415_vm13, %v4716_v27 }
0x24ab   :  { %v8210_v58 = vpop.eup %8209  ;;  %v4711_v4 = vmul.f32 %v8208_v61, %v10217_v30 }
0x24ac   :  { %v4710_v6 = vmul.f32 %v8210_v58, %v10209_v49  ;;  %v8212_v3 = vpop.eup %8211  ;;  %v7848_v49 = vld [vmem:[%s10988_s7 + $0x50] sm:$0xff]  }
0x24ad   :  { %v8214_v35 = vpop.eup %8213  ;;  %v4713_v10 = vmul.f32 %v8212_v3, %v10213_v14 }
0x24ae   :  { %v4718_v12 = vpack.c.bf16 %v4711_v4, %v4710_v6  ;;  %v4712_v32 = vmul.f32 %v8214_v35, %v10203_v33  ;;  %v7847_v33 = vld [vmem:[%s10988_s7 + $0x58] sm:$0xff]  }
0x24af   :  { %7606 = vmatpush3.bf16.msra.mxu1 %v7847_v33 }
0x24b0   :  { %v4719_v28 = vpack.c.bf16 %v4713_v10, %v4712_v32  ;;  %7607 = vmatprep.subr.bf16.mxu1 %v8402_v1 }
0x24b1   :  { %7582 = vmatmul.mubr.msk.bf16.gmra.mxu1 %vm415_vm13, %v4717_v29 }
0x24b2   :  { %7585 = vmatprep.mubr.msk.bf16.mxu1 %vm415_vm13, %v4718_v12 }
0x24b3   :  { %7608 = vmatpush3.bf16.msra.mxu1 %v7848_v49 }
0x24b9   :  { %7586 = vmatmul.mubr.msk.bf16.gmra.mxu1 %vm415_vm13, %v4719_v28 }
0x24ba   :  { %7609 = vmatprep.mubr.msk.bf16.mxu1 %vm8403_vm0, %v8402_v1 }
0x2534   :  { %v7547_v14 = vpop.f32.mrf.mxu1 }
0x2535   :  { %v4432_v24 = vmul.f32 %v7547_v14, %v8594_v47 }
0x2536   :  { %v4383_v30 = vpop.f32.mrf.mxu1 }
0x2537   :  { %v4430_v38 = vmul.f32 %v8594_v47, %v4383_v30 }
0x2538   :  { %v7548_v9 = vpop.f32.mrf.mxu1 }
0x2539   :  { %v4433_v63 = vmul.f32 %v7548_v9, %v8600_v50 }
0x253a   :  { %v4386_v16 = vpop.f32.mrf.mxu1 }
0x253b   :  { %v4431_v36 = vmul.f32 %v8594_v47, %v4386_v16  ;;  %v4436_v44 = vadd.f32 %v4433_v63, %v4430_v38 }
0x253c   :  { %v7551_v40 = vpop.f32.mrf.mxu1 }
0x253d   :  { %v4439_v59 = vmul.f32 %v7551_v40, %v8597_v48 }
0x253e   :  { %v4399_v17 = vpop.f32.mrf.mxu1 }
0x253f   :  { %v4434_v41 = vmul.f32 %v8600_v50, %v4399_v17  ;;  %v4442_v62 = vadd.f32 %v4439_v59, %v4436_v44 }
0x2540   :  { %v7552_v55 = vpop.f32.mrf.mxu1 }
0x2541   :  { %v4437_v42 = vadd.f32 %v4434_v41, %v4431_v36  ;;  %v4440_v21 = vmul.f32 %v7552_v55, %v8597_v48 }
0x2542   :  { %v4402_v23 = vpop.f32.mrf.mxu1 }
0x2543   :  { %v4443_v27 = vadd.f32 %v4440_v21, %v4437_v42  ;;  %v4435_v32 = vmul.f32 %v8600_v50, %v4402_v23 }
0x2544   :  { %v7555_v8 = vpop.f32.mrf.mxu1 }
0x2545   :  { %v4446_v15 = vmul.f32 %v7555_v8, %v8603_v52  ;;  %v4438_v9 = vadd.f32 %v4435_v32, %v4432_v24 }
0x2546   :  { %v4415_v13 = vpop.f32.mrf.mxu1 }
0x2547   :  { %v4449_v61 = vadd.f32 %v4446_v15, %v4443_v27  ;;  %v4441_v0 = vmul.f32 %v8597_v48, %v4415_v13 }
0x2548   :  { %v7556_v45 = vpop.f32.mrf.mxu1 }
0x2549   :  { %v4444_v17 = vadd.f32 %v4441_v0, %v4438_v9  ;;  %v4447_v55 = vmul.f32 %v7556_v45, %v8603_v52 }
0x254a   :  { %v4418_v53 = vpop.f32.mrf.mxu1 }
0x254b   :  { %v4445_v46 = vmul.f32 %v8603_v52, %v4418_v53  ;;  %v4450_v42 = vadd.f32 %v4447_v55, %v4444_v17 }
0x254d   :  { %v4448_v58 = vadd.f32 %v4445_v46, %v4442_v62 }
0x254f   :  { %v4848_v25 = vpack.c.bf16 %v4449_v61, %v4448_v58 }
0x2551   :  { %7594 = vmatmul.mubr.msk.bf16.vlgmr.msra.gmra.mxu0 %vm213_vm2, %v4848_v25 }
0x2552   :  { %7597 = vmatprep.mubr.msk.bf16.mxu0 %vm8403_vm0, %v8402_v1  ;;  %7622 = vmatpush3.bf16.msra.mxu0 %v7847_v33 }
0x2553   :  { %7623 = vmatprep.subr.bf16.mxu0 %v8402_v1 }
0x2556   :  { %7624 = vmatpush3.bf16.msra.mxu0 %v7848_v49 }
0x2569   :  { %v7579_v4 = vpop.f32.mrf.mxu1 }
0x256a   :  { %v4829_v63 = vmul.f32 %v7579_v4, %v8594_v47 }
0x256b   :  { %v4780_v39 = vpop.f32.mrf.mxu1 }
0x256c   :  { %v4827_v49 = vmul.f32 %v8594_v47, %v4780_v39  ;;  %v10318_v39 = vld [vmem:[%s10991_s10 + $0x10] sm:$0xf] }
0x256d   :  { %v7580_v6 = vpop.f32.mrf.mxu1 }
0x256e   :  { %v4830_v33 = vmul.f32 %v7580_v6, %v8600_v50  ;;  %v4854_v6 = vrot.slane %v10318_v39, %v8684_v2 }
0x256f   :  { %v4783_v29 = vpop.f32.mrf.mxu1 }
0x2570   :  { %v4833_v41 = vadd.f32 %v4830_v33, %v4827_v49  ;;  %v4828_v59 = vmul.f32 %v8594_v47, %v4783_v29 }
0x2571   :  { %v7583_v3 = vpop.f32.mrf.mxu1 }
0x2572   :  { %v4836_v16 = vmul.f32 %v7583_v3, %v8597_v48 }
0x2573   :  { %v4796_v12 = vpop.f32.mrf.mxu1 }
0x2574   :  { %v4831_v8 = vmul.f32 %v8600_v50, %v4796_v12  ;;  %v4839_v36 = vadd.f32 %v4836_v16, %v4833_v41 }
0x2575   :  { %v7584_v35 = vpop.f32.mrf.mxu1 }
0x2576   :  { %v4834_v15 = vadd.f32 %v4831_v8, %v4828_v59  ;;  %v4837_v45 = vmul.f32 %v7584_v35, %v8597_v48 }
0x2577   :  { %v4799_v10 = vpop.f32.mrf.mxu1 }
0x2578   :  { %v4832_v23 = vmul.f32 %v8600_v50, %v4799_v10  ;;  %v4840_v61 = vadd.f32 %v4837_v45, %v4834_v15 }
0x2579   :  { %v7587_v28 = vpop.f32.mrf.mxu1 }
0x257a   :  { %v4835_v21 = vadd.f32 %v4832_v23, %v4829_v63  ;;  %v4843_v46 = vmul.f32 %v7587_v28, %v8603_v52 }
0x257b   :  { %v4812_v30 = vpop.f32.mrf.mxu1 }
0x257c   :  { %v4838_v13 = vmul.f32 %v8597_v48, %v4812_v30  ;;  %v4846_v25 = vadd.f32 %v4843_v46, %v4840_v61 }
0x257d   :  { %v7588_v40 = vpop.f32.mrf.mxu1 }
0x257e   :  { %v4841_v53 = vadd.f32 %v4838_v13, %v4835_v21  ;;  %v4844_v62 = vmul.f32 %v7588_v40, %v8603_v52 }
0x257f   :  { %v4815_v14 = vpop.f32.mrf.mxu1 }
0x2580   :  { %v4842_v38 = vmul.f32 %v8603_v52, %v4815_v14  ;;  %v4847_v58 = vadd.f32 %v4844_v62, %v4841_v53 }
0x2582   :  { %v4845_v44 = vadd.f32 %v4842_v38, %v4839_v36  ;;  %v4850_v4 = vpack.c.bf16 %v4847_v58, %v4846_v25 }
0x2584   :  { %v4849_v27 = vpack.c.bf16 %v4845_v44, %v4450_v42 }
0x2586   :  { %7598 = vmatmul.mubr.msk.bf16.gmra.mxu0 %vm213_vm2, %v4849_v27 }
0x2587   :  { %7601 = vmatprep.mubr.msk.bf16.mxu0 %vm8403_vm0, %v8402_v1 }
0x258e   :  { %7602 = vmatmul.mubr.msk.bf16.gmra.mxu0 %vm213_vm2, %v4850_v4 }
0x258f   :  { %7625 = vmatprep.mubr.msk.bf16.mxu0 %vm8403_vm0, %v8402_v1 }
0x2596   :  { %7626 = vmatmul.mubr.msk.bf16.vlgmr.msra.gmra.mxu0 %vm213_vm2, %v9452_v18 }
0x2611   :  { %v4910_v29 = vpop.f32.mrf.mxu0 }
0x2612   :  { %v4911_v3 = vadd.f32 %v4910_v29, %v4854_v6 }
0x2613   :  { %v7595_v12 = vpop.f32.mrf.mxu0 }
0x2614   :  { %v4933_v35 = vadd.f32 %v4911_v3, %v9230_v60 }
0x2615   :  { %v4913_v10 = vpop.f32.mrf.mxu0 }
0x2616   :  { %v4914_v32 = vadd.f32 %v4913_v10, %v4854_v6  ;;  %v4939_v28 = vsel %vm213_vm2, %v4933_v35, 0.0 }
0x2617   :  { %4940 = vadd.xlane.f32.xlu0 %v4939_v28  ;;  %v7596_v24 = vpop.f32.mrf.mxu0 }
0x2618   :  { %v4934_v18 = vadd.f32 %v4914_v32, %v9587_v22 }
0x261a   :  { %v4942_v0 = vsel %vm213_vm2, %v4934_v18, 0.0 }
0x261b   :  { %4943 = vadd.xlane.f32.xlu1 %v4942_v0 }
0x2646   :  { %v4918_v33 = vpop.f32.mrf.mxu0 }
0x2647   :  { %v4919_v30 = vadd.f32 %v4918_v33, %v4854_v6 }
0x2648   :  { %v7599_v9 = vpop.f32.mrf.mxu0 }
0x2649   :  { %v4935_v49 = vadd.f32 %v4919_v30, %v9629_v43 }
0x264a   :  { %v4921_v16 = vpop.f32.mrf.mxu0 }
0x264b   :  { %v4922_v40 = vadd.f32 %v4921_v16, %v4854_v6  ;;  %v4945_v60 = vsel %vm213_vm2, %v4935_v49, 0.0 }
0x264c   :  { %4946 = vadd.xlane.f32.xlu0 %v4945_v60  ;;  %v7600_v17 = vpop.f32.mrf.mxu0 }
0x264d   :  { %v4936_v55 = vadd.f32 %v4922_v40, %v9227_v7  ;;  %v10359_v17 = vld [vmem:[%s10989_s8 + $0x5] ss:$0 sm:$0xff] }
0x264e   :  { %v4926_v41 = vpop.f32.mrf.mxu0 }
0x264f   :  { %v4927_v23 = vadd.f32 %v4926_v41, %v4854_v6  ;;  %v4948_v22 = vsel %vm213_vm2, %v4936_v55, 0.0 }
0x2650   :  { %4949 = vadd.xlane.f32.xlu0 %v4948_v22  ;;  %v7603_v8 = vpop.f32.mrf.mxu0 }
0x2651   :  { %v4937_v14 = vadd.f32 %v4927_v23, %v9642_v11 }
0x2652   :  { %v4929_v63 = vpop.f32.mrf.mxu0 }
0x2653   :  { %v4930_v36 = vadd.f32 %v4929_v63, %v4854_v6  ;;  %v4951_v43 = vsel %vm213_vm2, %v4937_v14, 0.0 }
0x2654   :  { %4952 = vadd.xlane.f32.xlu0 %v4951_v43  ;;  %v7604_v13 = vpop.f32.mrf.mxu0 }
0x2655   :  { %v4938_v38 = vadd.f32 %v4930_v36, %v9645_v54 }
0x2656   :  { %v5172_v59 = vpop.f32.mrf.mxu0 }
0x2657   :  { %v4954_v42 = vsel %vm213_vm2, %v4938_v38, 0.0  ;;  %v5173_v41 = vadd.f32 %v10359_v17, %v5172_v59  ;;  %v5020_v59 = vrot.slane %v10318_v39, %v8731_v34 }
0x2658   :  { %4955 = vadd.xlane.f32.xlu1 %v4954_v42  ;;  %v7627_v7 = vpop.f32.mrf.mxu0 }
0x2659   :  { %v10365_v22 = vpack.c.bf16 %v5173_v41, %v5173_v41 }
0x265a   :  { %v5175_v21 = vpop.f32.mrf.mxu0 }
0x265c   :  { %v7628_v44 = vpop.f32.mrf.mxu0 }
0x26a0   :  { %v4941_v15 = vpop.xlane.xlu0 %4940 }
0x26a1   :  { %v4957_v45 = vmul.f32 0.03125, %v4941_v15 }
0x26a3   :  { %v4963_v53 = vsub.f32 %v4933_v35, %v4957_v45 }
0x26a4   :  { %v4944_v62 = vpop.xlane.xlu1 %4943 }
0x26a5   :  { %v4958_v11 = vmul.f32 0.03125, %v4944_v62  ;;  %v4969_v27 = vmul.f32 %v4963_v53, %v4963_v53 }
0x26a7   :  { %v4964_v46 = vsub.f32 %v4934_v18, %v4958_v11  ;;  %v4975_v61 = vsel %vm213_vm2, %v4969_v27, 0.0 }
0x26a8   :  { %4976 = vadd.xlane.f32.xlu0 %v4975_v61 }
0x26a9   :  { %v4970_v58 = vmul.f32 %v4964_v46, %v4964_v46 }
0x26ab   :  { %v4978_v54 = vsel %vm213_vm2, %v4970_v58, 0.0 }
0x26ac   :  { %4979 = vadd.xlane.f32.xlu1 %v4978_v54 }
0x26d5   :  { %v4947_v25 = vpop.xlane.xlu0 %4946 }
0x26d6   :  { %v4959_v4 = vmul.f32 0.03125, %v4947_v25 }
0x26d8   :  { %v10336_v6 = vsub.f32 %v4935_v49, %v4959_v4 }
0x26d9   :  { %v4950_v29 = vpop.xlane.xlu0 %4949 }
0x26da   :  { %v4960_v3 = vmul.f32 0.03125, %v4950_v29  ;;  %v4971_v12 = vmul.f32 %v10336_v6, %v10336_v6 }
0x26dc   :  { %v10340_v35 = vsub.f32 %v4936_v55, %v4960_v3  ;;  %v4981_v10 = vsel %vm213_vm2, %v4971_v12, 0.0  ;;  %v5176_v55 = vadd.f32 %v10359_v17, %v5175_v21  ;;  %v5030_v21 = vrot.slane %v10318_v39, %v9073_v37 }
0x26dd   :  { %4982 = vadd.xlane.f32.xlu0 %v4981_v10  ;;  %v4953_v32 = vpop.xlane.xlu0 %4952 }
0x26de   :  { %v4961_v28 = vmul.f32 0.03125, %v4953_v32  ;;  %v4972_v24 = vmul.f32 %v10340_v35, %v10340_v35  ;;  %v10363_v23 = vpack.c.bf16 %v5176_v55, %v5176_v55 }
0x26e0   :  { %v10345_v18 = vsub.f32 %v4937_v14, %v4961_v28  ;;  %v4984_v0 = vsel %vm213_vm2, %v4972_v24, 0.0 }
0x26e1   :  { %4985 = vadd.xlane.f32.xlu1 %v4984_v0  ;;  %v4956_v33 = vpop.xlane.xlu1 %4955 }
0x26e2   :  { %v4962_v30 = vmul.f32 0.03125, %v4956_v33  ;;  %v4973_v9 = vmul.f32 %v10345_v18, %v10345_v18 }
0x26e4   :  { %v10350_v49 = vsub.f32 %v4938_v38, %v4962_v30  ;;  %v4987_v16 = vsel %vm213_vm2, %v4973_v9, 0.0 }
0x26e5   :  { %4988 = vadd.xlane.f32.xlu0 %v4987_v16 }
0x26e6   :  { %v4974_v40 = vmul.f32 %v10350_v49, %v10350_v49 }
0x26e8   :  { %v4990_v60 = vsel %vm213_vm2, %v4974_v40, 0.0 }
0x26e9   :  { %4991 = vadd.xlane.f32.xlu1 %v4990_v60 }
0x26fa   :  { %5586 = vrot.lane.b32.xlu1 %v10363_v23, %s8404_s0 }
0x26fb   :  { %5199 = vrot.lane.b32.xlu0 %v10365_v22, %s8404_s0 }
0x2731   :  { %v4977_v8 = vpop.xlane.xlu0 %4976 }
0x2732   :  { %v4993_v14 = vmul.f32 0.03125, %v4977_v8 }
0x2734   :  { %v4999_v63 = vadd.f32 1e-12, %v4993_v14 }
0x2735   :  { %v4980_v36 = vpop.xlane.xlu1 %4979 }
0x2736   :  { %8215 = vrsqrt.f32 %v4999_v63  ;;  %v4994_v43 = vmul.f32 0.03125, %v4980_v36 }
0x2738   :  { %v5000_v13 = vadd.f32 1e-12, %v4994_v43 }
0x273a   :  { %8217 = vrsqrt.f32 %v5000_v13 }
0x2743   :  { %v8216_v38 = vpop.eup %8215 }
0x2744   :  { %v5011_v42 = vmul.f32 %v8216_v38, %v4963_v53 }
0x2746   :  { %v5021_v44 = vmul.f32 %v5020_v59, %v5011_v42 }
0x2747   :  { %v8218_v7 = vpop.eup %8217 }
0x2748   :  { %v5012_v15 = vmul.f32 %v8218_v7, %v4964_v46  ;;  %v10375_v62 = vadd.f32 %v5030_v21, %v5021_v44 }
0x274a   :  { %v5022_v45 = vmul.f32 %v5020_v59, %v5012_v15 }
0x274c   :  { %v10377_v11 = vadd.f32 %v5030_v21, %v5022_v45 }
0x274e   :  { %v5051_v27 = vpack.c.bf16 %v10377_v11, %v10375_v62 }
0x2750   :  { %7610 = vmatmul.mubr.msk.bf16.vlgmr.msra.gmra.mxu1 %vm213_vm2, %v5051_v27 }
0x2751   :  { %7613 = vmatprep.mubr.msk.bf16.mxu1 %vm8403_vm0, %v8402_v1 }
0x2766   :  { %v4983_v53 = vpop.xlane.xlu0 %4982 }
0x2767   :  { %v4995_v61 = vmul.f32 0.03125, %v4983_v53 }
0x2769   :  { %v5001_v58 = vadd.f32 1e-12, %v4995_v61 }
0x276a   :  { %v4986_v54 = vpop.xlane.xlu1 %4985 }
0x276b   :  { %8219 = vrsqrt.f32 %v5001_v58  ;;  %v4996_v39 = vmul.f32 0.03125, %v4986_v54 }
0x276d   :  { %v5002_v46 = vadd.f32 1e-12, %v4996_v39 }
0x276e   :  { %v4989_v25 = vpop.xlane.xlu0 %4988 }
0x276f   :  { %8221 = vrsqrt.f32 %v5002_v46  ;;  %v4997_v4 = vmul.f32 0.03125, %v4989_v25 }
0x2771   :  { %v5003_v29 = vadd.f32 1e-12, %v4997_v4 }
0x2772   :  { %v4992_v3 = vpop.xlane.xlu1 %4991  ;;  %v5200_v12 = vpop.permute.xlu0 %5199 }
0x2773   :  { %8223 = vrsqrt.f32 %v5003_v29  ;;  %v4998_v10 = vmul.f32 0.03125, %v4992_v3  ;;  %v5220_v32 = vsel %vm213_vm2, %v5200_v12, 0  ;;  %7784 = vmatprep.subr.msk.bf16.mxu1 %vm213_vm2, %v5200_v12 }
0x2774   :  { %7630 = vmatpush3.bf16.xpose.msra.mxu1 %v5220_v32 }
0x2775   :  { %v5004_v28 = vadd.f32 1e-12, %v4998_v10 }
0x2776   :  { %v5587_v24 = vpop.permute.xlu1 %5586 }
0x2777   :  { %8225 = vrsqrt.f32 %v5004_v28  ;;  %7786 = vmatprep.subr.msk.bf16.mxu1 %vm213_vm2, %v5587_v24  ;;  %v5607_v12 = vsel %vm213_vm2, %v5587_v24, 0 }
0x2778   :  { %v8220_v0 = vpop.eup %8219 }
0x2779   :  { %v5013_v33 = vmul.f32 %v8220_v0, %v10336_v6 }
0x277b   :  { %v5023_v16 = vmul.f32 %v5020_v59, %v5013_v33 }
0x277c   :  { %v8222_v30 = vpop.eup %8221 }
0x277d   :  { %v5014_v9 = vmul.f32 %v8222_v30, %v10340_v35  ;;  %v10390_v41 = vadd.f32 %v5030_v21, %v5023_v16 }
0x277f   :  { %v5024_v40 = vmul.f32 %v5020_v59, %v5014_v9 }
0x2780   :  { %v8224_v60 = vpop.eup %8223 }
0x2781   :  { %v5015_v55 = vmul.f32 %v8224_v60, %v10345_v18  ;;  %v10392_v8 = vadd.f32 %v5030_v21, %v5024_v40 }
0x2783   :  { %v5052_v14 = vpack.c.bf16 %v10392_v8, %v10390_v41  ;;  %v5025_v6 = vmul.f32 %v5020_v59, %v5015_v55 }
0x2784   :  { %v8226_v63 = vpop.eup %8225 }
0x2785   :  { %v5016_v36 = vmul.f32 %v8226_v63, %v10350_v49  ;;  %7614 = vmatmul.mubr.msk.bf16.gmra.mxu1 %vm213_vm2, %v5052_v14  ;;  %v10400_v43 = vadd.f32 %v5030_v21, %v5025_v6 }
0x2786   :  { %7617 = vmatprep.mubr.msk.bf16.mxu1 %vm8403_vm0, %v8402_v1 }
0x2787   :  { %v5026_v35 = vmul.f32 %v5020_v59, %v5016_v36 }
0x2789   :  { %v10402_v18 = vadd.f32 %v5030_v21, %v5026_v35 }
0x278b   :  { %v5053_v13 = vpack.c.bf16 %v10402_v18, %v10400_v43 }
0x278d   :  { %7618 = vmatmul.mubr.msk.bf16.gmra.mxu1 %vm213_vm2, %v5053_v13 }
0x2810   :  { %v5115_v38 = vpop.f32.mrf.mxu1 }
0x2811   :  { %v5116_v49 = vadd.f32 %v10359_v17, %v5115_v38 }
0x2812   :  { %v7611_v42 = vpop.f32.mrf.mxu1 }
0x2813   :  { %v5179_v45 = vmul.f32 %v8594_v47, %v5116_v49  ;;  %v5182_v58 = vmul.f32 %v8600_v50, %v5116_v49  ;;  %v5185_v33 = vmul.f32 %v8597_v48, %v5116_v49  ;;  %v5188_v30 = vmul.f32 %v8603_v52, %v5116_v49 }
0x2814   :  { %v5118_v7 = vpop.f32.mrf.mxu1 }
0x2815   :  { %v5119_v44 = vadd.f32 %v10359_v17, %v5118_v7 }
0x2816   :  { %v7612_v15 = vpop.f32.mrf.mxu1 }
0x2817   :  { %v5180_v59 = vmul.f32 %v8594_v47, %v5119_v44  ;;  %v5183_v54 = vmul.f32 %v8600_v50, %v5119_v44  ;;  %v5186_v32 = vmul.f32 %v8597_v48, %v5119_v44  ;;  %v5189_v36 = vmul.f32 %v8603_v52, %v5119_v44 }
0x2819   :  { %v5191_v27 = vpack.c.bf16 %v5180_v59, %v5179_v45  ;;  %v5194_v16 = vpack.c.bf16 %v5186_v32, %v5185_v33 }
0x281b   :  { %7631 = vmatprep.mubr.msk.bf16.mxu1 %vm213_vm2, %v5191_v27 }
0x2845   :  { %v5123_v21 = vpop.f32.mrf.mxu1 }
0x2846   :  { %v5124_v53 = vadd.f32 %v10359_v17, %v5123_v21 }
0x2847   :  { %v7615_v61 = vpop.f32.mrf.mxu1 }
0x2848   :  { %v5181_v39 = vmul.f32 %v8594_v47, %v5124_v53  ;;  %v5184_v46 = vmul.f32 %v8600_v50, %v5124_v53  ;;  %v5187_v28 = vmul.f32 %v8597_v48, %v5124_v53  ;;  %v5190_v14 = vmul.f32 %v8603_v52, %v5124_v53 }
0x2849   :  { %v5126_v25 = vpop.f32.mrf.mxu1 }
0x284a   :  { %v5192_v4 = vpack.c.bf16 %v5182_v58, %v5181_v39  ;;  %v5193_v29 = vpack.c.bf16 %v5184_v46, %v5183_v54  ;;  %v5195_v60 = vpack.c.bf16 %v5188_v30, %v5187_v28  ;;  %v5127_v55 = vadd.f32 %v10359_v17, %v5126_v25 }
0x284b   :  { %v7616_v3 = vpop.f32.mrf.mxu1  ;;  %v5196_v35 = vpack.c.bf16 %v5190_v14, %v5189_v36 }
0x284c   :  { %7632 = vmatmul.mubr.msk.bf16.vlgmr.msra.gmra.mxu1 %vm213_vm2, %v5192_v4  ;;  %v5566_v6 = vmul.f32 %v8594_v47, %v5127_v55  ;;  %v5569_v7 = vmul.f32 %v8600_v50, %v5127_v55  ;;  %v5572_v27 = vmul.f32 %v8597_v48, %v5127_v55  ;;  %v5575_v21 = vmul.f32 %v8603_v52, %v5127_v55 }
0x284d   :  { %7658 = vmatpush3.bf16.xpose.msra.mxu1 %v5607_v12  ;;  %v5131_v10 = vpop.f32.mrf.mxu1  ;;  %7635 = vmatprep.mubr.msk.bf16.mxu1 %vm213_vm2, %v5193_v29 }
0x284e   :  { %7685 = vmatprep.subr.bf16.mxu1 %v8402_v1  ;;  %v5132_v24 = vadd.f32 %v10359_v17, %v5131_v10 }
0x284f   :  { %v7619_v0 = vpop.f32.mrf.mxu1 }
0x2850   :  { %v5567_v63 = vmul.f32 %v8594_v47, %v5132_v24  ;;  %v5570_v15 = vmul.f32 %v8600_v50, %v5132_v24  ;;  %v5576_v54 = vmul.f32 %v8603_v52, %v5132_v24 }
0x2851   :  { %v5134_v9 = vpop.f32.mrf.mxu1 }
0x2852   :  { %v5135_v13 = vadd.f32 %v10359_v17, %v5134_v9  ;;  %v5578_v38 = vpack.c.bf16 %v5567_v63, %v5566_v6  ;;  %v5573_v17 = vmul.f32 %v8597_v48, %v5132_v24 }
0x2853   :  { %v7620_v40 = vpop.f32.mrf.mxu1 }
0x2854   :  { %7636 = vmatmul.mubr.msk.bf16.gmra.mxu1 %vm213_vm2, %v5194_v16  ;;  %v5568_v42 = vmul.f32 %v8594_v47, %v5135_v13  ;;  %v5571_v49 = vmul.f32 %v8600_v50, %v5135_v13  ;;  %v5574_v59 = vmul.f32 %v8597_v48, %v5135_v13  ;;  %v5581_v53 = vpack.c.bf16 %v5573_v17, %v5572_v27 }
0x2855   :  { %7639 = vmatprep.mubr.msk.bf16.mxu1 %vm213_vm2, %v5195_v60  ;;  %v5577_v58 = vmul.f32 %v8603_v52, %v5135_v13 }
0x2856   :  { %v5579_v45 = vpack.c.bf16 %v5569_v7, %v5568_v42  ;;  %v5580_v44 = vpack.c.bf16 %v5571_v49, %v5570_v15  ;;  %v5582_v61 = vpack.c.bf16 %v5575_v21, %v5574_v59 }
0x2857   :  { %v5583_v39 = vpack.c.bf16 %v5577_v58, %v5576_v54 }
0x285c   :  { %7640 = vmatmul.mubr.msk.bf16.gmra.mxu1 %vm213_vm2, %v5196_v35 }
0x285d   :  { %7659 = vmatprep.mubr.msk.bf16.mxu1 %vm213_vm2, %v5578_v38 }
0x2864   :  { %7660 = vmatmul.mubr.msk.bf16.vlgmr.msra.gmra.mxu1 %vm213_vm2, %v5579_v45 }
0x2865   :  { %7663 = vmatprep.mubr.msk.bf16.mxu1 %vm213_vm2, %v5580_v44 }
0x286c   :  { %7664 = vmatmul.mubr.msk.bf16.gmra.mxu1 %vm213_vm2, %v5581_v53 }
0x286d   :  { %7667 = vmatprep.mubr.msk.bf16.mxu1 %vm213_vm2, %v5582_v61 }
0x2874   :  { %7668 = vmatmul.mubr.msk.bf16.gmra.mxu1 %vm213_vm2, %v5583_v39 }
0x2875   :  { %7689 = vmatprep.mubr.msk.bf16.mxu1 %vm8403_vm0, %v8402_v1 }
0x290c   :  { %v7633_v46 = vpop.f32.mrf.mxu1 }
0x290d   :  { %v10465_v0 = vadd.f32 %v7633_v46, %v9301_v5 }
0x290e   :  { %v5256_v25 = vpop.f32.mrf.mxu1 }
0x290f   :  { %v10454_v4 = vadd.f32 %v5256_v25, %v9301_v5  ;;  %v5309_v40 = vsel %vm1922_vm1, %v10465_v0, -inf }
0x2910   :  { %v7634_v29 = vpop.f32.mrf.mxu1 }
0x2911   :  { %v10457_v3 = vadd.f32 %v7634_v29, %v9301_v5  ;;  %v5303_v12 = vsel %vm1922_vm1, %v10454_v4, -inf }
0x2912   :  { %v5259_v10 = vpop.f32.mrf.mxu1  ;;  %5304 = vmax.xlane.f32.xlu1 %v5303_v12 }
0x2913   :  { %v10462_v32 = vadd.f32 %v5259_v10, %v9301_v5  ;;  %v5312_v30 = vsel %vm1922_vm1, %v10457_v3, -inf }
0x2914   :  { %v7637_v28 = vpop.f32.mrf.mxu1 }
0x2915   :  { %v5306_v33 = vsel %vm1922_vm1, %v10462_v32, -inf  ;;  %v10480_v63 = vadd.f32 %v7637_v28, %v9301_v5 }
0x2916   :  { %v5272_v9 = vpop.f32.mrf.mxu1  ;;  %5307 = vmax.xlane.f32.xlu0 %v5306_v33  ;;  %5313 = vmax.xlane.f32.xlu1 %v5312_v30 }
0x2917   :  { %v10472_v24 = vadd.f32 %v5272_v9, %v9301_v5  ;;  %v5321_v49 = vsel %vm1922_vm1, %v10480_v63, -inf }
0x2918   :  { %v7638_v16 = vpop.f32.mrf.mxu1 }
0x2919   :  { %v10483_v36 = vadd.f32 %v7638_v16, %v9301_v5  ;;  %v5315_v6 = vsel %vm1922_vm1, %v10472_v24, -inf }
0x291a   :  { %v5275_v60 = vpop.f32.mrf.mxu1  ;;  %5310 = vmax.xlane.f32.xlu0 %v5309_v40 }
0x291b   :  { %v10477_v55 = vadd.f32 %v5275_v60, %v9301_v5  ;;  %v5324_v7 = vsel %vm1922_vm1, %v10483_v36, -inf }
0x291c   :  { %v7641_v14 = vpop.f32.mrf.mxu1 }
0x291d   :  { %v5318_v35 = vsel %vm1922_vm1, %v10477_v55, -inf  ;;  %v10500_v17 = vadd.f32 %v7641_v14, %v9301_v5 }
0x291e   :  { %v5288_v13 = vpop.f32.mrf.mxu1  ;;  %5316 = vmax.xlane.f32.xlu0 %v5315_v6  ;;  %5319 = vmax.xlane.f32.xlu1 %v5318_v35 }
0x291f   :  { %v10490_v42 = vadd.f32 %v5288_v13, %v9301_v5  ;;  %v5333_v54 = vsel %vm1922_vm1, %v10500_v17, -inf }
0x2920   :  { %v7642_v38 = vpop.f32.mrf.mxu1 }
0x2921   :  { %v10503_v59 = vadd.f32 %v7642_v38, %v9301_v5  ;;  %v5327_v27 = vsel %vm1922_vm1, %v10490_v42, -inf }
0x2922   :  { %v5291_v15 = vpop.f32.mrf.mxu1  ;;  %5322 = vmax.xlane.f32.xlu0 %v5321_v49  ;;  %5325 = vmax.xlane.f32.xlu1 %v5324_v7 }
0x2923   :  { %v10497_v45 = vadd.f32 %v5291_v15, %v9301_v5  ;;  %v5336_v5 = vsel %vm1922_vm1, %v10503_v59, -inf }
0x2924   :  { %v7661_v44 = vpop.f32.mrf.mxu1 }
0x2925   :  { %v5330_v21 = vsel %vm1922_vm1, %v10497_v45, -inf  ;;  %v10520_v29 = vadd.f32 %v7661_v44, %v9309_v26 }
0x2926   :  { %5328 = vmax.xlane.f32.xlu0 %v5327_v27  ;;  %5331 = vmax.xlane.f32.xlu1 %v5330_v21  ;;  %v5643_v53 = vpop.f32.mrf.mxu1 }
0x2927   :  { %v10510_v58 = vadd.f32 %v5643_v53, %v9309_v26  ;;  %v5696_v40 = vsel %vm1922_vm1, %v10520_v29, -inf }
0x2928   :  { %v7662_v61 = vpop.f32.mrf.mxu1 }
0x2929   :  { %v10523_v12 = vadd.f32 %v7662_v61, %v9309_v26  ;;  %v5690_v28 = vsel %vm1922_vm1, %v10510_v58, -inf }
0x292a   :  { %5334 = vmax.xlane.f32.xlu0 %v5333_v54  ;;  %5337 = vmax.xlane.f32.xlu1 %v5336_v5  ;;  %v5646_v39 = vpop.f32.mrf.mxu1 }
0x292b   :  { %v10517_v46 = vadd.f32 %v5646_v39, %v9309_v26  ;;  %v5699_v16 = vsel %vm1922_vm1, %v10523_v12, -inf }
0x292c   :  { %v7665_v25 = vpop.f32.mrf.mxu1 }
0x292d   :  { %v5693_v10 = vsel %vm1922_vm1, %v10517_v46, -inf  ;;  %v10540_v35 = vadd.f32 %v7665_v25, %v9309_v26 }
0x292e   :  { %v5659_v33 = vpop.f32.mrf.mxu1  ;;  %5694 = vmax.xlane.f32.xlu1 %v5693_v10  ;;  %5691 = vmax.xlane.f32.xlu0 %v5690_v28 }
0x292f   :  { %v10530_v9 = vadd.f32 %v5659_v33, %v9309_v26  ;;  %v5708_v21 = vsel %vm1922_vm1, %v10540_v35, -inf }
0x2930   :  { %v7666_v30 = vpop.f32.mrf.mxu1 }
0x2931   :  { %v10543_v13 = vadd.f32 %v7666_v30, %v9309_v26  ;;  %v5702_v49 = vsel %vm1922_vm1, %v10530_v9, -inf }
0x2932   :  { %v5662_v60 = vpop.f32.mrf.mxu1  ;;  %5700 = vmax.xlane.f32.xlu1 %v5699_v16  ;;  %5697 = vmax.xlane.f32.xlu0 %v5696_v40 }
0x2933   :  { %v10537_v14 = vadd.f32 %v5662_v60, %v9309_v26  ;;  %v5711_v27 = vsel %vm1922_vm1, %v10543_v13, -inf }
0x2934   :  { %v7669_v6 = vpop.f32.mrf.mxu1 }
0x2935   :  { %v5705_v38 = vsel %vm1922_vm1, %v10537_v14, -inf  ;;  %v10560_v54 = vadd.f32 %v7669_v6, %v9309_v26 }
0x2936   :  { %v5675_v7 = vpop.f32.mrf.mxu1  ;;  %5706 = vmax.xlane.f32.xlu1 %v5705_v38  ;;  %5703 = vmax.xlane.f32.xlu0 %v5702_v49 }
0x2937   :  { %v10550_v44 = vadd.f32 %v5675_v7, %v9309_v26  ;;  %v5720_v28 = vsel %vm1922_vm1, %v10560_v54, -inf }
0x2938   :  { %v7670_v15 = vpop.f32.mrf.mxu1 }
0x2939   :  { %v10563_v5 = vadd.f32 %v7670_v15, %v9309_v26  ;;  %v5714_v25 = vsel %vm1922_vm1, %v10550_v44, -inf }
0x293a   :  { %v5678_v53 = vpop.f32.mrf.mxu1  ;;  %5712 = vmax.xlane.f32.xlu1 %v5711_v27  ;;  %5709 = vmax.xlane.f32.xlu0 %v5708_v21 }
0x293b   :  { %v10557_v61 = vadd.f32 %v5678_v53, %v9309_v26  ;;  %v5723_v10 = vsel %vm1922_vm1, %v10563_v5, -inf }
0x293d   :  { %v5717_v39 = vsel %vm1922_vm1, %v10557_v61, -inf }
0x293e   :  { %5718 = vmax.xlane.f32.xlu1 %v5717_v39  ;;  %5715 = vmax.xlane.f32.xlu0 %v5714_v25 }
0x2942   :  { %5724 = vmax.xlane.f32.xlu1 %v5723_v10  ;;  %5721 = vmax.xlane.f32.xlu0 %v5720_v28 }
0x299b   :  { %v5305_v33 = vpop.xlane.xlu1 %5304 }
0x299c   :  { %v5339_v60 = vsub.f32 %v10454_v4, %v5305_v33 }
0x299e   :  { %v5351_v15 = vmul.f32 1.442695, %v5339_v60 }
0x299f   :  { %v5308_v30 = vpop.xlane.xlu0 %5307  ;;  %v5314_v26 = vpop.xlane.xlu1 %5313 }
0x29a0   :  { %v5340_v16 = vsub.f32 %v10462_v32, %v5308_v30  ;;  %v5342_v40 = vsub.f32 %v10457_v3, %v5314_v26 }
0x29a2   :  { %v5357_v6 = vmul.f32 1.442695, %v5342_v40  ;;  %v5353_v38 = vmul.f32 1.442695, %v5340_v16 }
0x29a3   :  { %v5311_v49 = vpop.xlane.xlu0 %5310 }
0x29a4   :  { %v5341_v7 = vsub.f32 %v10465_v0, %v5311_v49  ;;  %8227 = vpow2.f32 %v5357_v6 }
0x29a5   :  { %8229 = vpow2.f32 %v5353_v38 }
0x29a6   :  { %v5355_v27 = vmul.f32 1.442695, %v5341_v7 }
0x29a7   :  { %v5317_v21 = vpop.xlane.xlu0 %5316  ;;  %v5320_v53 = vpop.xlane.xlu1 %5319 }
0x29a8   :  { %8231 = vpow2.f32 %v5355_v27  ;;  %v5343_v39 = vsub.f32 %v10472_v24, %v5317_v21  ;;  %v5344_v32 = vsub.f32 %v10477_v55, %v5320_v53 }
0x29a9   :  { %8233 = vpow2.f32 %v5351_v15 }
0x29aa   :  { %v5359_v28 = vmul.f32 1.442695, %v5343_v39  ;;  %v5361_v30 = vmul.f32 1.442695, %v5344_v32 }
0x29ab   :  { %v5323_v3 = vpop.xlane.xlu0 %5322  ;;  %v5326_v25 = vpop.xlane.xlu1 %5325 }
0x29ac   :  { %v5345_v4 = vsub.f32 %v10480_v63, %v5323_v3  ;;  %v5346_v10 = vsub.f32 %v10483_v36, %v5326_v25 }
0x29ae   :  { %v5363_v0 = vmul.f32 1.442695, %v5345_v4  ;;  %v5365_v33 = vmul.f32 1.442695, %v5346_v10 }
0x29af   :  { %v5329_v26 = vpop.xlane.xlu0 %5328  ;;  %v5332_v16 = vpop.xlane.xlu1 %5331 }
0x29b0   :  { %8235 = vpow2.f32 %v5363_v0  ;;  %v5347_v40 = vsub.f32 %v10490_v42, %v5329_v26  ;;  %v5348_v24 = vsub.f32 %v10497_v45, %v5332_v16 }
0x29b1   :  { %8237 = vpow2.f32 %v5365_v33  ;;  %v10582_v60 = vpop.eup %8227 }
0x29b2   :  { %8239 = vpow2.f32 %v5359_v28  ;;  %v5384_v63 = vsel %vm1922_vm1, %v10582_v60, 0.0  ;;  %v10587_v6 = vpop.eup %8229  ;;  %v5367_v42 = vmul.f32 1.442695, %v5347_v40  ;;  %v5369_v53 = vmul.f32 1.442695, %v5348_v24 }
0x29b3   :  { %8241 = vpow2.f32 %v5361_v30  ;;  %v5335_v55 = vpop.xlane.xlu0 %5334  ;;  %v5338_v36 = vpop.xlane.xlu1 %5337  ;;  %5385 = vadd.xlane.f32.xlu1 %v5384_v63  ;;  %v5378_v32 = vsel %vm1922_vm1, %v10587_v6, 0.0 }
0x29b4   :  { %v5349_v38 = vsub.f32 %v10500_v17, %v5335_v55  ;;  %v5350_v49 = vsub.f32 %v10503_v59, %v5338_v36 }
0x29b5   :  { %v10591_v7 = vpop.eup %8231 }
0x29b6   :  { %v5371_v15 = vmul.f32 1.442695, %v5349_v38  ;;  %v5373_v27 = vmul.f32 1.442695, %v5350_v49  ;;  %v5381_v45 = vsel %vm1922_vm1, %v10591_v7, 0.0  ;;  %v10595_v21 = vpop.eup %8233 }
0x29b7   :  { %5382 = vadd.xlane.f32.xlu0 %v5381_v45  ;;  %v5692_v39 = vpop.xlane.xlu0 %5691  ;;  %v5695_v17 = vpop.xlane.xlu1 %5694  ;;  %5379 = vadd.xlane.f32.xlu1 %v5378_v32  ;;  %v5375_v3 = vsel %vm1922_vm1, %v10595_v21, 0.0 }
0x29b8   :  { %8243 = vpow2.f32 %v5371_v15  ;;  %v5726_v59 = vsub.f32 %v10510_v58, %v5692_v39  ;;  %v5727_v25 = vsub.f32 %v10517_v46, %v5695_v17 }
0x29b9   :  { %8245 = vpow2.f32 %v5373_v27 }
0x29ba   :  { %8247 = vpow2.f32 %v5367_v42  ;;  %v5738_v30 = vmul.f32 1.442695, %v5726_v59  ;;  %v5740_v46 = vmul.f32 1.442695, %v5727_v25 }
0x29bb   :  { %8249 = vpow2.f32 %v5369_v53  ;;  %v5698_v4 = vpop.xlane.xlu0 %5697  ;;  %5376 = vadd.xlane.f32.xlu0 %v5375_v3  ;;  %v5701_v10 = vpop.xlane.xlu1 %5700 }
0x29bc   :  { %v5728_v28 = vsub.f32 %v10520_v29, %v5698_v4  ;;  %v5729_v0 = vsub.f32 %v10523_v12, %v5701_v10 }
0x29bd   :  { %v10605_v33 = vpop.eup %8235 }
0x29be   :  { %v10607_v26 = vpop.eup %8237  ;;  %v5742_v58 = vmul.f32 1.442695, %v5728_v28  ;;  %v5744_v16 = vmul.f32 1.442695, %v5729_v0  ;;  %v5393_v40 = vsel %vm1922_vm1, %v10605_v33, 0.0 }
0x29bf   :  { %v10611_v24 = vpop.eup %8239  ;;  %v5704_v55 = vpop.xlane.xlu0 %5703  ;;  %5394 = vadd.xlane.f32.xlu0 %v5393_v40  ;;  %v5396_v29 = vsel %vm1922_vm1, %v10607_v26, 0.0 }
0x29c0   :  { %v5707_v63 = vpop.xlane.xlu1 %5706  ;;  %v10615_v12 = vpop.eup %8241  ;;  %8251 = vpow2.f32 %v5742_v58  ;;  %5397 = vadd.xlane.f32.xlu1 %v5396_v29  ;;  %v5387_v36 = vsel %vm1922_vm1, %v10611_v24, 0.0  ;;  %v5730_v38 = vsub.f32 %v10530_v9, %v5704_v55 }
0x29c1   :  { %8253 = vpow2.f32 %v5744_v16  ;;  %v5390_v42 = vsel %vm1922_vm1, %v10615_v12, 0.0  ;;  %v5731_v10 = vsub.f32 %v10537_v14, %v5707_v63 }
0x29c2   :  { %8255 = vpow2.f32 %v5738_v30  ;;  %v5746_v9 = vmul.f32 1.442695, %v5730_v38 }
0x29c3   :  { %8257 = vpow2.f32 %v5740_v46  ;;  %v5710_v49 = vpop.xlane.xlu0 %5709  ;;  %5388 = vadd.xlane.f32.xlu0 %v5387_v36  ;;  %v5748_v46 = vmul.f32 1.442695, %v5731_v10 }
0x29c4   :  { %v5732_v15 = vsub.f32 %v10540_v35, %v5710_v49  ;;  %5391 = vadd.xlane.f32.xlu1 %v5390_v42  ;;  %v5713_v27 = vpop.xlane.xlu1 %5712 }
0x29c5   :  { %v10623_v45 = vpop.eup %8243  ;;  %v5733_v59 = vsub.f32 %v10543_v13, %v5713_v27 }
0x29c6   :  { %v10625_v53 = vpop.eup %8245  ;;  %v5750_v39 = vmul.f32 1.442695, %v5732_v15  ;;  %v5405_v32 = vsel %vm1922_vm1, %v10623_v45, 0.0 }
0x29c7   :  { %v10629_v17 = vpop.eup %8247  ;;  %5406 = vadd.xlane.f32.xlu0 %v5405_v32  ;;  %v5408_v3 = vsel %vm1922_vm1, %v10625_v53, 0.0  ;;  %v5716_v25 = vpop.xlane.xlu0 %5715  ;;  %v5752_v28 = vmul.f32 1.442695, %v5733_v59 }
0x29c8   :  { %v10634_v35 = vpop.eup %8249  ;;  %8259 = vpow2.f32 %v5750_v39  ;;  %5409 = vadd.xlane.f32.xlu1 %v5408_v3  ;;  %v5399_v4 = vsel %vm1922_vm1, %v10629_v17, 0.0  ;;  %v5719_v58 = vpop.xlane.xlu1 %5718  ;;  %v5734_v14 = vsub.f32 %v10550_v44, %v5716_v25 }
0x29c9   :  { %8261 = vpow2.f32 %v5746_v9  ;;  %v5402_v13 = vsel %vm1922_vm1, %v10634_v35, 0.0 }
0x29ca   :  { %8263 = vpow2.f32 %v5752_v28  ;;  %v5754_v38 = vmul.f32 1.442695, %v5734_v14  ;;  %v5735_v14 = vsub.f32 %v10557_v61, %v5719_v58 }
0x29cb   :  { %5400 = vadd.xlane.f32.xlu0 %v5399_v4  ;;  %v5722_v63 = vpop.xlane.xlu0 %5721  ;;  %8265 = vpow2.f32 %v5748_v46 }
0x29cc   :  { %5403 = vadd.xlane.f32.xlu1 %v5402_v13  ;;  %v5736_v49 = vsub.f32 %v10560_v54, %v5722_v63  ;;  %v5725_v44 = vpop.xlane.xlu1 %5724  ;;  %8267 = vpow2.f32 %v5754_v38  ;;  %v5756_v63 = vmul.f32 1.442695, %v5735_v14 }
0x29cd   :  { %v10641_v0 = vpop.eup %8251  ;;  %v5737_v32 = vsub.f32 %v10563_v5, %v5725_v44 }
0x29ce   :  { %v10643_v30 = vpop.eup %8253  ;;  %v5768_v16 = vsel %vm1922_vm1, %v10641_v0, 0.0  ;;  %v5758_v39 = vmul.f32 1.442695, %v5736_v49 }
0x29cf   :  { %v10647_v40 = vpop.eup %8255  ;;  %5769 = vadd.xlane.f32.xlu0 %v5768_v16  ;;  %v5771_v55 = vsel %vm1922_vm1, %v10643_v30, 0.0  ;;  %v5760_v54 = vmul.f32 1.442695, %v5737_v32 }
0x29d0   :  { %v10652_v29 = vpop.eup %8257  ;;  %5772 = vadd.xlane.f32.xlu1 %v5771_v55  ;;  %v5762_v36 = vsel %vm1922_vm1, %v10647_v40, 0.0  ;;  %8269 = vpow2.f32 %v5758_v39 }
0x29d1   :  { %v5765_v42 = vsel %vm1922_vm1, %v10652_v29, 0.0  ;;  %8271 = vpow2.f32 %v5760_v54 }
0x29d2   :  { %8273 = vpow2.f32 %v5756_v63 }
0x29d3   :  { %5763 = vadd.xlane.f32.xlu0 %v5762_v36 }
0x29d4   :  { %5766 = vadd.xlane.f32.xlu1 %v5765_v42 }
0x29d5   :  { %v10659_v15 = vpop.eup %8259 }
0x29d6   :  { %v5780_v27 = vsel %vm1922_vm1, %v10659_v15, 0.0  ;;  %v10664_v9 = vpop.eup %8261 }
0x29d7   :  { %v5774_v59 = vsel %vm1922_vm1, %v10664_v9, 0.0  ;;  %v10668_v3 = vpop.eup %8263 }
0x29d8   :  { %5781 = vadd.xlane.f32.xlu1 %v5780_v27  ;;  %v5783_v25 = vsel %vm1922_vm1, %v10668_v3, 0.0  ;;  %v10672_v4 = vpop.eup %8265 }
0x29d9   :  { %v5777_v5 = vsel %vm1922_vm1, %v10672_v4, 0.0  ;;  %v10676_v10 = vpop.eup %8267 }
0x29da   :  { %v5786_v28 = vsel %vm1922_vm1, %v10676_v10, 0.0 }
0x29dc   :  { %5775 = vadd.xlane.f32.xlu1 %v5774_v59 }
0x29dd   :  { %v10680_v13 = vpop.eup %8269 }
0x29de   :  { %v5792_v16 = vsel %vm1922_vm1, %v10680_v13, 0.0  ;;  %v10686_v46 = vpop.eup %8271 }
0x29df   :  { %v5795_v55 = vsel %vm1922_vm1, %v10686_v46, 0.0  ;;  %v10693_v36 = vpop.eup %8273 }
0x29e0   :  { %5784 = vadd.xlane.f32.xlu1 %v5783_v25 }
0x29e4   :  { %5778 = vadd.xlane.f32.xlu1 %v5777_v5 }
0x29e8   :  { %5787 = vadd.xlane.f32.xlu1 %v5786_v28 }
0x29e9   :  { %5441 = vrot.lane.b32.xlu0 %v10365_v22, %s8405_s1  ;;  %v5789_v22 = vsel %vm1922_vm1, %v10693_v36, 0.0 }
0x29ec   :  { %5793 = vadd.xlane.f32.xlu1 %v5792_v16 }
0x29f0   :  { %5796 = vadd.xlane.f32.xlu1 %v5795_v55 }
0x2a01   :  { %5828 = vrot.lane.b32.xlu1 %v10363_v23, %s8405_s1 }
0x2a08   :  { %5790 = vadd.xlane.f32.xlu0 %v5789_v22 }
0x2a3c   :  { %v5386_v38 = vpop.xlane.xlu1 %5385 }
0x2a40   :  { %v5383_v49 = vpop.xlane.xlu0 %5382  ;;  %v5380_v42 = vpop.xlane.xlu1 %5379 }
0x2a41   :  { %8275 = vrcp.f32 %v5380_v42 }
0x2a44   :  { %v5377_v61 = vpop.xlane.xlu0 %5376 }
0x2a45   :  { %8277 = vrcp.f32 %v5377_v61 }
0x2a46   :  { %8279 = vrcp.f32 %v5383_v49 }
0x2a48   :  { %v5395_v58 = vpop.xlane.xlu0 %5394 }
0x2a49   :  { %v5398_v44 = vpop.xlane.xlu1 %5397 }
0x2a4c   :  { %v5389_v27 = vpop.xlane.xlu0 %5388 }
0x2a4d   :  { %v5392_v39 = vpop.xlane.xlu1 %5391  ;;  %8281 = vrcp.f32 %v5389_v27 }
0x2a4e   :  { %v8276_v32 = vpop.eup %8275  ;;  %8283 = vrcp.f32 %v5392_v39 }
0x2a4f   :  { %8285 = vrcp.f32 %v5386_v38  ;;  %v5424_v5 = vmul.f32 %v8276_v32, %v10587_v6 }
0x2a50   :  { %v5407_v23 = vpop.xlane.xlu0 %5406  ;;  %8287 = vrcp.f32 %v5395_v58 }
0x2a51   :  { %v5410_v54 = vpop.xlane.xlu1 %5409  ;;  %8289 = vrcp.f32 %v5398_v44 }
0x2a52   :  { %v8278_v59 = vpop.eup %8277 }
0x2a53   :  { %v5423_v25 = vmul.f32 %v8278_v59, %v10595_v21  ;;  %v8280_v22 = vpop.eup %8279 }
0x2a54   :  { %v5401_v28 = vpop.xlane.xlu0 %5400  ;;  %v5425_v6 = vmul.f32 %v8280_v22, %v10591_v7 }
0x2a55   :  { %v5404_v16 = vpop.xlane.xlu1 %5403  ;;  %v5435_v14 = vpack.c.bf16 %v5424_v5, %v5423_v25  ;;  %8291 = vrcp.f32 %v5401_v28 }
0x2a56   :  { %8293 = vrcp.f32 %v5404_v16 }
0x2a57   :  { %7645 = vmatprep.mubr.msk.bf16.mxu0 %vm1922_vm1, %v5435_v14  ;;  %8295 = vrcp.f32 %v5407_v23 }
0x2a58   :  { %v5770_v55 = vpop.xlane.xlu0 %5769  ;;  %8297 = vrcp.f32 %v5410_v54 }
0x2a59   :  { %v5773_v63 = vpop.xlane.xlu1 %5772 }
0x2a5a   :  { %v8282_v49 = vpop.eup %8281 }
0x2a5b   :  { %v8284_v42 = vpop.eup %8283  ;;  %v5427_v44 = vmul.f32 %v8282_v49, %v10611_v24 }
0x2a5c   :  { %v5764_v38 = vpop.xlane.xlu0 %5763  ;;  %v8286_v21 = vpop.eup %8285  ;;  %v5428_v27 = vmul.f32 %v8284_v42, %v10615_v12 }
0x2a5d   :  { %v5767_v61 = vpop.xlane.xlu1 %5766  ;;  %8299 = vrcp.f32 %v5764_v38  ;;  %v5426_v39 = vmul.f32 %v8286_v21, %v10582_v60  ;;  %v8288_v23 = vpop.eup %8287 }
0x2a5e   :  { %8301 = vrcp.f32 %v5767_v61  ;;  %v8290_v25 = vpop.eup %8289  ;;  %v5437_v7 = vpack.c.bf16 %v5428_v27, %v5427_v44  ;;  %v5429_v24 = vmul.f32 %v8288_v23, %v10605_v33 }
0x2a5f   :  { %v5436_v54 = vpack.c.bf16 %v5426_v39, %v5425_v6  ;;  %v5430_v60 = vmul.f32 %v8290_v25, %v10607_v26  ;;  %8303 = vrcp.f32 %v5770_v55 }
0x2a60   :  { %v5442_v58 = vpop.permute.xlu0 %5441  ;;  %8305 = vrcp.f32 %v5773_v63 }
0x2a61   :  { %v5462_v32 = vsel %vm577_vm14, %v5442_v58, 0  ;;  %v5782_v59 = vpop.xlane.xlu1 %5781  ;;  %7785 = vmatprep.subr.msk.bf16.mxu0 %vm577_vm14, %v5442_v58  ;;  %v5438_v42 = vpack.c.bf16 %v5430_v60, %v5429_v24 }
0x2a62   :  { %7644 = vmatpush3.bf16.msra.mxu0 %v5462_v32  ;;  %v8292_v5 = vpop.eup %8291 }
0x2a63   :  { %v8294_v28 = vpop.eup %8293  ;;  %v5431_v12 = vmul.f32 %v8292_v5, %v10629_v17 }
0x2a64   :  { %v5432_v14 = vmul.f32 %v8294_v28, %v10634_v35  ;;  %v8296_v49 = vpop.eup %8295 }
0x2a65   :  { %v5776_v16 = vpop.xlane.xlu1 %5775  ;;  %7646 = vmatmul.mubr.msk.bf16.vlgmr.msra.gmra.mxu0 %vm1922_vm1, %v5436_v54  ;;  %v8298_v38 = vpop.eup %8297  ;;  %v5433_v33 = vmul.f32 %v8296_v49, %v10623_v45 }
0x2a66   :  { %7649 = vmatprep.mubr.msk.bf16.mxu0 %vm1922_vm1, %v5437_v7  ;;  %v5439_v21 = vpack.c.bf16 %v5432_v14, %v5431_v12  ;;  %v5434_v26 = vmul.f32 %v8298_v38, %v10625_v53 }
0x2a68   :  { %v5440_v44 = vpack.c.bf16 %v5434_v26, %v5433_v33 }
0x2a69   :  { %v5785_v22 = vpop.xlane.xlu1 %5784 }
0x2a6a   :  { %v8300_v61 = vpop.eup %8299 }
0x2a6b   :  { %v8302_v6 = vpop.eup %8301  ;;  %v5810_v17 = vmul.f32 %v8300_v61, %v10647_v40 }
0x2a6c   :  { %v5811_v35 = vmul.f32 %v8302_v6, %v10652_v29  ;;  %v8304_v39 = vpop.eup %8303 }
0x2a6d   :  { %v5779_v58 = vpop.xlane.xlu1 %5778  ;;  %7650 = vmatmul.mubr.msk.bf16.gmra.mxu0 %vm1922_vm1, %v5438_v42  ;;  %v8306_v32 = vpop.eup %8305  ;;  %v5812_v53 = vmul.f32 %v8304_v39, %v10641_v0 }
0x2a6e   :  { %8307 = vrcp.f32 %v5779_v58  ;;  %7653 = vmatprep.mubr.msk.bf16.mxu0 %vm1922_vm1, %v5439_v21  ;;  %v5822_v63 = vpack.c.bf16 %v5811_v35, %v5810_v17  ;;  %v5813_v40 = vmul.f32 %v8306_v32, %v10643_v30  ;;  %v7849_v21 = vld [vmem:[%s10990_s9 + $0x58] sm:$0xff]  }
0x2a6f   :  { %8309 = vrcp.f32 %v5776_v16  ;;  %7686 = vmatpush3.bf16.msra.mxu1 %v7849_v21 }
0x2a70   :  { %8311 = vrcp.f32 %v5785_v22  ;;  %v5823_v7 = vpack.c.bf16 %v5813_v40, %v5812_v53  ;;  %7687 = vmatprep.subr.bf16.mxu1 %v8402_v1 }
0x2a71   :  { %v5788_v55 = vpop.xlane.xlu1 %5787  ;;  %8313 = vrcp.f32 %v5782_v59 }
0x2a75   :  { %v5794_v27 = vpop.xlane.xlu1 %5793  ;;  %7654 = vmatmul.mubr.msk.bf16.gmra.mxu0 %vm1922_vm1, %v5440_v44 }
0x2a76   :  { %7673 = vmatprep.mubr.msk.bf16.mxu0 %vm1922_vm1, %v5822_v63 }
0x2a79   :  { %v5797_v23 = vpop.xlane.xlu1 %5796 }
0x2a7a   :  { %8315 = vrcp.f32 %v5797_v23 }
0x2a7b   :  { %v8308_v45 = vpop.eup %8307  ;;  %8317 = vrcp.f32 %v5788_v55 }
0x2a7c   :  { %v8310_v25 = vpop.eup %8309  ;;  %v5815_v54 = vmul.f32 %v8308_v45, %v10672_v4  ;;  %8319 = vrcp.f32 %v5794_v27 }
0x2a7d   :  { %v5829_v29 = vpop.permute.xlu1 %5828  ;;  %v5814_v59 = vmul.f32 %v8310_v25, %v10664_v9  ;;  %v8312_v28 = vpop.eup %8311 }
0x2a7e   :  { %v5849_v5 = vsel %vm577_vm14, %v5829_v29, 0  ;;  %7787 = vmatprep.subr.msk.bf16.mxu0 %vm577_vm14, %v5829_v29  ;;  %v8314_v0 = vpop.eup %8313  ;;  %v5817_v30 = vmul.f32 %v8312_v28, %v10668_v3 }
0x2a7f   :  { %7672 = vmatpush3.bf16.msra.mxu0 %v5849_v5  ;;  %v5824_v16 = vpack.c.bf16 %v5815_v54, %v5814_v59  ;;  %v5816_v4 = vmul.f32 %v8314_v0, %v10659_v15 }
0x2a80   :  { %7701 = vmatprep.subr.bf16.mxu0 %v8402_v1 }
0x2a81   :  { %v5825_v24 = vpack.c.bf16 %v5817_v30, %v5816_v4 }
0x2a82   :  { %7674 = vmatmul.mubr.msk.bf16.vlgmr.msra.gmra.mxu0 %vm1922_vm1, %v5823_v7 }
0x2a83   :  { %7677 = vmatprep.mubr.msk.bf16.mxu0 %vm1922_vm1, %v5824_v16 }
0x2a87   :  { %v8316_v60 = vpop.eup %8315 }
0x2a88   :  { %v8318_v12 = vpop.eup %8317  ;;  %v5821_v49 = vmul.f32 %v8316_v60, %v10686_v46 }
0x2a89   :  { %v8320_v14 = vpop.eup %8319  ;;  %v5818_v38 = vmul.f32 %v8318_v12, %v10676_v10  ;;  %v7850_v10 = vld [vmem:[%s10990_s9 + $0x50] sm:$0xff]  }
0x2a8a   :  { %7678 = vmatmul.mubr.msk.bf16.gmra.mxu0 %vm1922_vm1, %v5825_v24  ;;  %v5820_v15 = vmul.f32 %v8320_v14, %v10680_v13  ;;  %7688 = vmatpush3.bf16.msra.mxu1 %v7850_v10 }
0x2a8b   :  { %7717 = vmatprep.subr.bf16.mxu1 %v8402_v1 }
0x2a8c   :  { %v5827_v61 = vpack.c.bf16 %v5821_v49, %v5820_v15 }
0x2a91   :  { %v5791_v9 = vpop.xlane.xlu0 %5790 }
0x2a92   :  { %8321 = vrcp.f32 %v5791_v9 }
0x2a9f   :  { %v8322_v22 = vpop.eup %8321 }
0x2aa0   :  { %v5819_v3 = vmul.f32 %v8322_v22, %v10693_v36 }
0x2aa2   :  { %v5826_v42 = vpack.c.bf16 %v5819_v3, %v5818_v38 }
0x2aa4   :  { %7681 = vmatprep.mubr.msk.bf16.mxu0 %vm1922_vm1, %v5826_v42 }
0x2aa5   :  { %7682 = vmatmul.mubr.msk.bf16.gmra.mxu0 %vm1922_vm1, %v5827_v61 }
0x2aa6   :  { %7705 = vmatprep.mubr.msk.bf16.mxu0 %vm8403_vm0, %v8402_v1 }
0x2b25   :  { %v7647_v13 = vpop.f32.mrf.mxu0 }
0x2b26   :  { %v5547_v38 = vmul.f32 %v7647_v13, %v8594_v47 }
0x2b27   :  { %v5498_v46 = vpop.f32.mrf.mxu0 }
0x2b28   :  { %v5545_v39 = vmul.f32 %v8594_v47, %v5498_v46 }
0x2b29   :  { %v7648_v36 = vpop.f32.mrf.mxu0 }
0x2b2a   :  { %v5548_v44 = vmul.f32 %v7648_v36, %v8600_v50 }
0x2b2b   :  { %v5501_v6 = vpop.f32.mrf.mxu0 }
0x2b2c   :  { %v5546_v63 = vmul.f32 %v8594_v47, %v5501_v6  ;;  %v5551_v53 = vadd.f32 %v5548_v44, %v5545_v39 }
0x2b2d   :  { %v7651_v58 = vpop.f32.mrf.mxu0 }
0x2b2e   :  { %v5554_v32 = vmul.f32 %v7651_v58, %v8597_v48 }
0x2b2f   :  { %v5514_v33 = vpop.f32.mrf.mxu0 }
0x2b30   :  { %v5549_v35 = vmul.f32 %v8600_v50, %v5514_v33  ;;  %v5557_v54 = vadd.f32 %v5554_v32, %v5551_v53 }
0x2b31   :  { %v7652_v26 = vpop.f32.mrf.mxu0 }
0x2b32   :  { %v5552_v23 = vadd.f32 %v5549_v35, %v5546_v63  ;;  %v5555_v45 = vmul.f32 %v7652_v26, %v8597_v48 }
0x2b33   :  { %v5517_v17 = vpop.f32.mrf.mxu0 }
0x2b34   :  { %v5558_v5 = vadd.f32 %v5555_v45, %v5552_v23  ;;  %v5550_v22 = vmul.f32 %v8600_v50, %v5517_v17 }
0x2b35   :  { %v7655_v55 = vpop.f32.mrf.mxu0 }
0x2b36   :  { %v5561_v40 = vmul.f32 %v7655_v55, %v8603_v52  ;;  %v5553_v61 = vadd.f32 %v5550_v22, %v5547_v38 }
0x2b37   :  { %v5530_v27 = vpop.f32.mrf.mxu0 }
0x2b38   :  { %v5564_v7 = vadd.f32 %v5561_v40, %v5558_v5  ;;  %v5556_v3 = vmul.f32 %v8597_v48, %v5530_v27 }
0x2b39   :  { %v7656_v25 = vpop.f32.mrf.mxu0 }
0x2b3a   :  { %v5559_v36 = vadd.f32 %v5556_v3, %v5553_v61  ;;  %v5562_v6 = vmul.f32 %v7656_v25, %v8603_v52 }
0x2b3b   :  { %v5533_v29 = vpop.f32.mrf.mxu0 }
0x2b3c   :  { %v5560_v59 = vmul.f32 %v8603_v52, %v5533_v29  ;;  %v5565_v27 = vadd.f32 %v5562_v6, %v5559_v36 }
0x2b3e   :  { %v5563_v28 = vadd.f32 %v5560_v59, %v5557_v54 }
0x2b40   :  { %v5953_v16 = vpack.c.bf16 %v5564_v7, %v5563_v28 }
0x2b42   :  { %7690 = vmatmul.mubr.msk.bf16.vlgmr.msra.gmra.mxu1 %vm213_vm2, %v5953_v16  ;;  %v7675_v0 = vpop.f32.mrf.mxu0 }
0x2b43   :  { %7693 = vmatprep.mubr.msk.bf16.mxu1 %vm8403_vm0, %v8402_v1  ;;  %v5934_v17 = vmul.f32 %v7675_v0, %v8594_v47 }
0x2b44   :  { %v5885_v30 = vpop.f32.mrf.mxu0 }
0x2b45   :  { %v5932_v21 = vmul.f32 %v8594_v47, %v5885_v30 }
0x2b46   :  { %v7676_v4 = vpop.f32.mrf.mxu0 }
0x2b47   :  { %v5935_v15 = vmul.f32 %v7676_v4, %v8600_v50 }
0x2b48   :  { %v5888_v24 = vpop.f32.mrf.mxu0 }
0x2b49   :  { %v5938_v58 = vadd.f32 %v5935_v15, %v5932_v21  ;;  %v5933_v63 = vmul.f32 %v8594_v47, %v5888_v24 }
0x2b4a   :  { %v7679_v9 = vpop.f32.mrf.mxu0 }
0x2b4b   :  { %v5941_v10 = vmul.f32 %v7679_v9, %v8597_v48 }
0x2b4c   :  { %v5901_v60 = vpop.f32.mrf.mxu0 }
0x2b4d   :  { %v5936_v26 = vmul.f32 %v8600_v50, %v5901_v60  ;;  %v5944_v35 = vadd.f32 %v5941_v10, %v5938_v58 }
0x2b4e   :  { %v7680_v12 = vpop.f32.mrf.mxu0 }
0x2b4f   :  { %v5939_v23 = vadd.f32 %v5936_v26, %v5933_v63  ;;  %v5942_v45 = vmul.f32 %v7680_v12, %v8597_v48 }
0x2b50   :  { %v5904_v14 = vpop.f32.mrf.mxu0 }
0x2b51   :  { %v5937_v33 = vmul.f32 %v8600_v50, %v5904_v14  ;;  %v5945_v29 = vadd.f32 %v5942_v45, %v5939_v23 }
0x2b53   :  { %v5940_v39 = vadd.f32 %v5937_v33, %v5934_v17 }
0x2b65   :  { %v7683_v49 = vpop.f32.mrf.mxu0 }
0x2b66   :  { %v5948_v40 = vmul.f32 %v7683_v49, %v8603_v52 }
0x2b67   :  { %v5917_v42 = vpop.f32.mrf.mxu0 }
0x2b68   :  { %v5943_v55 = vmul.f32 %v8597_v48, %v5917_v42  ;;  %v5951_v47 = vadd.f32 %v5948_v40, %v5945_v29  ;;  %v10784_v48 = vld [vmem:[%s10991_s10 + $0x14] sm:$0xf] }
0x2b69   :  { %v7684_v46 = vpop.f32.mrf.mxu0 }
0x2b6a   :  { %v5946_v25 = vadd.f32 %v5943_v55, %v5940_v39  ;;  %v5949_v53 = vmul.f32 %v7684_v46, %v8603_v52  ;;  %v7852_v39 = vld [vmem:[%s10992_s11 + $0x30] sm:$0xff]  }
0x2b6b   :  { %v5920_v13 = vpop.f32.mrf.mxu0 }
0x2b6c   :  { %v5947_v44 = vmul.f32 %v8603_v52, %v5920_v13  ;;  %v5952_v54 = vadd.f32 %v5949_v53, %v5946_v25  ;;  %v5959_v52 = vrot.slane %v10784_v48, %v8684_v2 }
0x2b6e   :  { %v5950_v32 = vadd.f32 %v5947_v44, %v5944_v35  ;;  %v5955_v5 = vpack.c.bf16 %v5952_v54, %v5951_v47 }
0x2b70   :  { %v5954_v50 = vpack.c.bf16 %v5950_v32, %v5565_v27 }
0x2b72   :  { %7694 = vmatmul.mubr.msk.bf16.gmra.mxu1 %vm213_vm2, %v5954_v50 }
0x2b73   :  { %7697 = vmatprep.mubr.msk.bf16.mxu1 %vm8403_vm0, %v8402_v1 }
0x2b7a   :  { %7698 = vmatmul.mubr.msk.bf16.gmra.mxu1 %vm213_vm2, %v5955_v5 }
0x2b7b   :  { %7733 = vmatprep.mubr.msk.bf16.mxu1 %vm8403_vm0, %v8402_v1 }
0x2c02   :  { %v6015_v59 = vpop.f32.mrf.mxu1 }
0x2c03   :  { %v6016_v7 = vadd.f32 %v6015_v59, %v5959_v52 }
0x2c04   :  { %v7691_v28 = vpop.f32.mrf.mxu1 }
0x2c05   :  { %v6038_v16 = vadd.f32 %v6016_v7, %v10375_v62 }
0x2c06   :  { %v6018_v0 = vpop.f32.mrf.mxu1 }
0x2c07   :  { %v6019_v30 = vadd.f32 %v6018_v0, %v5959_v52  ;;  %v6044_v4 = vsel %vm213_vm2, %v6038_v16, 0.0 }
0x2c08   :  { %6045 = vadd.xlane.f32.xlu1 %v6044_v4  ;;  %v7692_v24 = vpop.f32.mrf.mxu1 }
0x2c09   :  { %v6039_v9 = vadd.f32 %v6019_v30, %v10377_v11 }
0x2c0b   :  { %v6047_v60 = vsel %vm213_vm2, %v6039_v9, 0.0 }
0x2c0c   :  { %6048 = vadd.xlane.f32.xlu0 %v6047_v60 }
0x2c32   :  { %v6023_v12 = vpop.f32.mrf.mxu1 }
0x2c33   :  { %v6024_v14 = vadd.f32 %v6023_v12, %v5959_v52 }
0x2c34   :  { %v7695_v22 = vpop.f32.mrf.mxu1 }
0x2c35   :  { %v6040_v49 = vadd.f32 %v6024_v14, %v10390_v41  ;;  %v10819_v14 = vrot.slane %v10784_v48, %v8731_v34 }
0x2c36   :  { %v6026_v38 = vpop.f32.mrf.mxu1 }
0x2c37   :  { %v6027_v3 = vadd.f32 %v6026_v38, %v5959_v52  ;;  %v6050_v62 = vsel %vm213_vm2, %v6040_v49, 0.0  ;;  %v10823_v38 = vrot.slane %v10784_v48, %v9073_v37 }
0x2c38   :  { %6051 = vadd.xlane.f32.xlu0 %v6050_v62  ;;  %v7696_v15 = vpop.f32.mrf.mxu1 }
0x2c39   :  { %v6041_v42 = vadd.f32 %v6027_v3, %v10392_v8 }
0x2c3a   :  { %v6031_v61 = vpop.f32.mrf.mxu1 }
0x2c3b   :  { %v6032_v21 = vadd.f32 %v6031_v61, %v5959_v52  ;;  %v6053_v11 = vsel %vm213_vm2, %v6041_v42, 0.0 }
0x2c3c   :  { %6054 = vadd.xlane.f32.xlu0 %v6053_v11  ;;  %v7699_v10 = vpop.f32.mrf.mxu1 }
0x2c3d   :  { %v6042_v47 = vadd.f32 %v6032_v21, %v10400_v43 }
0x2c3e   :  { %v6034_v46 = vpop.f32.mrf.mxu1 }
0x2c3f   :  { %v6035_v36 = vadd.f32 %v6034_v46, %v5959_v52  ;;  %v6056_v28 = vsel %vm213_vm2, %v6042_v47, 0.0 }
0x2c40   :  { %v7700_v6 = vpop.f32.mrf.mxu1 }
0x2c41   :  { %v6043_v58 = vadd.f32 %v6035_v36, %v10402_v18  ;;  %v7851_v18 = vld [vmem:[%s10992_s11 + $0x38] sm:$0xff]  }
0x2c42   :  { %7702 = vmatpush3.bf16.msra.mxu0 %v7851_v18 }
0x2c43   :  { %v6059_v41 = vsel %vm213_vm2, %v6043_v58, 0.0  ;;  %7703 = vmatprep.subr.bf16.mxu0 %v8402_v1 }
0x2c44   :  { %6060 = vadd.xlane.f32.xlu1 %v6059_v41  ;;  %v10838_v41 = vld [vmem:[%s10994_s13 + $0x8] sm:$0xf] }
0x2c46   :  { %7704 = vmatpush3.bf16.msra.mxu0 %v7852_v39 }
0x2c47   :  { %7745 = vmatprep.subr.bf16.mxu0 %v8402_v1 }
0x2c91   :  { %v6046_v33 = vpop.xlane.xlu1 %6045 }
0x2c92   :  { %v6062_v26 = vmul.f32 0.03125, %v6046_v33  ;;  %v3835_v33 = vrot.slane %v10838_v41, %v8731_v34 }
0x2c94   :  { %v6068_v13 = vsub.f32 %v6038_v16, %v6062_v26 }
0x2c95   :  { %v6049_v17 = vpop.xlane.xlu0 %6048 }
0x2c96   :  { %v6063_v35 = vmul.f32 0.03125, %v6049_v17  ;;  %v6074_v8 = vmul.f32 %v6068_v13, %v6068_v13 }
0x2c98   :  { %v6069_v55 = vsub.f32 %v6039_v9, %v6063_v35  ;;  %v6080_v44 = vsel %vm213_vm2, %v6074_v8, 0.0  ;;  %v3919_v8 = vadd.f32 %v9973_v20, %v3835_v33 }
0x2c99   :  { %6081 = vadd.xlane.f32.xlu0 %v6080_v44 }
0x2c9a   :  { %v6075_v63 = vmul.f32 %v6069_v55, %v6069_v55 }
0x2c9c   :  { %v6083_v27 = vsel %vm213_vm2, %v6075_v63, 0.0 }
0x2c9d   :  { %6084 = vadd.xlane.f32.xlu0 %v6083_v27  ;;  %v3925_v27 = vadd.f32 %v3919_v8, %v9787_v19 }
0x2cc1   :  { %v6052_v32 = vpop.xlane.xlu0 %6051 }
0x2cc2   :  { %v6064_v23 = vmul.f32 0.03125, %v6052_v32 }
0x2cc4   :  { %v6070_v45 = vsub.f32 %v6040_v49, %v6064_v23  ;;  %v3927_v23 = vsel %vm213_vm2, %v3925_v27, 0.0 }
0x2cc5   :  { %v6055_v25 = vpop.xlane.xlu0 %6054 }
0x2cc6   :  { %v6065_v53 = vmul.f32 0.03125, %v6055_v25  ;;  %v6076_v50 = vmul.f32 %v6070_v45, %v6070_v45 }
0x2cc8   :  { %v6071_v40 = vsub.f32 %v6041_v42, %v6065_v53  ;;  %v6086_v29 = vsel %vm213_vm2, %v6076_v50, 0.0  ;;  %v7854_v50 = vld [vmem:[%s10993_s12 + $0xf0] sm:$0xff]  }
0x2cc9   :  { %6087 = vadd.xlane.f32.xlu0 %v6086_v29  ;;  %v7856_v29 = vld [vmem:[%s10993_s12 + $0xe0] sm:$0xff]  }
0x2cca   :  { %v6077_v54 = vmul.f32 %v6071_v40, %v6071_v40 }
0x2ccc   :  { %v6089_v5 = vsel %vm213_vm2, %v6077_v54, 0.0  ;;  %v7857_v54 = vld [vmem:[%s10993_s12 + $0xd8] sm:$0xff]  }
0x2ccd   :  { %6090 = vadd.xlane.f32.xlu0 %v6089_v5  ;;  %v6061_v52 = vpop.xlane.xlu1 %6060  ;;  %v7859_v5 = vld [vmem:[%s10993_s12 + $0xc8] sm:$0xff]  }
0x2cce   :  { %v6067_v59 = vmul.f32 0.03125, %v6061_v52  ;;  %v7860_v52 = vld [vmem:[%s10993_s12 + $0xc0] sm:$0xff]  }
0x2cd0   :  { %v10811_v7 = vsub.f32 %v6043_v58, %v6067_v59 }
0x2cd1   :  { %6057 = vadd.xlane.f32.xlu0 %v6056_v28 }
0x2cd2   :  { %v6079_v16 = vmul.f32 %v10811_v7, %v10811_v7 }
0x2cd4   :  { %v6095_v0 = vsel %vm213_vm2, %v6079_v16, 0.0 }
0x2cd5   :  { %6096 = vadd.xlane.f32.xlu1 %v6095_v0 }
0x2d22   :  { %v6082_v30 = vpop.xlane.xlu0 %6081 }
0x2d23   :  { %v6098_v4 = vmul.f32 0.03125, %v6082_v30 }
0x2d25   :  { %v6104_v24 = vadd.f32 1e-12, %v6098_v4 }
0x2d26   :  { %v6085_v43 = vpop.xlane.xlu0 %6084 }
0x2d27   :  { %8323 = vrsqrt.f32 %v6104_v24  ;;  %v6099_v9 = vmul.f32 0.03125, %v6085_v43 }
0x2d29   :  { %v6105_v60 = vadd.f32 1e-12, %v6099_v9 }
0x2d2b   :  { %8325 = vrsqrt.f32 %v6105_v60  ;;  %v6616_v60 = vld [vmem:[%s10996_s15] ss:$0 sm:$0xff] }
0x2d34   :  { %v8324_v12 = vpop.eup %8323 }
0x2d35   :  { %v6116_v22 = vmul.f32 %v8324_v12, %v6068_v13  ;;  %v3922_v13 = vadd.f32 %v9975_v57, %v3835_v33 }
0x2d37   :  { %v6126_v3 = vmul.f32 %v10819_v14, %v6116_v22 }
0x2d38   :  { %v8326_v49 = vpop.eup %8325 }
0x2d39   :  { %v6117_v62 = vmul.f32 %v8326_v49, %v6069_v55  ;;  %v10828_v42 = vadd.f32 %v10823_v38, %v6126_v3  ;;  %v3926_v55 = vadd.f32 %v3922_v13, %v9789_v56  ;;  %v10902_v3 = vadd.f32 %v6616_v60, %v9261_v51  ;;  %v10916_v51 = vld [vmem:[%s10994_s13 + $0xc] sm:$0xf] }
0x2d3b   :  { %v6127_v15 = vmul.f32 %v10819_v14, %v6117_v62  ;;  %v3930_v39 = vsel %vm213_vm2, %v3926_v55, 0.0 }
0x2d3d   :  { %v6137_v61 = vadd.f32 %v10823_v38, %v6127_v15 }
0x2d3f   :  { %v6166_v21 = vpack.c.bf16 %v6137_v61, %v10828_v42 }
0x2d41   :  { %7706 = vmatmul.mubr.msk.bf16.vlgmr.msra.gmra.mxu0 %vm213_vm2, %v6166_v21 }
0x2d42   :  { %7709 = vmatprep.mubr.msk.bf16.mxu0 %vm8403_vm0, %v8402_v1 }
0x2d52   :  { %v6088_v11 = vpop.xlane.xlu0 %6087 }
0x2d53   :  { %v6100_v48 = vmul.f32 0.03125, %v6088_v11  ;;  %v1722_v11 = vmul.f32 %v10902_v3, %v10902_v3 }
0x2d55   :  { %v6106_v10 = vadd.f32 1e-12, %v6100_v48 }
0x2d56   :  { %v6091_v46 = vpop.xlane.xlu0 %6090 }
0x2d57   :  { %8327 = vrsqrt.f32 %v6106_v10  ;;  %v6101_v36 = vmul.f32 0.03125, %v6091_v46 }
0x2d59   :  { %v6107_v6 = vadd.f32 1e-12, %v6101_v36 }
0x2d5a   :  { %v6058_v58 = vpop.xlane.xlu0 %6057 }
0x2d5b   :  { %8329 = vrsqrt.f32 %v6107_v6  ;;  %v6066_v26 = vmul.f32 0.03125, %v6058_v58  ;;  %v1724_v6 = vsel %vm1723_vm3, %v1722_v11, 0.0  ;;  %v10921_v58 = vrot.slane %v10916_v51, %v8684_v2 }
0x2d5d   :  { %v10843_v17 = vsub.f32 %v6042_v47, %v6066_v26  ;;  %v7858_v47 = vld [vmem:[%s10993_s12 + $0xd0] sm:$0xff]  }
0x2d5e   :  { %v6097_v59 = vpop.xlane.xlu1 %6096 }
0x2d5f   :  { %v6078_v35 = vmul.f32 %v10843_v17, %v10843_v17  ;;  %v6103_v28 = vmul.f32 0.03125, %v6097_v59 }
0x2d61   :  { %v6092_v44 = vsel %vm213_vm2, %v6078_v35, 0.0  ;;  %v6109_v16 = vadd.f32 1e-12, %v6103_v28 }
0x2d62   :  { %6093 = vadd.xlane.f32.xlu0 %v6092_v44 }
0x2d63   :  { %8331 = vrsqrt.f32 %v6109_v16 }
0x2d64   :  { %v8328_v63 = vpop.eup %8327 }
0x2d65   :  { %v6118_v18 = vmul.f32 %v8328_v63, %v6070_v45  ;;  %v7853_v45 = vld [vmem:[%s10993_s12 + $0xf8] sm:$0xff]  }
0x2d66   :  { %3931 = vadd.xlane.f32.xlu0 %v3930_v39  ;;  %7718 = vmatpush3.bf16.msra.mxu1 %v7853_v45 }
0x2d67   :  { %v6128_v25 = vmul.f32 %v10819_v14, %v6118_v18  ;;  %7719 = vmatprep.subr.bf16.mxu1 %v8402_v1 }
0x2d68   :  { %v8330_v57 = vpop.eup %8329 }
0x2d69   :  { %v6119_v32 = vmul.f32 %v8330_v57, %v6071_v40  ;;  %v6138_v56 = vadd.f32 %v10823_v38, %v6128_v25  ;;  %v7855_v40 = vld [vmem:[%s10993_s12 + $0xe8] sm:$0xff]  }
0x2d6a   :  { %3928 = vadd.xlane.f32.xlu0 %v3927_v23  ;;  %7720 = vmatpush3.bf16.msra.mxu1 %v7854_v50 }
0x2d6b   :  { %v6129_v20 = vmul.f32 %v10819_v14, %v6119_v32  ;;  %7721 = vmatprep.subr.bf16.mxu1 %v8402_v1 }
0x2d6d   :  { %v10857_v53 = vadd.f32 %v10823_v38, %v6129_v20 }
0x2d6e   :  { %7722 = vmatpush3.bf16.msra.mxu1 %v7855_v40 }
0x2d6f   :  { %v6167_v19 = vpack.c.bf16 %v10857_v53, %v6138_v56  ;;  %7723 = vmatprep.subr.bf16.mxu1 %v8402_v1 }
0x2d70   :  { %v8332_v61 = vpop.eup %8331 }
0x2d71   :  { %7710 = vmatmul.mubr.msk.bf16.gmra.mxu0 %vm213_vm2, %v6167_v19  ;;  %v6121_v48 = vmul.f32 %v8332_v61, %v10811_v7 }
0x2d72   :  { %7713 = vmatprep.mubr.msk.bf16.mxu0 %vm8403_vm0, %v8402_v1  ;;  %7724 = vmatpush3.bf16.msra.mxu1 %v7856_v29 }
0x2d73   :  { %7725 = vmatprep.subr.bf16.mxu1 %v8402_v1  ;;  %v6131_v33 = vmul.f32 %v10819_v14, %v6121_v48 }
0x2d75   :  { %v6141_v8 = vadd.f32 %v10823_v38, %v6131_v33 }
0x2d76   :  { %7726 = vmatpush3.bf16.msra.mxu1 %v7857_v54 }
0x2d77   :  { %7727 = vmatprep.subr.bf16.mxu1 %v8402_v1 }
0x2d7a   :  { %7728 = vmatpush3.bf16.msra.mxu1 %v7858_v47 }
0x2d7b   :  { %7729 = vmatprep.subr.bf16.mxu1 %v8402_v1 }
0x2d7e   :  { %7730 = vmatpush3.bf16.msra.mxu1 %v7859_v5 }
0x2d7f   :  { %7731 = vmatprep.subr.bf16.mxu1 %v8402_v1 }
0x2d82   :  { %7732 = vmatpush3.bf16.msra.mxu1 %v7860_v52 }
0x2deb   :  { %v6094_v0 = vpop.xlane.xlu0 %6093 }
0x2dec   :  { %v6102_v30 = vmul.f32 0.03125, %v6094_v0 }
0x2dee   :  { %v6108_v4 = vadd.f32 1e-12, %v6102_v30 }
0x2def   :  { %v3932_v24 = vpop.xlane.xlu0 %3931 }
0x2df0   :  { %8333 = vrsqrt.f32 %v6108_v4  ;;  %v3934_v43 = vmul.f32 0.03125, %v3932_v24 }
0x2df2   :  { %v10894_v9 = vsub.f32 %v3926_v55, %v3934_v43 }
0x2df3   :  { %v3929_v12 = vpop.xlane.xlu0 %3928 }
0x2df4   :  { %v3933_v22 = vmul.f32 0.03125, %v3929_v12  ;;  %v3938_v49 = vmul.f32 %v10894_v9, %v10894_v9 }
0x2df6   :  { %v10904_v62 = vsub.f32 %v3925_v27, %v3933_v22  ;;  %v3942_v15 = vsel %vm213_vm2, %v3938_v49, 0.0 }
0x2df7   :  { %3943 = vadd.xlane.f32.xlu0 %v3942_v15 }
0x2df8   :  { %v3937_v21 = vmul.f32 %v10904_v62, %v10904_v62 }
0x2dfa   :  { %v3939_v10 = vsel %vm213_vm2, %v3937_v21, 0.0 }
0x2dfb   :  { %3940 = vadd.xlane.f32.xlu0 %v3939_v10 }
0x2dfd   :  { %v8334_v46 = vpop.eup %8333 }
0x2dfe   :  { %v6120_v36 = vmul.f32 %v8334_v46, %v10843_v17 }
0x2dff   :  { %1725 = vadd.xlane.f32.xlu0 %v1724_v6 }
0x2e00   :  { %v6130_v7 = vmul.f32 %v10819_v14, %v6120_v36 }
0x2e01   :  { %v6228_v26 = vpop.f32.mrf.mxu0 }
0x2e02   :  { %v6229_v13 = vadd.f32 %v6228_v26, %v10921_v58  ;;  %v6140_v35 = vadd.f32 %v10823_v38, %v6130_v7 }
0x2e03   :  { %v7707_v55 = vpop.f32.mrf.mxu0 }
0x2e04   :  { %v6251_v44 = vmul.f32 %v6229_v13, %v6229_v13  ;;  %v6168_v17 = vpack.c.bf16 %v6141_v8, %v6140_v35 }
0x2e05   :  { %v6231_v63 = vpop.f32.mrf.mxu0 }
0x2e06   :  { %v6257_v27 = vmul.f32 %v6251_v44, %v6229_v13  ;;  %v6232_v2 = vadd.f32 %v6231_v63, %v10921_v58  ;;  %7714 = vmatmul.mubr.msk.bf16.gmra.mxu0 %vm213_vm2, %v6168_v17 }
0x2e07   :  { %v7708_v18 = vpop.f32.mrf.mxu0  ;;  %7749 = vmatprep.mubr.msk.bf16.mxu0 %vm8403_vm0, %v8402_v1 }
0x2e08   :  { %v6263_v14 = vmul.f32 0.044715, %v6257_v27  ;;  %v6252_v39 = vmul.f32 %v6232_v2, %v6232_v2 }
0x2e0a   :  { %v6269_v57 = vadd.f32 %v6263_v14, %v6229_v13  ;;  %v6258_v32 = vmul.f32 %v6252_v39, %v6232_v2  ;;  %v3962_v14 = vrot.slane %v10838_v41, %v9217_v31 }
0x2e0c   :  { %v6275_v23 = vmul.f32 0.7978846, %v6269_v57  ;;  %v6264_v25 = vmul.f32 0.044715, %v6258_v32 }
0x2e0e   :  { %8335 = vtanh.f32 %v6275_v23  ;;  %v6270_v38 = vadd.f32 %v6264_v25, %v6232_v2 }
0x2e10   :  { %v6276_v20 = vmul.f32 0.7978846, %v6270_v38 }
0x2e12   :  { %8337 = vtanh.f32 %v6276_v20 }
0x2e1b   :  { %v8336_v56 = vpop.eup %8335 }
0x2e1c   :  { %v6287_v19 = vadd.f32 1.0, %v8336_v56 }
0x2e1e   :  { %v6293_v50 = vmul.f32 0.5, %v6287_v19 }
0x2e1f   :  { %v8338_v45 = vpop.eup %8337 }
0x2e20   :  { %v6288_v40 = vadd.f32 1.0, %v8338_v45  ;;  %v6299_v54 = vmul.f32 %v6293_v50, %v6229_v13 }
0x2e22   :  { %v6294_v29 = vmul.f32 0.5, %v6288_v40 }
0x2e24   :  { %v6300_v47 = vmul.f32 %v6294_v29, %v6232_v2  ;;  %v3956_v2 = vrot.slane %v10838_v41, %v9073_v37 }
0x2e26   :  { %v6305_v5 = vpack.c.bf16 %v6300_v47, %v6299_v54 }
0x2e28   :  { %7734 = vmatmul.mubr.bf16.vlgmr.msra.gmra.mxu1 %v6305_v5 }
0x2e29   :  { %7737 = vmatprep.mubr.msk.bf16.mxu1 %vm8403_vm0, %v8402_v1 }
0x2e31   :  { %v6236_v52 = vpop.f32.mrf.mxu0 }
0x2e32   :  { %v6237_v59 = vadd.f32 %v6236_v52, %v10921_v58 }
0x2e33   :  { %v7711_v28 = vpop.f32.mrf.mxu0 }
0x2e34   :  { %v6253_v16 = vmul.f32 %v6237_v59, %v6237_v59 }
0x2e35   :  { %v6239_v0 = vpop.f32.mrf.mxu0 }
0x2e36   :  { %v6259_v30 = vmul.f32 %v6253_v16, %v6237_v59  ;;  %v6240_v4 = vadd.f32 %v6239_v0, %v10921_v58 }
0x2e37   :  { %v7712_v24 = vpop.f32.mrf.mxu0 }
0x2e38   :  { %v6265_v43 = vmul.f32 0.044715, %v6259_v30  ;;  %v6254_v60 = vmul.f32 %v6240_v4, %v6240_v4 }
0x2e3a   :  { %v6271_v12 = vadd.f32 %v6265_v43, %v6237_v59  ;;  %v6260_v22 = vmul.f32 %v6254_v60, %v6240_v4 }
0x2e3c   :  { %v6277_v49 = vmul.f32 0.7978846, %v6271_v12  ;;  %v6266_v15 = vmul.f32 0.044715, %v6260_v22 }
0x2e3e   :  { %8339 = vtanh.f32 %v6277_v49  ;;  %v6272_v61 = vadd.f32 %v6266_v15, %v6240_v4 }
0x2e40   :  { %v6278_v21 = vmul.f32 0.7978846, %v6272_v61 }
0x2e42   :  { %8341 = vtanh.f32 %v6278_v21 }
0x2e4b   :  { %v8340_v11 = vpop.eup %8339 }
0x2e4c   :  { %v6289_v48 = vadd.f32 1.0, %v8340_v11 }
0x2e4e   :  { %v6295_v46 = vmul.f32 0.5, %v6289_v48 }
0x2e4f   :  { %v8342_v10 = vpop.eup %8341 }
0x2e50   :  { %v6290_v36 = vadd.f32 1.0, %v8342_v10  ;;  %v6301_v33 = vmul.f32 %v6295_v46, %v6237_v59 }
0x2e52   :  { %v6296_v6 = vmul.f32 0.5, %v6290_v36  ;;  %v6311_v36 = vrot.slane %v10916_v51, %v8731_v34 }
0x2e54   :  { %v6302_v7 = vmul.f32 %v6296_v6, %v6240_v4 }
0x2e56   :  { %v6306_v26 = vpack.c.bf16 %v6302_v7, %v6301_v33 }
0x2e58   :  { %7738 = vmatmul.mubr.bf16.gmra.mxu1 %v6306_v26 }
0x2e59   :  { %7741 = vmatprep.mubr.msk.bf16.mxu1 %vm8403_vm0, %v8402_v1 }
0x2e80   :  { %v3944_v13 = vpop.xlane.xlu0 %3943 }
0x2e81   :  { %v3946_v35 = vmul.f32 0.03125, %v3944_v13 }
0x2e83   :  { %v3948_v8 = vadd.f32 1e-12, %v3946_v35 }
0x2e84   :  { %v3941_v55 = vpop.xlane.xlu0 %3940 }
0x2e85   :  { %8343 = vrsqrt.f32 %v3948_v8  ;;  %v3945_v44 = vmul.f32 0.03125, %v3941_v55 }
0x2e87   :  { %v3947_v17 = vadd.f32 1e-12, %v3945_v44 }
0x2e88   :  { %v1726_v63 = vpop.xlane.xlu0 %1725 }
0x2e89   :  { %8345 = vrsqrt.f32 %v3947_v17  ;;  %v1727_v27 = vadd.f32 1e-12, %v1726_v63 }
0x2e8b   :  { %8347 = vrsqrt.f32 %v1727_v27 }
0x2e92   :  { %v8344_v18 = vpop.eup %8343 }
0x2e93   :  { %v3952_v39 = vmul.f32 %v8344_v18, %v10894_v9 }
0x2e95   :  { %v3958_v57 = vmul.f32 %v3956_v2, %v3952_v39 }
0x2e96   :  { %v8346_v32 = vpop.eup %8345 }
0x2e97   :  { %v3964_v23 = vadd.f32 %v3962_v14, %v3958_v57  ;;  %v3951_v25 = vmul.f32 %v8346_v32, %v10904_v62 }
0x2e98   :  { %v8348_v38 = vpop.eup %8347 }
0x2e99   :  { %v3957_v20 = vmul.f32 %v3956_v2, %v3951_v25  ;;  %v1729_v56 = vmul.f32 %v8348_v38, %v10902_v3  ;;  %v6454_v19 = vrot.slane %v3964_v23, 7  ;;  %v7861_v38 = vld [vmem:[%s10997_s16 + $0x8] sm:$0xff]  }
0x2e9a   :  { %7746 = vmatpush3.bf16.msra.mxu0 %v7861_v38 }
0x2e9b   :  { %v3963_v45 = vadd.f32 %v3962_v14, %v3957_v20  ;;  %1730 = vst [vmem:[#allocation4] sm:$0x3] %v1729_v56  ;;  %7747 = vmatprep.subr.bf16.mxu0 %v8402_v1  ;;  %v7862_v20 = vld [vmem:[%s10997_s16] sm:$0xff]   ;;  %v6450_v1 = vrot.slane %v10916_v51, %v9217_v31  ;;  %s8406_s16 = smov [#allocation4]  }
0x2e9c   :  { %s6546_s30 = sshll.u32 %s8406_s16, 4  ;;  %s6547_s30 = int_to_ptr.vmem [resolvable:$true] %s6546_s30 }
0x2e9d   :  { %v10946_v50 = vsel %vm1653_vm15, %v3963_v45, %v6454_v19  ;;  %s8358_s11 = scalar_lea.vmem %s6547_s30, 32  ;;  %p8363_p1 = scmp.lt.s32.totalorder %s6547_s30, %s6547_s30 }
0x2e9e   :  { %7748 = vmatpush3.bf16.msra.mxu0 %v7862_v20  ;;  %p8359_p0 = scmp.ne.s32.totalorder %s6547_s30, %s8358_s11  ;;  %p8364_p2 = scmp.lt.s32.totalorder %s8358_s11, %s8358_s11 }
0x2ea0   :  { %p8365_p3 = por %p8364_p2, %p8363_p1 }
0x2ea2   :  { %p8366_p4 = pnand %p8365_p3, %p8359_p0 }
0x2ec6   :  { %v6244_v40 = vpop.f32.mrf.mxu0 }
0x2ec7   :  { %v6245_v41 = vadd.f32 %v6244_v40, %v10921_v58 }
0x2ec8   :  { %v7715_v29 = vpop.f32.mrf.mxu0 }
0x2ec9   :  { %v6255_v9 = vmul.f32 %v6245_v41, %v6245_v41 }
0x2eca   :  { %v6247_v54 = vpop.f32.mrf.mxu0 }
0x2ecb   :  { %v6261_v47 = vmul.f32 %v6255_v9, %v6245_v41  ;;  %v6248_v5 = vadd.f32 %v6247_v54, %v10921_v58  ;;  %v6444_v9 = vrot.slane %v10916_v51, %v9073_v37 }
0x2ecc   :  { %v7716_v62 = vpop.f32.mrf.mxu0 }
0x2ecd   :  { %v6267_v52 = vmul.f32 0.044715, %v6261_v47  ;;  %v6256_v59 = vmul.f32 %v6248_v5, %v6248_v5 }
0x2ecf   :  { %v6273_v28 = vadd.f32 %v6267_v52, %v6245_v41  ;;  %v6262_v3 = vmul.f32 %v6256_v59, %v6248_v5 }
0x2ed1   :  { %v6279_v16 = vmul.f32 0.7978846, %v6273_v28  ;;  %v6268_v0 = vmul.f32 0.044715, %v6262_v3 }
0x2ed3   :  { %8349 = vtanh.f32 %v6279_v16  ;;  %v6274_v30 = vadd.f32 %v6268_v0, %v6248_v5 }
0x2ed5   :  { %v6280_v4 = vmul.f32 0.7978846, %v6274_v30 }
0x2ed7   :  { %8351 = vtanh.f32 %v6280_v4 }
0x2ee0   :  { %v8350_v24 = vpop.eup %8349 }
0x2ee1   :  { %v6291_v43 = vadd.f32 1.0, %v8350_v24 }
0x2ee3   :  { %v6297_v12 = vmul.f32 0.5, %v6291_v43 }
0x2ee4   :  { %v8352_v60 = vpop.eup %8351 }
0x2ee5   :  { %v6292_v22 = vadd.f32 1.0, %v8352_v60  ;;  %v6303_v61 = vmul.f32 %v6297_v12, %v6245_v41 }
0x2ee7   :  { %v6298_v49 = vmul.f32 0.5, %v6292_v22 }
0x2ee8   :  { %v6394_v15 = vpop.f32.mrf.mxu1 }
0x2ee9   :  { %v6304_v58 = vmul.f32 %v6298_v49, %v6248_v5  ;;  %v6395_v7 = vadd.f32 %v6394_v15, %v6311_v36 }
0x2eea   :  { %v7735_v21 = vpop.f32.mrf.mxu1 }
0x2eeb   :  { %v6307_v11 = vpack.c.bf16 %v6304_v58, %v6303_v61  ;;  %v6413_v8 = vadd.f32 %v6395_v7, %v10828_v42 }
0x2eec   :  { %v6397_v48 = vpop.f32.mrf.mxu1 }
0x2eed   :  { %7742 = vmatmul.mubr.bf16.gmra.mxu1 %v6307_v11  ;;  %v6415_v44 = vsel %vm213_vm2, %v6413_v8, 0.0 }
0x2eee   :  { %v7736_v10 = vpop.f32.mrf.mxu1 }
0x2f18   :  { %v6401_v46 = vpop.f32.mrf.mxu1 }
0x2f1a   :  { %v7739_v6 = vpop.f32.mrf.mxu1 }
0x2f1c   :  { %v6403_v33 = vpop.f32.mrf.mxu1 }
0x2f1d   :  { %v6404_v26 = vadd.f32 %v6403_v33, %v6311_v36 }
0x2f1e   :  { %v7740_v13 = vpop.f32.mrf.mxu1 }
0x2f1f   :  { %v6414_v35 = vadd.f32 %v6404_v26, %v10857_v53 }
0x2f21   :  { %v6418_v55 = vsel %vm213_vm2, %v6414_v35, 0.0 }
0x2f22   :  { %6419 = vadd.xlane.f32.xlu1 %v6418_v55 }
0x2f26   :  { %6416 = vadd.xlane.f32.xlu1 %v6415_v44 }
0x2fab   :  { %v6420_v17 = vpop.xlane.xlu1 %6419 }
0x2fac   :  { %v6422_v63 = vmul.f32 0.03125, %v6420_v17 }
0x2fad   :  { %v6408_v27 = vpop.f32.mrf.mxu1 }
0x2fae   :  { %v6424_v2 = vsub.f32 %v6414_v35, %v6422_v63 }
0x2faf   :  { %v6417_v34 = vpop.xlane.xlu1 %6416  ;;  %v7743_v18 = vpop.f32.mrf.mxu1 }
0x2fb0   :  { %v6421_v14 = vmul.f32 0.03125, %v6417_v34  ;;  %v6426_v39 = vmul.f32 %v6424_v2, %v6424_v2 }
0x2fb1   :  { %v6410_v57 = vpop.f32.mrf.mxu1 }
0x2fb2   :  { %v6423_v32 = vsub.f32 %v6413_v8, %v6421_v14  ;;  %v6430_v53 = vsel %vm213_vm2, %v6426_v39, 0.0 }
0x2fb3   :  { %6431 = vadd.xlane.f32.xlu1 %v6430_v53  ;;  %v7744_v42 = vpop.f32.mrf.mxu1 }
0x2fb4   :  { %v6425_v23 = vmul.f32 %v6423_v32, %v6423_v32 }
0x2fb6   :  { %v6427_v25 = vsel %vm213_vm2, %v6425_v23, 0.0 }
0x2fb7   :  { %6428 = vadd.xlane.f32.xlu1 %v6427_v25 }
0x303c   :  { %v6432_v56 = vpop.xlane.xlu1 %6431 }
0x303d   :  { %v6434_v19 = vmul.f32 0.03125, %v6432_v56 }
0x303f   :  { %v6436_v45 = vadd.f32 1e-12, %v6434_v19 }
0x3040   :  { %v6429_v40 = vpop.xlane.xlu1 %6428 }
0x3041   :  { %8353 = vrsqrt.f32 %v6436_v45  ;;  %v6433_v41 = vmul.f32 0.03125, %v6429_v40 }
0x3043   :  { %v6435_v29 = vadd.f32 1e-12, %v6433_v41 }
0x3045   :  { %8355 = vrsqrt.f32 %v6435_v29 }
0x304e   :  { %v8354_v54 = vpop.eup %8353 }
0x304f   :  { %v6440_v47 = vmul.f32 %v8354_v54, %v6424_v2 }
0x3051   :  { %v6446_v5 = vmul.f32 %v6444_v9, %v6440_v47 }
0x3052   :  { %v8356_v62 = vpop.eup %8355 }
0x3053   :  { %v6452_v52 = vadd.f32 %v6450_v1, %v6446_v5  ;;  %v6439_v59 = vmul.f32 %v8356_v62, %v6423_v32 }
0x3055   :  { %v6445_v28 = vmul.f32 %v6444_v9, %v6439_v59  ;;  %v6458_v3 = vrot.slane %v6452_v52, 7 }
0x3057   :  { %v6451_v16 = vadd.f32 %v6450_v1, %v6445_v28 }
0x3059   :  { %v6460_v0 = vsel %vm1653_vm15, %v6451_v16, %v6458_v3 }
0x305a   :  { %v6461_v30 = vmul.f32 %v6460_v0, %v10946_v50 }
0x305c   :  { %v6462_v4 = vpack.c.bf16 %v6461_v30, %v6461_v30 }
0x305e   :  { %7750 = vmatmul.mubr.msk.bf16.vlgmr.msra.gmra.mxu0 %vm213_vm2, %v6462_v4 }
0x305f   :  { %8369 = shalt.err (!%p8366_p4)
}
0x3060   :  { %6549 = dma.vmem_to_hbm [thread:$0]  %s6547_s30, 32, %s11000_s19, [#allocation5]   ;;  %v6889_v37 = vld [vmem:[%s10998_s17] ss:$0 sm:$0xff] }
0x3061   :  { %s8407_s2 = smov [#allocation2]  }
0x3062   :  { %s6536_s4 = sshll.u32 %s8407_s2, 4  ;;  %s6537_s4 = int_to_ptr.vmem [resolvable:$true] %s6536_s4 }
0x3063   :  { %s8378_s23 = scalar_lea.vmem %s6537_s4, 32  ;;  %p8383_p6 = scmp.lt.s32.totalorder %s6537_s4, %s6537_s4 }
0x3064   :  { %p8379_p5 = scmp.ne.s32.totalorder %s6537_s4, %s8378_s23  ;;  %p8384_p7 = scmp.lt.s32.totalorder %s8378_s23, %s8378_s23 }
0x3066   :  { %p8385_p8 = por %p8384_p7, %p8383_p6 }
0x3068   :  { %p8386_p9 = pnand %p8385_p8, %p8379_p5 }
0x311e   :  { %v6523_v31 = vpop.f32.mrf.mxu0 }
0x311f   :  { %v6524_v51 = vadd.f32 %v6889_v37, %v6523_v31 }
0x3120   :  { %v7751_v50 = vpop.f32.mrf.mxu0 }
0x3121   :  { %6529 = vst [vmem:[#allocation2] sm:$0x3] %v6524_v51 }
0x3122   :  { %v6526_v24 = vpop.f32.mrf.mxu0 }
0x3123   :  { %8389 = shalt.err (!%p8386_p9)
}
0x3124   :  { %6539 = dma.vmem_to_hbm [thread:$0]  %s6537_s4, 32, %s10999_s18, [#allocation3]   ;;  %v7752_v43 = vpop.f32.mrf.mxu0 }
0x3125   :  { %8398 = dma.done.wait [#allocation3], 32  }
0x3126   :  { %8399 = vsyncadd [#allocation3], 4294967264 }
0x3127   :  { %8400 = dma.done.wait [#allocation5], 32  }
0x3128   :  { %8401 = vsyncadd [#allocation5], 4294967264 }
0x3129   :  { %6556 = vsyncpa [#allocation3], 1 }
0x312a   :  { %6557 = vsyncpa [#allocation5], 1 }

</bundles_post_ra>
